<compile_context>
chip_gen: v6e
topology: v6e:2x2x1
jax: 0.10.0
libtpu: 0.0.40
codegen_flags: <defaults>
</compile_context>

<pallas_src>
import jax
import jax.numpy as jnp
from jax.experimental import pallas as pl
from jax.experimental.pallas import tpu as pltpu

ALPHA = 0.1
LANES = 128
MAX_BLOCK_ROWS = 8192        # 8192 x 128 x 4B = 4 MiB per f32 buffer
FAST_PATH_BYTES = 1 << 20    # below ~1 MiB a pallas_call is pure fixed overhead


def _leaky_softplus_math(x, alpha):
    # == alpha*x + (1-alpha)*(log1p(exp(-|x|)) + max(x, 0))  for 0 <= alpha <= 1
    return jnp.maximum(x, alpha * x) + (1.0 - alpha) * jnp.log1p(jnp.exp(-jnp.abs(x)))


def _make_kernel(compute_dtype, alpha):
    def kernel(x_ref, o_ref):
        x = x_ref[...].astype(compute_dtype)   # no-op when compute_dtype == I/O dtype
        o_ref[...] = _leaky_softplus_math(x, alpha).astype(o_ref.dtype)
    return kernel


def _min_sublanes(dtype) -> int:
    # sublane packing requirement per dtype width
    return {4: 8, 2: 16, 1: 32}.get(jnp.dtype(dtype).itemsize, 8)


def _round_up(v: int, m: int) -> int:
    return ((v + m - 1) // m) * m


def _compute_dtype_for(dtype):
    dt = jnp.dtype(dtype)
    if dt == jnp.dtype(jnp.float32):
        return jnp.float32
    # v5x has no bf16 VPU/EUP -> upcast to f32 there; v6e/v7x run native bf16.
    try:
        kind = jax.devices()[0].device_kind.lower()
    except Exception:
        kind = ""
    if "v5" in kind:
        return jnp.float32
    return dt


def leaky_softplus(x: jax.Array, alpha: float = ALPHA) -> jax.Array:
    orig_shape = x.shape
    dtype = x.dtype
    n = x.size

    # ---- tiny-input fast path: fused XLA elementwise beats any kernel launch.
    if n == 0 or n * jnp.dtype(dtype).itemsize < FAST_PATH_BYTES:
        return _leaky_softplus_math(x, alpha).astype(dtype)

    # ---- Pallas streaming path (bandwidth-bound elementwise).
    flat = x.reshape(-1)                     # contiguous reshape: bitcast, no HBM pass
    n_main = (n // LANES) * LANES            # 128-aligned prefix handled by the kernel
    main = flat if n_main == n else flat[:n_main]

    rows = n_main // LANES
    x2d = main.reshape(rows, LANES)

    sublanes = _min_sublanes(dtype)
    # >= 2 grid steps so v7x's two TensorCores both get work; <= ~4 MiB / buffer.
    num_blocks = max(2, pl.cdiv(rows, MAX_BLOCK_ROWS))
    block_rows = min(_round_up(pl.cdiv(rows, num_blocks), sublanes), rows)
    grid = (pl.cdiv(rows, block_rows),)      # partial last block clipped by the pipeline

    kernel = _make_kernel(_compute_dtype_for(dtype), alpha)
    out2d = pl.pallas_call(
        kernel,
        out_shape=jax.ShapeDtypeStruct((rows, LANES), dtype),
        grid=grid,
        in_specs=[pl.BlockSpec((block_rows, LANES), lambda i: (i, 0))],
        out_specs=pl.BlockSpec((block_rows, LANES), lambda i: (i, 0)),
        compiler_params=pltpu.CompilerParams(
            # independent elementwise tiles: let megacore / v7x shard the steps
            dimension_semantics=("parallel",),
        ),
    )(x2d)

    out_flat = out2d.reshape(-1)
    if n_main != n:
        # < 128-element tail: plain jnp (avoids full-array pad + slice HBM passes).
        tail_out = _leaky_softplus_math(flat[n_main:], alpha).astype(dtype)
        out_flat = jnp.concatenate([out_flat, tail_out])
    return out_flat.reshape(orig_shape)


def leaky_softplus_ref(x: jax.Array, alpha: float = ALPHA) -> jax.Array:
    xf = x.astype(jnp.float32)
    softplus = jnp.log1p(jnp.exp(-jnp.abs(xf))) + jnp.maximum(xf, 0.0)
    return alpha * xf + (1.0 - alpha) * softplus


if __name__ == "__main__":
    key = jax.random.PRNGKey(0)
    k1, k2, k3, k4 = jax.random.split(key, 4)

    # 1) Shape matching the PyTorch module's typical NCHW use (2, 4, 16, 16).
    #    Tiny (8 KiB) -> fused-jnp fast path.
    x1 = jax.random.normal(k1, (2, 4, 16, 16), dtype=jnp.float32) * 3.0
    o1 = jax.block_until_ready(leaky_softplus(x1))
    assert o1.shape == x1.shape and o1.dtype == x1.dtype
    assert jnp.allclose(o1, leaky_softplus_ref(x1), atol=1e-5, rtol=1e-5)

    # 2) Larger f32 input -> Pallas path (128-aligned, >= 2 grid steps).
    x2 = jax.random.normal(k2, (4, 64, 32, 64), dtype=jnp.float32) * 3.0
    o2 = jax.block_until_ready(leaky_softplus(x2))
    assert jnp.allclose(o2, leaky_softplus_ref(x2), atol=1e-5, rtol=1e-5)

    # 3) bf16 input -> native-bf16 compute on bf16-capable chips (f32 on v5x).
    x3 = jax.random.normal(k3, (8, 64, 32, 64), dtype=jnp.bfloat16) * 3.0
    o3 = jax.block_until_ready(leaky_softplus(x3))
    assert o3.dtype == jnp.bfloat16
    assert jnp.allclose(o3.astype(jnp.float32), leaky_softplus_ref(x3),
                        atol=1e-1, rtol=5e-2)

    # 4) Ragged (non-128-multiple) large input -> partial last block + jnp tail.
    x4 = jax.random.normal(k4, (3, 1000, 173), dtype=jnp.float32) * 3.0
    o4 = jax.block_until_ready(leaky_softplus(x4))
    assert jnp.allclose(o4, leaky_softplus_ref(x4), atol=1e-5, rtol=1e-5)

    print("KERNEL_OK")
</pallas_src>

<mosaic_0001>
module attributes {stable_mosaic.version = 11 : i64} {
  func.func @kernel(%arg0: i32, %arg1: memref<2048x128xf32, #tpu.memory_space<vmem>>, %arg2: memref<2048x128xf32, #tpu.memory_space<vmem>>) attributes {dimension_semantics = [#tpu.dimension_semantics<parallel>], iteration_bounds = array<i64: 2>, scalar_prefetch = 0 : i64, scratch_operands = 0 : i64, tpu.core_type = #tpu.core_type<tc>, window_params = [{transform_indices = @transform_0, window_bounds = array<i64: 2048, 128>}, {transform_indices = @transform_1, window_bounds = array<i64: 2048, 128>}]} {
    %c0 = arith.constant 0 : index
    %c0_0 = arith.constant 0 : index
    %0 = vector.load %arg1[%c0, %c0_0] : memref<2048x128xf32, #tpu.memory_space<vmem>>, vector<2048x128xf32>
    %cst = arith.constant 1.000000e-01 : f32
    %1 = vector.broadcast %cst : f32 to vector<2048x128xf32>
    %2 = arith.mulf %1, %0 : vector<2048x128xf32>
    %3 = arith.maximumf %0, %2 : vector<2048x128xf32>
    %4 = math.absf %0 : vector<2048x128xf32>
    %cst_1 = arith.constant 0.000000e+00 : f32
    %5 = vector.broadcast %cst_1 : f32 to vector<2048x128xf32>
    %6 = arith.subf %5, %4 : vector<2048x128xf32>
    %7 = math.exp %6 : vector<2048x128xf32>
    %8 = math.log1p %7 : vector<2048x128xf32>
    %cst_2 = arith.constant 0.899999976 : f32
    %9 = vector.broadcast %cst_2 : f32 to vector<2048x128xf32>
    %10 = arith.mulf %9, %8 : vector<2048x128xf32>
    %11 = arith.addf %3, %10 : vector<2048x128xf32>
    %c0_3 = arith.constant 0 : index
    %c0_4 = arith.constant 0 : index
    %12 = vector.load %arg2[%c0_3, %c0_4] : memref<2048x128xf32, #tpu.memory_space<vmem>>, vector<2048x128xf32>
    tpu.vector_store %arg2[%c0_3, %c0_4], %11 {strides = array<i32>} : memref<2048x128xf32, #tpu.memory_space<vmem>>, vector<2048x128xf32>,
    return
  }
  func.func @transform_0(%arg0: i32) -> (i32, i32) {
    %c0_i32 = arith.constant 0 : i32
    %c0_i32_0 = arith.constant 0 : i32
    return %arg0, %c0_i32 : i32, i32
  }
  func.func @transform_1(%arg0: i32) -> (i32, i32) {
    %c0_i32 = arith.constant 0 : i32
    %c0_i32_0 = arith.constant 0 : i32
    return %arg0, %c0_i32 : i32, i32
  }
}

</mosaic_0001>

<bundles_post_ra>
// kernel: tpu_custom_call.1
= control target key start
LH: loop header
LB: loop body
LE: loop exit
PB: predicated region body
PF: predicated region fallthrough
CT: control target
= control target key end

     0   :  { %6 = vsyncpa [#allocation3], 0  ;;  %s12199_s0 = inlined_call_operand.hbm [shape: f32[4096,128], index: 0, kind: input, shape index: {}]   ;;  %s12200_s1 = inlined_call_operand.hbm [shape: f32[4096,128], index: 1, kind: output, shape index: {}]  }
   0x1   :  { %8 = vsyncpa [#allocation3 + $0x1], 0 }
   0x2   :  { %9 = vsyncpa [#allocation4], 0 }
   0x3   :  { %11 = vsyncpa [#allocation4 + $0x1], 0  ;;  %s6288_s6 = smov 0   ;;  %s6290_s7 = smov 0  }
   0x4   :  { %s6292_s8 = smov 0   ;;  %s6294_s9 = smov 0  }
   0x5 LB: > { %s6309_s10 = sadd.s32 4294967295, %s6270_s9   ;;  %s5088_s11 = sadd.s32 4294967294, %s6270_s9   ;;  %s6270_s9 = sphi %s6294_s9, %s12721_s9   ;;  %s6266_s8 = sphi %s6292_s8, %s12720_s8   ;;  %s6262_s7 = sphi %s6290_s7, %s12719_s7   ;;  %s6258_s6 = sphi %s6288_s6, %s12718_s6  }
   0x6   : > { %s6313_s12 = sadd.s32 1, %s6270_s9   ;;  %s24_s13 = sadd.s32 1, %s6266_s8 }
   0x7   : > { %s21_s14 = ssub.s32 %s6270_s9, %s6313_s12  ;;  %p31_p0 = scmp.ne.s32.totalorder %s6266_s8, %s6262_s7 }
   0x8   : > { %p22_p1 = scmp.eq.s32.totalorder %s21_s14, 0  ;;  %p32_p2 = scmp.eq.s32.totalorder %s6270_s9, 0 }
   0x9   : > { %p37_p3 = scmp.ne.s32.totalorder %s6262_s7, %s6258_s6  ;;  %p38_p4 = scmp.eq.s32.totalorder %s6309_s10, 0 }
   0xa   : > { %s6325_s15 = scalar_select %p22_p1, %s6266_s8, %s24_s13  }
   0xb   : > { %p6327_p5 = por %p32_p2, %p31_p0  ;;  %p6331_p6 = por %p38_p4, %p37_p3 }
   0xc   : > { %p61_p7 = scmp.eq.s32.totalorder %s6309_s10, 1  ;;  %p67_p8 = scmp.eq.s32.totalorder %s5088_s11, 1 }
   0xd   : > { %s12204_s17 = scalar_select %p6331_p6, 1, 0 }
   0xe   : > { %p5116_p10 = scmp.lt.s32.totalorder %s6270_s9, 2  ;;  %p6338_p11 = por %p61_p7, %p31_p0 }
   0xf   : > { %p6342_p12 = por %p67_p8, %p37_p3  ;;  %s87_s20 = sand.u32 1, %s6266_s8  }
  0x10   : > { %s12205_s18 = scalar_select %p6338_p11, 1, 0 }
  0x11   : > { %s12206_s19 = scalar_select %p6342_p12, 1, 0 }
  0x12   : > { %s5102_s21 = sshll.u32 %s6270_s9, 15  ;;  %s5091_s22 = sshll.u32 %s87_s20, 11 }
  0x13   : > { %s6351_s25 = scalar_lea.hbm %s12199_s0, %s5102_s21  ;;  %s91_s26 = scalar_lea.vmem [#allocation2], %s5091_s22 }
  0x14   : > { %s98_s27 = sshll.u32 %s91_s26, 4  ;;  %p6355_p13 = pnand %p5116_p10, %p6327_p5  ;;  %s6359_s27 = int_to_ptr.vmem [resolvable:$true] %s98_s27 }
  0x15   : > { %s6361_s29 = scalar_lea.sflag [#allocation3], %s87_s20  ;;  %s6178_s30 = scalar_lea.hbm %s6351_s25, 32768 }
  0x16   : > { %p6179_p0 = scmp.ne.s32.totalorder %s6351_s25, %s6178_s30  ;;  %p6180_p1 = pneg %p6355_p13 }
  0x17   : > { %s6183_s4 = scalar_lea.hbm %s12199_s0, 65536  ;;  %p6184_p4 = scmp.lt.s32.totalorder %s6351_s25, %s12199_s0 }
  0x18   : > { %p6181_p2 = pnand %p6180_p1, %p6179_p0  ;;  %p6185_p5 = scmp.lt.s32.totalorder %s6183_s4, %s6178_s30 }
  0x1a   : > { %p6182_p3 = pneg %p6181_p2  ;;  %p6186_p7 = por %p6185_p5, %p6184_p4 }
  0x1c   : > { %p6187_p8 = pnand %p6186_p7, %p6182_p3 }
  0x1e   : > { %6190 = shalt.err (!%p6187_p8)
}
  0x1f   : > { %s6191_s13 = scalar_lea.vmem %s6359_s27, 32768  ;;  %s6272_s14 = smov [#allocation2]  }
  0x20   : > { %p6192_p10 = scmp.ne.s32.totalorder %s6359_s27, %s6191_s13  ;;  %s6196_s16 = sshll.u32 %s6272_s14, 4  ;;  %s6197_s16 = int_to_ptr.vmem [resolvable:$false] %s6196_s16 }
  0x21   : > { %s6198_s20 = scalar_lea.vmem %s6197_s16, 65536  ;;  %p6199_p2 = scmp.lt.s32.totalorder %s6359_s27, %s6197_s16 }
  0x22   : > { %p6194_p9 = pnand %p6192_p10, %p6180_p1  ;;  %p6200_p12 = scmp.lt.s32.totalorder %s6198_s20, %s6191_s13 }
  0x24   : > { %p6195_p0 = pneg %p6194_p9  ;;  %p6201_p11 = por %p6200_p12, %p6199_p2 }
  0x26   : > { %p6202_p6 = pnand %p6201_p11, %p6195_p0 }
  0x28   : > { %6205 = shalt.err (!%p6202_p6)
}
  0x29   : > { %s6273_s21 = smov 128   ;;  %s6274_s22 = smov 8  }
  0x2a   : > { %5111 = dma.hbm_to_vmem [thread:$0]  (!%p6355_p13), %s6351_s25, 32768, %s6359_s27, %s6361_s29, %s6273_s21, %s6273_s21, %s6274_s22  }
  0x2b   : > { %p5094_p9 = scmp.ge.s32.totalorder %s6270_s9, 1  ;;  %p106_p1 = scmp.lt.s32.totalorder %s6270_s9, 3 }
  0x2d   : > { %p107_p3 = pnand %p5094_p9, %p106_p1 }
  0x2e   : > { %s6385_s23 = sand.u32 (!%p107_p3), 1, %s6262_s7   ;;  %p12208_p6 = scmp.ne.s32.totalorder (!%p107_p3), %s12204_s17, 0 }
  0x2f   : > { %110 = sbr.rel (%p107_p3) target bundleno = 1177 (0x499), region = 24  ;;  %s5095_s24 = sshll.u32 (!%p107_p3), %s6385_s23, 11 }
  0x30   : > { %s113_s26 = scalar_lea.sflag (!%p107_p3), [#allocation3], %s6385_s23  ;;  %s6391_s30 = scalar_lea.vmem (!%p107_p3), [#allocation2], %s5095_s24 }
  0x34   : > { %6249 = dma.done.wait (%p12208_p6), %s113_s26, 32768  }
  0x35   : > { %6251 = vsyncadd (%p12208_p6), %s113_s26, 4294934528  ;;  %v6398_v0 = vld [vmem:[%s6391_s30] sm:$0xff]  ;;  %v6401_v1 = vld [vmem:[%s6391_s30 + $0x8] sm:$0xff]  ;;  %s6574_s17 = scalar_lea.vmem [#allocation5], %s5095_s24  ;;  %s5103_s25 = sshll.u32 %s6309_s10, 15 }
  0x36   : > { %v6404_v2 = vld [vmem:[%s6391_s30 + $0x10] sm:$0xff]  ;;  %v905_v3 = vand.u32 2147483647, %v6398_v0  ;;  %v906_v4 = vand.u32 2147483647, %v6401_v1  ;;  %v6410_v7 = vld [vmem:[%s6391_s30 + $0x18] sm:$0xff]  ;;  %s12153_s2 = scalar_lea.hbm %s12200_s1, %s5103_s25 }
  0x37   : > { %v907_v5 = vand.u32 2147483647, %v6404_v2  ;;  %v6413_v8 = vld [vmem:[%s6391_s30 + $0x20] sm:$0xff]  ;;  %v908_v12 = vand.u32 2147483647, %v6410_v7  ;;  %v6417_v13 = vld [vmem:[%s6391_s30 + $0x28] sm:$0xff] }
  0x38   : > { %v1161_v6 = vsub.f32 0.0, %v905_v3  ;;  %v1162_v9 = vsub.f32 0.0, %v906_v4  ;;  %v6420_v14 = vld [vmem:[%s6391_s30 + $0x30] sm:$0xff]  ;;  %v909_v17 = vand.u32 2147483647, %v6413_v8  ;;  %v6428_v22 = vld [vmem:[%s6391_s30 + $0x38] sm:$0xff] }
  0x39   : > { %v1163_v10 = vsub.f32 0.0, %v907_v5  ;;  %v1164_v18 = vsub.f32 0.0, %v908_v12  ;;  %v6424_v19 = vmul.f32 0.1, %v6398_v0  ;;  %v910_v21 = vand.u32 2147483647, %v6417_v13 }
  0x3a   : > { %v1417_v11 = vmul.f32 1.442695, %v1161_v6  ;;  %v1419_v15 = vmul.f32 1.442695, %v1162_v9  ;;  %v1165_v20 = vsub.f32 0.0, %v909_v17  ;;  %v6432_v25 = vld [vmem:[%s6391_s30 + $0x40] sm:$0xff] }
  0x3b   : > { %v1421_v16 = vmul.f32 1.442695, %v1163_v10  ;;  %v1423_v23 = vmul.f32 1.442695, %v1164_v18  ;;  %v911_v24 = vand.u32 2147483647, %v6420_v14 }
  0x3c   : > { %5154 = vpow2.f32 %v1417_v11  ;;  %v6435_v26 = vmul.f32 0.1, %v6401_v1  ;;  %v1425_v27 = vmul.f32 1.442695, %v1165_v20  ;;  %v1166_v28 = vsub.f32 0.0, %v910_v21  ;;  %v6442_v32 = vld [vmem:[%s6391_s30 + $0x48] sm:$0xff] }
  0x3d   : > { %5156 = vpow2.f32 %v1419_v15  ;;  %v6438_v29 = vmul.f32 0.1, %v6404_v2  ;;  %v1167_v30 = vsub.f32 0.0, %v911_v24  ;;  %v912_v31 = vand.u32 2147483647, %v6428_v22  ;;  %v6446_v35 = vld [vmem:[%s6391_s30 + $0x50] sm:$0xff] }
  0x3e   : > { %5158 = vpow2.f32 %v1421_v16  ;;  %v1427_v33 = vmul.f32 1.442695, %v1166_v28  ;;  %v913_v34 = vand.u32 2147483647, %v6432_v25  ;;  %v6449_v36 = vmul.f32 0.1, %v6410_v7 }
  0x3f   : > { %5160 = vpow2.f32 %v1423_v23  ;;  %v1429_v37 = vmul.f32 1.442695, %v1167_v30  ;;  %v1168_v38 = vsub.f32 0.0, %v912_v31  ;;  %v6452_v39 = vmul.f32 0.1, %v6413_v8  ;;  %v6463_v48 = vld [vmem:[%s6391_s30 + $0x58] sm:$0xff] }
  0x40   : > { %5162 = vpow2.f32 %v1425_v27  ;;  %v1169_v40 = vsub.f32 0.0, %v913_v34  ;;  %v914_v41 = vand.u32 2147483647, %v6442_v32  ;;  %v6456_v42 = vmul.f32 0.1, %v6417_v13  ;;  %v6481_v59 = vld [vmem:[%s6391_s30 + $0x60] sm:$0xff] }
  0x41   : > { %5164 = vpow2.f32 %v1427_v33  ;;  %v1431_v43 = vmul.f32 1.442695, %v1168_v38  ;;  %v915_v44 = vand.u32 2147483647, %v6446_v35  ;;  %v6460_v45 = vmul.f32 0.1, %v6420_v14 }
  0x42   : > { %5166 = vpow2.f32 %v1429_v37  ;;  %v1433_v46 = vmul.f32 1.442695, %v1169_v40  ;;  %v1170_v47 = vsub.f32 0.0, %v914_v41  ;;  %v6466_v49 = vmul.f32 0.1, %v6428_v22  ;;  %v6498_v27 = vld [vmem:[%s6391_s30 + $0x68] sm:$0xff] }
  0x43   : > { %5168 = vpow2.f32 %v1431_v43  ;;  %v6469_v50 = vmul.f32 0.1, %v6432_v25  ;;  %v1171_v51 = vsub.f32 0.0, %v915_v44  ;;  %v916_v58 = vand.u32 2147483647, %v6463_v48  ;;  %s5015_s27 = sshll.u32 %s6574_s17, 4  ;;  %s12155_s27 = int_to_ptr.vmem [resolvable:$true] %s5015_s27 }
  0x44   : > { %5170 = vpow2.f32 %v1433_v46  ;;  %v1435_v54 = vmul.f32 1.442695, %v1170_v47  ;;  %v917_v15 = vand.u32 2147483647, %v6481_v59  ;;  %v6495_v17 = vmul.f32 0.1, %v6442_v32 }
  0x45   : > { %v1437_v57 = vmul.f32 1.442695, %v1171_v51  ;;  %v1172_v18 = vsub.f32 0.0, %v916_v58  ;;  %v6501_v38 = vmul.f32 0.1, %v6446_v35  ;;  %s5002_s3 = scalar_lea.sflag [#allocation4], %s6385_s23 }
  0x46   : > { %5172 = vpow2.f32 %v1435_v54  ;;  %v6503_v40 = vsub.f32 0.0, %v917_v15  ;;  %s6206_s4 = scalar_lea.vmem %s12155_s27, 32768  ;;  %p12715_p12 = scmp.ne.s32.totalorder %s12205_s18, 0 }
  0x47   : > { %5174 = vpow2.f32 %v1437_v57  ;;  %v6510_v58 = vmul.f32 1.442695, %v1172_v18  ;;  %p6207_p11 = scmp.ne.s32.totalorder %s12155_s27, %s6206_s4  ;;  %s6275_s10 = smov [#allocation5]  }
  0x48   : > { %s6210_s5 = sshll.u32 %s6275_s10, 4  ;;  %s6211_s5 = int_to_ptr.vmem [resolvable:$false] %s6210_s5 }
  0x49   : > { %v5155_v60 = vpop.eup %5154  ;;  %p6208_p13 = pnand %p6207_p11, %p12715_p12  ;;  %s6212_s11 = scalar_lea.vmem %s6211_s5, 65536 }
  0x4a   : > { %v5157_v3 = vpop.eup %5156  ;;  %v1929_v4 = vadd.f32 1.0, %v5155_v60  ;;  %v1932_v5 = vmul.f32 -0.5, %v5155_v60  ;;  %v1935_v23 = vand.u32 2147483647, %v5155_v60  ;;  %p6213_p5 = scmp.lt.s32.totalorder %s12155_s27, %s6211_s5  ;;  %p6214_p7 = scmp.lt.s32.totalorder %s6212_s11, %s6206_s4 }
  0x4b   : > { %v5159_v10 = vpop.eup %5158  ;;  %v1938_v11 = vadd.f32 1.0, %v5157_v3  ;;  %v1941_v12 = vmul.f32 -0.5, %v5157_v3  ;;  %v1944_v31 = vand.u32 2147483647, %v5157_v3  ;;  %p6209_p4 = pneg %p6208_p13 }
  0x4c   : > { %5176 = vlog2.f32 %v1929_v4  ;;  %v1947_v16 = vadd.f32 1.0, %v5159_v10  ;;  %v5161_v20 = vpop.eup %5160  ;;  %v1933_v21 = vadd.f32 1.0, %v1932_v5  ;;  %v1950_v24 = vmul.f32 -0.5, %v5159_v10  ;;  %p6215_p8 = por %p6214_p7, %p6213_p5 }
  0x4d   : > { %5178 = vlog2.f32 %v1938_v11  ;;  %v5163_v28 = vpop.eup %5162  ;;  %v1942_v30 = vadd.f32 1.0, %v1941_v12  ;;  %v1956_v33 = vadd.f32 1.0, %v5161_v20  ;;  %v1953_v34 = vand.u32 2147483647, %v5159_v10 }
  0x4e   : > { %5180 = vlog2.f32 %v1947_v16  ;;  %v1959_v37 = vmul.f32 -0.5, %v5161_v20  ;;  %v5165_v41 = vpop.eup %5164  ;;  %v1965_v43 = vadd.f32 1.0, %v5163_v28  ;;  %v1968_v44 = vmul.f32 -0.5, %v5163_v28  ;;  %p6216_p10 = pnand %p6215_p8, %p6209_p4 }
  0x4f   : > { %5182 = vlog2.f32 %v1956_v33  ;;  %v5167_v47 = vpop.eup %5166  ;;  %v1934_v51 = vmul.f32 %v5155_v60, %v1933_v21  ;;  %vm6506_vm0 = vcmp.lt.f32.partialorder %v1935_v23, 0.0004427343  ;;  %v1951_v57 = vadd.f32 1.0, %v1950_v24 }
  0x50   : > { %v1943_v4 = vmul.f32 %v5157_v3, %v1942_v30  ;;  %vm6512_vm1 = vcmp.lt.f32.partialorder %v1944_v31, 0.0004427343  ;;  %5184 = vlog2.f32 %v1965_v43  ;;  %v1974_v11 = vadd.f32 1.0, %v5165_v41  ;;  %v5169_v15 = vpop.eup %5168 }
  0x51   : > { %v1977_v12 = vmul.f32 -0.5, %v5165_v41  ;;  %vm6516_vm2 = vcmp.lt.f32.partialorder %v1953_v34, 0.0004427343  ;;  %v1960_v60 = vadd.f32 1.0, %v1959_v37  ;;  %v1962_v21 = vand.u32 2147483647, %v5161_v20  ;;  %v6520_v33 = vpop.eup %5170 }
  0x52   : > { %v1983_v23 = vadd.f32 1.0, %v5167_v47  ;;  %v1969_v18 = vadd.f32 1.0, %v1968_v44  ;;  %v1971_v24 = vand.u32 2147483647, %v5163_v28  ;;  %5186 = vlog2.f32 %v1974_v11 }
  0x53   : > { %v1986_v3 = vmul.f32 -0.5, %v5167_v47  ;;  %v1952_v30 = vmul.f32 %v5159_v10, %v1951_v57  ;;  %v1980_v31 = vand.u32 2147483647, %v5165_v41  ;;  %v1992_v43 = vadd.f32 1.0, %v5169_v15  ;;  %v6522_v9 = vpop.eup %5172 }
  0x54   : > { %5188 = vlog2.f32 %v1983_v23  ;;  %v1978_v6 = vadd.f32 1.0, %v1977_v12  ;;  %v1989_v63 = vand.u32 2147483647, %v5167_v47  ;;  %v1995_v62 = vmul.f32 -0.5, %v5169_v15  ;;  %v6529_v11 = vpop.eup %5174 }
  0x55   : > { %v1987_v34 = vadd.f32 1.0, %v1986_v3  ;;  %v1961_v61 = vmul.f32 %v5161_v20, %v1960_v60  ;;  %vm6524_vm3 = vcmp.lt.f32.partialorder %v1962_v21, 0.0004427343  ;;  %5190 = vlog2.f32 %v1992_v43 }
  0x56   : > { %v2001_v44 = vadd.f32 1.0, %v6520_v33  ;;  %v1970_v10 = vmul.f32 %v5163_v28, %v1969_v18  ;;  %vm6531_vm4 = vcmp.lt.f32.partialorder %v1971_v24, 0.0004427343  ;;  %v1998_v23 = vand.u32 2147483647, %v5169_v15 }
  0x57   : > { %v2004_v12 = vmul.f32 -0.5, %v6520_v33  ;;  %vm6536_vm5 = vcmp.lt.f32.partialorder %v1980_v31, 0.0004427343  ;;  %v1996_v60 = vadd.f32 1.0, %v1995_v62  ;;  %v2010_v21 = vadd.f32 1.0, %v6522_v9 }
  0x58   : > { %5192 = vlog2.f32 %v2001_v44  ;;  %v1979_v56 = vmul.f32 %v5165_v41, %v1978_v6  ;;  %v1988_v28 = vmul.f32 %v5167_v47, %v1987_v34  ;;  %vm6541_vm6 = vcmp.lt.f32.partialorder %v1989_v63, 0.0004427343 }
  0x59   : > { %v5177_v3 = vpop.eup %5176  ;;  %v2007_v53 = vand.u32 2147483647, %v6520_v33  ;;  %5194 = vlog2.f32 %v2010_v21  ;;  %v2013_v31 = vmul.f32 -0.5, %v6522_v9  ;;  %vm6549_vm7 = vcmp.lt.f32.partialorder %v1998_v23, 0.0004427343 }
  0x5a   : > { %v5179_v43 = vpop.eup %5178  ;;  %v1931_v46 = vmul.f32 0.6931472, %v5177_v3  ;;  %v2005_v6 = vadd.f32 1.0, %v2004_v12  ;;  %v2019_v63 = vadd.f32 1.0, %v6529_v11  ;;  %v1997_v3 = vmul.f32 %v5169_v15, %v1996_v60 }
  0x5b   : > { %v5181_v24 = vpop.eup %5180  ;;  %v1940_v55 = vmul.f32 0.6931472, %v5179_v43  ;;  %v2016_v21 = vand.u32 2147483647, %v6522_v9  ;;  %v12225_v23 = vmax.f32 %v6398_v0, %v6424_v19  ;;  %vm6562_vm8 = vcmp.lt.f32.partialorder %v2007_v53, 0.0004427343 }
  0x5c   : > { %v1937_v62 = vsel %vm6506_vm0, %v1934_v51, %v1931_v46  ;;  %v1949_v44 = vmul.f32 0.6931472, %v5181_v24  ;;  %v5183_v41 = vpop.eup %5182  ;;  %5196 = vlog2.f32 %v2019_v63  ;;  %v12229_v0 = vmax.f32 %v6404_v2, %v6438_v29 }
  0x5d   : > { %v4233_v47 = vmul.f32 0.9, %v1937_v62  ;;  %v1946_v34 = vsel %vm6512_vm1, %v1943_v4, %v1940_v55  ;;  %v1958_v51 = vmul.f32 0.6931472, %v5183_v41  ;;  %v5185_v54 = vpop.eup %5184  ;;  %v2014_v55 = vadd.f32 1.0, %v2013_v31 }
  0x5e   : > { %v4234_v43 = vmul.f32 0.9, %v1946_v34  ;;  %v1955_v46 = vsel %vm6516_vm2, %v1952_v30, %v1949_v44  ;;  %v12228_v4 = vmax.f32 %v6401_v1, %v6435_v26  ;;  %v1967_v30 = vmul.f32 0.6931472, %v5185_v54 }
  0x5f   : > { %v4489_v12 = vadd.f32 %v4233_v47, %v12225_v23  ;;  %v4235_v24 = vmul.f32 0.9, %v1955_v46  ;;  %v1964_v16 = vsel %vm6524_vm3, %v1961_v61, %v1958_v51  ;;  %5198 = vpow2.f32 %v6510_v58  ;;  %v5187_v60 = vpop.eup %5186  ;;  %v6586_v61 = vld [vmem:[%s6391_s30 + $0x70] sm:$0xff]  ;;  %v6610_v46 = vld [vmem:[%s6391_s30 + $0x78] sm:$0xff] }
  0x60   : > { %v4490_v15 = vadd.f32 %v4234_v43, %v12228_v4  ;;  %v4236_v1 = vmul.f32 0.9, %v1964_v16  ;;  %v2006_v26 = vmul.f32 %v6520_v33, %v2005_v6  ;;  %vm6581_vm9 = vcmp.lt.f32.partialorder %v2016_v21, 0.0004427343  ;;  %v6623_v16 = vld [vmem:[%s6391_s30 + $0x80] sm:$0xff] }
  0x61   : > { %4745 = vst [vmem:[%s6574_s17] sm:$0xff] %v4489_v12  ;;  %v4491_v19 = vadd.f32 %v4235_v24, %v12229_v0  ;;  %v5189_v58 = vpop.eup %5188  ;;  %v1973_v37 = vsel %vm6531_vm4, %v1970_v10, %v1967_v30  ;;  %v1976_v31 = vmul.f32 0.6931472, %v5187_v60  ;;  %v2022_v62 = vmul.f32 -0.5, %v6529_v11  ;;  %v6637_v0 = vld [vmem:[%s6391_s30 + $0x88] sm:$0xff] }
  0x62   : > { %4746 = vst [vmem:[%s6574_s17 + $0x8] sm:$0xff] %v4490_v15  ;;  %v1441_v2 = vmul.f32 1.442695, %v6503_v40  ;;  %v12232_v29 = vmax.f32 %v6410_v7, %v6449_v36  ;;  %v4237_v44 = vmul.f32 0.9, %v1973_v37  ;;  %v5191_v47 = vpop.eup %5190  ;;  %v2015_v57 = vmul.f32 %v6522_v9, %v2014_v55 }
  0x63   : > { %4747 = vst [vmem:[%s6574_s17 + $0x10] sm:$0xff] %v4491_v19  ;;  %v1985_v6 = vmul.f32 0.6931472, %v5189_v58  ;;  %v12233_v63 = vand.u32 2147483647, %v6498_v27  ;;  %v1982_v10 = vsel %vm6536_vm5, %v1979_v56, %v1976_v31  ;;  %v12234_v7 = vmax.f32 %v6413_v8, %v6452_v39 }
  0x64   : > { %v4492_v33 = vadd.f32 %v4236_v1, %v12232_v29  ;;  %5200 = vpow2.f32 %v1441_v2  ;;  %v919_v40 = vand.u32 2147483647, %v6586_v61  ;;  %v4238_v34 = vmul.f32 0.9, %v1982_v10  ;;  %v6673_v10 = vld [vmem:[%s6391_s30 + $0x98] sm:$0xff] }
  0x65   : > { %v1174_v41 = vsub.f32 0.0, %v12233_v63  ;;  %v4493_v36 = vadd.f32 %v4237_v44, %v12234_v7  ;;  %v1991_v21 = vsel %vm6541_vm6, %v1988_v28, %v1985_v6  ;;  %v1994_v43 = vmul.f32 0.6931472, %v5191_v47  ;;  %v5193_v20 = vpop.eup %5192 }
  0x66   : > { %4748 = vst [vmem:[%s6574_s17 + $0x18] sm:$0xff] %v4492_v33  ;;  %v4239_v56 = vmul.f32 0.9, %v1991_v21  ;;  %v2023_v9 = vadd.f32 1.0, %v2022_v62  ;;  %v1175_v54 = vsub.f32 0.0, %v919_v40  ;;  %v12235_v23 = vmax.f32 %v6417_v13, %v6456_v42  ;;  %v5195_v12 = vpop.eup %5194 }
  0x67   : > { %v1443_v51 = vmul.f32 1.442695, %v1174_v41  ;;  %4749 = vst [vmem:[%s6574_s17 + $0x20] sm:$0xff] %v4493_v36  ;;  %v2000_v39 = vsel %vm6549_vm7, %v1997_v3, %v1994_v43  ;;  %v2003_v28 = vmul.f32 0.6931472, %v5193_v20  ;;  %v12236_v24 = vmax.f32 %v6420_v14, %v6460_v45  ;;  %v6686_v20 = vld [vmem:[%s6391_s30 + $0xa0] sm:$0xff] }
  0x68   : > { %v4494_v8 = vadd.f32 %v4238_v34, %v12235_v23  ;;  %v2025_v18 = vand.u32 2147483647, %v6529_v11  ;;  %v4240_v4 = vmul.f32 0.9, %v2000_v39  ;;  %v1445_v15 = vmul.f32 1.442695, %v1175_v54 }
  0x69   : > { %v4495_v55 = vadd.f32 %v4239_v56, %v12236_v24  ;;  %5202 = vpow2.f32 %v1443_v51  ;;  %v2009_v13 = vsel %vm6562_vm8, %v2006_v26, %v2003_v28  ;;  %v658_v42 = vmax.f32 %v6442_v32, %v6495_v17  ;;  %v5197_v5 = vpop.eup %5196 }
  0x6a   : > { %4750 = vst [vmem:[%s6574_s17 + $0x28] sm:$0xff] %v4494_v8  ;;  %v2012_v52 = vmul.f32 0.6931472, %v5195_v12  ;;  %v920_v3 = vand.u32 2147483647, %v6610_v46  ;;  %v12237_v14 = vmax.f32 %v6428_v22, %v6466_v49  ;;  %v2024_v60 = vmul.f32 %v6529_v11, %v2023_v9 }
  0x6b   : > { %4751 = vst [vmem:[%s6574_s17 + $0x30] sm:$0xff] %v4495_v55  ;;  %v4241_v30 = vmul.f32 0.9, %v2009_v13  ;;  %5204 = vpow2.f32 %v1445_v15  ;;  %vm6641_vm10 = vcmp.lt.f32.partialorder %v2025_v18, 0.0004427343  ;;  %v12240_v49 = vmax.f32 %v6432_v25, %v6469_v50  ;;  %v6660_v50 = vld [vmem:[%s6391_s30 + $0x90] sm:$0xff] }
  0x6c   : > { %v4496_v45 = vadd.f32 %v4240_v4, %v12237_v14  ;;  %v2018_v19 = vsel %vm6581_vm9, %v2015_v57, %v2012_v52  ;;  %v1176_v17 = vsub.f32 0.0, %v920_v3  ;;  %v921_v22 = vand.u32 2147483647, %v6623_v16  ;;  %v6650_v58 = vpop.eup %5198  ;;  %v6707_v4 = vld [vmem:[%s6391_s30 + $0xa8] sm:$0xff] }
  0x6d   : > { %v4497_v11 = vadd.f32 %v4241_v30, %v12240_v49  ;;  %v4242_v1 = vmul.f32 0.9, %v2018_v19  ;;  %v2021_v26 = vmul.f32 0.6931472, %v5197_v5  ;;  %v659_v53 = vmax.f32 %v6446_v35, %v6501_v38  ;;  %v6717_v30 = vld [vmem:[%s6391_s30 + $0xb0] sm:$0xff] }
  0x6e   : > { %4752 = vst [vmem:[%s6574_s17 + $0x38] sm:$0xff] %v4496_v45  ;;  %v1447_v37 = vmul.f32 1.442695, %v1176_v17  ;;  %v1177_v31 = vsub.f32 0.0, %v921_v22  ;;  %v922_v62 = vand.u32 2147483647, %v6637_v0 }
  0x6f   : > { %4753 = vst [vmem:[%s6574_s17 + $0x40] sm:$0xff] %v4497_v11  ;;  %v4498_v2 = vadd.f32 %v4242_v1, %v658_v42  ;;  %v2027_v29 = vsel %vm6641_vm10, %v2024_v60, %v2021_v26  ;;  %v2028_v25 = vadd.f32 1.0, %v6650_v58  ;;  %v6664_v35 = vmul.f32 0.1, %v6463_v48 }
  0x70   : > { %v4243_v33 = vmul.f32 0.9, %v2027_v29  ;;  %5206 = vpow2.f32 %v1447_v37  ;;  %v1449_v44 = vmul.f32 1.442695, %v1177_v31  ;;  %v1178_v38 = vsub.f32 0.0, %v922_v62 }
  0x71   : > { %4754 = vst [vmem:[%s6574_s17 + $0x48] sm:$0xff] %v4498_v2  ;;  %5208 = vlog2.f32 %v2028_v25  ;;  %v6666_v6 = vpop.eup %5200  ;;  %v6669_v41 = vmul.f32 0.1, %v6481_v59  ;;  %v923_v47 = vand.u32 2147483647, %v6660_v50  ;;  %v2031_v21 = vmul.f32 -0.5, %v6650_v58 }
  0x72   : > { %v4499_v63 = vadd.f32 %v4243_v33, %v659_v53  ;;  %5210 = vpow2.f32 %v1449_v44  ;;  %v2037_v57 = vadd.f32 1.0, %v6666_v6  ;;  %v6677_v40 = vmul.f32 0.1, %v6498_v27 }
  0x73   : > { %v6680_v7 = vmul.f32 0.1, %v6586_v61  ;;  %v1451_v36 = vmul.f32 1.442695, %v1178_v38  ;;  %v1179_v34 = vsub.f32 0.0, %v923_v47  ;;  %v660_v9 = vmax.f32 %v6463_v48, %v6664_v35 }
  0x74   : > { %4755 = vst [vmem:[%s6574_s17 + $0x50] sm:$0xff] %v4499_v63  ;;  %5212 = vlog2.f32 %v2037_v57  ;;  %v924_v43 = vand.u32 2147483647, %v6673_v10  ;;  %v6693_v51 = vmul.f32 0.1, %v6610_v46  ;;  %v661_v23 = vmax.f32 %v6481_v59, %v6669_v41 }
  0x75   : > { %5214 = vpow2.f32 %v1451_v36  ;;  %v1453_v54 = vmul.f32 1.442695, %v1179_v34  ;;  %v662_v8 = vmax.f32 %v6498_v27, %v6677_v40  ;;  %v663_v28 = vmax.f32 %v6586_v61, %v6680_v7 }
  0x76   : > { %v6688_v56 = vpop.eup %5202  ;;  %v2040_v12 = vmul.f32 -0.5, %v6666_v6  ;;  %v1180_v24 = vsub.f32 0.0, %v924_v43  ;;  %v925_v55 = vand.u32 2147483647, %v6686_v20  ;;  %v2032_v15 = vadd.f32 1.0, %v2031_v21 }
  0x77   : > { %v2046_v39 = vadd.f32 1.0, %v6688_v56  ;;  %5216 = vpow2.f32 %v1453_v54  ;;  %v2034_v13 = vand.u32 2147483647, %v6650_v58  ;;  %v664_v52 = vmax.f32 %v6610_v46, %v6693_v51 }
  0x78   : > { %v6702_v18 = vpop.eup %5204  ;;  %v6714_v3 = vmul.f32 0.1, %v6623_v16  ;;  %v1455_v14 = vmul.f32 1.442695, %v1180_v24  ;;  %v1181_v45 = vsub.f32 0.0, %v925_v55  ;;  %v2041_v32 = vadd.f32 1.0, %v2040_v12 }
  0x79   : > { %5218 = vlog2.f32 %v2046_v39  ;;  %v2055_v42 = vadd.f32 1.0, %v6702_v18  ;;  %v6720_v60 = vmul.f32 0.1, %v6637_v0  ;;  %v6723_v5 = vmul.f32 0.1, %v6660_v50 }
  0x7a   : > { %v926_v19 = vand.u32 2147483647, %v6707_v4  ;;  %v2043_v17 = vand.u32 2147483647, %v6666_v6  ;;  %v1457_v22 = vmul.f32 1.442695, %v1181_v45  ;;  %v2033_v11 = vmul.f32 %v6650_v58, %v2032_v15 }
  0x7b   : > { %5220 = vlog2.f32 %v2055_v42  ;;  %vm6730_vm11 = vcmp.lt.f32.partialorder %v2034_v13, 0.0004427343  ;;  %v2049_v26 = vmul.f32 -0.5, %v6688_v56  ;;  %v665_v62 = vmax.f32 %v6623_v16, %v6714_v3 }
  0x7c   : > { %5222 = vpow2.f32 %v1455_v14  ;;  %v1182_v53 = vsub.f32 0.0, %v926_v19  ;;  %v6739_v2 = vmul.f32 0.1, %v6673_v10  ;;  %v927_v29 = vand.u32 2147483647, %v6717_v30 }
  0x7d   : > { %v6727_v49 = vpop.eup %5206  ;;  %v2058_v33 = vmul.f32 -0.5, %v6702_v18  ;;  %5224 = vpow2.f32 %v1457_v22  ;;  %v2042_v38 = vmul.f32 %v6666_v6, %v2041_v32  ;;  %vm6746_vm12 = vcmp.lt.f32.partialorder %v2043_v17, 0.0004427343 }
  0x7e   : > { %v5209_v37 = vpop.eup %5208  ;;  %v2064_v31 = vadd.f32 1.0, %v6727_v49  ;;  %v1459_v44 = vmul.f32 1.442695, %v1182_v53  ;;  %v2050_v36 = vadd.f32 1.0, %v2049_v26  ;;  %v2052_v34 = vand.u32 2147483647, %v6688_v56 }
  0x7f   : > { %v6742_v25 = vpop.eup %5210  ;;  %v2030_v58 = vmul.f32 0.6931472, %v5209_v37  ;;  %v6755_v54 = vmul.f32 0.1, %v6686_v20  ;;  %v1183_v6 = vsub.f32 0.0, %v927_v29  ;;  %v2059_v24 = vadd.f32 1.0, %v2058_v33 }
  0x80   : > { %5226 = vlog2.f32 %v2064_v31  ;;  %v2073_v47 = vadd.f32 1.0, %v6742_v25  ;;  %v2061_v55 = vand.u32 2147483647, %v6702_v18  ;;  %v666_v15 = vmax.f32 %v6637_v0, %v6720_v60 }
  0x81   : > { %v2036_v57 = vsel %vm6730_vm11, %v2033_v11, %v2030_v58  ;;  %5228 = vpow2.f32 %v1459_v44  ;;  %v5213_v21 = vpop.eup %5212  ;;  %v2067_v42 = vmul.f32 -0.5, %v6727_v49  ;;  %v2076_v14 = vmul.f32 -0.5, %v6742_v25  ;;  %v6792_v44 = vld [vmem:[%s6391_s30 + $0xb8] sm:$0xff] }
  0x82   : > { %v4244_v43 = vmul.f32 0.9, %v2036_v57  ;;  %5230 = vlog2.f32 %v2073_v47  ;;  %v6757_v39 = vpop.eup %5214  ;;  %v2039_v12 = vmul.f32 0.6931472, %v5213_v21  ;;  %v2051_v17 = vmul.f32 %v6688_v56, %v2050_v36 }
  0x83   : > { %v2082_v45 = vadd.f32 1.0, %v6757_v39  ;;  %vm6773_vm13 = vcmp.lt.f32.partialorder %v2052_v34, 0.0004427343  ;;  %v1461_v11 = vmul.f32 1.442695, %v1183_v6  ;;  %v2060_v53 = vmul.f32 %v6702_v18, %v2059_v24 }
  0x84   : > { %v4500_v13 = vadd.f32 %v4244_v43, %v660_v9  ;;  %v6768_v19 = vpop.eup %5216  ;;  %v2045_v32 = vsel %vm6746_vm12, %v2042_v38, %v2039_v12  ;;  %v2070_v9 = vand.u32 2147483647, %v6727_v49  ;;  %v6780_v1 = vmul.f32 0.1, %v6707_v4 }
  0x85   : > { %v4245_v35 = vmul.f32 0.9, %v2045_v32  ;;  %5232 = vlog2.f32 %v2082_v45  ;;  %vm6783_vm14 = vcmp.lt.f32.partialorder %v2061_v55, 0.0004427343  ;;  %v2091_v37 = vadd.f32 1.0, %v6768_v19 }
  0x86   : > { %v5219_v48 = vpop.eup %5218  ;;  %4756 = vst [vmem:[%s6574_s17 + $0x58] sm:$0xff] %v4500_v13  ;;  %v2068_v58 = vadd.f32 1.0, %v2067_v42  ;;  %v2077_v33 = vadd.f32 1.0, %v2076_v14  ;;  %5234 = vpow2.f32 %v1461_v11  ;;  %v2085_v47 = vmul.f32 -0.5, %v6757_v39 }
  0x87   : > { %v2048_v26 = vmul.f32 0.6931472, %v5219_v48  ;;  %v4501_v29 = vadd.f32 %v4245_v35, %v661_v23  ;;  %5236 = vlog2.f32 %v2091_v37  ;;  %vm6800_vm15 = vcmp.lt.f32.partialorder %v2070_v9, 0.0004427343  ;;  %v6839_v9 = vld [vmem:[%s6391_s30 + $0xc0] sm:$0xff] }
  0x88   : > { %v5221_v31 = vpop.eup %5220  ;;  %v667_v59 = vmax.f32 %v6660_v50, %v6723_v5  ;;  %v2079_v34 = vand.u32 2147483647, %v6742_v25  ;;  %v2094_v21 = vmul.f32 -0.5, %v6768_v19  ;;  %v928_v43 = vand.u32 2147483647, %v6792_v44 }
  0x89   : > { %v6794_v38 = vpop.eup %5222  ;;  %v2054_v18 = vsel %vm6773_vm13, %v2051_v17, %v2048_v26  ;;  %v2057_v63 = vmul.f32 0.6931472, %v5221_v31  ;;  %4757 = vst [vmem:[%s6574_s17 + $0x60] sm:$0xff] %v4501_v29  ;;  %v2069_v55 = vmul.f32 %v6727_v49, %v2068_v58  ;;  %v2078_v42 = vmul.f32 %v6742_v25, %v2077_v33  ;;  %v6854_v33 = vld [vmem:[%s6391_s30 + $0xc8] sm:$0xff] }
  0x8a   : > { %v4246_v57 = vmul.f32 0.9, %v2054_v18  ;;  %v2100_v41 = vadd.f32 1.0, %v6794_v38  ;;  %v6812_v6 = vpop.eup %5224  ;;  %v2086_v14 = vadd.f32 1.0, %v2085_v47  ;;  %v2088_v45 = vand.u32 2147483647, %v6757_v39 }
  0x8b   : > { %v2063_v23 = vsel %vm6783_vm14, %v2060_v53, %v2057_v63  ;;  %v2109_v32 = vadd.f32 1.0, %v6812_v6  ;;  %v1184_v49 = vsub.f32 0.0, %v928_v43  ;;  %vm6828_vm0 = vcmp.lt.f32.partialorder %v2079_v34, 0.0004427343 }
  0x8c   : > { %v4502_v12 = vadd.f32 %v4246_v57, %v662_v8  ;;  %v4247_v24 = vmul.f32 0.9, %v2063_v23  ;;  %5238 = vlog2.f32 %v2100_v41  ;;  %v2097_v8 = vand.u32 2147483647, %v6768_v19 }
  0x8d   : > { %v5227_v13 = vpop.eup %5226  ;;  %v2095_v11 = vadd.f32 1.0, %v2094_v21  ;;  %5240 = vlog2.f32 %v2109_v32  ;;  %v2103_v7 = vmul.f32 -0.5, %v6794_v38  ;;  %vm6841_vm1 = vcmp.lt.f32.partialorder %v2088_v45, 0.0004427343  ;;  %v6883_v32 = vld [vmem:[%s6391_s30 + $0xd0] sm:$0xff] }
  0x8e   : > { %v6821_v17 = vpop.eup %5228  ;;  %4758 = vst [vmem:[%s6574_s17 + $0x68] sm:$0xff] %v4502_v12  ;;  %v4503_v27 = vadd.f32 %v4247_v24, %v663_v28  ;;  %v2066_v40 = vmul.f32 0.6931472, %v5227_v13  ;;  %v2106_v28 = vand.u32 2147483647, %v6794_v38  ;;  %v2087_v31 = vmul.f32 %v6757_v39, %v2086_v14 }
  0x8f   : > { %v5231_v22 = vpop.eup %5230  ;;  %v2118_v48 = vadd.f32 1.0, %v6821_v17  ;;  %v1463_v56 = vmul.f32 1.442695, %v1184_v49  ;;  %vm6848_vm2 = vcmp.lt.f32.partialorder %v2097_v8, 0.0004427343  ;;  %v2112_v58 = vmul.f32 -0.5, %v6812_v6 }
  0x90   : > { %4759 = vst [vmem:[%s6574_s17 + $0x70] sm:$0xff] %v4503_v27  ;;  %v2072_v35 = vsel %vm6800_vm15, %v2069_v55, %v2066_v40  ;;  %v2075_v61 = vmul.f32 0.6931472, %v5231_v22  ;;  %v929_v57 = vand.u32 2147483647, %v6839_v9  ;;  %v2096_v39 = vmul.f32 %v6768_v19, %v2095_v11  ;;  %v6886_v27 = vld [vmem:[%s6391_s30 + $0xd8] sm:$0xff] }
  0x91   : > { %v4248_v26 = vmul.f32 0.9, %v2072_v35  ;;  %5242 = vlog2.f32 %v2118_v48  ;;  %v2104_v41 = vadd.f32 1.0, %v2103_v7  ;;  %vm6861_vm3 = vcmp.lt.f32.partialorder %v2106_v28, 0.0004427343 }
  0x92   : > { %v2081_v37 = vsel %vm6828_vm0, %v2078_v42, %v2075_v61  ;;  %v5233_v18 = vpop.eup %5232  ;;  %5244 = vpow2.f32 %v1463_v56  ;;  %v2121_v51 = vmul.f32 -0.5, %v6821_v17  ;;  %v930_v21 = vand.u32 2147483647, %v6854_v33 }
  0x93   : > { %v4504_v63 = vadd.f32 %v4248_v26, %v664_v52  ;;  %v4249_v47 = vmul.f32 0.9, %v2081_v37  ;;  %v2084_v36 = vmul.f32 0.6931472, %v5233_v18  ;;  %v6865_v34 = vpop.eup %5234  ;;  %v1185_v52 = vsub.f32 0.0, %v929_v57 }
  0x94   : > { %v5237_v19 = vpop.eup %5236  ;;  %v2113_v12 = vadd.f32 1.0, %v2112_v58  ;;  %v2115_v24 = vand.u32 2147483647, %v6812_v6  ;;  %v2127_v55 = vadd.f32 1.0, %v6865_v34  ;;  %v2105_v42 = vmul.f32 %v6794_v38, %v2104_v41  ;;  %v6894_v38 = vld [vmem:[%s6391_s30 + $0xe0] sm:$0xff]  ;;  %v6924_v58 = vld [vmem:[%s6391_s30 + $0xe8] sm:$0xff] }
  0x95   : > { %4760 = vst [vmem:[%s6574_s17 + $0x78] sm:$0xff] %v4504_v63  ;;  %v4505_v46 = vadd.f32 %v4249_v47, %v665_v62  ;;  %v2090_v43 = vsel %vm6841_vm1, %v2087_v31, %v2084_v36  ;;  %v2093_v3 = vmul.f32 0.6931472, %v5237_v19  ;;  %v668_v62 = vmax.f32 %v6673_v10, %v6739_v2  ;;  %v6934_v41 = vld [vmem:[%s6391_s30 + $0xf0] sm:$0xff]  ;;  %v6939_v19 = vld [vmem:[%s6391_s30 + $0xf8] sm:$0xff] }
  0x96   : > { %v4250_v16 = vmul.f32 0.9, %v2090_v43  ;;  %v1465_v13 = vmul.f32 1.442695, %v1185_v52  ;;  %v2124_v14 = vand.u32 2147483647, %v6821_v17  ;;  %5246 = vlog2.f32 %v2127_v55 }
  0x97   : > { %4761 = vst [vmem:[%s6574_s17 + $0x80] sm:$0xff] %v4505_v46  ;;  %v1186_v45 = vsub.f32 0.0, %v930_v21  ;;  %v2099_v10 = vsel %vm6848_vm2, %v2096_v39, %v2093_v3  ;;  %v2122_v2 = vadd.f32 1.0, %v2121_v51  ;;  %v669_v25 = vmax.f32 %v6686_v20, %v6755_v54 }
  0x98   : > { %v4506_v8 = vadd.f32 %v4250_v16, %v666_v15  ;;  %5248 = vpow2.f32 %v1465_v13  ;;  %v4251_v49 = vmul.f32 0.9, %v2099_v10  ;;  %v2114_v48 = vmul.f32 %v6812_v6, %v2113_v12 }
  0x99   : > { %v5239_v40 = vpop.eup %5238  ;;  %v1467_v11 = vmul.f32 1.442695, %v1186_v45  ;;  %vm6900_vm4 = vcmp.lt.f32.partialorder %v2115_v24, 0.0004427343  ;;  %v931_v60 = vand.u32 2147483647, %v6883_v32  ;;  %v2123_v28 = vmul.f32 %v6821_v17, %v2122_v2 }
  0x9a   : > { %v2102_v22 = vmul.f32 0.6931472, %v5239_v40  ;;  %4762 = vst [vmem:[%s6574_s17 + $0x88] sm:$0xff] %v4506_v8  ;;  %v932_v15 = vand.u32 2147483647, %v6886_v27  ;;  %v5241_v35 = vpop.eup %5240  ;;  %v4507_v61 = vadd.f32 %v4251_v49, %v667_v59  ;;  %v2130_v54 = vmul.f32 -0.5, %v6865_v34 }
  0x9b   : > { %5250 = vpow2.f32 %v1467_v11  ;;  %v2111_v7 = vmul.f32 0.6931472, %v5241_v35  ;;  %v1187_v26 = vsub.f32 0.0, %v931_v60  ;;  %v670_v56 = vmax.f32 %v6707_v4, %v6780_v1 }
  0x9c   : > { %v2108_v20 = vsel %vm6861_vm3, %v2105_v42, %v2102_v22  ;;  %4763 = vst [vmem:[%s6574_s17 + $0x90] sm:$0xff] %v4507_v61  ;;  %vm6916_vm5 = vcmp.lt.f32.partialorder %v2124_v14, 0.0004427343  ;;  %v1188_v5 = vsub.f32 0.0, %v932_v15  ;;  %v933_v59 = vand.u32 2147483647, %v6894_v38 }
  0x9d   : > { %v4252_v6 = vmul.f32 0.9, %v2108_v20  ;;  %v2117_v31 = vsel %vm6900_vm4, %v2114_v48, %v2111_v7  ;;  %v1469_v29 = vmul.f32 1.442695, %v1187_v26  ;;  %v2131_v4 = vadd.f32 1.0, %v2130_v54  ;;  %v6979_v61 = vld [vmem:[%s6391_s30 + $0x108] sm:$0xff] }
  0x9e   : > { %v5243_v53 = vpop.eup %5242  ;;  %v4253_v63 = vmul.f32 0.9, %v2117_v31  ;;  %v1471_v1 = vmul.f32 1.442695, %v1188_v5  ;;  %v1189_v47 = vsub.f32 0.0, %v933_v59 }
  0x9f   : > { %v4508_v37 = vadd.f32 %v4252_v6, %v668_v62  ;;  %v2120_v17 = vmul.f32 0.6931472, %v5243_v53  ;;  %v6926_v18 = vpop.eup %5244  ;;  %v2133_v36 = vand.u32 2147483647, %v6865_v34  ;;  %5252 = vpow2.f32 %v1469_v29 }
  0xa0   : > { %v2136_v39 = vadd.f32 1.0, %v6926_v18  ;;  %v4509_v23 = vadd.f32 %v4253_v63, %v669_v25  ;;  %v1473_v51 = vmul.f32 1.442695, %v1189_v47  ;;  %v415_v52 = vmul.f32 0.1, %v6717_v30  ;;  %v6961_v25 = vld [vmem:[%s6391_s30 + $0x100] sm:$0xff] }
  0xa1   : > { %4764 = vst [vmem:[%s6574_s17 + $0x98] sm:$0xff] %v4508_v37  ;;  %v2126_v57 = vsel %vm6916_vm5, %v2123_v28, %v2120_v17  ;;  %v934_v21 = vand.u32 2147483647, %v6924_v58  ;;  %v2132_v12 = vmul.f32 %v6865_v34, %v2131_v4  ;;  %v935_v24 = vand.u32 2147483647, %v6934_v41 }
  0xa2   : > { %v4254_v46 = vmul.f32 0.9, %v2126_v57  ;;  %5254 = vlog2.f32 %v2136_v39  ;;  %4765 = vst [vmem:[%s6574_s17 + $0xa0] sm:$0xff] %v4509_v23  ;;  %vm6944_vm6 = vcmp.lt.f32.partialorder %v2133_v36, 0.0004427343  ;;  %v671_v34 = vmax.f32 %v6717_v30, %v415_v52 }
  0xa3   : > { %5256 = vpow2.f32 %v1471_v1  ;;  %v5247_v55 = vpop.eup %5246  ;;  %v1190_v3 = vsub.f32 0.0, %v934_v21  ;;  %v1191_v42 = vsub.f32 0.0, %v935_v24  ;;  %v936_v14 = vand.u32 2147483647, %v6939_v19 }
  0xa4   : > { %v4510_v43 = vadd.f32 %v4254_v46, %v670_v56  ;;  %5258 = vpow2.f32 %v1473_v51  ;;  %v2129_v13 = vmul.f32 0.6931472, %v5247_v55  ;;  %v2139_v45 = vmul.f32 -0.5, %v6926_v18 }
  0xa5   : > { %v6948_v62 = vpop.eup %5248  ;;  %v1475_v8 = vmul.f32 1.442695, %v1190_v3  ;;  %v6958_v2 = vmul.f32 0.1, %v6792_v44  ;;  %v1477_v49 = vmul.f32 1.442695, %v1191_v42 }
  0xa6   : > { %4766 = vst [vmem:[%s6574_s17 + $0xa8] sm:$0xff] %v4510_v43  ;;  %v2145_v40 = vadd.f32 1.0, %v6948_v62  ;;  %v2135_v10 = vsel %vm6944_vm6, %v2132_v12, %v2129_v13  ;;  %v1192_v22 = vsub.f32 0.0, %v936_v14  ;;  %v6966_v30 = vmul.f32 0.1, %v6839_v9  ;;  %v7025_v42 = vld [vmem:[%s6391_s30 + $0x110] sm:$0xff] }
  0xa7   : > { %v4255_v48 = vmul.f32 0.9, %v2135_v10  ;;  %v6969_v0 = vmul.f32 0.1, %v6854_v33  ;;  %v6973_v15 = vmul.f32 0.1, %v6883_v32  ;;  %v672_v5 = vmax.f32 %v6792_v44, %v6958_v2 }
  0xa8   : > { %v6963_v11 = vpop.eup %5250  ;;  %5260 = vlog2.f32 %v2145_v40  ;;  %v6976_v35 = vmul.f32 0.1, %v6886_v27  ;;  %v2140_v54 = vadd.f32 1.0, %v2139_v45  ;;  %v1479_v6 = vmul.f32 1.442695, %v1192_v22 }
  0xa9   : > { %v2154_v60 = vadd.f32 1.0, %v6963_v11  ;;  %5262 = vpow2.f32 %v1475_v8  ;;  %v4511_v20 = vadd.f32 %v4255_v48, %v671_v34  ;;  %v2142_v7 = vand.u32 2147483647, %v6926_v18 }
  0xaa   : > { %5264 = vpow2.f32 %v1477_v49  ;;  %v6983_v28 = vmul.f32 0.1, %v6894_v38  ;;  %v6986_v26 = vmul.f32 0.1, %v6924_v58  ;;  %v2148_v53 = vmul.f32 -0.5, %v6948_v62 }
  0xab   : > { %5266 = vlog2.f32 %v2154_v60  ;;  %4767 = vst [vmem:[%s6574_s17 + $0xb0] sm:$0xff] %v4511_v20  ;;  %v937_v56 = vand.u32 2147483647, %v6961_v25  ;;  %v938_v50 = vand.u32 2147483647, %v6979_v61  ;;  %v673_v59 = vmax.f32 %v6839_v9, %v6966_v30 }
  0xac   : > { %5268 = vpow2.f32 %v1479_v6  ;;  %v674_v37 = vmax.f32 %v6854_v33, %v6969_v0  ;;  %v675_v31 = vmax.f32 %v6883_v32, %v6973_v15  ;;  %v5253_v17 = vpop.eup %5252  ;;  %v2141_v29 = vmul.f32 %v6926_v18, %v2140_v54 }
  0xad   : > { %v676_v63 = vmax.f32 %v6886_v27, %v6976_v35  ;;  %v1193_v4 = vsub.f32 0.0, %v937_v56  ;;  %v1194_v1 = vsub.f32 0.0, %v938_v50  ;;  %vm7003_vm7 = vcmp.lt.f32.partialorder %v2142_v7, 0.0004427343 }
  0xae   : > { %v2157_v57 = vmul.f32 -0.5, %v6963_v11  ;;  %v2163_v36 = vadd.f32 1.0, %v5253_v17  ;;  %v677_v39 = vmax.f32 %v6894_v38, %v6983_v28  ;;  %v2149_v46 = vadd.f32 1.0, %v2148_v53 }
  0xaf   : > { %v5255_v47 = vpop.eup %5254  ;;  %v2151_v51 = vand.u32 2147483647, %v6948_v62  ;;  %v678_v52 = vmax.f32 %v6924_v58, %v6986_v26  ;;  %v7019_v12 = vmul.f32 0.1, %v6934_v41  ;;  %v1481_v24 = vmul.f32 1.442695, %v1193_v4 }
  0xb0   : > { %v7010_v23 = vpop.eup %5256  ;;  %v2138_v18 = vmul.f32 0.6931472, %v5255_v47  ;;  %5270 = vlog2.f32 %v2163_v36  ;;  %v2166_v16 = vmul.f32 -0.5, %v5253_v17  ;;  %v1483_v13 = vmul.f32 1.442695, %v1194_v1  ;;  %v7104_v4 = vld [vmem:[%s6391_s30 + $0x128] sm:$0xff] }
  0xb1   : > { %v7015_v21 = vpop.eup %5258  ;;  %v2172_v43 = vadd.f32 1.0, %v7010_v23  ;;  %v2158_v34 = vadd.f32 1.0, %v2157_v57  ;;  %v7028_v45 = vmul.f32 0.1, %v6939_v19  ;;  %v2150_v40 = vmul.f32 %v6948_v62, %v2149_v46 }
  0xb2   : > { %v2144_v55 = vsel %vm7003_vm7, %v2141_v29, %v2138_v18  ;;  %v2181_v3 = vadd.f32 1.0, %v7015_v21  ;;  %vm7031_vm8 = vcmp.lt.f32.partialorder %v2151_v51, 0.0004427343  ;;  %v2160_v10 = vand.u32 2147483647, %v6963_v11 }
  0xb3   : > { %v4256_v14 = vmul.f32 0.9, %v2144_v55  ;;  %5272 = vlog2.f32 %v2172_v43  ;;  %v2169_v22 = vand.u32 2147483647, %v5253_v17  ;;  %v939_v48 = vand.u32 2147483647, %v7025_v42 }
  0xb4   : > { %5274 = vlog2.f32 %v2181_v3  ;;  %v2167_v54 = vadd.f32 1.0, %v2166_v16  ;;  %v2175_v6 = vmul.f32 -0.5, %v7010_v23  ;;  %v2159_v7 = vmul.f32 %v6963_v11, %v2158_v34  ;;  %v7063_v43 = vld [vmem:[%s6391_s30 + $0x118] sm:$0xff]  ;;  %v7076_v3 = vld [vmem:[%s6391_s30 + $0x120] sm:$0xff] }
  0xb5   : > { %v5261_v2 = vpop.eup %5260  ;;  %v4512_v49 = vadd.f32 %v4256_v14, %v672_v5  ;;  %5276 = vpow2.f32 %v1481_v24  ;;  %v2178_v53 = vand.u32 2147483647, %v7010_v23  ;;  %v679_v50 = vmax.f32 %v6934_v41, %v7019_v12  ;;  %v7179_v12 = vld [vmem:[%s6391_s30 + $0x148] sm:$0xff] }
  0xb6   : > { %v7037_v60 = vpop.eup %5262  ;;  %v2147_v20 = vmul.f32 0.6931472, %v5261_v2  ;;  %5278 = vpow2.f32 %v1483_v13  ;;  %vm7050_vm9 = vcmp.lt.f32.partialorder %v2160_v10, 0.0004427343  ;;  %v2184_v1 = vmul.f32 -0.5, %v7015_v21 }
  0xb7   : > { %v7040_v62 = vpop.eup %5264  ;;  %4768 = vst [vmem:[%s6574_s17 + $0xb8] sm:$0xff] %v4512_v49  ;;  %v2190_v56 = vadd.f32 1.0, %v7037_v60  ;;  %v1195_v36 = vsub.f32 0.0, %v939_v48  ;;  %v2168_v18 = vmul.f32 %v5253_v17, %v2167_v54  ;;  %vm7058_vm10 = vcmp.lt.f32.partialorder %v2169_v22, 0.0004427343 }
  0xb8   : > { %v5267_v5 = vpop.eup %5266  ;;  %v2153_v29 = vsel %vm7031_vm8, %v2150_v40, %v2147_v20  ;;  %v2199_v11 = vadd.f32 1.0, %v7040_v62  ;;  %v2176_v51 = vadd.f32 1.0, %v2175_v6  ;;  %vm7070_vm11 = vcmp.lt.f32.partialorder %v2178_v53, 0.0004427343 }
  0xb9   : > { %v7056_v47 = vpop.eup %5268  ;;  %v4257_v44 = vmul.f32 0.9, %v2153_v29  ;;  %v2156_v57 = vmul.f32 0.6931472, %v5267_v5  ;;  %5280 = vlog2.f32 %v2190_v56  ;;  %v2185_v14 = vadd.f32 1.0, %v2184_v1 }
  0xba   : > { %5282 = vlog2.f32 %v2199_v11  ;;  %v2208_v17 = vadd.f32 1.0, %v7056_v47  ;;  %v2187_v34 = vand.u32 2147483647, %v7015_v21  ;;  %v2193_v40 = vmul.f32 -0.5, %v7037_v60 }
  0xbb   : > { %v4513_v24 = vadd.f32 %v4257_v44, %v673_v59  ;;  %v2162_v55 = vsel %vm7050_vm9, %v2159_v7, %v2156_v57  ;;  %v2196_v9 = vand.u32 2147483647, %v7037_v60  ;;  %v1485_v30 = vmul.f32 1.442695, %v1195_v36 }
  0xbc   : > { %v4258_v13 = vmul.f32 0.9, %v2162_v55  ;;  %5284 = vlog2.f32 %v2208_v17  ;;  %v940_v59 = vand.u32 2147483647, %v7063_v43  ;;  %v2202_v2 = vmul.f32 -0.5, %v7040_v62 }
  0xbd   : > { %4769 = vst [vmem:[%s6574_s17 + $0xc0] sm:$0xff] %v4513_v24  ;;  %v5271_v8 = vpop.eup %5270  ;;  %v2211_v49 = vmul.f32 -0.5, %v7056_v47  ;;  %v941_v22 = vand.u32 2147483647, %v7076_v3  ;;  %v2177_v20 = vmul.f32 %v7010_v23, %v2176_v51  ;;  %5286 = vpow2.f32 %v1485_v30  ;;  %v7128_v30 = vld [vmem:[%s6391_s30 + $0x130] sm:$0xff] }
  0xbe   : > { %v4514_v10 = vadd.f32 %v4258_v13, %v674_v37  ;;  %v2165_v48 = vmul.f32 0.6931472, %v5271_v8  ;;  %v1196_v54 = vsub.f32 0.0, %v940_v59  ;;  %v2186_v7 = vmul.f32 %v7015_v21, %v2185_v14 }
  0xbf   : > { %vm7092_vm12 = vcmp.lt.f32.partialorder %v2187_v34, 0.0004427343  ;;  %v2205_v33 = vand.u32 2147483647, %v7040_v62  ;;  %v1197_v0 = vsub.f32 0.0, %v941_v22  ;;  %v2194_v29 = vadd.f32 1.0, %v2193_v40 }
  0xc0   : > { %v5273_v6 = vpop.eup %5272  ;;  %4770 = vst [vmem:[%s6574_s17 + $0xc8] sm:$0xff] %v4514_v10  ;;  %v2171_v56 = vsel %vm7058_vm10, %v2168_v18, %v2165_v48  ;;  %vm7099_vm13 = vcmp.lt.f32.partialorder %v2196_v9, 0.0004427343  ;;  %v2203_v44 = vadd.f32 1.0, %v2202_v2  ;;  %v2212_v57 = vadd.f32 1.0, %v2211_v49  ;;  %v7148_v2 = vld [vmem:[%s6391_s30 + $0x138] sm:$0xff] }
  0xc1   : > { %v5275_v37 = vpop.eup %5274  ;;  %v2174_v5 = vmul.f32 0.6931472, %v5273_v6  ;;  %v4259_v1 = vmul.f32 0.9, %v2171_v56  ;;  %v1487_v51 = vmul.f32 1.442695, %v1196_v54  ;;  %v2195_v16 = vmul.f32 %v7037_v60, %v2194_v29 }
  0xc2   : > { %v7106_v21 = vpop.eup %5276  ;;  %v2183_v11 = vmul.f32 0.6931472, %v5275_v37  ;;  %v1489_v24 = vmul.f32 1.442695, %v1197_v0  ;;  %v942_v40 = vand.u32 2147483647, %v7104_v4  ;;  %v2204_v15 = vmul.f32 %v7040_v62, %v2203_v44 }
  0xc3   : > { %v7108_v36 = vpop.eup %5278  ;;  %v2180_v18 = vsel %vm7070_vm11, %v2177_v20, %v2174_v5  ;;  %v2217_v46 = vadd.f32 1.0, %v7106_v21  ;;  %v4515_v55 = vadd.f32 %v4259_v1, %v675_v31  ;;  %v2214_v31 = vand.u32 2147483647, %v7056_v47  ;;  %v7173_v1 = vld [vmem:[%s6391_s30 + $0x140] sm:$0xff] }
  0xc4   : > { %v4260_v17 = vmul.f32 0.9, %v2180_v18  ;;  %v2189_v13 = vsel %vm7092_vm12, %v2186_v7, %v2183_v11  ;;  %v2226_v14 = vadd.f32 1.0, %v7108_v36  ;;  %vm7133_vm14 = vcmp.lt.f32.partialorder %v2205_v33, 0.0004427343 }
  0xc5   : > { %v4261_v34 = vmul.f32 0.9, %v2189_v13  ;;  %5288 = vlog2.f32 %v2217_v46  ;;  %4771 = vst [vmem:[%s6574_s17 + $0xd0] sm:$0xff] %v4515_v55  ;;  %v2213_v35 = vmul.f32 %v7056_v47, %v2212_v57  ;;  %v2220_v38 = vmul.f32 -0.5, %v7106_v21 }
  0xc6   : > { %v5281_v9 = vpop.eup %5280  ;;  %v4516_v32 = vadd.f32 %v4260_v17, %v676_v63  ;;  %5290 = vlog2.f32 %v2226_v14  ;;  %v7140_v63 = vmul.f32 0.1, %v6961_v25  ;;  %v1198_v28 = vsub.f32 0.0, %v942_v40 }
  0xc7   : > { %v5283_v59 = vpop.eup %5282  ;;  %v4517_v60 = vadd.f32 %v4261_v34, %v677_v39  ;;  %v2192_v8 = vmul.f32 0.6931472, %v5281_v9  ;;  %5292 = vpow2.f32 %v1487_v51  ;;  %v943_v39 = vand.u32 2147483647, %v7128_v30 }
  0xc8   : > { %4772 = vst [vmem:[%s6574_s17 + $0xd8] sm:$0xff] %v4516_v32  ;;  %v2201_v27 = vmul.f32 0.6931472, %v5283_v59  ;;  %5294 = vpow2.f32 %v1489_v24  ;;  %vm7152_vm15 = vcmp.lt.f32.partialorder %v2214_v31, 0.0004427343  ;;  %v2229_v20 = vmul.f32 -0.5, %v7108_v36 }
  0xc9   : > { %4773 = vst [vmem:[%s6574_s17 + $0xe0] sm:$0xff] %v4517_v60  ;;  %v2198_v62 = vsel %vm7099_vm13, %v2195_v16, %v2192_v8  ;;  %v5285_v49 = vpop.eup %5284  ;;  %v680_v6 = vmax.f32 %v6939_v19, %v7028_v45  ;;  %v1491_v53 = vmul.f32 1.442695, %v1198_v28  ;;  %v2223_v37 = vand.u32 2147483647, %v7106_v21 }
  0xca   : > { %v4262_v22 = vmul.f32 0.9, %v2198_v62  ;;  %v2207_v47 = vsel %vm7133_vm14, %v2204_v15, %v2201_v27  ;;  %v2210_v7 = vmul.f32 0.6931472, %v5285_v49  ;;  %v7159_v33 = vpop.eup %5286  ;;  %v1199_v56 = vsub.f32 0.0, %v943_v39 }
  0xcb   : > { %v4263_v54 = vmul.f32 0.9, %v2207_v47  ;;  %v944_v5 = vand.u32 2147483647, %v7148_v2  ;;  %v2221_v45 = vadd.f32 1.0, %v2220_v38  ;;  %v2235_v23 = vadd.f32 1.0, %v7159_v33 }
  0xcc   : > { %v4518_v0 = vadd.f32 %v4262_v22, %v678_v52  ;;  %v2216_v19 = vsel %vm7152_vm15, %v2213_v35, %v2210_v7  ;;  %v2230_v26 = vadd.f32 1.0, %v2229_v20  ;;  %5296 = vpow2.f32 %v1491_v53  ;;  %v7221_v22 = vld [vmem:[%s6391_s30 + $0x158] sm:$0xff] }
  0xcd   : > { %v4519_v29 = vadd.f32 %v4263_v54, %v679_v50  ;;  %v4264_v58 = vmul.f32 0.9, %v2216_v19  ;;  %v1493_v52 = vmul.f32 1.442695, %v1199_v56  ;;  %v2232_v11 = vand.u32 2147483647, %v7108_v36 }
  0xce   : > { %4774 = vst [vmem:[%s6574_s17 + $0xe8] sm:$0xff] %v4518_v0  ;;  %5298 = vlog2.f32 %v2235_v23  ;;  %v1200_v41 = vsub.f32 0.0, %v944_v5  ;;  %v426_v44 = vmul.f32 0.1, %v6979_v61  ;;  %v945_v57 = vand.u32 2147483647, %v7173_v1 }
  0xcf   : > { %4775 = vst [vmem:[%s6574_s17 + $0xf0] sm:$0xff] %v4519_v29  ;;  %v4520_v50 = vadd.f32 %v4264_v58, %v680_v6  ;;  %5300 = vpow2.f32 %v1493_v52  ;;  %v681_v18 = vmax.f32 %v6961_v25, %v7140_v63  ;;  %v2222_v46 = vmul.f32 %v7106_v21, %v2221_v45  ;;  %v7199_v21 = vld [vmem:[%s6391_s30 + $0x150] sm:$0xff]  ;;  %v7241_v29 = vld [vmem:[%s6391_s30 + $0x160] sm:$0xff] }
  0xd0   : > { %v1495_v51 = vmul.f32 1.442695, %v1200_v41  ;;  %vm7187_vm0 = vcmp.lt.f32.partialorder %v2223_v37, 0.0004427343  ;;  %v2231_v17 = vmul.f32 %v7108_v36, %v2230_v26  ;;  %v1201_v13 = vsub.f32 0.0, %v945_v57 }
  0xd1   : > { %4776 = vst [vmem:[%s6574_s17 + $0xf8] sm:$0xff] %v4520_v50  ;;  %v946_v14 = vand.u32 2147483647, %v7179_v12  ;;  %vm7193_vm1 = vcmp.lt.f32.partialorder %v2232_v11, 0.0004427343  ;;  %v2238_v25 = vmul.f32 -0.5, %v7159_v33  ;;  %v682_v32 = vmax.f32 %v6979_v61, %v426_v44 }
  0xd2   : > { %v5289_v24 = vpop.eup %5288  ;;  %5302 = vpow2.f32 %v1495_v51  ;;  %v7205_v36 = vmul.f32 0.1, %v7025_v42  ;;  %v7208_v31 = vmul.f32 0.1, %v7063_v43  ;;  %v1497_v10 = vmul.f32 1.442695, %v1201_v13 }
  0xd3   : > { %v5291_v34 = vpop.eup %5290  ;;  %v2219_v16 = vmul.f32 0.6931472, %v5289_v24  ;;  %v1202_v27 = vsub.f32 0.0, %v946_v14  ;;  %v947_v62 = vand.u32 2147483647, %v7199_v21  ;;  %v2239_v28 = vadd.f32 1.0, %v2238_v25 }
  0xd4   : > { %v7201_v9 = vpop.eup %5292  ;;  %v2228_v15 = vmul.f32 0.6931472, %v5291_v34  ;;  %v2241_v49 = vand.u32 2147483647, %v7159_v33  ;;  %v7224_v48 = vmul.f32 0.1, %v7076_v3  ;;  %v683_v54 = vmax.f32 %v7025_v42, %v7205_v36 }
  0xd5   : > { %v7210_v59 = vpop.eup %5294  ;;  %v2225_v60 = vsel %vm7187_vm0, %v2222_v46, %v2219_v16  ;;  %v2244_v8 = vadd.f32 1.0, %v7201_v9  ;;  %v1499_v20 = vmul.f32 1.442695, %v1202_v27  ;;  %v684_v6 = vmax.f32 %v7063_v43, %v7208_v31  ;;  %v7273_v25 = vld [vmem:[%s6391_s30 + $0x168] sm:$0xff] }
  0xd6   : > { %v4265_v35 = vmul.f32 0.9, %v2225_v60  ;;  %v2234_v61 = vsel %vm7193_vm1, %v2231_v17, %v2228_v15  ;;  %v2253_v63 = vadd.f32 1.0, %v7210_v59  ;;  %v7232_v7 = vmul.f32 0.1, %v7104_v4 }
  0xd7   : > { %v4266_v38 = vmul.f32 0.9, %v2234_v61  ;;  %5304 = vlog2.f32 %v2244_v8  ;;  %v1203_v53 = vsub.f32 0.0, %v947_v62  ;;  %v2240_v37 = vmul.f32 %v7159_v33, %v2239_v28 }
  0xd8   : > { %v4521_v39 = vadd.f32 %v4265_v35, %v681_v18  ;;  %5306 = vlog2.f32 %v2253_v63  ;;  %v2247_v56 = vmul.f32 -0.5, %v7201_v9  ;;  %v948_v5 = vand.u32 2147483647, %v7221_v22 }
  0xd9   : > { %v4522_v47 = vadd.f32 %v4266_v38, %v682_v32  ;;  %5308 = vpow2.f32 %v1497_v10  ;;  %v7234_v0 = vpop.eup %5296  ;;  %vm7243_vm2 = vcmp.lt.f32.partialorder %v2241_v49, 0.0004427343  ;;  %v2256_v45 = vmul.f32 -0.5, %v7210_v59  ;;  %v7289_v38 = vld [vmem:[%s6391_s30 + $0x170] sm:$0xff] }
  0xda   : > { %4777 = vst [vmem:[%s6574_s17 + $0x100] sm:$0xff] %v4521_v39  ;;  %5310 = vpow2.f32 %v1499_v20  ;;  %v2262_v23 = vadd.f32 1.0, %v7234_v0  ;;  %v1501_v58 = vmul.f32 1.442695, %v1203_v53  ;;  %v685_v52 = vmax.f32 %v7076_v3, %v7224_v48 }
  0xdb   : > { %4778 = vst [vmem:[%s6574_s17 + $0x108] sm:$0xff] %v4522_v47  ;;  %v5299_v42 = vpop.eup %5298  ;;  %v7254_v11 = vmul.f32 0.1, %v7128_v30  ;;  %v1204_v41 = vsub.f32 0.0, %v948_v5  ;;  %v686_v50 = vmax.f32 %v7104_v4, %v7232_v7  ;;  %v949_v57 = vand.u32 2147483647, %v7241_v29 }
  0xdc   : > { %v7249_v26 = vpop.eup %5300  ;;  %v2237_v33 = vmul.f32 0.6931472, %v5299_v42  ;;  %5312 = vlog2.f32 %v2262_v23  ;;  %v2248_v46 = vadd.f32 1.0, %v2247_v56  ;;  %v2250_v51 = vand.u32 2147483647, %v7201_v9 }
  0xdd   : > { %v2271_v44 = vadd.f32 1.0, %v7249_v26  ;;  %5314 = vpow2.f32 %v1501_v58  ;;  %v2257_v17 = vadd.f32 1.0, %v2256_v45  ;;  %v1503_v13 = vmul.f32 1.442695, %v1204_v41 }
  0xde   : > { %v2243_v18 = vsel %vm7243_vm2, %v2240_v37, %v2237_v33  ;;  %v2259_v14 = vand.u32 2147483647, %v7210_v59  ;;  %v687_v34 = vmax.f32 %v7128_v30, %v7254_v11  ;;  %v7269_v16 = vmul.f32 0.1, %v7148_v2 }
  0xdf   : > { %v7263_v24 = vpop.eup %5302  ;;  %v4267_v55 = vmul.f32 0.9, %v2243_v18  ;;  %5316 = vlog2.f32 %v2271_v44  ;;  %v2265_v15 = vmul.f32 -0.5, %v7234_v0  ;;  %v1205_v36 = vsub.f32 0.0, %v949_v57 }
  0xe0   : > { %v2280_v40 = vadd.f32 1.0, %v7263_v24  ;;  %5318 = vpow2.f32 %v1503_v13  ;;  %v2249_v60 = vmul.f32 %v7201_v9, %v2248_v46  ;;  %vm7277_vm3 = vcmp.lt.f32.partialorder %v2250_v51, 0.0004427343 }
  0xe1   : > { %v4523_v32 = vadd.f32 %v4267_v55, %v683_v54  ;;  %v7282_v10 = vmul.f32 0.1, %v7173_v1  ;;  %v2258_v35 = vmul.f32 %v7210_v59, %v2257_v17  ;;  %v2274_v61 = vmul.f32 -0.5, %v7249_v26 }
  0xe2   : > { %5320 = vlog2.f32 %v2280_v40  ;;  %v1505_v63 = vmul.f32 1.442695, %v1205_v36  ;;  %v950_v62 = vand.u32 2147483647, %v7273_v25  ;;  %vm7291_vm4 = vcmp.lt.f32.partialorder %v2259_v14, 0.0004427343 }
  0xe3   : > { %4779 = vst [vmem:[%s6574_s17 + $0x110] sm:$0xff] %v4523_v32  ;;  %v2268_v49 = vand.u32 2147483647, %v7234_v0  ;;  %v688_v47 = vmax.f32 %v7148_v2, %v7269_v16  ;;  %v2266_v54 = vadd.f32 1.0, %v2265_v15  ;;  %v2283_v56 = vmul.f32 -0.5, %v7263_v24 }
  0xe4   : > { %v5305_v27 = vpop.eup %5304  ;;  %5322 = vpow2.f32 %v1505_v63  ;;  %v1206_v53 = vsub.f32 0.0, %v950_v62  ;;  %v951_v42 = vand.u32 2147483647, %v7289_v38  ;;  %v2275_v58 = vadd.f32 1.0, %v2274_v61 }
  0xe5   : > { %v5307_v9 = vpop.eup %5306  ;;  %v2246_v28 = vmul.f32 0.6931472, %v5305_v27  ;;  %v2277_v44 = vand.u32 2147483647, %v7249_v26  ;;  %v689_v57 = vmax.f32 %v7173_v1, %v7282_v10  ;;  %v2267_v46 = vmul.f32 %v7234_v0, %v2266_v54 }
  0xe6   : > { %v7298_v20 = vpop.eup %5308  ;;  %v2255_v59 = vmul.f32 0.6931472, %v5307_v9  ;;  %v1507_v33 = vmul.f32 1.442695, %v1206_v53  ;;  %vm7316_vm5 = vcmp.lt.f32.partialorder %v2268_v49, 0.0004427343  ;;  %v2276_v31 = vmul.f32 %v7249_v26, %v2275_v58 }
  0xe7   : > { %v2252_v37 = vsel %vm7277_vm3, %v2249_v60, %v2246_v28  ;;  %v2289_v5 = vadd.f32 1.0, %v7298_v20  ;;  %v7305_v19 = vpop.eup %5310  ;;  %v2284_v14 = vadd.f32 1.0, %v2283_v56  ;;  %v1207_v40 = vsub.f32 0.0, %v951_v42  ;;  %v7429_v28 = vld [vmem:[%s6391_s30 + $0x198] sm:$0xff] }
  0xe8   : > { %v4268_v45 = vmul.f32 0.9, %v2252_v37  ;;  %v2261_v23 = vsel %vm7291_vm4, %v2258_v35, %v2255_v59  ;;  %v2298_v55 = vadd.f32 1.0, %v7305_v19  ;;  %vm7330_vm6 = vcmp.lt.f32.partialorder %v2277_v44, 0.0004427343  ;;  %v7357_v59 = vld [vmem:[%s6391_s30 + $0x178] sm:$0xff] }
  0xe9   : > { %v4269_v41 = vmul.f32 0.9, %v2261_v23  ;;  %5324 = vlog2.f32 %v2289_v5  ;;  %v5313_v17 = vpop.eup %5312  ;;  %v2292_v3 = vmul.f32 -0.5, %v7298_v20  ;;  %v7336_v48 = vmul.f32 0.1, %v7179_v12  ;;  %v7380_v23 = vld [vmem:[%s6391_s30 + $0x180] sm:$0xff] }
  0xea   : > { %v4524_v18 = vadd.f32 %v4268_v45, %v684_v6  ;;  %5326 = vpow2.f32 %v1507_v33  ;;  %v7324_v32 = vpop.eup %5314  ;;  %v2264_v43 = vmul.f32 0.6931472, %v5313_v17  ;;  %v2286_v6 = vand.u32 2147483647, %v7263_v24 }
  0xeb   : > { %v4525_v13 = vadd.f32 %v4269_v41, %v685_v52  ;;  %5328 = vlog2.f32 %v2298_v55  ;;  %v2307_v52 = vadd.f32 1.0, %v7324_v32  ;;  %v2295_v60 = vand.u32 2147483647, %v7298_v20 }
  0xec   : > { %4780 = vst [vmem:[%s6574_s17 + $0x118] sm:$0xff] %v4524_v18  ;;  %v5317_v0 = vpop.eup %5316  ;;  %v2270_v26 = vsel %vm7316_vm5, %v2267_v46, %v2264_v43  ;;  %v7343_v8 = vmul.f32 0.1, %v7199_v21  ;;  %v2285_v61 = vmul.f32 %v7263_v24, %v2284_v14  ;;  %v1509_v63 = vmul.f32 1.442695, %v1207_v40  ;;  %v7389_v46 = vld [vmem:[%s6391_s30 + $0x188] sm:$0xff] }
  0xed   : > { %4781 = vst [vmem:[%s6574_s17 + $0x120] sm:$0xff] %v4525_v13  ;;  %v2273_v36 = vmul.f32 0.6931472, %v5317_v0  ;;  %v7345_v27 = vpop.eup %5318  ;;  %v4270_v35 = vmul.f32 0.9, %v2270_v26  ;;  %5330 = vlog2.f32 %v2307_v52  ;;  %v2301_v39 = vmul.f32 -0.5, %v7305_v19 }
  0xee   : > { %vm7350_vm7 = vcmp.lt.f32.partialorder %v2286_v6, 0.0004427343  ;;  %v2316_v49 = vadd.f32 1.0, %v7345_v27  ;;  %v2293_v37 = vadd.f32 1.0, %v2292_v3  ;;  %vm7362_vm8 = vcmp.lt.f32.partialorder %v2295_v60, 0.0004427343 }
  0xef   : > { %v5321_v62 = vpop.eup %5320  ;;  %v2279_v9 = vsel %vm7330_vm6, %v2276_v31, %v2273_v36  ;;  %v4526_v24 = vadd.f32 %v4270_v35, %v686_v50  ;;  %v2310_v5 = vmul.f32 -0.5, %v7324_v32  ;;  %v7368_v42 = vmul.f32 0.1, %v7221_v22 }
  0xf0   : > { %v4271_v54 = vmul.f32 0.9, %v2279_v9  ;;  %v2282_v53 = vmul.f32 0.6931472, %v5321_v62  ;;  %5332 = vlog2.f32 %v2316_v49  ;;  %v952_v50 = vand.u32 2147483647, %v7357_v59 }
  0xf1   : > { %v7370_v45 = vpop.eup %5322  ;;  %4782 = vst [vmem:[%s6574_s17 + $0x128] sm:$0xff] %v4526_v24  ;;  %5334 = vpow2.f32 %v1509_v63  ;;  %v2302_v33 = vadd.f32 1.0, %v2301_v39  ;;  %v2304_v41 = vand.u32 2147483647, %v7305_v19  ;;  %v2294_v18 = vmul.f32 %v7298_v20, %v2293_v37 }
  0xf2   : > { %v4527_v4 = vadd.f32 %v4271_v54, %v687_v34  ;;  %v2288_v7 = vsel %vm7350_vm7, %v2285_v61, %v2282_v53  ;;  %v2325_v44 = vadd.f32 1.0, %v7370_v45  ;;  %v2313_v30 = vand.u32 2147483647, %v7324_v32  ;;  %v7421_v61 = vld [vmem:[%s6391_s30 + $0x190] sm:$0xff] }
  0xf3   : > { %v4272_v58 = vmul.f32 0.9, %v2288_v7  ;;  %v2319_v11 = vmul.f32 -0.5, %v7345_v27  ;;  %v1208_v34 = vsub.f32 0.0, %v952_v50  ;;  %v2311_v17 = vadd.f32 1.0, %v2310_v5 }
  0xf4   : > { %4783 = vst [vmem:[%s6574_s17 + $0x130] sm:$0xff] %v4527_v4  ;;  %5336 = vlog2.f32 %v2325_v44  ;;  %v953_v13 = vand.u32 2147483647, %v7380_v23  ;;  %v690_v20 = vmax.f32 %v7179_v12, %v7336_v48  ;;  %v2322_v40 = vand.u32 2147483647, %v7345_v27 }
  0xf5   : > { %v4528_v55 = vadd.f32 %v4272_v58, %v688_v47  ;;  %v1511_v43 = vmul.f32 1.442695, %v1208_v34  ;;  %v2303_v6 = vmul.f32 %v7305_v19, %v2302_v33  ;;  %vm7402_vm9 = vcmp.lt.f32.partialorder %v2304_v41, 0.0004427343 }
  0xf6   : > { %v5325_v51 = vpop.eup %5324  ;;  %v1209_v2 = vsub.f32 0.0, %v953_v13  ;;  %v954_v16 = vand.u32 2147483647, %v7389_v46  ;;  %v2320_v15 = vadd.f32 1.0, %v2319_v11  ;;  %v2328_v3 = vmul.f32 -0.5, %v7370_v45 }
  0xf7   : > { %v2291_v14 = vmul.f32 0.6931472, %v5325_v51  ;;  %v7398_v31 = vpop.eup %5326  ;;  %4784 = vst [vmem:[%s6574_s17 + $0x138] sm:$0xff] %v4528_v55  ;;  %5338 = vpow2.f32 %v1511_v43  ;;  %v2312_v36 = vmul.f32 %v7324_v32, %v2311_v17  ;;  %vm7412_vm10 = vcmp.lt.f32.partialorder %v2313_v30, 0.0004427343  ;;  %v7452_v51 = vld [vmem:[%s6391_s30 + $0x1a0] sm:$0xff] }
  0xf8   : > { %v5329_v47 = vpop.eup %5328  ;;  %v2334_v48 = vadd.f32 1.0, %v7398_v31  ;;  %v1513_v26 = vmul.f32 1.442695, %v1209_v2  ;;  %vm7416_vm11 = vcmp.lt.f32.partialorder %v2322_v40, 0.0004427343  ;;  %v1210_v32 = vsub.f32 0.0, %v954_v16 }
  0xf9   : > { %v2297_v12 = vsel %vm7362_vm8, %v2294_v18, %v2291_v14  ;;  %v2300_v19 = vmul.f32 0.6931472, %v5329_v47  ;;  %v691_v49 = vmax.f32 %v7199_v21, %v7343_v8  ;;  %v2329_v54 = vadd.f32 1.0, %v2328_v3 }
  0xfa   : > { %v4273_v52 = vmul.f32 0.9, %v2297_v12  ;;  %5340 = vlog2.f32 %v2334_v48  ;;  %v5331_v63 = vpop.eup %5330  ;;  %v2321_v53 = vmul.f32 %v7345_v27, %v2320_v15  ;;  %v2331_v1 = vand.u32 2147483647, %v7370_v45 }
  0xfb   : > { %v2306_v9 = vsel %vm7402_vm9, %v2303_v6, %v2300_v19  ;;  %5342 = vpow2.f32 %v1513_v26  ;;  %v2309_v24 = vmul.f32 0.6931472, %v5331_v63  ;;  %v1515_v10 = vmul.f32 1.442695, %v1210_v32 }
  0xfc   : > { %v4529_v62 = vadd.f32 %v4273_v52, %v689_v57  ;;  %v4274_v39 = vmul.f32 0.9, %v2306_v9  ;;  %v955_v57 = vand.u32 2147483647, %v7421_v61  ;;  %v2337_v4 = vmul.f32 -0.5, %v7398_v31 }
  0xfd   : > { %v5333_v37 = vpop.eup %5332  ;;  %v2315_v5 = vsel %vm7412_vm10, %v2312_v36, %v2309_v24  ;;  %v956_v21 = vand.u32 2147483647, %v7429_v28  ;;  %5344 = vpow2.f32 %v1515_v10  ;;  %v692_v58 = vmax.f32 %v7221_v22, %v7368_v42  ;;  %v7459_v42 = vld [vmem:[%s6391_s30 + $0x1a8] sm:$0xff] }
  0xfe   : > { %4785 = vst [vmem:[%s6574_s17 + $0x140] sm:$0xff] %v4529_v62  ;;  %v4530_v56 = vadd.f32 %v4274_v39, %v690_v20  ;;  %v7441_v8 = vpop.eup %5334  ;;  %v4275_v7 = vmul.f32 0.9, %v2315_v5  ;;  %v2318_v50 = vmul.f32 0.6931472, %v5333_v37  ;;  %v1211_v27 = vsub.f32 0.0, %v955_v57 }
  0xff   : > { %v437_v33 = vmul.f32 0.1, %v7241_v29  ;;  %v2330_v41 = vmul.f32 %v7370_v45, %v2329_v54  ;;  %v2343_v44 = vadd.f32 1.0, %v7441_v8  ;;  %v1212_v34 = vsub.f32 0.0, %v956_v21  ;;  %v7490_v39 = vld [vmem:[%s6391_s30 + $0x1b0] sm:$0xff] }
 0x100   : > { %4786 = vst [vmem:[%s6574_s17 + $0x148] sm:$0xff] %v4530_v56  ;;  %v4531_v18 = vadd.f32 %v4275_v7, %v691_v49  ;;  %v2324_v30 = vsel %vm7416_vm11, %v2321_v53, %v2318_v50  ;;  %v1517_v11 = vmul.f32 1.442695, %v1211_v27  ;;  %vm7454_vm12 = vcmp.lt.f32.partialorder %v2331_v1, 0.0004427343  ;;  %v7498_v53 = vld [vmem:[%s6391_s30 + $0x1b8] sm:$0xff] }
 0x101   : > { %v5337_v55 = vpop.eup %5336  ;;  %v4276_v17 = vmul.f32 0.9, %v2324_v30  ;;  %v2338_v22 = vadd.f32 1.0, %v2337_v4  ;;  %5346 = vlog2.f32 %v2343_v44  ;;  %v2340_v14 = vand.u32 2147483647, %v7398_v31 }
 0x102   : > { %4787 = vst [vmem:[%s6574_s17 + $0x150] sm:$0xff] %v4531_v18  ;;  %v2327_v45 = vmul.f32 0.6931472, %v5337_v55  ;;  %5348 = vpow2.f32 %v1517_v11  ;;  %v1519_v20 = vmul.f32 1.442695, %v1212_v34  ;;  %v693_v43 = vmax.f32 %v7241_v29, %v437_v33 }
 0x103   : > { %v4532_v40 = vadd.f32 %v4276_v17, %v692_v58  ;;  %v438_v6 = vmul.f32 0.1, %v7273_v25  ;;  %v957_v0 = vand.u32 2147483647, %v7452_v51  ;;  %v7469_v16 = vmul.f32 0.1, %v7289_v38 }
 0x104   : > { %v2333_v2 = vsel %vm7454_vm12, %v2330_v41, %v2327_v45  ;;  %5350 = vpow2.f32 %v1519_v20  ;;  %v958_v47 = vand.u32 2147483647, %v7459_v42  ;;  %v7472_v12 = vpop.eup %5338  ;;  %v2339_v29 = vmul.f32 %v7398_v31, %v2338_v22 }
 0x105   : > { %4788 = vst [vmem:[%s6574_s17 + $0x158] sm:$0xff] %v4532_v40  ;;  %v4277_v15 = vmul.f32 0.9, %v2333_v2  ;;  %v2346_v3 = vmul.f32 -0.5, %v7441_v8  ;;  %v1213_v48 = vsub.f32 0.0, %v957_v0  ;;  %v2352_v26 = vadd.f32 1.0, %v7472_v12 }
 0x106   : > { %vm7477_vm13 = vcmp.lt.f32.partialorder %v2340_v14, 0.0004427343  ;;  %v1214_v36 = vsub.f32 0.0, %v958_v47  ;;  %v7485_v62 = vmul.f32 0.1, %v7357_v59  ;;  %v694_v9 = vmax.f32 %v7273_v25, %v438_v6  ;;  %v7543_v0 = vld [vmem:[%s6391_s30 + $0x1c0] sm:$0xff] }
 0x107   : > { %v5341_v52 = vpop.eup %5340  ;;  %v4533_v35 = vadd.f32 %v4277_v15, %v693_v43  ;;  %v1521_v31 = vmul.f32 1.442695, %v1213_v48  ;;  %5352 = vlog2.f32 %v2352_v26  ;;  %v695_v24 = vmax.f32 %v7289_v38, %v7469_v16  ;;  %v7546_v2 = vld [vmem:[%s6391_s30 + $0x1c8] sm:$0xff] }
 0x108   : > { %v7482_v60 = vpop.eup %5342  ;;  %v2336_v63 = vmul.f32 0.6931472, %v5341_v52  ;;  %v2347_v54 = vadd.f32 1.0, %v2346_v3  ;;  %v2349_v10 = vand.u32 2147483647, %v7441_v8  ;;  %v696_v37 = vmax.f32 %v7357_v59, %v7485_v62 }
 0x109   : > { %v2361_v32 = vadd.f32 1.0, %v7482_v60  ;;  %4789 = vst [vmem:[%s6574_s17 + $0x160] sm:$0xff] %v4533_v35  ;;  %5354 = vpow2.f32 %v1521_v31  ;;  %v1523_v25 = vmul.f32 1.442695, %v1214_v36  ;;  %v7506_v56 = vmul.f32 0.1, %v7380_v23 }
 0x10a   : > { %v2342_v49 = vsel %vm7477_vm13, %v2339_v29, %v2336_v63  ;;  %v7501_v57 = vpop.eup %5344  ;;  %v7509_v38 = vmul.f32 0.1, %v7389_v46  ;;  %v959_v5 = vand.u32 2147483647, %v7490_v39  ;;  %v2355_v21 = vmul.f32 -0.5, %v7472_v12 }
 0x10b   : > { %v4278_v1 = vmul.f32 0.9, %v2342_v49  ;;  %5356 = vlog2.f32 %v2361_v32  ;;  %v2364_v7 = vmul.f32 -0.5, %v7482_v60  ;;  %v2370_v50 = vadd.f32 1.0, %v7501_v57 }
 0x10c   : > { %v2348_v27 = vmul.f32 %v7441_v8, %v2347_v54  ;;  %v7517_v58 = vmul.f32 0.1, %v7421_v61  ;;  %5358 = vpow2.f32 %v1523_v25  ;;  %v1215_v33 = vsub.f32 0.0, %v959_v5 }
 0x10d   : > { %v4534_v4 = vadd.f32 %v4278_v1, %v694_v9  ;;  %vm7520_vm14 = vcmp.lt.f32.partialorder %v2349_v10, 0.0004427343  ;;  %5360 = vlog2.f32 %v2370_v50  ;;  %v7525_v18 = vmul.f32 0.1, %v7429_v28 }
 0x10e   : > { %v5347_v41 = vpop.eup %5346  ;;  %v960_v30 = vand.u32 2147483647, %v7498_v53  ;;  %v697_v34 = vmax.f32 %v7380_v23, %v7506_v56  ;;  %v7533_v55 = vmul.f32 0.1, %v7452_v51  ;;  %v1525_v17 = vmul.f32 1.442695, %v1215_v33 }
 0x10f   : > { %4790 = vst [vmem:[%s6574_s17 + $0x168] sm:$0xff] %v4534_v4  ;;  %v7528_v8 = vpop.eup %5348  ;;  %v2345_v11 = vmul.f32 0.6931472, %v5347_v41  ;;  %v2356_v13 = vadd.f32 1.0, %v2355_v21  ;;  %v2358_v22 = vand.u32 2147483647, %v7472_v12  ;;  %v698_v29 = vmax.f32 %v7389_v46, %v7509_v38 }
 0x110   : > { %v2365_v45 = vadd.f32 1.0, %v2364_v7  ;;  %v2379_v14 = vadd.f32 1.0, %v7528_v8  ;;  %v2373_v43 = vmul.f32 -0.5, %v7501_v57  ;;  %5362 = vpow2.f32 %v1525_v17 }
 0x111   : > { %v7537_v20 = vpop.eup %5350  ;;  %v2351_v40 = vsel %vm7520_vm14, %v2348_v27, %v2345_v11  ;;  %v1216_v6 = vsub.f32 0.0, %v960_v30  ;;  %v2367_v47 = vand.u32 2147483647, %v7482_v60  ;;  %v7550_v15 = vmul.f32 0.1, %v7459_v42 }
 0x112   : > { %v4279_v16 = vmul.f32 0.9, %v2351_v40  ;;  %5364 = vlog2.f32 %v2379_v14  ;;  %v2376_v3 = vand.u32 2147483647, %v7501_v57  ;;  %v2388_v48 = vadd.f32 1.0, %v7537_v20 }
 0x113   : > { %v1527_v52 = vmul.f32 1.442695, %v1216_v6  ;;  %v2357_v26 = vmul.f32 %v7472_v12, %v2356_v13  ;;  %vm7557_vm15 = vcmp.lt.f32.partialorder %v2358_v22, 0.0004427343  ;;  %v961_v35 = vand.u32 2147483647, %v7543_v0 }
 0x114   : > { %v4535_v19 = vadd.f32 %v4279_v16, %v695_v24  ;;  %v5353_v63 = vpop.eup %5352  ;;  %v2366_v31 = vmul.f32 %v7482_v60, %v2365_v45  ;;  %v2374_v9 = vadd.f32 1.0, %v2373_v43  ;;  %5366 = vlog2.f32 %v2388_v48  ;;  %v7587_v13 = vld [vmem:[%s6391_s30 + $0x1d0] sm:$0xff] }
 0x115   : > { %v962_v32 = vand.u32 2147483647, %v7546_v2  ;;  %v2354_v54 = vmul.f32 0.6931472, %v5353_v63  ;;  %v2382_v24 = vmul.f32 -0.5, %v7528_v8  ;;  %5368 = vpow2.f32 %v1527_v52 }
 0x116   : > { %v7564_v49 = vpop.eup %5354  ;;  %4791 = vst [vmem:[%s6574_s17 + $0x170] sm:$0xff] %v4535_v19  ;;  %v1217_v12 = vsub.f32 0.0, %v961_v35  ;;  %vm7568_vm0 = vcmp.lt.f32.partialorder %v2367_v47, 0.0004427343  ;;  %vm7572_vm1 = vcmp.lt.f32.partialorder %v2376_v3, 0.0004427343  ;;  %v2375_v33 = vmul.f32 %v7501_v57, %v2374_v9 }
 0x117   : > { %v2391_v60 = vmul.f32 -0.5, %v7537_v20  ;;  %v2397_v5 = vadd.f32 1.0, %v7564_v49  ;;  %v2360_v4 = vsel %vm7557_vm15, %v2357_v26, %v2354_v54  ;;  %v1218_v50 = vsub.f32 0.0, %v962_v32  ;;  %v7629_v32 = vld [vmem:[%s6391_s30 + $0x1e0] sm:$0xff] }
 0x118   : > { %v5357_v1 = vpop.eup %5356  ;;  %v1529_v7 = vmul.f32 1.442695, %v1217_v12  ;;  %v4280_v27 = vmul.f32 0.9, %v2360_v4  ;;  %v2385_v41 = vand.u32 2147483647, %v7528_v8  ;;  %v699_v19 = vmax.f32 %v7421_v61, %v7517_v58 }
 0x119   : > { %v2363_v21 = vmul.f32 0.6931472, %v5357_v1  ;;  %5370 = vlog2.f32 %v2397_v5  ;;  %v7582_v44 = vpop.eup %5358  ;;  %v2383_v11 = vadd.f32 1.0, %v2382_v24  ;;  %v1531_v17 = vmul.f32 1.442695, %v1218_v50 }
 0x11a   : > { %5372 = vpow2.f32 %v1529_v7  ;;  %v5361_v22 = vpop.eup %5360  ;;  %v4536_v45 = vadd.f32 %v4280_v27, %v696_v37  ;;  %v2394_v14 = vand.u32 2147483647, %v7537_v20  ;;  %v2406_v40 = vadd.f32 1.0, %v7582_v44 }
 0x11b   : > { %v2369_v30 = vsel %vm7568_vm0, %v2366_v31, %v2363_v21  ;;  %v2372_v43 = vmul.f32 0.6931472, %v5361_v22  ;;  %v2392_v6 = vadd.f32 1.0, %v2391_v60  ;;  %v7595_v16 = vmul.f32 0.1, %v7490_v39 }
 0x11c   : > { %v4281_v57 = vmul.f32 0.9, %v2369_v30  ;;  %5374 = vpow2.f32 %v1531_v17  ;;  %4792 = vst [vmem:[%s6574_s17 + $0x178] sm:$0xff] %v4536_v45  ;;  %v2400_v59 = vmul.f32 -0.5, %v7564_v49  ;;  %v963_v62 = vand.u32 2147483647, %v7587_v13 }
 0x11d   : > { %5376 = vlog2.f32 %v2406_v40  ;;  %v7603_v37 = vpop.eup %5362  ;;  %v2378_v3 = vsel %vm7572_vm1, %v2375_v33, %v2372_v43  ;;  %v2384_v48 = vmul.f32 %v7528_v8, %v2383_v11  ;;  %vm7608_vm2 = vcmp.lt.f32.partialorder %v2385_v41, 0.0004427343  ;;  %v7624_v8 = vld [vmem:[%s6391_s30 + $0x1d8] sm:$0xff] }
 0x11e   : > { %v4537_v47 = vadd.f32 %v4281_v57, %v697_v34  ;;  %v7613_v23 = vmul.f32 0.1, %v7498_v53  ;;  %v4282_v34 = vmul.f32 0.9, %v2378_v3  ;;  %vm7618_vm3 = vcmp.lt.f32.partialorder %v2394_v14, 0.0004427343 }
 0x11f   : > { %v5365_v56 = vpop.eup %5364  ;;  %v2415_v36 = vadd.f32 1.0, %v7603_v37  ;;  %v2393_v63 = vmul.f32 %v7537_v20, %v2392_v6  ;;  %v2409_v31 = vmul.f32 -0.5, %v7582_v44  ;;  %v1219_v9 = vsub.f32 0.0, %v963_v62 }
 0x120   : > { %4793 = vst [vmem:[%s6574_s17 + $0x180] sm:$0xff] %v4537_v47  ;;  %v2381_v35 = vmul.f32 0.6931472, %v5365_v56  ;;  %v4538_v61 = vadd.f32 %v4282_v34, %v698_v29  ;;  %v2401_v58 = vadd.f32 1.0, %v2400_v59  ;;  %v2403_v54 = vand.u32 2147483647, %v7564_v49 }
 0x121   : > { %5378 = vlog2.f32 %v2415_v36  ;;  %v5367_v24 = vpop.eup %5366  ;;  %v2412_v1 = vand.u32 2147483647, %v7582_v44  ;;  %v1533_v20 = vmul.f32 1.442695, %v1219_v9  ;;  %v964_v10 = vand.u32 2147483647, %v7624_v8 }
 0x122   : > { %v2387_v12 = vsel %vm7608_vm2, %v2384_v48, %v2381_v35  ;;  %v7639_v25 = vpop.eup %5368  ;;  %4794 = vst [vmem:[%s6574_s17 + $0x188] sm:$0xff] %v4538_v61  ;;  %v700_v46 = vmax.f32 %v7429_v28, %v7525_v18  ;;  %v2390_v38 = vmul.f32 0.6931472, %v5367_v24  ;;  %v965_v29 = vand.u32 2147483647, %v7629_v32  ;;  %v7674_v48 = vld [vmem:[%s6391_s30 + $0x1e8] sm:$0xff] }
 0x123   : > { %v4283_v60 = vmul.f32 0.9, %v2387_v12  ;;  %v2410_v5 = vadd.f32 1.0, %v2409_v31  ;;  %v2418_v4 = vmul.f32 -0.5, %v7603_v37  ;;  %v2424_v21 = vadd.f32 1.0, %v7639_v25  ;;  %v7723_v28 = vld [vmem:[%s6391_s30 + $0x200] sm:$0xff] }
 0x124   : > { %5380 = vpow2.f32 %v1533_v20  ;;  %v2396_v50 = vsel %vm7618_vm3, %v2393_v63, %v2390_v38  ;;  %v2402_v27 = vmul.f32 %v7564_v49, %v2401_v58  ;;  %v1220_v33 = vsub.f32 0.0, %v964_v10 }
 0x125   : > { %v4539_v7 = vadd.f32 %v4283_v60, %v699_v19  ;;  %v4284_v30 = vmul.f32 0.9, %v2396_v50  ;;  %vm7650_vm4 = vcmp.lt.f32.partialorder %v2403_v54, 0.0004427343  ;;  %vm7654_vm5 = vcmp.lt.f32.partialorder %v2412_v1, 0.0004427343 }
 0x126   : > { %v5371_v41 = vpop.eup %5370  ;;  %5382 = vlog2.f32 %v2424_v21  ;;  %v701_v17 = vmax.f32 %v7452_v51, %v7533_v55  ;;  %v1535_v22 = vmul.f32 1.442695, %v1220_v33  ;;  %v1221_v45 = vsub.f32 0.0, %v965_v29  ;;  %v7700_v54 = vld [vmem:[%s6391_s30 + $0x1f8] sm:$0xff] }
 0x127   : > { %v7658_v11 = vpop.eup %5372  ;;  %4795 = vst [vmem:[%s6574_s17 + $0x190] sm:$0xff] %v4539_v7  ;;  %v2399_v49 = vmul.f32 0.6931472, %v5371_v41  ;;  %v4540_v57 = vadd.f32 %v4284_v30, %v700_v46  ;;  %v2411_v14 = vmul.f32 %v7582_v44, %v2410_v5  ;;  %v2419_v40 = vadd.f32 1.0, %v2418_v4 }
 0x128   : > { %v2433_v43 = vadd.f32 1.0, %v7658_v11  ;;  %v2427_v59 = vmul.f32 -0.5, %v7639_v25  ;;  %5384 = vpow2.f32 %v1535_v22  ;;  %v1537_v62 = vmul.f32 1.442695, %v1221_v45 }
 0x129   : > { %v7665_v6 = vpop.eup %5374  ;;  %v2405_v47 = vsel %vm7650_vm4, %v2402_v27, %v2399_v49  ;;  %4796 = vst [vmem:[%s6574_s17 + $0x198] sm:$0xff] %v4540_v57  ;;  %v2421_v3 = vand.u32 2147483647, %v7603_v37  ;;  %v702_v52 = vmax.f32 %v7459_v42, %v7550_v15  ;;  %v7679_v34 = vmul.f32 0.1, %v7543_v0  ;;  %v7689_v15 = vld [vmem:[%s6391_s30 + $0x1f0] sm:$0xff] }
 0x12a   : > { %v5377_v51 = vpop.eup %5376  ;;  %v4285_v55 = vmul.f32 0.9, %v2405_v47  ;;  %5386 = vlog2.f32 %v2433_v43  ;;  %v2442_v44 = vadd.f32 1.0, %v7665_v6  ;;  %v703_v26 = vmax.f32 %v7490_v39, %v7595_v16 }
 0x12b   : > { %v2408_v56 = vmul.f32 0.6931472, %v5377_v51  ;;  %5388 = vpow2.f32 %v1537_v62  ;;  %v2430_v36 = vand.u32 2147483647, %v7639_v25  ;;  %v2420_v63 = vmul.f32 %v7603_v37, %v2419_v40 }
 0x12c   : > { %v4541_v19 = vadd.f32 %v4285_v55, %v701_v17  ;;  %5390 = vlog2.f32 %v2442_v44  ;;  %v2428_v31 = vadd.f32 1.0, %v2427_v59  ;;  %v966_v42 = vand.u32 2147483647, %v7674_v48 }
 0x12d   : > { %v2414_v35 = vsel %vm7654_vm5, %v2411_v14, %v2408_v56  ;;  %vm7692_vm6 = vcmp.lt.f32.partialorder %v2421_v3, 0.0004427343  ;;  %v704_v39 = vmax.f32 %v7498_v53, %v7613_v23  ;;  %v2436_v16 = vmul.f32 -0.5, %v7658_v11 }
 0x12e   : > { %v5379_v9 = vpop.eup %5378  ;;  %4797 = vst [vmem:[%s6574_s17 + $0x1a0] sm:$0xff] %v4541_v19  ;;  %v4286_v61 = vmul.f32 0.9, %v2414_v35  ;;  %v705_v24 = vmax.f32 %v7543_v0, %v7679_v34  ;;  %v2445_v12 = vmul.f32 -0.5, %v7665_v6  ;;  %v1222_v1 = vsub.f32 0.0, %v966_v42 }
 0x12f   : > { %v2417_v37 = vmul.f32 0.6931472, %v5379_v9  ;;  %vm7705_vm7 = vcmp.lt.f32.partialorder %v2430_v36, 0.0004427343  ;;  %v7710_v60 = vmul.f32 0.1, %v7546_v2  ;;  %v2429_v38 = vmul.f32 %v7639_v25, %v2428_v31 }
 0x130   : > { %v4542_v20 = vadd.f32 %v4286_v61, %v702_v52  ;;  %v967_v53 = vand.u32 2147483647, %v7689_v15  ;;  %v1539_v29 = vmul.f32 1.442695, %v1222_v1  ;;  %v968_v5 = vand.u32 2147483647, %v7700_v54 }
 0x131   : > { %v7713_v23 = vpop.eup %5380  ;;  %v2423_v46 = vsel %vm7692_vm6, %v2420_v63, %v2417_v37  ;;  %v2437_v21 = vadd.f32 1.0, %v2436_v16  ;;  %v2439_v7 = vand.u32 2147483647, %v7658_v11  ;;  %v2446_v33 = vadd.f32 1.0, %v2445_v12  ;;  %v7762_v9 = vld [vmem:[%s6391_s30 + $0x208] sm:$0xff]  ;;  %v7765_v61 = vld [vmem:[%s6391_s30 + $0x210] sm:$0xff] }
 0x132   : > { %4798 = vst [vmem:[%s6574_s17 + $0x1a8] sm:$0xff] %v4542_v20  ;;  %v4287_v4 = vmul.f32 0.9, %v2423_v46  ;;  %v2451_v50 = vadd.f32 1.0, %v7713_v23  ;;  %5392 = vpow2.f32 %v1539_v29  ;;  %v1223_v41 = vsub.f32 0.0, %v967_v53  ;;  %v7775_v20 = vld [vmem:[%s6391_s30 + $0x218] sm:$0xff] }
 0x133   : > { %v5383_v27 = vpop.eup %5382  ;;  %v1224_v30 = vsub.f32 0.0, %v968_v5  ;;  %v7726_v17 = vmul.f32 0.1, %v7587_v13  ;;  %v706_v49 = vmax.f32 %v7546_v2, %v7710_v60  ;;  %v2448_v22 = vand.u32 2147483647, %v7665_v6 }
 0x134   : > { %v4543_v18 = vadd.f32 %v4287_v4, %v703_v26  ;;  %v2426_v25 = vmul.f32 0.6931472, %v5383_v27  ;;  %5394 = vlog2.f32 %v2451_v50  ;;  %v7732_v45 = vmul.f32 0.1, %v7624_v8 }
 0x135   : > { %v1541_v57 = vmul.f32 1.442695, %v1223_v41  ;;  %v7734_v14 = vpop.eup %5384  ;;  %v2438_v43 = vmul.f32 %v7658_v11, %v2437_v21  ;;  %vm7740_vm8 = vcmp.lt.f32.partialorder %v2439_v7, 0.0004427343  ;;  %v969_v2 = vand.u32 2147483647, %v7723_v28 }
 0x136   : > { %4799 = vst [vmem:[%s6574_s17 + $0x1b0] sm:$0xff] %v4543_v18  ;;  %v2432_v40 = vsel %vm7705_vm7, %v2429_v38, %v2426_v25  ;;  %v2447_v51 = vmul.f32 %v7665_v6, %v2446_v33  ;;  %v2460_v55 = vadd.f32 1.0, %v7734_v14  ;;  %v1543_v3 = vmul.f32 1.442695, %v1224_v30  ;;  %v7783_v38 = vld [vmem:[%s6391_s30 + $0x220] sm:$0xff] }
 0x137   : > { %v5387_v59 = vpop.eup %5386  ;;  %v4288_v62 = vmul.f32 0.9, %v2432_v40  ;;  %v2454_v11 = vmul.f32 -0.5, %v7713_v23  ;;  %5396 = vpow2.f32 %v1541_v57  ;;  %v1225_v56 = vsub.f32 0.0, %v969_v2 }
 0x138   : > { %v7747_v44 = vpop.eup %5388  ;;  %v2435_v52 = vmul.f32 0.6931472, %v5387_v59  ;;  %vm7750_vm9 = vcmp.lt.f32.partialorder %v2448_v22, 0.0004427343  ;;  %v707_v6 = vmax.f32 %v7587_v13, %v7726_v17  ;;  %5398 = vlog2.f32 %v2460_v55 }
 0x139   : > { %v5391_v19 = vpop.eup %5390  ;;  %v4544_v26 = vadd.f32 %v4288_v62, %v704_v39  ;;  %v708_v31 = vmax.f32 %v7624_v8, %v7732_v45  ;;  %v2469_v42 = vadd.f32 1.0, %v7747_v44  ;;  %v2457_v39 = vand.u32 2147483647, %v7713_v23 }
 0x13a   : > { %v2441_v35 = vsel %vm7740_vm8, %v2438_v43, %v2435_v52  ;;  %v2444_v63 = vmul.f32 0.6931472, %v5391_v19  ;;  %v7770_v16 = vmul.f32 0.1, %v7629_v32  ;;  %5400 = vpow2.f32 %v1543_v3 }
 0x13b   : > { %4800 = vst [vmem:[%s6574_s17 + $0x1b8] sm:$0xff] %v4544_v26  ;;  %v4289_v58 = vmul.f32 0.9, %v2441_v35  ;;  %v2455_v12 = vadd.f32 1.0, %v2454_v11  ;;  %5402 = vlog2.f32 %v2469_v42  ;;  %v1545_v1 = vmul.f32 1.442695, %v1225_v56 }
 0x13c   : > { %v2450_v37 = vsel %vm7750_vm9, %v2447_v51, %v2444_v63  ;;  %v2463_v53 = vmul.f32 -0.5, %v7734_v14  ;;  %v970_v46 = vand.u32 2147483647, %v7762_v9  ;;  %v7786_v29 = vmul.f32 0.1, %v7674_v48  ;;  %v7820_v56 = vld [vmem:[%s6391_s30 + $0x228] sm:$0xff] }
 0x13d   : > { %v4545_v10 = vadd.f32 %v4289_v58, %v705_v24  ;;  %v4290_v60 = vmul.f32 0.9, %v2450_v37  ;;  %v7789_v5 = vmul.f32 0.1, %v7689_v15  ;;  %5404 = vpow2.f32 %v1545_v1 }
 0x13e   : > { %v971_v4 = vand.u32 2147483647, %v7765_v61  ;;  %v2472_v34 = vmul.f32 -0.5, %v7747_v44  ;;  %v1226_v24 = vsub.f32 0.0, %v970_v46  ;;  %v972_v21 = vand.u32 2147483647, %v7775_v20 }
 0x13f   : > { %4801 = vst [vmem:[%s6574_s17 + $0x1c0] sm:$0xff] %v4545_v10  ;;  %v4546_v0 = vadd.f32 %v4290_v60, %v706_v49  ;;  %v7795_v7 = vpop.eup %5392  ;;  %v2456_v50 = vmul.f32 %v7713_v23, %v2455_v12  ;;  %vm7798_vm10 = vcmp.lt.f32.partialorder %v2457_v39, 0.0004427343  ;;  %v973_v41 = vand.u32 2147483647, %v7783_v38 }
 0x140   : > { %v1227_v33 = vsub.f32 0.0, %v971_v4  ;;  %v2464_v18 = vadd.f32 1.0, %v2463_v53  ;;  %v2466_v25 = vand.u32 2147483647, %v7734_v14  ;;  %v2478_v49 = vadd.f32 1.0, %v7795_v7 }
 0x141   : > { %v5395_v30 = vpop.eup %5394  ;;  %4802 = vst [vmem:[%s6574_s17 + $0x1c8] sm:$0xff] %v4546_v0  ;;  %v1547_v22 = vmul.f32 1.442695, %v1226_v24  ;;  %v709_v40 = vmax.f32 %v7629_v32, %v7770_v16  ;;  %v1228_v43 = vsub.f32 0.0, %v972_v21  ;;  %v2473_v47 = vadd.f32 1.0, %v2472_v34  ;;  %v7855_v24 = vld [vmem:[%s6391_s30 + $0x230] sm:$0xff] }
 0x142   : > { %v2453_v57 = vmul.f32 0.6931472, %v5395_v30  ;;  %v1549_v23 = vmul.f32 1.442695, %v1227_v33  ;;  %v710_v2 = vmax.f32 %v7674_v48, %v7786_v29  ;;  %5406 = vlog2.f32 %v2478_v49 }
 0x143   : > { %v7811_v59 = vmul.f32 0.1, %v7700_v54  ;;  %5408 = vpow2.f32 %v1547_v22  ;;  %v1551_v51 = vmul.f32 1.442695, %v1228_v43  ;;  %v1229_v55 = vsub.f32 0.0, %v973_v41 }
 0x144   : > { %v2459_v62 = vsel %vm7798_vm10, %v2456_v50, %v2453_v57  ;;  %v7815_v3 = vpop.eup %5396  ;;  %v2465_v52 = vmul.f32 %v7734_v14, %v2464_v18  ;;  %v2475_v11 = vand.u32 2147483647, %v7747_v44  ;;  %5410 = vpow2.f32 %v1549_v23 }
 0x145   : > { %v4291_v32 = vmul.f32 0.9, %v2459_v62  ;;  %v5399_v19 = vpop.eup %5398  ;;  %vm7822_vm11 = vcmp.lt.f32.partialorder %v2466_v25, 0.0004427343  ;;  %v711_v36 = vmax.f32 %v7689_v15, %v7789_v5  ;;  %v2487_v35 = vadd.f32 1.0, %v7815_v3 }
 0x146   : > { %5412 = vpow2.f32 %v1551_v51  ;;  %v2462_v63 = vmul.f32 0.6931472, %v5399_v19  ;;  %v2481_v42 = vmul.f32 -0.5, %v7795_v7  ;;  %v1553_v58 = vmul.f32 1.442695, %v1229_v55  ;;  %v7883_v55 = vld [vmem:[%s6391_s30 + $0x238] sm:$0xff] }
 0x147   : > { %v4547_v14 = vadd.f32 %v4291_v32, %v707_v6  ;;  %v7833_v39 = vpop.eup %5400  ;;  %v2474_v16 = vmul.f32 %v7747_v44, %v2473_v47  ;;  %5414 = vlog2.f32 %v2487_v35  ;;  %v7837_v37 = vmul.f32 0.1, %v7723_v28 }
 0x148   : > { %v974_v12 = vand.u32 2147483647, %v7820_v56  ;;  %v5403_v1 = vpop.eup %5402  ;;  %v2468_v13 = vsel %vm7822_vm11, %v2465_v52, %v2462_v63  ;;  %vm7843_vm12 = vcmp.lt.f32.partialorder %v2475_v11, 0.0004427343  ;;  %v712_v6 = vmax.f32 %v7700_v54, %v7811_v59 }
 0x149   : > { %4803 = vst [vmem:[%s6574_s17 + $0x1d0] sm:$0xff] %v4547_v14  ;;  %v2496_v44 = vadd.f32 1.0, %v7833_v39  ;;  %v4292_v10 = vmul.f32 0.9, %v2468_v13  ;;  %v2471_v60 = vmul.f32 0.6931472, %v5403_v1  ;;  %5416 = vpow2.f32 %v1553_v58 }
 0x14a   : > { %v7851_v53 = vmul.f32 0.1, %v7762_v9  ;;  %v5405_v46 = vpop.eup %5404  ;;  %v2482_v4 = vadd.f32 1.0, %v2481_v42  ;;  %v2484_v0 = vand.u32 2147483647, %v7795_v7  ;;  %v1230_v34 = vsub.f32 0.0, %v974_v12 }
 0x14b   : > { %5418 = vlog2.f32 %v2496_v44  ;;  %v4548_v21 = vadd.f32 %v4292_v10, %v708_v31  ;;  %v2477_v50 = vsel %vm7843_vm12, %v2474_v16, %v2471_v60  ;;  %v2490_v27 = vmul.f32 -0.5, %v7815_v3 }
 0x14c   : > { %v2505_v33 = vadd.f32 1.0, %v5405_v46  ;;  %v4293_v41 = vmul.f32 0.9, %v2477_v50  ;;  %v713_v30 = vmax.f32 %v7723_v28, %v7837_v37  ;;  %v7866_v18 = vmul.f32 0.1, %v7765_v61 }
 0x14d   : > { %v1555_v25 = vmul.f32 1.442695, %v1230_v34  ;;  %4804 = vst [vmem:[%s6574_s17 + $0x1d8] sm:$0xff] %v4548_v21  ;;  %v2499_v8 = vmul.f32 -0.5, %v7833_v39  ;;  %v7871_v45 = vmul.f32 0.1, %v7775_v20  ;;  %v2483_v22 = vmul.f32 %v7795_v7, %v2482_v4 }
 0x14e   : > { %5420 = vlog2.f32 %v2505_v33  ;;  %v975_v31 = vand.u32 2147483647, %v7855_v24  ;;  %v4549_v49 = vadd.f32 %v4293_v41, %v709_v40  ;;  %v2508_v57 = vmul.f32 -0.5, %v5405_v46  ;;  %v7914_v34 = vld [vmem:[%s6391_s30 + $0x240] sm:$0xff] }
 0x14f   : > { %5422 = vpow2.f32 %v1555_v25  ;;  %v5407_v23 = vpop.eup %5406  ;;  %vm7875_vm13 = vcmp.lt.f32.partialorder %v2484_v0, 0.0004427343  ;;  %v2491_v47 = vadd.f32 1.0, %v2490_v27  ;;  %v2493_v62 = vand.u32 2147483647, %v7815_v3 }
 0x150   : > { %v714_v51 = vmax.f32 %v7762_v9, %v7851_v53  ;;  %v7885_v32 = vpop.eup %5408  ;;  %4805 = vst [vmem:[%s6574_s17 + $0x1e0] sm:$0xff] %v4549_v49  ;;  %v2480_v40 = vmul.f32 0.6931472, %v5407_v23  ;;  %v2502_v7 = vand.u32 2147483647, %v7833_v39  ;;  %v715_v52 = vmax.f32 %v7765_v61, %v7866_v18 }
 0x151   : > { %v1231_v11 = vsub.f32 0.0, %v975_v31  ;;  %v7891_v19 = vpop.eup %5410  ;;  %v2500_v26 = vadd.f32 1.0, %v2499_v8  ;;  %v2511_v35 = vand.u32 2147483647, %v5405_v46  ;;  %v2514_v14 = vadd.f32 1.0, %v7885_v32 }
 0x152   : > { %v7895_v63 = vmul.f32 0.1, %v7783_v38  ;;  %v2486_v58 = vsel %vm7875_vm13, %v2483_v22, %v2480_v40  ;;  %v2509_v16 = vadd.f32 1.0, %v2508_v57  ;;  %v2523_v12 = vadd.f32 1.0, %v7891_v19 }
 0x153   : > { %v7897_v42 = vpop.eup %5412  ;;  %v976_v1 = vand.u32 2147483647, %v7883_v55  ;;  %v4294_v13 = vmul.f32 0.9, %v2486_v58  ;;  %v2492_v17 = vmul.f32 %v7815_v3, %v2491_v47  ;;  %vm7904_vm14 = vcmp.lt.f32.partialorder %v2493_v62, 0.0004427343 }
 0x154   : > { %5424 = vlog2.f32 %v2514_v14  ;;  %v5415_v10 = vpop.eup %5414  ;;  %vm7908_vm15 = vcmp.lt.f32.partialorder %v2502_v7, 0.0004427343  ;;  %v2532_v4 = vadd.f32 1.0, %v7897_v42  ;;  %v1557_v0 = vmul.f32 1.442695, %v1231_v11 }
 0x155   : > { %5426 = vlog2.f32 %v2523_v12  ;;  %v4550_v3 = vadd.f32 %v4294_v13, %v710_v2  ;;  %v2489_v21 = vmul.f32 0.6931472, %v5415_v10  ;;  %v2501_v50 = vmul.f32 %v7833_v39, %v2500_v26  ;;  %v7954_v12 = vld [vmem:[%s6391_s30 + $0x248] sm:$0xff]  ;;  %v7962_v10 = vld [vmem:[%s6391_s30 + $0x250] sm:$0xff] }
 0x156   : > { %v2517_v27 = vmul.f32 -0.5, %v7885_v32  ;;  %v7921_v33 = vpop.eup %5416  ;;  %v2510_v41 = vmul.f32 %v5405_v46, %v2509_v16  ;;  %vm7923_vm0 = vcmp.lt.f32.partialorder %v2511_v35, 0.0004427343  ;;  %5428 = vlog2.f32 %v2532_v4 }
 0x157   : > { %v1232_v8 = vsub.f32 0.0, %v976_v1  ;;  %4806 = vst [vmem:[%s6574_s17 + $0x1e8] sm:$0xff] %v4550_v3  ;;  %v2495_v48 = vsel %vm7904_vm14, %v2492_v17, %v2489_v21  ;;  %v2520_v29 = vand.u32 2147483647, %v7885_v32  ;;  %v2541_v2 = vadd.f32 1.0, %v7921_v33  ;;  %v7969_v3 = vld [vmem:[%s6391_s30 + $0x258] sm:$0xff] }
 0x158   : > { %v5419_v31 = vpop.eup %5418  ;;  %v977_v39 = vand.u32 2147483647, %v7914_v34  ;;  %v4295_v49 = vmul.f32 0.9, %v2495_v48  ;;  %v2526_v46 = vmul.f32 -0.5, %v7891_v19  ;;  %5430 = vpow2.f32 %v1557_v0 }
 0x159   : > { %v2498_v22 = vmul.f32 0.6931472, %v5419_v31  ;;  %v2518_v57 = vadd.f32 1.0, %v2517_v27  ;;  %v2529_v23 = vand.u32 2147483647, %v7891_v19  ;;  %v2535_v43 = vmul.f32 -0.5, %v7897_v42 }
 0x15a   : > { %5432 = vlog2.f32 %v2541_v2  ;;  %v4551_v62 = vadd.f32 %v4295_v49, %v711_v36  ;;  %v2544_v7 = vmul.f32 -0.5, %v7921_v33  ;;  %v1559_v11 = vmul.f32 1.442695, %v1232_v8  ;;  %v7986_v2 = vld [vmem:[%s6391_s30 + $0x260] sm:$0xff] }
 0x15b   : > { %v5421_v47 = vpop.eup %5420  ;;  %v2504_v40 = vsel %vm7908_vm15, %v2501_v50, %v2498_v22  ;;  %vm7944_vm1 = vcmp.lt.f32.partialorder %v2520_v29, 0.0004427343  ;;  %v716_v16 = vmax.f32 %v7775_v20, %v7871_v45  ;;  %v2527_v15 = vadd.f32 1.0, %v2526_v46 }
 0x15c   : > { %v7942_v26 = vpop.eup %5422  ;;  %v4296_v35 = vmul.f32 0.9, %v2504_v40  ;;  %v2507_v14 = vmul.f32 0.6931472, %v5421_v47  ;;  %4807 = vst [vmem:[%s6574_s17 + $0x1f0] sm:$0xff] %v4551_v62  ;;  %5434 = vpow2.f32 %v1559_v11  ;;  %v2536_v17 = vadd.f32 1.0, %v2535_v43 }
 0x15d   : > { %v2538_v5 = vand.u32 2147483647, %v7897_v42  ;;  %v2550_v36 = vadd.f32 1.0, %v7942_v26  ;;  %v1233_v44 = vsub.f32 0.0, %v977_v39  ;;  %vm7964_vm2 = vcmp.lt.f32.partialorder %v2529_v23, 0.0004427343 }
 0x15e   : > { %v4552_v1 = vadd.f32 %v4296_v35, %v712_v6  ;;  %v2513_v13 = vsel %vm7923_vm0, %v2510_v41, %v2507_v14  ;;  %v2545_v0 = vadd.f32 1.0, %v2544_v7  ;;  %v2519_v54 = vmul.f32 %v7885_v32, %v2518_v57 }
 0x15f   : > { %v4297_v60 = vmul.f32 0.9, %v2513_v13  ;;  %5436 = vlog2.f32 %v2550_v36  ;;  %v2547_v59 = vand.u32 2147483647, %v7921_v33  ;;  %v1561_v6 = vmul.f32 1.442695, %v1233_v44 }
 0x160   : > { %4808 = vst [vmem:[%s6574_s17 + $0x1f8] sm:$0xff] %v4552_v1  ;;  %v978_v21 = vand.u32 2147483647, %v7954_v12  ;;  %v2528_v41 = vmul.f32 %v7891_v19, %v2527_v15  ;;  %vm7979_vm3 = vcmp.lt.f32.partialorder %v2538_v5, 0.0004427343  ;;  %v2537_v48 = vmul.f32 %v7897_v42, %v2536_v17 }
 0x161   : > { %v5425_v50 = vpop.eup %5424  ;;  %v4553_v27 = vadd.f32 %v4297_v60, %v713_v30  ;;  %v979_v8 = vand.u32 2147483647, %v7962_v10  ;;  %5438 = vpow2.f32 %v1561_v6  ;;  %v2553_v28 = vmul.f32 -0.5, %v7942_v26  ;;  %v8028_v60 = vld [vmem:[%s6391_s30 + $0x268] sm:$0xff] }
 0x162   : > { %v5427_v31 = vpop.eup %5426  ;;  %v2516_v32 = vmul.f32 0.6931472, %v5425_v50  ;;  %v1234_v29 = vsub.f32 0.0, %v978_v21  ;;  %v980_v30 = vand.u32 2147483647, %v7969_v3  ;;  %v2546_v22 = vmul.f32 %v7921_v33, %v2545_v0 }
 0x163   : > { %4809 = vst [vmem:[%s6574_s17 + $0x200] sm:$0xff] %v4553_v27  ;;  %v2525_v39 = vmul.f32 0.6931472, %v5427_v31  ;;  %v1235_v37 = vsub.f32 0.0, %v979_v8  ;;  %v5429_v19 = vpop.eup %5428  ;;  %vm7994_vm4 = vcmp.lt.f32.partialorder %v2547_v59, 0.0004427343  ;;  %v717_v9 = vmax.f32 %v7783_v38, %v7895_v63 }
 0x164   : > { %v2522_v49 = vsel %vm7944_vm1, %v2519_v54, %v2516_v32  ;;  %v1563_v42 = vmul.f32 1.442695, %v1234_v29  ;;  %v2534_v43 = vmul.f32 0.6931472, %v5429_v19  ;;  %v981_v47 = vand.u32 2147483647, %v7986_v2 }
 0x165   : > { %v4298_v57 = vmul.f32 0.9, %v2522_v49  ;;  %v2531_v23 = vsel %vm7964_vm2, %v2528_v41, %v2525_v39  ;;  %v8001_v62 = vpop.eup %5430  ;;  %v1565_v7 = vmul.f32 1.442695, %v1235_v37  ;;  %v1236_v11 = vsub.f32 0.0, %v980_v30  ;;  %v8057_v31 = vld [vmem:[%s6391_s30 + $0x278] sm:$0xff] }
 0x166   : > { %v4299_v40 = vmul.f32 0.9, %v2531_v23  ;;  %5440 = vpow2.f32 %v1563_v42  ;;  %v2540_v14 = vsel %vm7979_vm3, %v2537_v48, %v2534_v43  ;;  %v2554_v58 = vadd.f32 1.0, %v2553_v28 }
 0x167   : > { %v5433_v33 = vpop.eup %5432  ;;  %v4554_v35 = vadd.f32 %v4298_v57, %v714_v51  ;;  %v2559_v15 = vadd.f32 1.0, %v8001_v62  ;;  %v4300_v36 = vmul.f32 0.9, %v2540_v14  ;;  %v2556_v13 = vand.u32 2147483647, %v7942_v26 }
 0x168   : > { %v4555_v5 = vadd.f32 %v4299_v40, %v715_v52  ;;  %v2543_v1 = vmul.f32 0.6931472, %v5433_v33  ;;  %v1567_v53 = vmul.f32 1.442695, %v1236_v11  ;;  %v1237_v51 = vsub.f32 0.0, %v981_v47  ;;  %v8083_v11 = vld [vmem:[%s6391_s30 + $0x280] sm:$0xff] }
 0x169   : > { %4810 = vst [vmem:[%s6574_s17 + $0x208] sm:$0xff] %v4554_v35  ;;  %5442 = vlog2.f32 %v2559_v15  ;;  %v8016_v17 = vpop.eup %5434  ;;  %v4556_v61 = vadd.f32 %v4300_v36, %v716_v16  ;;  %v462_v52 = vmul.f32 0.1, %v7820_v56  ;;  %v2555_v38 = vmul.f32 %v7942_v26, %v2554_v58  ;;  %v8037_v16 = vld [vmem:[%s6391_s30 + $0x270] sm:$0xff] }
 0x16a   : > { %4811 = vst [vmem:[%s6574_s17 + $0x210] sm:$0xff] %v4555_v5  ;;  %v2549_v18 = vsel %vm7994_vm4, %v2546_v22, %v2543_v1  ;;  %5444 = vpow2.f32 %v1565_v7  ;;  %v2568_v63 = vadd.f32 1.0, %v8016_v17  ;;  %vm8031_vm5 = vcmp.lt.f32.partialorder %v2556_v13, 0.0004427343 }
 0x16b   : > { %v4301_v44 = vmul.f32 0.9, %v2549_v18  ;;  %4812 = vst [vmem:[%s6574_s17 + $0x218] sm:$0xff] %v4556_v61  ;;  %v2562_v20 = vmul.f32 -0.5, %v8001_v62  ;;  %5446 = vpow2.f32 %v1567_v53  ;;  %v1569_v45 = vmul.f32 1.442695, %v1237_v51 }
 0x16c   : > { %v5437_v4 = vpop.eup %5436  ;;  %v8040_v59 = vmul.f32 0.1, %v7855_v24  ;;  %5448 = vlog2.f32 %v2568_v63  ;;  %v718_v6 = vmax.f32 %v7820_v56, %v462_v52  ;;  %v8044_v21 = vmul.f32 0.1, %v7883_v55 }
 0x16d   : > { %v4557_v54 = vadd.f32 %v4301_v44, %v717_v9  ;;  %v2552_v26 = vmul.f32 0.6931472, %v5437_v4  ;;  %5450 = vpow2.f32 %v1569_v45  ;;  %v982_v50 = vand.u32 2147483647, %v8028_v60 }
 0x16e   : > { %v8047_v27 = vpop.eup %5438  ;;  %v8053_v25 = vmul.f32 0.1, %v7914_v34  ;;  %v983_v8 = vand.u32 2147483647, %v8037_v16  ;;  %v2563_v32 = vadd.f32 1.0, %v2562_v20  ;;  %v719_v39 = vmax.f32 %v7855_v24, %v8040_v59 }
 0x16f   : > { %4813 = vst [vmem:[%s6574_s17 + $0x220] sm:$0xff] %v4557_v54  ;;  %v2558_v41 = vsel %vm8031_vm5, %v2555_v38, %v2552_v26  ;;  %v2577_v48 = vadd.f32 1.0, %v8047_v27  ;;  %v8061_v29 = vmul.f32 0.1, %v7954_v12  ;;  %v2571_v28 = vmul.f32 -0.5, %v8016_v17 }
 0x170   : > { %v4302_v56 = vmul.f32 0.9, %v2558_v41  ;;  %v1238_v37 = vsub.f32 0.0, %v982_v50  ;;  %v1239_v30 = vsub.f32 0.0, %v983_v8  ;;  %v2565_v49 = vand.u32 2147483647, %v8001_v62 }
 0x171   : > { %v720_v22 = vmax.f32 %v7883_v55, %v8044_v21  ;;  %5452 = vlog2.f32 %v2577_v48  ;;  %v721_v42 = vmax.f32 %v7914_v34, %v8053_v25  ;;  %v984_v24 = vand.u32 2147483647, %v8057_v31 }
 0x172   : > { %v4558_v19 = vadd.f32 %v4302_v56, %v718_v6  ;;  %v1571_v57 = vmul.f32 1.442695, %v1238_v37  ;;  %v1573_v23 = vmul.f32 1.442695, %v1239_v30  ;;  %v2564_v43 = vmul.f32 %v8001_v62, %v2563_v32  ;;  %v8123_v32 = vld [vmem:[%s6391_s30 + $0x288] sm:$0xff] }
 0x173   : > { %v8069_v46 = vpop.eup %5440  ;;  %v722_v47 = vmax.f32 %v7954_v12, %v8061_v29  ;;  %v8080_v7 = vmul.f32 0.1, %v7962_v10  ;;  %v2572_v33 = vadd.f32 1.0, %v2571_v28  ;;  %v2580_v35 = vmul.f32 -0.5, %v8047_v27 }
 0x174   : > { %4814 = vst [vmem:[%s6574_s17 + $0x228] sm:$0xff] %v4558_v19  ;;  %v2586_v40 = vadd.f32 1.0, %v8069_v46  ;;  %5454 = vpow2.f32 %v1571_v57  ;;  %v1240_v14 = vsub.f32 0.0, %v984_v24  ;;  %vm8086_vm6 = vcmp.lt.f32.partialorder %v2565_v49, 0.0004427343  ;;  %v8131_v49 = vld [vmem:[%s6391_s30 + $0x290] sm:$0xff] }
 0x175   : > { %v2574_v62 = vand.u32 2147483647, %v8016_v17  ;;  %v8092_v5 = vmul.f32 0.1, %v7969_v3  ;;  %v985_v9 = vand.u32 2147483647, %v8083_v11  ;;  %v723_v51 = vmax.f32 %v7962_v10, %v8080_v7 }
 0x176   : > { %v5443_v58 = vpop.eup %5442  ;;  %5456 = vlog2.f32 %v2586_v40  ;;  %v1575_v13 = vmul.f32 1.442695, %v1240_v14  ;;  %v2583_v53 = vand.u32 2147483647, %v8047_v27  ;;  %v8099_v18 = vmul.f32 0.1, %v7986_v2 }
 0x177   : > { %v5445_v36 = vpop.eup %5444  ;;  %v2561_v1 = vmul.f32 0.6931472, %v5443_v58  ;;  %5458 = vpow2.f32 %v1573_v23  ;;  %v2573_v38 = vmul.f32 %v8016_v17, %v2572_v33  ;;  %v2581_v63 = vadd.f32 1.0, %v2580_v35 }
 0x178   : > { %v2595_v61 = vadd.f32 1.0, %v5445_v36  ;;  %v8101_v52 = vpop.eup %5446  ;;  %5460 = vpow2.f32 %v1575_v13  ;;  %vm8106_vm7 = vcmp.lt.f32.partialorder %v2574_v62, 0.0004427343  ;;  %v2589_v45 = vmul.f32 -0.5, %v8069_v46 }
 0x179   : > { %v2567_v44 = vsel %vm8086_vm6, %v2564_v43, %v2561_v1  ;;  %v5449_v4 = vpop.eup %5448  ;;  %v2598_v59 = vmul.f32 -0.5, %v5445_v36  ;;  %v2604_v6 = vadd.f32 1.0, %v8101_v52  ;;  %v1241_v17 = vsub.f32 0.0, %v985_v9 }
 0x17a   : > { %v4303_v0 = vmul.f32 0.9, %v2567_v44  ;;  %5462 = vlog2.f32 %v2595_v61  ;;  %v8111_v54 = vpop.eup %5450  ;;  %v2570_v26 = vmul.f32 0.6931472, %v5449_v4  ;;  %vm8114_vm8 = vcmp.lt.f32.partialorder %v2583_v53, 0.0004427343 }
 0x17b   : > { %v2613_v8 = vadd.f32 1.0, %v8111_v54  ;;  %v8120_v56 = vmul.f32 0.1, %v8028_v60  ;;  %v2582_v28 = vmul.f32 %v8047_v27, %v2581_v63  ;;  %v2592_v37 = vand.u32 2147483647, %v8069_v46 }
 0x17c   : > { %v4559_v50 = vadd.f32 %v4303_v0, %v719_v39  ;;  %v2576_v48 = vsel %vm8106_vm7, %v2573_v38, %v2570_v26  ;;  %5464 = vlog2.f32 %v2604_v6  ;;  %v2590_v30 = vadd.f32 1.0, %v2589_v45 }
 0x17d   : > { %v4304_v39 = vmul.f32 0.9, %v2576_v48  ;;  %v2601_v19 = vand.u32 2147483647, %v5445_v36  ;;  %5466 = vlog2.f32 %v2613_v8  ;;  %v2599_v23 = vadd.f32 1.0, %v2598_v59  ;;  %v8174_v59 = vld [vmem:[%s6391_s30 + $0x298] sm:$0xff] }
 0x17e   : > { %4815 = vst [vmem:[%s6574_s17 + $0x230] sm:$0xff] %v4559_v50  ;;  %v5453_v57 = vpop.eup %5452  ;;  %v2607_v24 = vmul.f32 -0.5, %v8101_v52  ;;  %v1577_v43 = vmul.f32 1.442695, %v1241_v17  ;;  %v986_v40 = vand.u32 2147483647, %v8123_v32  ;;  %v2591_v21 = vmul.f32 %v8069_v46, %v2590_v30 }
 0x17f   : > { %v4560_v27 = vadd.f32 %v4304_v39, %v720_v22  ;;  %v2579_v33 = vmul.f32 0.6931472, %v5453_v57  ;;  %v2610_v35 = vand.u32 2147483647, %v8101_v52  ;;  %v2616_v14 = vmul.f32 -0.5, %v8111_v54 }
 0x180   : > { %vm8140_vm9 = vcmp.lt.f32.partialorder %v2592_v37, 0.0004427343  ;;  %v8145_v15 = vmul.f32 0.1, %v8037_v16  ;;  %v8148_v62 = vmul.f32 0.1, %v8057_v31  ;;  %5468 = vpow2.f32 %v1577_v43 }
 0x181   : > { %v8150_v1 = vpop.eup %5454  ;;  %4816 = vst [vmem:[%s6574_s17 + $0x238] sm:$0xff] %v4560_v27  ;;  %v2585_v55 = vsel %vm8114_vm8, %v2582_v28, %v2579_v33  ;;  %v1242_v22 = vsub.f32 0.0, %v986_v40  ;;  %v987_v13 = vand.u32 2147483647, %v8131_v49  ;;  %v2600_v61 = vmul.f32 %v5445_v36, %v2599_v23  ;;  %v8199_v43 = vld [vmem:[%s6391_s30 + $0x2a0] sm:$0xff]  ;;  %v8202_v40 = vld [vmem:[%s6391_s30 + $0x2a8] sm:$0xff] }
 0x182   : > { %v4305_v53 = vmul.f32 0.9, %v2585_v55  ;;  %vm8157_vm10 = vcmp.lt.f32.partialorder %v2601_v19, 0.0004427343  ;;  %v2622_v38 = vadd.f32 1.0, %v8150_v1  ;;  %v2608_v0 = vadd.f32 1.0, %v2607_v24 }
 0x183   : > { %v5457_v9 = vpop.eup %5456  ;;  %vm8164_vm11 = vcmp.lt.f32.partialorder %v2610_v35, 0.0004427343  ;;  %v2617_v20 = vadd.f32 1.0, %v2616_v14  ;;  %v2619_v45 = vand.u32 2147483647, %v8111_v54  ;;  %v2625_v26 = vmul.f32 -0.5, %v8150_v1 }
 0x184   : > { %v8162_v63 = vpop.eup %5458  ;;  %v2588_v4 = vmul.f32 0.6931472, %v5457_v9  ;;  %v4561_v36 = vadd.f32 %v4305_v53, %v721_v42  ;;  %5470 = vlog2.f32 %v2622_v38  ;;  %v1579_v41 = vmul.f32 1.442695, %v1242_v22 }
 0x185   : > { %v8176_v6 = vpop.eup %5460  ;;  %v2631_v50 = vadd.f32 1.0, %v8162_v63  ;;  %v1243_v8 = vsub.f32 0.0, %v987_v13  ;;  %v724_v25 = vmax.f32 %v7969_v3, %v8092_v5  ;;  %v2628_v42 = vand.u32 2147483647, %v8150_v1 }
 0x186   : > { %v2594_v17 = vsel %vm8140_vm9, %v2591_v21, %v2588_v4  ;;  %4817 = vst [vmem:[%s6574_s17 + $0x240] sm:$0xff] %v4561_v36  ;;  %v2640_v28 = vadd.f32 1.0, %v8176_v6  ;;  %v2609_v39 = vmul.f32 %v8101_v52, %v2608_v0  ;;  %v988_v30 = vand.u32 2147483647, %v8174_v59  ;;  %v8228_v4 = vld [vmem:[%s6391_s30 + $0x2b0] sm:$0xff]  ;;  %v8232_v36 = vld [vmem:[%s6391_s30 + $0x2b8] sm:$0xff] }
 0x187   : > { %v5463_v48 = vpop.eup %5462  ;;  %v4306_v34 = vmul.f32 0.9, %v2594_v17  ;;  %5472 = vlog2.f32 %v2631_v50  ;;  %v2618_v57 = vmul.f32 %v8111_v54, %v2617_v20  ;;  %vm8192_vm12 = vcmp.lt.f32.partialorder %v2619_v45, 0.0004427343 }
 0x188   : > { %v2597_v37 = vmul.f32 0.6931472, %v5463_v48  ;;  %5474 = vlog2.f32 %v2640_v28  ;;  %v2626_v24 = vadd.f32 1.0, %v2625_v26  ;;  %v1581_v52 = vmul.f32 1.442695, %v1243_v8 }
 0x189   : > { %v4562_v19 = vadd.f32 %v4306_v34, %v722_v47  ;;  %v5465_v5 = vpop.eup %5464  ;;  %5476 = vpow2.f32 %v1579_v41  ;;  %v725_v54 = vmax.f32 %v7986_v2, %v8099_v18  ;;  %vm8207_vm13 = vcmp.lt.f32.partialorder %v2628_v42, 0.0004427343 }
 0x18a   : > { %v2603_v23 = vsel %vm8157_vm10, %v2600_v61, %v2597_v37  ;;  %v5467_v12 = vpop.eup %5466  ;;  %v2606_v47 = vmul.f32 0.6931472, %v5465_v5  ;;  %v2634_v35 = vmul.f32 -0.5, %v8162_v63  ;;  %5478 = vpow2.f32 %v1581_v52 }
 0x18b   : > { %4818 = vst [vmem:[%s6574_s17 + $0x248] sm:$0xff] %v4562_v19  ;;  %v4307_v29 = vmul.f32 0.9, %v2603_v23  ;;  %v2615_v33 = vmul.f32 0.6931472, %v5467_v12  ;;  %v1244_v14 = vsub.f32 0.0, %v988_v30  ;;  %v2627_v46 = vmul.f32 %v8150_v1, %v2626_v24 }
 0x18c   : > { %v2612_v55 = vsel %vm8164_vm11, %v2609_v39, %v2606_v47  ;;  %v2643_v21 = vmul.f32 -0.5, %v8176_v6  ;;  %v989_v2 = vand.u32 2147483647, %v8199_v43  ;;  %v990_v53 = vand.u32 2147483647, %v8202_v40  ;;  %v8253_v39 = vld [vmem:[%s6391_s30 + $0x2c0] sm:$0xff] }
 0x18d   : > { %v4563_v58 = vadd.f32 %v4307_v29, %v723_v51  ;;  %v8219_v18 = vpop.eup %5468  ;;  %v4308_v22 = vmul.f32 0.9, %v2612_v55  ;;  %v2621_v13 = vsel %vm8192_vm12, %v2618_v57, %v2615_v33  ;;  %v1583_v9 = vmul.f32 1.442695, %v1244_v14 }
 0x18e   : > { %v4309_v10 = vmul.f32 0.9, %v2621_v13  ;;  %v2637_v7 = vand.u32 2147483647, %v8162_v63  ;;  %v2649_v51 = vadd.f32 1.0, %v8219_v18  ;;  %v2635_v44 = vadd.f32 1.0, %v2634_v35 }
 0x18f   : > { %4819 = vst [vmem:[%s6574_s17 + $0x250] sm:$0xff] %v4563_v58  ;;  %v4564_v61 = vadd.f32 %v4308_v22, %v724_v25  ;;  %5480 = vpow2.f32 %v1583_v9  ;;  %v1245_v38 = vsub.f32 0.0, %v989_v2  ;;  %v2644_v20 = vadd.f32 1.0, %v2643_v21 }
 0x190   : > { %v4565_v0 = vadd.f32 %v4309_v10, %v725_v54  ;;  %5482 = vlog2.f32 %v2649_v51  ;;  %v726_v26 = vmax.f32 %v8028_v60, %v8120_v56  ;;  %v2646_v17 = vand.u32 2147483647, %v8176_v6 }
 0x191   : > { %v5471_v45 = vpop.eup %5470  ;;  %4820 = vst [vmem:[%s6574_s17 + $0x258] sm:$0xff] %v4564_v61  ;;  %v1585_v50 = vmul.f32 1.442695, %v1245_v38  ;;  %v1246_v41 = vsub.f32 0.0, %v990_v53  ;;  %v727_v48 = vmax.f32 %v8037_v16, %v8145_v15  ;;  %v2652_v1 = vmul.f32 -0.5, %v8219_v18 }
 0x192   : > { %4821 = vst [vmem:[%s6574_s17 + $0x260] sm:$0xff] %v4565_v0  ;;  %v2624_v8 = vmul.f32 0.6931472, %v5471_v45  ;;  %v991_v34 = vand.u32 2147483647, %v8228_v4  ;;  %v2636_v25 = vmul.f32 %v8162_v63, %v2635_v44  ;;  %v2645_v16 = vmul.f32 %v8176_v6, %v2644_v20  ;;  %v8296_v0 = vld [vmem:[%s6391_s30 + $0x2d0] sm:$0xff] }
 0x193   : > { %5484 = vpow2.f32 %v1585_v50  ;;  %v1587_v42 = vmul.f32 1.442695, %v1246_v41  ;;  %v992_v60 = vand.u32 2147483647, %v8232_v36  ;;  %vm8247_vm14 = vcmp.lt.f32.partialorder %v2637_v7, 0.0004427343 }
 0x194   : > { %v5473_v56 = vpop.eup %5472  ;;  %v2630_v28 = vsel %vm8207_vm13, %v2627_v46, %v2624_v8  ;;  %v1247_v15 = vsub.f32 0.0, %v991_v34  ;;  %vm8255_vm15 = vcmp.lt.f32.partialorder %v2646_v17, 0.0004427343  ;;  %v728_v5 = vmax.f32 %v8057_v31, %v8148_v62  ;;  %v8286_v7 = vld [vmem:[%s6391_s30 + $0x2c8] sm:$0xff] }
 0x195   : > { %v5475_v30 = vpop.eup %5474  ;;  %v4310_v19 = vmul.f32 0.9, %v2630_v28  ;;  %v2633_v63 = vmul.f32 0.6931472, %v5473_v56  ;;  %5486 = vpow2.f32 %v1587_v42  ;;  %v2653_v24 = vadd.f32 1.0, %v2652_v1 }
 0x196   : > { %v8259_v3 = vpop.eup %5476  ;;  %v2642_v23 = vmul.f32 0.6931472, %v5475_v30  ;;  %v1589_v6 = vmul.f32 1.442695, %v1247_v15  ;;  %v1248_v47 = vsub.f32 0.0, %v992_v60 }
 0x197   : > { %v4566_v52 = vadd.f32 %v4310_v19, %v726_v26  ;;  %v2639_v12 = vsel %vm8247_vm14, %v2636_v25, %v2633_v63  ;;  %v2658_v29 = vadd.f32 1.0, %v8259_v3  ;;  %v8266_v54 = vpop.eup %5478  ;;  %v993_v31 = vand.u32 2147483647, %v8253_v39 }
 0x198   : > { %v4311_v27 = vmul.f32 0.9, %v2639_v12  ;;  %v2648_v33 = vsel %vm8255_vm15, %v2645_v16, %v2642_v23  ;;  %5488 = vpow2.f32 %v1589_v6  ;;  %v2655_v35 = vand.u32 2147483647, %v8219_v18  ;;  %v8335_v12 = vld [vmem:[%s6391_s30 + $0x2d8] sm:$0xff] }
 0x199   : > { %4822 = vst [vmem:[%s6574_s17 + $0x268] sm:$0xff] %v4566_v52  ;;  %v4312_v62 = vmul.f32 0.9, %v2648_v33  ;;  %5490 = vlog2.f32 %v2658_v29  ;;  %v2667_v14 = vadd.f32 1.0, %v8266_v54  ;;  %v473_v55 = vmul.f32 0.1, %v8083_v11 }
 0x19a   : > { %v4567_v58 = vadd.f32 %v4311_v27, %v727_v48  ;;  %v8276_v21 = vmul.f32 0.1, %v8123_v32  ;;  %v1591_v22 = vmul.f32 1.442695, %v1248_v47  ;;  %v2654_v9 = vmul.f32 %v8219_v18, %v2653_v24 }
 0x19b   : > { %v4568_v2 = vadd.f32 %v4312_v62, %v728_v5  ;;  %5492 = vlog2.f32 %v2667_v14  ;;  %v8283_v53 = vmul.f32 0.1, %v8131_v49  ;;  %v1249_v10 = vsub.f32 0.0, %v993_v31 }
 0x19c   : > { %v8278_v13 = vpop.eup %5480  ;;  %4823 = vst [vmem:[%s6574_s17 + $0x270] sm:$0xff] %v4567_v58  ;;  %vm8289_vm0 = vcmp.lt.f32.partialorder %v2655_v35, 0.0004427343  ;;  %v2661_v44 = vmul.f32 -0.5, %v8259_v3  ;;  %5494 = vpow2.f32 %v1591_v22  ;;  %v729_v18 = vmax.f32 %v8083_v11, %v473_v55 }
 0x19d   : > { %v5483_v51 = vpop.eup %5482  ;;  %4824 = vst [vmem:[%s6574_s17 + $0x278] sm:$0xff] %v4568_v2  ;;  %v2676_v38 = vadd.f32 1.0, %v8278_v13  ;;  %v730_v20 = vmax.f32 %v8123_v32, %v8276_v21  ;;  %v1593_v45 = vmul.f32 1.442695, %v1249_v10  ;;  %v2670_v26 = vmul.f32 -0.5, %v8266_v54 }
 0x19e   : > { %v2651_v46 = vmul.f32 0.6931472, %v5483_v51  ;;  %v8303_v17 = vmul.f32 0.1, %v8174_v59  ;;  %v994_v50 = vand.u32 2147483647, %v8286_v7  ;;  %v731_v25 = vmax.f32 %v8131_v49, %v8283_v53 }
 0x19f   : > { %5496 = vlog2.f32 %v2676_v38  ;;  %v8311_v11 = vmul.f32 0.1, %v8199_v43  ;;  %v995_v48 = vand.u32 2147483647, %v8296_v0  ;;  %v2662_v34 = vadd.f32 1.0, %v2661_v44 }
 0x1a0   : > { %v8306_v41 = vpop.eup %5484  ;;  %v2657_v8 = vsel %vm8289_vm0, %v2654_v9, %v2651_v46  ;;  %5498 = vpow2.f32 %v1593_v45  ;;  %v2664_v56 = vand.u32 2147483647, %v8259_v3  ;;  %v2679_v28 = vmul.f32 -0.5, %v8278_v13 }
 0x1a1   : > { %v4313_v1 = vmul.f32 0.9, %v2657_v8  ;;  %v2685_v42 = vadd.f32 1.0, %v8306_v41  ;;  %v1250_v37 = vsub.f32 0.0, %v994_v50  ;;  %v1251_v16 = vsub.f32 0.0, %v995_v48 }
 0x1a2   : > { %v8317_v60 = vpop.eup %5486  ;;  %v2671_v30 = vadd.f32 1.0, %v2670_v26  ;;  %v2673_v63 = vand.u32 2147483647, %v8266_v54  ;;  %v732_v49 = vmax.f32 %v8174_v59, %v8303_v17  ;;  %v733_v57 = vmax.f32 %v8199_v43, %v8311_v11 }
 0x1a3   : > { %v4569_v15 = vadd.f32 %v4313_v1, %v729_v18  ;;  %5500 = vlog2.f32 %v2685_v42  ;;  %v2694_v19 = vadd.f32 1.0, %v8317_v60  ;;  %v8328_v5 = vmul.f32 0.1, %v8202_v40 }
 0x1a4   : > { %v2663_v24 = vmul.f32 %v8259_v3, %v2662_v34  ;;  %v1595_v6 = vmul.f32 1.442695, %v1250_v37  ;;  %v1597_v52 = vmul.f32 1.442695, %v1251_v16  ;;  %vm8337_vm1 = vcmp.lt.f32.partialorder %v2664_v56, 0.0004427343 }
 0x1a5   : > { %v8330_v23 = vpop.eup %5488  ;;  %4825 = vst [vmem:[%s6574_s17 + $0x280] sm:$0xff] %v4569_v15  ;;  %5502 = vlog2.f32 %v2694_v19  ;;  %v2680_v27 = vadd.f32 1.0, %v2679_v28  ;;  %v2682_v33 = vand.u32 2147483647, %v8278_v13  ;;  %v2672_v35 = vmul.f32 %v8266_v54, %v2671_v30  ;;  %v8380_v37 = vld [vmem:[%s6391_s30 + $0x2e0] sm:$0xff]  ;;  %v8386_v19 = vld [vmem:[%s6391_s30 + $0x2e8] sm:$0xff] }
 0x1a6   : > { %v5491_v29 = vpop.eup %5490  ;;  %v2703_v31 = vadd.f32 1.0, %v8330_v23  ;;  %v2688_v3 = vmul.f32 -0.5, %v8306_v41  ;;  %5504 = vpow2.f32 %v1595_v6  ;;  %vm8345_vm2 = vcmp.lt.f32.partialorder %v2673_v63, 0.0004427343 }
 0x1a7   : > { %v2660_v62 = vmul.f32 0.6931472, %v5491_v29  ;;  %v734_v55 = vmax.f32 %v8202_v40, %v8328_v5  ;;  %v996_v2 = vand.u32 2147483647, %v8335_v12  ;;  %v2697_v54 = vmul.f32 -0.5, %v8317_v60 }
 0x1a8   : > { %v5493_v14 = vpop.eup %5492  ;;  %5506 = vlog2.f32 %v2703_v31  ;;  %v2681_v51 = vmul.f32 %v8278_v13, %v2680_v27  ;;  %vm8358_vm3 = vcmp.lt.f32.partialorder %v2682_v33, 0.0004427343  ;;  %v2689_v18 = vadd.f32 1.0, %v2688_v3 }
 0x1a9   : > { %v2666_v22 = vsel %vm8337_vm1, %v2663_v24, %v2660_v62  ;;  %v2669_v9 = vmul.f32 0.6931472, %v5493_v14  ;;  %5508 = vpow2.f32 %v1597_v52  ;;  %v8355_v53 = vpop.eup %5494  ;;  %v1252_v44 = vsub.f32 0.0, %v996_v2  ;;  %v8395_v52 = vld [vmem:[%s6391_s30 + $0x2f0] sm:$0xff] }
 0x1aa   : > { %v4314_v10 = vmul.f32 0.9, %v2666_v22  ;;  %v2706_v46 = vmul.f32 -0.5, %v8330_v23  ;;  %v2712_v45 = vadd.f32 1.0, %v8355_v53  ;;  %v2691_v8 = vand.u32 2147483647, %v8306_v41 }
 0x1ab   : > { %v2675_v38 = vsel %vm8345_vm2, %v2672_v35, %v2669_v9  ;;  %v1599_v48 = vmul.f32 1.442695, %v1252_v44  ;;  %v2698_v42 = vadd.f32 1.0, %v2697_v54  ;;  %v8373_v56 = vmul.f32 0.1, %v8228_v4 }
 0x1ac   : > { %v5497_v26 = vpop.eup %5496  ;;  %v4570_v13 = vadd.f32 %v4314_v10, %v730_v20  ;;  %v4315_v50 = vmul.f32 0.9, %v2675_v38  ;;  %5510 = vlog2.f32 %v2712_v45  ;;  %v2700_v32 = vand.u32 2147483647, %v8317_v60 }
 0x1ad   : > { %v8370_v1 = vpop.eup %5498  ;;  %v2678_v34 = vmul.f32 0.6931472, %v5497_v26  ;;  %v2709_v21 = vand.u32 2147483647, %v8330_v23  ;;  %v2690_v15 = vmul.f32 %v8306_v41, %v2689_v18  ;;  %v2707_v30 = vadd.f32 1.0, %v2706_v46 }
 0x1ae   : > { %4826 = vst [vmem:[%s6574_s17 + $0x288] sm:$0xff] %v4570_v13  ;;  %v4571_v28 = vadd.f32 %v4315_v50, %v731_v25  ;;  %v2721_v20 = vadd.f32 1.0, %v8370_v1  ;;  %5512 = vpow2.f32 %v1599_v48  ;;  %vm8389_vm4 = vcmp.lt.f32.partialorder %v2691_v8, 0.0004427343 }
 0x1af   : > { %v2684_v16 = vsel %vm8358_vm3, %v2681_v51, %v2678_v34  ;;  %v2715_v6 = vmul.f32 -0.5, %v8355_v53  ;;  %v2699_v41 = vmul.f32 %v8317_v60, %v2698_v42  ;;  %v8399_v47 = vmul.f32 0.1, %v8232_v36  ;;  %v8444_v42 = vld [vmem:[%s6391_s30 + $0x2f8] sm:$0xff] }
 0x1b0   : > { %v5501_v63 = vpop.eup %5500  ;;  %4827 = vst [vmem:[%s6574_s17 + $0x290] sm:$0xff] %v4571_v28  ;;  %v4316_v25 = vmul.f32 0.9, %v2684_v16  ;;  %5514 = vlog2.f32 %v2721_v20  ;;  %v997_v27 = vand.u32 2147483647, %v8380_v37  ;;  %v2708_v58 = vmul.f32 %v8330_v23, %v2707_v30 }
 0x1b1   : > { %v2687_v29 = vmul.f32 0.6931472, %v5501_v63  ;;  %vm8405_vm5 = vcmp.lt.f32.partialorder %v2700_v32, 0.0004427343  ;;  %vm8409_vm6 = vcmp.lt.f32.partialorder %v2709_v21, 0.0004427343  ;;  %v735_v26 = vmax.f32 %v8228_v4, %v8373_v56 }
 0x1b2   : > { %v5503_v33 = vpop.eup %5502  ;;  %v4572_v31 = vadd.f32 %v4316_v25, %v732_v49  ;;  %v998_v60 = vand.u32 2147483647, %v8386_v19  ;;  %v1253_v2 = vsub.f32 0.0, %v997_v27  ;;  %v2716_v17 = vadd.f32 1.0, %v2715_v6  ;;  %v8469_v6 = vld [vmem:[%s6391_s30 + $0x300] sm:$0xff] }
 0x1b3   : > { %v2693_v3 = vsel %vm8389_vm4, %v2690_v15, %v2687_v29  ;;  %v2696_v14 = vmul.f32 0.6931472, %v5503_v33  ;;  %v8417_v22 = vpop.eup %5504  ;;  %v2718_v49 = vand.u32 2147483647, %v8355_v53  ;;  %v2724_v9 = vmul.f32 -0.5, %v8370_v1 }
 0x1b4   : > { %4828 = vst [vmem:[%s6574_s17 + $0x298] sm:$0xff] %v4572_v31  ;;  %v4317_v59 = vmul.f32 0.9, %v2693_v3  ;;  %v2730_v51 = vadd.f32 1.0, %v8417_v22  ;;  %v1254_v61 = vsub.f32 0.0, %v998_v60  ;;  %v2717_v34 = vmul.f32 %v8355_v53, %v2716_v17  ;;  %v8476_v31 = vld [vmem:[%s6391_s30 + $0x308] sm:$0xff] }
 0x1b5   : > { %v5507_v54 = vpop.eup %5506  ;;  %v2702_v10 = vsel %vm8405_vm5, %v2699_v41, %v2696_v14  ;;  %v999_v23 = vand.u32 2147483647, %v8395_v52  ;;  %v1601_v45 = vmul.f32 1.442695, %v1253_v2  ;;  %v481_v13 = vmul.f32 0.1, %v8253_v39 }
 0x1b6   : > { %v8426_v44 = vpop.eup %5508  ;;  %v4573_v38 = vadd.f32 %v4317_v59, %v733_v57  ;;  %v4318_v18 = vmul.f32 0.9, %v2702_v10  ;;  %v2705_v46 = vmul.f32 0.6931472, %v5507_v54  ;;  %5516 = vlog2.f32 %v2730_v51  ;;  %v8483_v14 = vld [vmem:[%s6391_s30 + $0x310] sm:$0xff] }
 0x1b7   : > { %v2739_v50 = vadd.f32 1.0, %v8426_v44  ;;  %v2725_v11 = vadd.f32 1.0, %v2724_v9  ;;  %v2727_v57 = vand.u32 2147483647, %v8370_v1  ;;  %v1603_v4 = vmul.f32 1.442695, %v1254_v61 }
 0x1b8   : > { %4829 = vst [vmem:[%s6574_s17 + $0x2a0] sm:$0xff] %v4573_v38  ;;  %v4574_v8 = vadd.f32 %v4318_v18, %v734_v55  ;;  %v2711_v43 = vsel %vm8409_vm6, %v2708_v58, %v2705_v46  ;;  %vm8447_vm7 = vcmp.lt.f32.partialorder %v2718_v49, 0.0004427343  ;;  %v2733_v40 = vmul.f32 -0.5, %v8417_v22 }
 0x1b9   : > { %v4319_v48 = vmul.f32 0.9, %v2711_v43  ;;  %5518 = vlog2.f32 %v2739_v50  ;;  %v5511_v56 = vpop.eup %5510  ;;  %v1255_v5 = vsub.f32 0.0, %v999_v23  ;;  %v736_v53 = vmax.f32 %v8232_v36, %v8399_v47  ;;  %v8492_v23 = vld [vmem:[%s6391_s30 + $0x318] sm:$0xff] }
 0x1ba   : > { %4830 = vst [vmem:[%s6574_s17 + $0x2a8] sm:$0xff] %v4574_v8  ;;  %5520 = vpow2.f32 %v1601_v45  ;;  %v2714_v32 = vmul.f32 0.6931472, %v5511_v56  ;;  %v737_v20 = vmax.f32 %v8253_v39, %v481_v13  ;;  %v2726_v16 = vmul.f32 %v8370_v1, %v2725_v11 }
 0x1bb   : > { %v4575_v55 = vadd.f32 %v4319_v48, %v735_v26  ;;  %5522 = vpow2.f32 %v1603_v4  ;;  %v8454_v21 = vpop.eup %5512  ;;  %v1605_v15 = vmul.f32 1.442695, %v1255_v5  ;;  %v1000_v30 = vand.u32 2147483647, %v8444_v42 }
 0x1bc   : > { %v2720_v25 = vsel %vm8447_vm7, %v2717_v34, %v2714_v32  ;;  %vm8462_vm8 = vcmp.lt.f32.partialorder %v2727_v57, 0.0004427343  ;;  %v2742_v36 = vmul.f32 -0.5, %v8426_v44  ;;  %v2748_v39 = vadd.f32 1.0, %v8454_v21 }
 0x1bd   : > { %v5515_v63 = vpop.eup %5514  ;;  %4831 = vst [vmem:[%s6574_s17 + $0x2b0] sm:$0xff] %v4575_v55  ;;  %v4320_v1 = vmul.f32 0.9, %v2720_v25  ;;  %v2734_v41 = vadd.f32 1.0, %v2733_v40  ;;  %5524 = vpow2.f32 %v1605_v15  ;;  %v482_v47 = vmul.f32 0.1, %v8286_v7 }
 0x1be   : > { %v2723_v29 = vmul.f32 0.6931472, %v5515_v63  ;;  %v8473_v27 = vmul.f32 0.1, %v8296_v0  ;;  %5526 = vlog2.f32 %v2748_v39  ;;  %v1256_v33 = vsub.f32 0.0, %v1000_v30 }
 0x1bf   : > { %v4576_v62 = vadd.f32 %v4320_v1, %v736_v53  ;;  %v2736_v60 = vand.u32 2147483647, %v8417_v22  ;;  %v1001_v3 = vand.u32 2147483647, %v8469_v6  ;;  %v2743_v2 = vadd.f32 1.0, %v2742_v36 }
 0x1c0   : > { %v2729_v35 = vsel %vm8462_vm8, %v2726_v16, %v2723_v29  ;;  %v1607_v59 = vmul.f32 1.442695, %v1256_v33  ;;  %v2735_v17 = vmul.f32 %v8417_v22, %v2734_v41  ;;  %v2745_v49 = vand.u32 2147483647, %v8426_v44 }
 0x1c1   : > { %v4321_v58 = vmul.f32 0.9, %v2729_v35  ;;  %4832 = vst [vmem:[%s6574_s17 + $0x2b8] sm:$0xff] %v4576_v62  ;;  %v1257_v9 = vsub.f32 0.0, %v1001_v3  ;;  %v1002_v54 = vand.u32 2147483647, %v8476_v31  ;;  %v738_v18 = vmax.f32 %v8286_v7, %v482_v47 }
 0x1c2   : > { %v2751_v51 = vmul.f32 -0.5, %v8454_v21  ;;  %5528 = vpow2.f32 %v1607_v59  ;;  %v1003_v61 = vand.u32 2147483647, %v8483_v14  ;;  %vm8495_vm9 = vcmp.lt.f32.partialorder %v2736_v60, 0.0004427343 }
 0x1c3   : > { %v4577_v10 = vadd.f32 %v4321_v58, %v737_v20  ;;  %v5517_v38 = vpop.eup %5516  ;;  %v8500_v22 = vmul.f32 0.1, %v8335_v12  ;;  %v1609_v45 = vmul.f32 1.442695, %v1257_v9  ;;  %v739_v13 = vmax.f32 %v8296_v0, %v8473_v27  ;;  %v8546_v27 = vld [vmem:[%s6391_s30 + $0x320] sm:$0xff] }
 0x1c4   : > { %v2732_v26 = vmul.f32 0.6931472, %v5517_v38  ;;  %v2744_v50 = vmul.f32 %v8426_v44, %v2743_v2  ;;  %v1258_v8 = vsub.f32 0.0, %v1002_v54  ;;  %vm8506_vm10 = vcmp.lt.f32.partialorder %v2745_v49, 0.0004427343 }
 0x1c5   : > { %4833 = vst [vmem:[%s6574_s17 + $0x2c0] sm:$0xff] %v4577_v10  ;;  %v8511_v7 = vmul.f32 0.1, %v8380_v37  ;;  %5530 = vpow2.f32 %v1609_v45  ;;  %v1004_v57 = vand.u32 2147483647, %v8492_v23  ;;  %v2752_v4 = vadd.f32 1.0, %v2751_v51 }
 0x1c6   : > { %v5519_v43 = vpop.eup %5518  ;;  %v2738_v34 = vsel %vm8495_vm9, %v2735_v17, %v2732_v26  ;;  %v1259_v44 = vsub.f32 0.0, %v1003_v61  ;;  %v740_v40 = vmax.f32 %v8335_v12, %v8500_v22  ;;  %v2754_v5 = vand.u32 2147483647, %v8454_v21  ;;  %v8562_v17 = vld [vmem:[%s6391_s30 + $0x328] sm:$0xff] }
 0x1c7   : > { %v8514_v48 = vpop.eup %5520  ;;  %v2741_v0 = vmul.f32 0.6931472, %v5519_v43  ;;  %v4322_v28 = vmul.f32 0.9, %v2738_v34  ;;  %v8527_v32 = vmul.f32 0.1, %v8386_v19  ;;  %v2753_v25 = vmul.f32 %v8454_v21, %v2752_v4 }
 0x1c8   : > { %v8518_v56 = vpop.eup %5522  ;;  %v2757_v55 = vadd.f32 1.0, %v8514_v48  ;;  %v1611_v16 = vmul.f32 1.442695, %v1258_v8  ;;  %v1260_v63 = vsub.f32 0.0, %v1004_v57  ;;  %v8534_v24 = vmul.f32 0.1, %v8395_v52 }
 0x1c9   : > { %v2747_v53 = vsel %vm8506_vm10, %v2744_v50, %v2741_v0  ;;  %v2766_v20 = vadd.f32 1.0, %v8518_v56  ;;  %v4578_v15 = vadd.f32 %v4322_v28, %v738_v18  ;;  %v1613_v36 = vmul.f32 1.442695, %v1259_v44 }
 0x1ca   : > { %v4323_v30 = vmul.f32 0.9, %v2747_v53  ;;  %5532 = vlog2.f32 %v2757_v55  ;;  %v8530_v12 = vpop.eup %5524  ;;  %vm8537_vm11 = vcmp.lt.f32.partialorder %v2754_v5, 0.0004427343  ;;  %v8543_v47 = vmul.f32 0.1, %v8444_v42 }
 0x1cb   : > { %5534 = vlog2.f32 %v2766_v20  ;;  %v5527_v39 = vpop.eup %5526  ;;  %4834 = vst [vmem:[%s6574_s17 + $0x2c8] sm:$0xff] %v4578_v15  ;;  %v2775_v41 = vadd.f32 1.0, %v8530_v12  ;;  %v741_v33 = vmax.f32 %v8380_v37, %v8511_v7  ;;  %v2760_v62 = vmul.f32 -0.5, %v8514_v48  ;;  %v8596_v20 = vld [vmem:[%s6391_s30 + $0x338] sm:$0xff] }
 0x1cc   : > { %v4579_v1 = vadd.f32 %v4323_v30, %v739_v13  ;;  %v2750_v21 = vmul.f32 0.6931472, %v5527_v39  ;;  %5536 = vpow2.f32 %v1611_v16  ;;  %v742_v35 = vmax.f32 %v8386_v19, %v8527_v32  ;;  %v8579_v13 = vld [vmem:[%s6391_s30 + $0x330] sm:$0xff] }
 0x1cd   : > { %5538 = vlog2.f32 %v2775_v41  ;;  %v8555_v60 = vmul.f32 0.1, %v8469_v6  ;;  %v1615_v3 = vmul.f32 1.442695, %v1260_v63  ;;  %v2769_v2 = vmul.f32 -0.5, %v8518_v56 }
 0x1ce   : > { %4835 = vst [vmem:[%s6574_s17 + $0x2d0] sm:$0xff] %v4579_v1  ;;  %v2756_v58 = vsel %vm8537_vm11, %v2753_v25, %v2750_v21  ;;  %5540 = vpow2.f32 %v1613_v36  ;;  %v1005_v59 = vand.u32 2147483647, %v8546_v27  ;;  %v743_v54 = vmax.f32 %v8395_v52, %v8534_v24 }
 0x1cf   : > { %v8564_v49 = vpop.eup %5528  ;;  %v4324_v9 = vmul.f32 0.9, %v2756_v58  ;;  %v744_v10 = vmax.f32 %v8444_v42, %v8543_v47  ;;  %5542 = vpow2.f32 %v1615_v3  ;;  %v2761_v51 = vadd.f32 1.0, %v2760_v62 }
 0x1d0   : > { %v2784_v61 = vadd.f32 1.0, %v8564_v49  ;;  %v8572_v38 = vmul.f32 0.1, %v8476_v31  ;;  %v1261_v18 = vsub.f32 0.0, %v1005_v59  ;;  %v2778_v22 = vmul.f32 -0.5, %v8530_v12 }
 0x1d1   : > { %v4580_v46 = vadd.f32 %v4324_v9, %v740_v40  ;;  %v745_v45 = vmax.f32 %v8469_v6, %v8555_v60  ;;  %v1006_v26 = vand.u32 2147483647, %v8562_v17  ;;  %v2763_v8 = vand.u32 2147483647, %v8514_v48 }
 0x1d2   : > { %v8581_v50 = vpop.eup %5530  ;;  %v2770_v43 = vadd.f32 1.0, %v2769_v2  ;;  %5544 = vlog2.f32 %v2784_v61  ;;  %v1617_v11 = vmul.f32 1.442695, %v1261_v18  ;;  %v2772_v57 = vand.u32 2147483647, %v8518_v56 }
 0x1d3   : > { %4836 = vst [vmem:[%s6574_s17 + $0x2d8] sm:$0xff] %v4580_v46  ;;  %v2793_v34 = vadd.f32 1.0, %v8581_v50  ;;  %v8588_v0 = vmul.f32 0.1, %v8483_v14  ;;  %v1262_v4 = vsub.f32 0.0, %v1006_v26  ;;  %v2762_v44 = vmul.f32 %v8514_v48, %v2761_v51 }
 0x1d4   : > { %v746_v28 = vmax.f32 %v8476_v31, %v8572_v38  ;;  %5546 = vpow2.f32 %v1617_v11  ;;  %v1007_v40 = vand.u32 2147483647, %v8579_v13  ;;  %v2779_v5 = vadd.f32 1.0, %v2778_v22 }
 0x1d5   : > { %v2781_v55 = vand.u32 2147483647, %v8530_v12  ;;  %5548 = vlog2.f32 %v2793_v34  ;;  %v1619_v53 = vmul.f32 1.442695, %v1262_v4  ;;  %vm8598_vm12 = vcmp.lt.f32.partialorder %v2763_v8, 0.0004427343 }
 0x1d6   : > { %v2771_v48 = vmul.f32 %v8518_v56, %v2770_v43  ;;  %v2787_v30 = vmul.f32 -0.5, %v8564_v49  ;;  %v1263_v63 = vsub.f32 0.0, %v1007_v40  ;;  %vm8604_vm13 = vcmp.lt.f32.partialorder %v2772_v57, 0.0004427343 }
 0x1d7   : > { %v5533_v16 = vpop.eup %5532  ;;  %v8609_v1 = vmul.f32 0.1, %v8492_v23  ;;  %5550 = vpow2.f32 %v1619_v53  ;;  %v747_v41 = vmax.f32 %v8483_v14, %v8588_v0  ;;  %v1008_v56 = vand.u32 2147483647, %v8596_v20 }
 0x1d8   : > { %v5535_v25 = vpop.eup %5534  ;;  %v2759_v36 = vmul.f32 0.6931472, %v5533_v16  ;;  %v1621_v21 = vmul.f32 1.442695, %v1263_v63  ;;  %v2780_v58 = vmul.f32 %v8530_v12, %v2779_v5  ;;  %vm8619_vm14 = vcmp.lt.f32.partialorder %v2781_v55, 0.0004427343 }
 0x1d9   : > { %v2768_v29 = vmul.f32 0.6931472, %v5535_v25  ;;  %v8614_v62 = vpop.eup %5536  ;;  %v2796_v59 = vmul.f32 -0.5, %v8581_v50  ;;  %v2788_v18 = vadd.f32 1.0, %v2787_v30  ;;  %v2790_v8 = vand.u32 2147483647, %v8564_v49 }
 0x1da   : > { %v2765_v3 = vsel %vm8598_vm12, %v2762_v44, %v2759_v36  ;;  %v5539_v9 = vpop.eup %5538  ;;  %v2802_v46 = vadd.f32 1.0, %v8614_v62  ;;  %5552 = vpow2.f32 %v1621_v21  ;;  %v1264_v34 = vsub.f32 0.0, %v1008_v56  ;;  %v8643_v55 = vld [vmem:[%s6391_s30 + $0x340] sm:$0xff] }
 0x1db   : > { %v4325_v51 = vmul.f32 0.9, %v2765_v3  ;;  %v2774_v61 = vsel %vm8604_vm13, %v2771_v48, %v2768_v29  ;;  %v8627_v22 = vpop.eup %5540  ;;  %v2777_v12 = vmul.f32 0.6931472, %v5539_v9  ;;  %v2797_v40 = vadd.f32 1.0, %v2796_v59 }
 0x1dc   : > { %v4326_v26 = vmul.f32 0.9, %v2774_v61  ;;  %v8630_v43 = vpop.eup %5542  ;;  %5554 = vlog2.f32 %v2802_v46  ;;  %v2811_v57 = vadd.f32 1.0, %v8627_v22  ;;  %v2799_v5 = vand.u32 2147483647, %v8581_v50 }
 0x1dd   : > { %v4581_v11 = vadd.f32 %v4325_v51, %v741_v33  ;;  %v2783_v44 = vsel %vm8619_vm14, %v2780_v58, %v2777_v12  ;;  %v2789_v7 = vmul.f32 %v8564_v49, %v2788_v18  ;;  %v748_v33 = vmax.f32 %v8492_v23, %v8609_v1  ;;  %v8684_v51 = vld [vmem:[%s6391_s30 + $0x348] sm:$0xff] }
 0x1de   : > { %v4582_v4 = vadd.f32 %v4326_v26, %v742_v35  ;;  %v4327_v37 = vmul.f32 0.9, %v2783_v44  ;;  %5556 = vlog2.f32 %v2811_v57  ;;  %vm8650_vm15 = vcmp.lt.f32.partialorder %v2790_v8, 0.0004427343 }
 0x1df   : > { %4837 = vst [vmem:[%s6574_s17 + $0x2e0] sm:$0xff] %v4581_v11  ;;  %v5545_v53 = vpop.eup %5544  ;;  %v2805_v32 = vmul.f32 -0.5, %v8614_v62  ;;  %v2820_v35 = vadd.f32 1.0, %v8630_v43  ;;  %v8657_v16 = vmul.f32 0.1, %v8546_v27  ;;  %v2798_v25 = vmul.f32 %v8581_v50, %v2797_v40 }
 0x1e0   : > { %4838 = vst [vmem:[%s6574_s17 + $0x2e8] sm:$0xff] %v4582_v4  ;;  %v4583_v49 = vadd.f32 %v4327_v37, %v743_v54  ;;  %v2786_v15 = vmul.f32 0.6931472, %v5545_v53  ;;  %v1623_v48 = vmul.f32 1.442695, %v1264_v34  ;;  %v2814_v54 = vmul.f32 -0.5, %v8627_v22 }
 0x1e1   : > { %v1009_v30 = vand.u32 2147483647, %v8643_v55  ;;  %v8663_v63 = vpop.eup %5546  ;;  %vm8666_vm0 = vcmp.lt.f32.partialorder %v2799_v5, 0.0004427343  ;;  %5558 = vlog2.f32 %v2820_v35  ;;  %v8671_v39 = vmul.f32 0.1, %v8562_v17 }
 0x1e2   : > { %v5549_v29 = vpop.eup %5548  ;;  %4839 = vst [vmem:[%s6574_s17 + $0x2f0] sm:$0xff] %v4583_v49  ;;  %v2792_v52 = vsel %vm8650_vm15, %v2789_v7, %v2786_v15  ;;  %v2808_v24 = vand.u32 2147483647, %v8614_v62  ;;  %v2829_v50 = vadd.f32 1.0, %v8663_v63  ;;  %v2806_v3 = vadd.f32 1.0, %v2805_v32  ;;  %v8725_v35 = vld [vmem:[%s6391_s30 + $0x358] sm:$0xff] }
 0x1e3   : > { %v4328_v21 = vmul.f32 0.9, %v2792_v52  ;;  %v2795_v56 = vmul.f32 0.6931472, %v5549_v29  ;;  %5560 = vpow2.f32 %v1623_v48  ;;  %v2817_v2 = vand.u32 2147483647, %v8627_v22 }
 0x1e4   : > { %v8679_v58 = vpop.eup %5550  ;;  %v2823_v59 = vmul.f32 -0.5, %v8630_v43  ;;  %5562 = vlog2.f32 %v2829_v50  ;;  %v1265_v9 = vsub.f32 0.0, %v1009_v30  ;;  %v2826_v46 = vand.u32 2147483647, %v8630_v43  ;;  %v8761_v34 = vld [vmem:[%s6391_s30 + $0x368] sm:$0xff] }
 0x1e5   : > { %v4584_v61 = vadd.f32 %v4328_v21, %v744_v10  ;;  %v2801_v18 = vsel %vm8666_vm0, %v2798_v25, %v2795_v56  ;;  %v2838_v26 = vadd.f32 1.0, %v8679_v58  ;;  %v2815_v8 = vadd.f32 1.0, %v2814_v54  ;;  %v8703_v10 = vld [vmem:[%s6391_s30 + $0x350] sm:$0xff]  ;;  %v8734_v21 = vld [vmem:[%s6391_s30 + $0x360] sm:$0xff] }
 0x1e6   : > { %v4329_v12 = vmul.f32 0.9, %v2801_v18  ;;  %v749_v11 = vmax.f32 %v8546_v27, %v8657_v16  ;;  %v1625_v57 = vmul.f32 1.442695, %v1265_v9  ;;  %vm8696_vm1 = vcmp.lt.f32.partialorder %v2808_v24, 0.0004427343 }
 0x1e7   : > { %4840 = vst [vmem:[%s6574_s17 + $0x2f8] sm:$0xff] %v4584_v61  ;;  %v2832_v42 = vmul.f32 -0.5, %v8663_v63  ;;  %5564 = vlog2.f32 %v2838_v26  ;;  %v1010_v47 = vand.u32 2147483647, %v8684_v51  ;;  %v8705_v4 = vpop.eup %5552  ;;  %v2807_v40 = vmul.f32 %v8614_v62, %v2806_v3 }
 0x1e8   : > { %v4585_v44 = vadd.f32 %v4329_v12, %v745_v45  ;;  %vm8711_vm2 = vcmp.lt.f32.partialorder %v2817_v2, 0.0004427343  ;;  %5566 = vpow2.f32 %v1625_v57  ;;  %v2824_v7 = vadd.f32 1.0, %v2823_v59 }
 0x1e9   : > { %v5555_v37 = vpop.eup %5554  ;;  %vm8715_vm3 = vcmp.lt.f32.partialorder %v2826_v46, 0.0004427343  ;;  %v2841_v19 = vmul.f32 -0.5, %v8679_v58  ;;  %v2847_v32 = vadd.f32 1.0, %v8705_v4  ;;  %v2816_v60 = vmul.f32 %v8627_v22, %v2815_v8 }
 0x1ea   : > { %4841 = vst [vmem:[%s6574_s17 + $0x300] sm:$0xff] %v4585_v44  ;;  %v2804_v6 = vmul.f32 0.6931472, %v5555_v37  ;;  %v1266_v45 = vsub.f32 0.0, %v1010_v47  ;;  %v1011_v62 = vand.u32 2147483647, %v8703_v10  ;;  %v2825_v24 = vmul.f32 %v8630_v43, %v2824_v7 }
 0x1eb   : > { %v5557_v49 = vpop.eup %5556  ;;  %v2833_v15 = vadd.f32 1.0, %v2832_v42  ;;  %v2835_v48 = vand.u32 2147483647, %v8663_v63  ;;  %v2844_v30 = vand.u32 2147483647, %v8679_v58  ;;  %5568 = vlog2.f32 %v2847_v32 }
 0x1ec   : > { %v2810_v25 = vsel %vm8696_vm1, %v2807_v40, %v2804_v6  ;;  %v2813_v36 = vmul.f32 0.6931472, %v5557_v49  ;;  %v1627_v29 = vmul.f32 1.442695, %v1266_v45  ;;  %v1267_v52 = vsub.f32 0.0, %v1011_v62 }
 0x1ed   : > { %v4330_v22 = vmul.f32 0.9, %v2810_v25  ;;  %v2842_v54 = vadd.f32 1.0, %v2841_v19  ;;  %v1012_v50 = vand.u32 2147483647, %v8725_v35  ;;  %v2850_v2 = vmul.f32 -0.5, %v8705_v4 }
 0x1ee   : > { %v5559_v56 = vpop.eup %5558  ;;  %v2819_v3 = vsel %vm8711_vm2, %v2816_v60, %v2813_v36  ;;  %5570 = vpow2.f32 %v1627_v29  ;;  %v1629_v59 = vmul.f32 1.442695, %v1267_v52  ;;  %v2834_v26 = vmul.f32 %v8663_v63, %v2833_v15  ;;  %v8792_v15 = vld [vmem:[%s6391_s30 + $0x370] sm:$0xff] }
 0x1ef   : > { %v4586_v9 = vadd.f32 %v4330_v22, %v746_v28  ;;  %v4331_v43 = vmul.f32 0.9, %v2819_v3  ;;  %v2822_v61 = vmul.f32 0.6931472, %v5559_v56  ;;  %v1268_v18 = vsub.f32 0.0, %v1012_v50 }
 0x1f0   : > { %v8742_v46 = vpop.eup %5560  ;;  %v8746_v12 = vmul.f32 0.1, %v8579_v13  ;;  %5572 = vpow2.f32 %v1629_v59  ;;  %v1013_v8 = vand.u32 2147483647, %v8734_v21  ;;  %vm8755_vm4 = vcmp.lt.f32.partialorder %v2835_v48, 0.0004427343 }
 0x1f1   : > { %v5563_v57 = vpop.eup %5562  ;;  %4842 = vst [vmem:[%s6574_s17 + $0x308] sm:$0xff] %v4586_v9  ;;  %v4587_v31 = vadd.f32 %v4331_v43, %v747_v41  ;;  %v2828_v38 = vsel %vm8715_vm3, %v2825_v24, %v2822_v61  ;;  %v2856_v63 = vadd.f32 1.0, %v8742_v46  ;;  %v2843_v44 = vmul.f32 %v8679_v58, %v2842_v54  ;;  %v8795_v48 = vld [vmem:[%s6391_s30 + $0x378] sm:$0xff] }
 0x1f2   : > { %v4332_v42 = vmul.f32 0.9, %v2828_v38  ;;  %v2831_v47 = vmul.f32 0.6931472, %v5563_v57  ;;  %vm8764_vm5 = vcmp.lt.f32.partialorder %v2844_v30, 0.0004427343  ;;  %v750_v6 = vmax.f32 %v8562_v17, %v8671_v39 }
 0x1f3   : > { %4843 = vst [vmem:[%s6574_s17 + $0x310] sm:$0xff] %v4587_v31  ;;  %v2851_v14 = vadd.f32 1.0, %v2850_v2  ;;  %5574 = vlog2.f32 %v2856_v63  ;;  %v1631_v0 = vmul.f32 1.442695, %v1268_v18  ;;  %v1269_v41 = vsub.f32 0.0, %v1013_v8 }
 0x1f4   : > { %v5565_v5 = vpop.eup %5564  ;;  %v4588_v37 = vadd.f32 %v4332_v42, %v748_v33  ;;  %v2837_v7 = vsel %vm8755_vm4, %v2834_v26, %v2831_v47  ;;  %v2853_v58 = vand.u32 2147483647, %v8705_v4  ;;  %v1014_v53 = vand.u32 2147483647, %v8761_v34  ;;  %v8826_v26 = vld [vmem:[%s6391_s30 + $0x380] sm:$0xff]  ;;  %v8836_v42 = vld [vmem:[%s6391_s30 + $0x388] sm:$0xff] }
 0x1f5   : > { %v8776_v19 = vpop.eup %5566  ;;  %v4333_v32 = vmul.f32 0.9, %v2837_v7  ;;  %v2840_v60 = vmul.f32 0.6931472, %v5565_v5  ;;  %5576 = vpow2.f32 %v1631_v0  ;;  %v751_v23 = vmax.f32 %v8579_v13, %v8746_v12 }
 0x1f6   : > { %4844 = vst [vmem:[%s6574_s17 + $0x318] sm:$0xff] %v4588_v37  ;;  %v2859_v1 = vmul.f32 -0.5, %v8742_v46  ;;  %v2865_v33 = vadd.f32 1.0, %v8776_v19  ;;  %v1633_v45 = vmul.f32 1.442695, %v1269_v41  ;;  %v2852_v17 = vmul.f32 %v8705_v4, %v2851_v14 }
 0x1f7   : > { %v4589_v62 = vadd.f32 %v4333_v32, %v749_v11  ;;  %v2846_v49 = vsel %vm8764_vm5, %v2843_v44, %v2840_v60  ;;  %v1270_v39 = vsub.f32 0.0, %v1014_v53  ;;  %vm8797_vm6 = vcmp.lt.f32.partialorder %v2853_v58, 0.0004427343 }
 0x1f8   : > { %v5569_v13 = vpop.eup %5568  ;;  %v4334_v30 = vmul.f32 0.9, %v2846_v49  ;;  %v8802_v36 = vmul.f32 0.1, %v8596_v20  ;;  %5578 = vlog2.f32 %v2865_v33  ;;  %v8806_v16 = vmul.f32 0.1, %v8643_v55 }
 0x1f9   : > { %4845 = vst [vmem:[%s6574_s17 + $0x320] sm:$0xff] %v4589_v62  ;;  %v2849_v27 = vmul.f32 0.6931472, %v5569_v13  ;;  %5580 = vpow2.f32 %v1633_v45  ;;  %v1635_v11 = vmul.f32 1.442695, %v1270_v39  ;;  %v2860_v29 = vadd.f32 1.0, %v2859_v1 }
 0x1fa   : > { %v4590_v4 = vadd.f32 %v4334_v30, %v750_v6  ;;  %v8809_v52 = vmul.f32 0.1, %v8684_v51  ;;  %v1015_v22 = vand.u32 2147483647, %v8792_v15  ;;  %v2868_v50 = vmul.f32 -0.5, %v8776_v19  ;;  %v8869_v49 = vld [vmem:[%s6391_s30 + $0x390] sm:$0xff] }
 0x1fb   : > { %v8812_v24 = vpop.eup %5570  ;;  %v2855_v54 = vsel %vm8797_vm6, %v2852_v17, %v2849_v27  ;;  %5582 = vpow2.f32 %v1635_v11  ;;  %v1016_v56 = vand.u32 2147483647, %v8795_v48  ;;  %v2862_v2 = vand.u32 2147483647, %v8742_v46 }
 0x1fc   : > { %4846 = vst [vmem:[%s6574_s17 + $0x328] sm:$0xff] %v4590_v4  ;;  %v4335_v3 = vmul.f32 0.9, %v2855_v54  ;;  %v2874_v59 = vadd.f32 1.0, %v8812_v24  ;;  %v752_v43 = vmax.f32 %v8596_v20, %v8802_v36  ;;  %v1271_v61 = vsub.f32 0.0, %v1015_v22 }
 0x1fd   : > { %v8821_v9 = vpop.eup %5572  ;;  %v1272_v18 = vsub.f32 0.0, %v1016_v56  ;;  %v753_v8 = vmax.f32 %v8643_v55, %v8806_v16  ;;  %v8831_v57 = vmul.f32 0.1, %v8703_v10  ;;  %v2861_v31 = vmul.f32 %v8742_v46, %v2860_v29 }
 0x1fe   : > { %v4591_v12 = vadd.f32 %v4335_v3, %v751_v23  ;;  %5584 = vlog2.f32 %v2874_v59  ;;  %v2869_v38 = vadd.f32 1.0, %v2868_v50  ;;  %v2883_v28 = vadd.f32 1.0, %v8821_v9 }
 0x1ff   : > { %v1637_v63 = vmul.f32 1.442695, %v1271_v61  ;;  %vm8839_vm7 = vcmp.lt.f32.partialorder %v2862_v2, 0.0004427343  ;;  %v754_v55 = vmax.f32 %v8684_v51, %v8809_v52  ;;  %v1639_v44 = vmul.f32 1.442695, %v1272_v18 }
 0x200   : > { %v5575_v20 = vpop.eup %5574  ;;  %4847 = vst [vmem:[%s6574_s17 + $0x330] sm:$0xff] %v4591_v12  ;;  %v1017_v40 = vand.u32 2147483647, %v8826_v26  ;;  %v2871_v46 = vand.u32 2147483647, %v8776_v19  ;;  %5586 = vlog2.f32 %v2883_v28  ;;  %v2877_v5 = vmul.f32 -0.5, %v8812_v24 }
 0x201   : > { %v2858_v14 = vmul.f32 0.6931472, %v5575_v20  ;;  %v8848_v0 = vmul.f32 0.1, %v8725_v35  ;;  %5588 = vpow2.f32 %v1637_v63  ;;  %v1018_v7 = vand.u32 2147483647, %v8836_v42 }
 0x202   : > { %v8850_v41 = vpop.eup %5576  ;;  %v1273_v37 = vsub.f32 0.0, %v1017_v40  ;;  %v2870_v53 = vmul.f32 %v8776_v19, %v2869_v38  ;;  %v8859_v6 = vmul.f32 0.1, %v8734_v21  ;;  %v2886_v23 = vmul.f32 -0.5, %v8821_v9  ;;  %v8893_v61 = vld [vmem:[%s6391_s30 + $0x398] sm:$0xff]  ;;  %v8903_v63 = vld [vmem:[%s6391_s30 + $0x3a0] sm:$0xff] }
 0x203   : > { %v2864_v58 = vsel %vm8839_vm7, %v2861_v31, %v2858_v14  ;;  %v2892_v32 = vadd.f32 1.0, %v8850_v41  ;;  %5590 = vpow2.f32 %v1639_v44  ;;  %vm8862_vm8 = vcmp.lt.f32.partialorder %v2871_v46, 0.0004427343 }
 0x204   : > { %v4336_v60 = vmul.f32 0.9, %v2864_v58  ;;  %v1641_v1 = vmul.f32 1.442695, %v1273_v37  ;;  %v755_v62 = vmax.f32 %v8703_v10, %v8831_v57  ;;  %v1274_v19 = vsub.f32 0.0, %v1018_v7 }
 0x205   : > { %v5579_v33 = vpop.eup %5578  ;;  %5592 = vlog2.f32 %v2892_v32  ;;  %v2878_v30 = vadd.f32 1.0, %v2877_v5  ;;  %v2880_v25 = vand.u32 2147483647, %v8812_v24  ;;  %v756_v36 = vmax.f32 %v8725_v35, %v8848_v0 }
 0x206   : > { %v8871_v17 = vpop.eup %5580  ;;  %v4592_v39 = vadd.f32 %v4336_v60, %v752_v43  ;;  %v2867_v13 = vmul.f32 0.6931472, %v5579_v33  ;;  %5594 = vpow2.f32 %v1641_v1  ;;  %v757_v27 = vmax.f32 %v8734_v21, %v8859_v6 }
 0x207   : > { %v2901_v16 = vadd.f32 1.0, %v8871_v17  ;;  %v2887_v29 = vadd.f32 1.0, %v2886_v23  ;;  %v1643_v22 = vmul.f32 1.442695, %v1274_v19  ;;  %v1019_v54 = vand.u32 2147483647, %v8869_v49 }
 0x208   : > { %v8879_v11 = vpop.eup %5582  ;;  %4848 = vst [vmem:[%s6574_s17 + $0x338] sm:$0xff] %v4592_v39  ;;  %v2873_v4 = vsel %vm8862_vm8, %v2870_v53, %v2867_v13  ;;  %v2895_v56 = vmul.f32 -0.5, %v8850_v41  ;;  %v8887_v3 = vmul.f32 0.1, %v8761_v34  ;;  %v2879_v2 = vmul.f32 %v8812_v24, %v2878_v30 }
 0x209   : > { %v4337_v50 = vmul.f32 0.9, %v2873_v4  ;;  %5596 = vlog2.f32 %v2901_v16  ;;  %v2889_v59 = vand.u32 2147483647, %v8821_v9  ;;  %v2910_v43 = vadd.f32 1.0, %v8879_v11 }
 0x20a   : > { %5598 = vpow2.f32 %v1643_v22  ;;  %vm8895_vm9 = vcmp.lt.f32.partialorder %v2880_v25, 0.0004427343  ;;  %v8900_v38 = vmul.f32 0.1, %v8792_v15  ;;  %v1275_v28 = vsub.f32 0.0, %v1019_v54 }
 0x20b   : > { %v5585_v18 = vpop.eup %5584  ;;  %v4593_v12 = vadd.f32 %v4337_v50, %v753_v8  ;;  %v2888_v20 = vmul.f32 %v8821_v9, %v2887_v29  ;;  %v2898_v47 = vand.u32 2147483647, %v8850_v41  ;;  %5600 = vlog2.f32 %v2910_v43 }
 0x20c   : > { %v2876_v24 = vmul.f32 0.6931472, %v5585_v18  ;;  %v2896_v44 = vadd.f32 1.0, %v2895_v56  ;;  %v2904_v8 = vmul.f32 -0.5, %v8871_v17  ;;  %v1645_v40 = vmul.f32 1.442695, %v1275_v28 }
 0x20d   : > { %4849 = vst [vmem:[%s6574_s17 + $0x340] sm:$0xff] %v4593_v12  ;;  %v1020_v14 = vand.u32 2147483647, %v8893_v61  ;;  %v5587_v46 = vpop.eup %5586  ;;  %vm8912_vm10 = vcmp.lt.f32.partialorder %v2889_v59, 0.0004427343  ;;  %v758_v9 = vmax.f32 %v8761_v34, %v8887_v3  ;;  %v2913_v1 = vmul.f32 -0.5, %v8879_v11 }
 0x20e   : > { %v2882_v5 = vsel %vm8895_vm9, %v2879_v2, %v2876_v24  ;;  %v1021_v7 = vand.u32 2147483647, %v8903_v63  ;;  %v8919_v58 = vpop.eup %5588  ;;  %v2885_v32 = vmul.f32 0.6931472, %v5587_v46  ;;  %5602 = vpow2.f32 %v1645_v40 }
 0x20f   : > { %v4338_v53 = vmul.f32 0.9, %v2882_v5  ;;  %v1276_v60 = vsub.f32 0.0, %v1020_v14  ;;  %vm8921_vm11 = vcmp.lt.f32.partialorder %v2898_v47, 0.0004427343  ;;  %v759_v33 = vmax.f32 %v8792_v15, %v8900_v38  ;;  %v8975_v14 = vld [vmem:[%s6391_s30 + $0x3a8] sm:$0xff] }
 0x210   : > { %v2919_v45 = vadd.f32 1.0, %v8919_v58  ;;  %v8929_v19 = vpop.eup %5590  ;;  %v2891_v13 = vsel %vm8912_vm10, %v2888_v20, %v2885_v32  ;;  %v2897_v30 = vmul.f32 %v8850_v41, %v2896_v44  ;;  %v2905_v25 = vadd.f32 1.0, %v2904_v8 }
 0x211   : > { %v4594_v39 = vadd.f32 %v4338_v53, %v754_v55  ;;  %v4339_v4 = vmul.f32 0.9, %v2891_v13  ;;  %v2907_v29 = vand.u32 2147483647, %v8871_v17  ;;  %v2916_v22 = vand.u32 2147483647, %v8879_v11 }
 0x212   : > { %v5593_v16 = vpop.eup %5592  ;;  %5604 = vlog2.f32 %v2919_v45  ;;  %v2928_v51 = vadd.f32 1.0, %v8929_v19  ;;  %v1647_v52 = vmul.f32 1.442695, %v1276_v60  ;;  %v1277_v55 = vsub.f32 0.0, %v1021_v7  ;;  %v8982_v53 = vld [vmem:[%s6391_s30 + $0x3b0] sm:$0xff] }
 0x213   : > { %v8939_v54 = vpop.eup %5594  ;;  %4850 = vst [vmem:[%s6574_s17 + $0x348] sm:$0xff] %v4594_v39  ;;  %v2894_v50 = vmul.f32 0.6931472, %v5593_v16  ;;  %v4595_v41 = vadd.f32 %v4339_v4, %v755_v62  ;;  %v2914_v56 = vadd.f32 1.0, %v2913_v1  ;;  %v8947_v2 = vmul.f32 0.1, %v8795_v48 }
 0x214   : > { %v2937_v59 = vadd.f32 1.0, %v8939_v54  ;;  %v2906_v18 = vmul.f32 %v8871_v17, %v2905_v25  ;;  %5606 = vlog2.f32 %v2928_v51  ;;  %v8954_v12 = vmul.f32 0.1, %v8826_v26 }
 0x215   : > { %v2900_v43 = vsel %vm8921_vm11, %v2897_v30, %v2894_v50  ;;  %4851 = vst [vmem:[%s6574_s17 + $0x350] sm:$0xff] %v4595_v41  ;;  %vm8957_vm12 = vcmp.lt.f32.partialorder %v2907_v29, 0.0004427343  ;;  %v2922_v62 = vmul.f32 -0.5, %v8919_v58  ;;  %vm8964_vm13 = vcmp.lt.f32.partialorder %v2916_v22, 0.0004427343 }
 0x216   : > { %v5597_v31 = vpop.eup %5596  ;;  %v4340_v10 = vmul.f32 0.9, %v2900_v43  ;;  %5608 = vlog2.f32 %v2937_v59  ;;  %v1649_v20 = vmul.f32 1.442695, %v1277_v55  ;;  %v2915_v44 = vmul.f32 %v8879_v11, %v2914_v56  ;;  %v9007_v50 = vld [vmem:[%s6391_s30 + $0x3b8] sm:$0xff] }
 0x217   : > { %v8962_v28 = vpop.eup %5598  ;;  %v2903_v17 = vmul.f32 0.6931472, %v5597_v31  ;;  %5610 = vpow2.f32 %v1647_v52  ;;  %v2931_v8 = vmul.f32 -0.5, %v8929_v19  ;;  %v2925_v37 = vand.u32 2147483647, %v8919_v58 }
 0x218   : > { %v4596_v47 = vadd.f32 %v4340_v10, %v756_v36  ;;  %v2946_v40 = vadd.f32 1.0, %v8962_v28  ;;  %v5601_v46 = vpop.eup %5600  ;;  %v2940_v7 = vmul.f32 -0.5, %v8939_v54  ;;  %5612 = vpow2.f32 %v1649_v20 }
 0x219   : > { %v2909_v5 = vsel %vm8957_vm12, %v2906_v18, %v2903_v17  ;;  %v2912_v0 = vmul.f32 0.6931472, %v5601_v46  ;;  %v2923_v36 = vadd.f32 1.0, %v2922_v62  ;;  %v760_v11 = vmax.f32 %v8795_v48, %v8947_v2 }
 0x21a   : > { %4852 = vst [vmem:[%s6574_s17 + $0x358] sm:$0xff] %v4596_v47  ;;  %v4341_v35 = vmul.f32 0.9, %v2909_v5  ;;  %5614 = vlog2.f32 %v2946_v40  ;;  %v2934_v32 = vand.u32 2147483647, %v8929_v19  ;;  %v2932_v13 = vadd.f32 1.0, %v2931_v8 }
 0x21b   : > { %v2943_v60 = vand.u32 2147483647, %v8939_v54  ;;  %v1022_v23 = vand.u32 2147483647, %v8975_v14  ;;  %v8990_v1 = vpop.eup %5602  ;;  %v2918_v39 = vsel %vm8964_vm13, %v2915_v44, %v2912_v0  ;;  %v1023_v30 = vand.u32 2147483647, %v8982_v53 }
 0x21c   : > { %v4597_v45 = vadd.f32 %v4341_v35, %v757_v27  ;;  %v4342_v25 = vmul.f32 0.9, %v2918_v39  ;;  %v2941_v16 = vadd.f32 1.0, %v2940_v7  ;;  %v2949_v4 = vmul.f32 -0.5, %v8962_v28  ;;  %v9059_v39 = vld [vmem:[%s6391_s30 + $0x3c8] sm:$0xff] }
 0x21d   : > { %v2955_v29 = vadd.f32 1.0, %v8990_v1  ;;  %v2924_v22 = vmul.f32 %v8919_v58, %v2923_v36  ;;  %vm9002_vm14 = vcmp.lt.f32.partialorder %v2925_v37, 0.0004427343  ;;  %v1278_v6 = vsub.f32 0.0, %v1022_v23  ;;  %v9021_v58 = vld [vmem:[%s6391_s30 + $0x3c0] sm:$0xff] }
 0x21e   : > { %4853 = vst [vmem:[%s6574_s17 + $0x360] sm:$0xff] %v4597_v45  ;;  %v1279_v27 = vsub.f32 0.0, %v1023_v30  ;;  %v4598_v52 = vadd.f32 %v4342_v25, %v758_v9  ;;  %vm9012_vm15 = vcmp.lt.f32.partialorder %v2934_v32, 0.0004427343  ;;  %vm9016_vm0 = vcmp.lt.f32.partialorder %v2943_v60, 0.0004427343 }
 0x21f   : > { %v5605_v51 = vpop.eup %5604  ;;  %5616 = vlog2.f32 %v2955_v29  ;;  %v2933_v59 = vmul.f32 %v8929_v19, %v2932_v13  ;;  %v2952_v43 = vand.u32 2147483647, %v8962_v28  ;;  %v1651_v18 = vmul.f32 1.442695, %v1278_v6 }
 0x220   : > { %v2921_v56 = vmul.f32 0.6931472, %v5605_v51  ;;  %4854 = vst [vmem:[%s6574_s17 + $0x368] sm:$0xff] %v4598_v52  ;;  %v2942_v34 = vmul.f32 %v8939_v54, %v2941_v16  ;;  %v2950_v3 = vadd.f32 1.0, %v2949_v4  ;;  %v1653_v9 = vmul.f32 1.442695, %v1279_v27 }
 0x221   : > { %v1024_v31 = vand.u32 2147483647, %v9007_v50  ;;  %v5607_v10 = vpop.eup %5606  ;;  %v2958_v62 = vmul.f32 -0.5, %v8990_v1  ;;  %5618 = vpow2.f32 %v1651_v18  ;;  %v1025_v17 = vand.u32 2147483647, %v9021_v58  ;;  %v9064_v16 = vld [vmem:[%s6391_s30 + $0x3d0] sm:$0xff] }
 0x222   : > { %v2927_v57 = vsel %vm9002_vm14, %v2924_v22, %v2921_v56  ;;  %v2930_v20 = vmul.f32 0.6931472, %v5607_v10  ;;  %5620 = vpow2.f32 %v1653_v9  ;;  %v761_v44 = vmax.f32 %v8826_v26, %v8954_v12  ;;  %v9074_v22 = vld [vmem:[%s6391_s30 + $0x3d8] sm:$0xff]  ;;  %v9086_v56 = vld [vmem:[%s6391_s30 + $0x3e0] sm:$0xff] }
 0x223   : > { %v5609_v19 = vpop.eup %5608  ;;  %v4343_v24 = vmul.f32 0.9, %v2927_v57  ;;  %v1280_v47 = vsub.f32 0.0, %v1024_v31  ;;  %v506_v40 = vmul.f32 0.1, %v8836_v42  ;;  %v2951_v7 = vmul.f32 %v8962_v28, %v2950_v3 }
 0x224   : > { %v9032_v54 = vpop.eup %5610  ;;  %v2939_v8 = vmul.f32 0.6931472, %v5609_v19  ;;  %vm9037_vm1 = vcmp.lt.f32.partialorder %v2952_v43, 0.0004427343  ;;  %v2936_v37 = vsel %vm9012_vm15, %v2933_v59, %v2930_v20  ;;  %v1281_v32 = vsub.f32 0.0, %v1025_v17 }
 0x225   : > { %v4599_v5 = vadd.f32 %v4343_v24, %v759_v33  ;;  %v2964_v35 = vadd.f32 1.0, %v9032_v54  ;;  %v9048_v26 = vpop.eup %5612  ;;  %v4344_v12 = vmul.f32 0.9, %v2936_v37  ;;  %v1655_v36 = vmul.f32 1.442695, %v1280_v47 }
 0x226   : > { %v2945_v0 = vsel %vm9016_vm0, %v2942_v34, %v2939_v8  ;;  %v2959_v33 = vadd.f32 1.0, %v2958_v62  ;;  %v2973_v28 = vadd.f32 1.0, %v9048_v26  ;;  %v2961_v45 = vand.u32 2147483647, %v8990_v1 }
 0x227   : > { %v5615_v15 = vpop.eup %5614  ;;  %4855 = vst [vmem:[%s6574_s17 + $0x370] sm:$0xff] %v4599_v5  ;;  %v4345_v38 = vmul.f32 0.9, %v2945_v0  ;;  %5622 = vlog2.f32 %v2964_v35  ;;  %v4600_v60 = vadd.f32 %v4344_v12, %v760_v11  ;;  %v762_v30 = vmax.f32 %v8836_v42, %v506_v40 }
 0x228   : > { %v2948_v23 = vmul.f32 0.6931472, %v5615_v15  ;;  %v507_v25 = vmul.f32 0.1, %v8869_v49  ;;  %5624 = vlog2.f32 %v2973_v28  ;;  %v2967_v48 = vmul.f32 -0.5, %v9032_v54 }
 0x229   : > { %v4601_v13 = vadd.f32 %v4345_v38, %v761_v44  ;;  %4856 = vst [vmem:[%s6574_s17 + $0x378] sm:$0xff] %v4600_v60  ;;  %5626 = vpow2.f32 %v1655_v36  ;;  %v1657_v2 = vmul.f32 1.442695, %v1281_v32  ;;  %v2960_v29 = vmul.f32 %v8990_v1, %v2959_v33 }
 0x22a   : > { %v2954_v4 = vsel %vm9037_vm1, %v2951_v7, %v2948_v23  ;;  %v1026_v42 = vand.u32 2147483647, %v9059_v39  ;;  %vm9076_vm2 = vcmp.lt.f32.partialorder %v2961_v45, 0.0004427343  ;;  %v9081_v27 = vmul.f32 0.1, %v8893_v61 }
 0x22b   : > { %4857 = vst [vmem:[%s6574_s17 + $0x380] sm:$0xff] %v4601_v13  ;;  %v4346_v11 = vmul.f32 0.9, %v2954_v4  ;;  %5628 = vpow2.f32 %v1657_v2  ;;  %v1027_v51 = vand.u32 2147483647, %v9064_v16  ;;  %v2976_v1 = vmul.f32 -0.5, %v9048_v26 }
 0x22c   : > { %v5617_v21 = vpop.eup %5616  ;;  %v1282_v41 = vsub.f32 0.0, %v1026_v42  ;;  %v763_v59 = vmax.f32 %v8869_v49, %v507_v25  ;;  %v2968_v43 = vadd.f32 1.0, %v2967_v48  ;;  %v2970_v18 = vand.u32 2147483647, %v9032_v54  ;;  %v9114_v7 = vld [vmem:[%s6391_s30 + $0x3e8] sm:$0xff] }
 0x22d   : > { %v4602_v52 = vadd.f32 %v4346_v11, %v762_v30  ;;  %v2957_v55 = vmul.f32 0.6931472, %v5617_v21  ;;  %v9091_v34 = vmul.f32 0.1, %v8903_v63  ;;  %v1283_v10 = vsub.f32 0.0, %v1027_v51 }
 0x22e   : > { %v9093_v3 = vpop.eup %5618  ;;  %v1659_v31 = vmul.f32 1.442695, %v1282_v41  ;;  %v1028_v57 = vand.u32 2147483647, %v9074_v22  ;;  %v1029_v19 = vand.u32 2147483647, %v9086_v56  ;;  %v764_v8 = vmax.f32 %v8893_v61, %v9081_v27 }
 0x22f   : > { %4858 = vst [vmem:[%s6574_s17 + $0x388] sm:$0xff] %v4602_v52  ;;  %v2963_v9 = vsel %vm9076_vm2, %v2960_v29, %v2957_v55  ;;  %v9099_v62 = vpop.eup %5620  ;;  %v2982_v17 = vadd.f32 1.0, %v9093_v3  ;;  %v2977_v24 = vadd.f32 1.0, %v2976_v1  ;;  %v2979_v20 = vand.u32 2147483647, %v9048_v26  ;;  %v9152_v52 = vld [vmem:[%s6391_s30 + $0x3f0] sm:$0xff] }
 0x230   : > { %v4347_v49 = vmul.f32 0.9, %v2963_v9  ;;  %v2991_v47 = vadd.f32 1.0, %v9099_v62  ;;  %5630 = vpow2.f32 %v1659_v31  ;;  %v9108_v40 = vmul.f32 0.1, %v8975_v14  ;;  %v9155_v55 = vld [vmem:[%s6391_s30 + $0x3f8] sm:$0xff] }
 0x231   : > { %5632 = vlog2.f32 %v2982_v17  ;;  %v2969_v46 = vmul.f32 %v9032_v54, %v2968_v43  ;;  %v765_v5 = vmax.f32 %v8903_v63, %v9091_v34  ;;  %v1661_v37 = vmul.f32 1.442695, %v1283_v10 }
 0x232   : > { %v4603_v44 = vadd.f32 %v4347_v49, %v763_v59  ;;  %5634 = vlog2.f32 %v2991_v47  ;;  %vm9117_vm3 = vcmp.lt.f32.partialorder %v2970_v18, 0.0004427343  ;;  %v9122_v61 = vmul.f32 0.1, %v8982_v53 }
 0x233   : > { %v1284_v0 = vsub.f32 0.0, %v1028_v57  ;;  %v1285_v36 = vsub.f32 0.0, %v1029_v19  ;;  %v2978_v54 = vmul.f32 %v9048_v26, %v2977_v24  ;;  %vm9125_vm4 = vcmp.lt.f32.partialorder %v2979_v20, 0.0004427343 }
 0x234   : > { %v5623_v35 = vpop.eup %5622  ;;  %4859 = vst [vmem:[%s6574_s17 + $0x390] sm:$0xff] %v4603_v44  ;;  %5636 = vpow2.f32 %v1661_v37  ;;  %v766_v38 = vmax.f32 %v8975_v14, %v9108_v40  ;;  %v2985_v33 = vmul.f32 -0.5, %v9093_v3  ;;  %v1030_v60 = vand.u32 2147483647, %v9114_v7 }
 0x235   : > { %v2966_v32 = vmul.f32 0.6931472, %v5623_v35  ;;  %v5625_v15 = vpop.eup %5624  ;;  %v1663_v28 = vmul.f32 1.442695, %v1284_v0  ;;  %v2994_v13 = vmul.f32 -0.5, %v9099_v62  ;;  %v767_v4 = vmax.f32 %v8982_v53, %v9122_v61 }
 0x236   : > { %v9133_v23 = vpop.eup %5626  ;;  %v2975_v26 = vmul.f32 0.6931472, %v5625_v15  ;;  %v9139_v30 = vmul.f32 0.1, %v9007_v50  ;;  %v1665_v2 = vmul.f32 1.442695, %v1285_v36 }
 0x237   : > { %v2972_v45 = vsel %vm9117_vm3, %v2969_v46, %v2966_v32  ;;  %v3000_v48 = vadd.f32 1.0, %v9133_v23  ;;  %v9149_v42 = vmul.f32 0.1, %v9021_v58  ;;  %5638 = vpow2.f32 %v1663_v28  ;;  %v9196_v28 = vld [vmem:[%s6391_s30 + $0x400] sm:$0xff] }
 0x238   : > { %v4348_v25 = vmul.f32 0.9, %v2972_v45  ;;  %v9144_v11 = vpop.eup %5628  ;;  %v2981_v29 = vsel %vm9125_vm4, %v2978_v54, %v2975_v26  ;;  %v1286_v21 = vsub.f32 0.0, %v1030_v60  ;;  %v2986_v51 = vadd.f32 1.0, %v2985_v33 }
 0x239   : > { %v4349_v27 = vmul.f32 0.9, %v2981_v29  ;;  %5640 = vlog2.f32 %v3000_v48  ;;  %v2988_v1 = vand.u32 2147483647, %v9093_v3  ;;  %v2995_v41 = vadd.f32 1.0, %v2994_v13 }
 0x23a   : > { %v4604_v6 = vadd.f32 %v4348_v25, %v764_v8  ;;  %v3009_v59 = vadd.f32 1.0, %v9144_v11  ;;  %v9160_v43 = vmul.f32 0.1, %v9059_v39  ;;  %v2997_v34 = vand.u32 2147483647, %v9099_v62 }
 0x23b   : > { %v4605_v18 = vadd.f32 %v4349_v27, %v765_v5  ;;  %5642 = vpow2.f32 %v1665_v2  ;;  %v1667_v9 = vmul.f32 1.442695, %v1286_v21  ;;  %v768_v31 = vmax.f32 %v9007_v50, %v9139_v30 }
 0x23c   : > { %4860 = vst [vmem:[%s6574_s17 + $0x398] sm:$0xff] %v4604_v6  ;;  %v769_v10 = vmax.f32 %v9021_v58, %v9149_v42  ;;  %5644 = vlog2.f32 %v3009_v59  ;;  %v1031_v57 = vand.u32 2147483647, %v9152_v52  ;;  %v2987_v17 = vmul.f32 %v9093_v3, %v2986_v51  ;;  %v9218_v59 = vld [vmem:[%s6391_s30 + $0x408] sm:$0xff]  ;;  %v9287_v58 = vld [vmem:[%s6391_s30 + $0x418] sm:$0xff] }
 0x23d   : > { %v9169_v49 = vpop.eup %5630  ;;  %4861 = vst [vmem:[%s6574_s17 + $0x3a0] sm:$0xff] %v4605_v18  ;;  %v3003_v19 = vmul.f32 -0.5, %v9133_v23  ;;  %5646 = vpow2.f32 %v1667_v9  ;;  %v1032_v24 = vand.u32 2147483647, %v9155_v55  ;;  %vm9175_vm5 = vcmp.lt.f32.partialorder %v2988_v1, 0.0004427343 }
 0x23e   : > { %v5633_v20 = vpop.eup %5632  ;;  %v2996_v44 = vmul.f32 %v9099_v62, %v2995_v41  ;;  %v770_v8 = vmax.f32 %v9059_v39, %v9160_v43  ;;  %v3018_v46 = vadd.f32 1.0, %v9169_v49  ;;  %vm9183_vm6 = vcmp.lt.f32.partialorder %v2997_v34, 0.0004427343 }
 0x23f   : > { %v5635_v5 = vpop.eup %5634  ;;  %v2984_v3 = vmul.f32 0.6931472, %v5633_v20  ;;  %v1287_v35 = vsub.f32 0.0, %v1031_v57  ;;  %v1288_v12 = vsub.f32 0.0, %v1032_v24  ;;  %v3012_v36 = vmul.f32 -0.5, %v9144_v11 }
 0x240   : > { %v2993_v0 = vmul.f32 0.6931472, %v5635_v5  ;;  %5648 = vlog2.f32 %v3018_v46  ;;  %v9189_v62 = vmul.f32 0.1, %v9064_v16  ;;  %v3004_v63 = vadd.f32 1.0, %v3003_v19 }
 0x241   : > { %v9191_v32 = vpop.eup %5636  ;;  %v2990_v54 = vsel %vm9175_vm5, %v2987_v17, %v2984_v3  ;;  %v1669_v15 = vmul.f32 1.442695, %v1287_v35  ;;  %v1671_v33 = vmul.f32 1.442695, %v1288_v12  ;;  %v3006_v26 = vand.u32 2147483647, %v9133_v23 }
 0x242   : > { %v4350_v60 = vmul.f32 0.9, %v2990_v54  ;;  %v2999_v45 = vsel %vm9183_vm6, %v2996_v44, %v2993_v0  ;;  %v3027_v13 = vadd.f32 1.0, %v9191_v32  ;;  %v3021_v48 = vmul.f32 -0.5, %v9169_v49 }
 0x243   : > { %v4351_v25 = vmul.f32 0.9, %v2999_v45  ;;  %v9204_v2 = vmul.f32 0.1, %v9074_v22  ;;  %5650 = vpow2.f32 %v1669_v15  ;;  %v3013_v21 = vadd.f32 1.0, %v3012_v36 }
 0x244   : > { %v4606_v29 = vadd.f32 %v4350_v60, %v766_v38  ;;  %5652 = vlog2.f32 %v3027_v13  ;;  %v1033_v6 = vand.u32 2147483647, %v9196_v28  ;;  %v9210_v27 = vpop.eup %5638  ;;  %v3005_v1 = vmul.f32 %v9133_v23, %v3004_v63 }
 0x245   : > { %v4607_v51 = vadd.f32 %v4351_v25, %v767_v4  ;;  %v3015_v41 = vand.u32 2147483647, %v9144_v11  ;;  %5654 = vpow2.f32 %v1671_v33  ;;  %vm9221_vm7 = vcmp.lt.f32.partialorder %v3006_v26, 0.0004427343  ;;  %v9261_v33 = vld [vmem:[%s6391_s30 + $0x410] sm:$0xff] }
 0x246   : > { %v5641_v14 = vpop.eup %5640  ;;  %4862 = vst [vmem:[%s6574_s17 + $0x3a8] sm:$0xff] %v4606_v29  ;;  %v3024_v38 = vand.u32 2147483647, %v9169_v49  ;;  %v3036_v18 = vadd.f32 1.0, %v9210_v27  ;;  %v1289_v34 = vsub.f32 0.0, %v1033_v6  ;;  %v3022_v61 = vadd.f32 1.0, %v3021_v48 }
 0x247   : > { %4863 = vst [vmem:[%s6574_s17 + $0x3b0] sm:$0xff] %v4607_v51  ;;  %v3002_v53 = vmul.f32 0.6931472, %v5641_v14  ;;  %v771_v23 = vmax.f32 %v9064_v16, %v9189_v62  ;;  %v9231_v4 = vmul.f32 0.1, %v9086_v56  ;;  %v3014_v57 = vmul.f32 %v9144_v11, %v3013_v21 }
 0x248   : > { %v9233_v9 = vpop.eup %5642  ;;  %v3030_v17 = vmul.f32 -0.5, %v9191_v32  ;;  %5656 = vlog2.f32 %v3036_v18  ;;  %v1673_v19 = vmul.f32 1.442695, %v1289_v34  ;;  %vm9239_vm8 = vcmp.lt.f32.partialorder %v3015_v41, 0.0004427343 }
 0x249   : > { %v5645_v24 = vpop.eup %5644  ;;  %v3008_v20 = vsel %vm9221_vm7, %v3005_v1, %v3002_v53  ;;  %v3045_v44 = vadd.f32 1.0, %v9233_v9  ;;  %v1034_v46 = vand.u32 2147483647, %v9218_v59  ;;  %vm9247_vm9 = vcmp.lt.f32.partialorder %v3024_v38, 0.0004427343 }
 0x24a   : > { %v9245_v5 = vpop.eup %5646  ;;  %v4352_v11 = vmul.f32 0.9, %v3008_v20  ;;  %v3011_v3 = vmul.f32 0.6931472, %v5645_v24  ;;  %5658 = vpow2.f32 %v1673_v19  ;;  %v3023_v35 = vmul.f32 %v9169_v49, %v3022_v61 }
 0x24b   : > { %v3033_v12 = vand.u32 2147483647, %v9191_v32  ;;  %5660 = vlog2.f32 %v3045_v44  ;;  %v3054_v0 = vadd.f32 1.0, %v9245_v5  ;;  %v3031_v63 = vadd.f32 1.0, %v3030_v17 }
 0x24c   : > { %v4608_v36 = vadd.f32 %v4352_v11, %v768_v31  ;;  %v3017_v54 = vsel %vm9239_vm8, %v3014_v57, %v3011_v3  ;;  %v3039_v15 = vmul.f32 -0.5, %v9210_v27  ;;  %v3042_v49 = vand.u32 2147483647, %v9210_v27 }
 0x24d   : > { %v5649_v60 = vpop.eup %5648  ;;  %v4353_v45 = vmul.f32 0.9, %v3017_v54  ;;  %5662 = vlog2.f32 %v3054_v0  ;;  %v1290_v26 = vsub.f32 0.0, %v1034_v46  ;;  %v772_v50 = vmax.f32 %v9074_v22, %v9204_v2 }
 0x24e   : > { %4864 = vst [vmem:[%s6574_s17 + $0x3b8] sm:$0xff] %v4608_v36  ;;  %v3020_v13 = vmul.f32 0.6931472, %v5649_v60  ;;  %v773_v30 = vmax.f32 %v9086_v56, %v9231_v4  ;;  %v3048_v31 = vmul.f32 -0.5, %v9233_v9  ;;  %v9274_v48 = vmul.f32 0.1, %v9114_v7 }
 0x24f   : > { %v4609_v25 = vadd.f32 %v4353_v45, %v769_v10  ;;  %v1675_v29 = vmul.f32 1.442695, %v1290_v26  ;;  %v1035_v21 = vand.u32 2147483647, %v9261_v33  ;;  %v3032_v1 = vmul.f32 %v9191_v32, %v3031_v63  ;;  %v9322_v36 = vld [vmem:[%s6391_s30 + $0x420] sm:$0xff] }
 0x250   : > { %v9277_v6 = vpop.eup %5650  ;;  %v3026_v51 = vsel %vm9247_vm9, %v3023_v35, %v3020_v13  ;;  %vm9282_vm10 = vcmp.lt.f32.partialorder %v3033_v12, 0.0004427343  ;;  %v3040_v14 = vadd.f32 1.0, %v3039_v15  ;;  %vm9290_vm11 = vcmp.lt.f32.partialorder %v3042_v49, 0.0004427343  ;;  %v9339_v49 = vld [vmem:[%s6391_s30 + $0x428] sm:$0xff] }
 0x251   : > { %v5653_v42 = vpop.eup %5652  ;;  %4865 = vst [vmem:[%s6574_s17 + $0x3c0] sm:$0xff] %v4609_v25  ;;  %v4354_v10 = vmul.f32 0.9, %v3026_v51  ;;  %v3057_v38 = vmul.f32 -0.5, %v9245_v5  ;;  %v3063_v18 = vadd.f32 1.0, %v9277_v6  ;;  %v3049_v53 = vadd.f32 1.0, %v3048_v31 }
 0x252   : > { %v9296_v32 = vpop.eup %5654  ;;  %v3029_v34 = vmul.f32 0.6931472, %v5653_v42  ;;  %5664 = vpow2.f32 %v1675_v29  ;;  %v1291_v61 = vsub.f32 0.0, %v1035_v21  ;;  %v3051_v17 = vand.u32 2147483647, %v9233_v9  ;;  %v9349_v51 = vld [vmem:[%s6391_s30 + $0x430] sm:$0xff] }
 0x253   : > { %v4610_v57 = vadd.f32 %v4354_v10, %v770_v8  ;;  %5666 = vlog2.f32 %v3063_v18  ;;  %v1036_v19 = vand.u32 2147483647, %v9287_v58  ;;  %v3041_v20 = vmul.f32 %v9210_v27, %v3040_v14 }
 0x254   : > { %v3035_v24 = vsel %vm9282_vm10, %v3032_v1, %v3029_v34  ;;  %v3060_v47 = vand.u32 2147483647, %v9245_v5  ;;  %v3072_v44 = vadd.f32 1.0, %v9296_v32  ;;  %v774_v39 = vmax.f32 %v9114_v7, %v9274_v48 }
 0x255   : > { %v5657_v46 = vpop.eup %5656  ;;  %4866 = vst [vmem:[%s6574_s17 + $0x3c8] sm:$0xff] %v4610_v57  ;;  %v4355_v11 = vmul.f32 0.9, %v3035_v24  ;;  %v3058_v43 = vadd.f32 1.0, %v3057_v38  ;;  %v1677_v8 = vmul.f32 1.442695, %v1291_v61  ;;  %v3050_v37 = vmul.f32 %v9233_v9, %v3049_v53 }
 0x256   : > { %v3038_v3 = vmul.f32 0.6931472, %v5657_v46  ;;  %v9313_v35 = vmul.f32 0.1, %v9152_v52  ;;  %5668 = vlog2.f32 %v3072_v44  ;;  %v3066_v0 = vmul.f32 -0.5, %v9277_v6 }
 0x257   : > { %v9315_v27 = vpop.eup %5658  ;;  %v4611_v12 = vadd.f32 %v4355_v11, %v771_v23  ;;  %5670 = vpow2.f32 %v1677_v8  ;;  %v1292_v7 = vsub.f32 0.0, %v1036_v19  ;;  %vm9326_vm12 = vcmp.lt.f32.partialorder %v3051_v17, 0.0004427343 }
 0x258   : > { %v5661_v54 = vpop.eup %5660  ;;  %v3044_v9 = vsel %vm9290_vm11, %v3041_v20, %v3038_v3  ;;  %vm9330_vm13 = vcmp.lt.f32.partialorder %v3060_v47, 0.0004427343  ;;  %v3081_v16 = vadd.f32 1.0, %v9315_v27  ;;  %v3059_v60 = vmul.f32 %v9245_v5, %v3058_v43  ;;  %v9374_v20 = vld [vmem:[%s6391_s30 + $0x438] sm:$0xff] }
 0x259   : > { %4867 = vst [vmem:[%s6574_s17 + $0x3d0] sm:$0xff] %v4611_v12  ;;  %v4356_v62 = vmul.f32 0.9, %v3044_v9  ;;  %v3047_v23 = vmul.f32 0.6931472, %v5661_v54  ;;  %v3075_v45 = vmul.f32 -0.5, %v9296_v32  ;;  %v775_v53 = vmax.f32 %v9152_v52, %v9313_v35 }
 0x25a   : > { %v5663_v26 = vpop.eup %5662  ;;  %v3069_v13 = vand.u32 2147483647, %v9277_v6  ;;  %5672 = vlog2.f32 %v3081_v16  ;;  %v1679_v31 = vmul.f32 1.442695, %v1292_v7  ;;  %v1037_v25 = vand.u32 2147483647, %v9322_v36 }
 0x25b   : > { %v4612_v48 = vadd.f32 %v4356_v62, %v772_v50  ;;  %v3053_v29 = vsel %vm9326_vm12, %v3050_v37, %v3047_v23  ;;  %v3056_v5 = vmul.f32 0.6931472, %v5663_v26  ;;  %v3067_v21 = vadd.f32 1.0, %v3066_v0  ;;  %v9393_v9 = vld [vmem:[%s6391_s30 + $0x440] sm:$0xff]  ;;  %v9399_v23 = vld [vmem:[%s6391_s30 + $0x448] sm:$0xff] }
 0x25c   : > { %v4357_v1 = vmul.f32 0.9, %v3053_v29  ;;  %v3084_v41 = vmul.f32 -0.5, %v9315_v27  ;;  %5674 = vpow2.f32 %v1679_v31  ;;  %v1293_v14 = vsub.f32 0.0, %v1037_v25 }
 0x25d   : > { %4868 = vst [vmem:[%s6574_s17 + $0x3d8] sm:$0xff] %v4612_v48  ;;  %v3062_v42 = vsel %vm9330_vm13, %v3059_v60, %v3056_v5  ;;  %v3076_v10 = vadd.f32 1.0, %v3075_v45  ;;  %v3078_v22 = vand.u32 2147483647, %v9296_v32  ;;  %v1038_v2 = vand.u32 2147483647, %v9339_v49 }
 0x25e   : > { %v4613_v50 = vadd.f32 %v4357_v1, %v773_v30  ;;  %v4358_v40 = vmul.f32 0.9, %v3062_v42  ;;  %v1681_v38 = vmul.f32 1.442695, %v1293_v14  ;;  %v1039_v18 = vand.u32 2147483647, %v9349_v51 }
 0x25f   : > { %v9361_v34 = vpop.eup %5664  ;;  %v3068_v61 = vmul.f32 %v9277_v6, %v3067_v21  ;;  %v520_v57 = vmul.f32 0.1, %v9155_v55  ;;  %v1294_v17 = vsub.f32 0.0, %v1038_v2  ;;  %vm9368_vm14 = vcmp.lt.f32.partialorder %v3069_v13, 0.0004427343 }
 0x260   : > { %v5667_v19 = vpop.eup %5666  ;;  %4869 = vst [vmem:[%s6574_s17 + $0x3e0] sm:$0xff] %v4613_v50  ;;  %v4614_v56 = vadd.f32 %v4358_v40, %v774_v39  ;;  %v3085_v30 = vadd.f32 1.0, %v3084_v41  ;;  %v3090_v24 = vadd.f32 1.0, %v9361_v34  ;;  %5676 = vpow2.f32 %v1681_v38 }
 0x261   : > { %v3065_v47 = vmul.f32 0.6931472, %v5667_v19  ;;  %v1683_v52 = vmul.f32 1.442695, %v1294_v17  ;;  %v1295_v44 = vsub.f32 0.0, %v1039_v18  ;;  %v3077_v6 = vmul.f32 %v9296_v32, %v3076_v10  ;;  %v9422_v10 = vld [vmem:[%s6391_s30 + $0x450] sm:$0xff] }
 0x262   : > { %4870 = vst [vmem:[%s6574_s17 + $0x3e8] sm:$0xff] %v4614_v56  ;;  %vm9378_vm15 = vcmp.lt.f32.partialorder %v3078_v22, 0.0004427343  ;;  %v3087_v11 = vand.u32 2147483647, %v9315_v27  ;;  %5678 = vlog2.f32 %v3090_v24  ;;  %v776_v0 = vmax.f32 %v9155_v55, %v520_v57 }
 0x263   : > { %v5669_v39 = vpop.eup %5668  ;;  %v3071_v43 = vsel %vm9368_vm14, %v3068_v61, %v3065_v47  ;;  %5680 = vpow2.f32 %v1683_v52  ;;  %v1685_v8 = vmul.f32 1.442695, %v1295_v44  ;;  %v1040_v3 = vand.u32 2147483647, %v9374_v20 }
 0x264   : > { %v9386_v37 = vpop.eup %5670  ;;  %v4359_v32 = vmul.f32 0.9, %v3071_v43  ;;  %v3074_v35 = vmul.f32 0.6931472, %v5669_v39  ;;  %v521_v12 = vmul.f32 0.1, %v9196_v28  ;;  %v3086_v7 = vmul.f32 %v9315_v27, %v3085_v30 }
 0x265   : > { %v3099_v54 = vadd.f32 1.0, %v9386_v37  ;;  %5682 = vpow2.f32 %v1685_v8  ;;  %v3093_v16 = vmul.f32 -0.5, %v9361_v34  ;;  %v1296_v62 = vsub.f32 0.0, %v1040_v3 }
 0x266   : > { %v4615_v63 = vadd.f32 %v4359_v32, %v775_v53  ;;  %v3080_v15 = vsel %vm9378_vm15, %v3077_v6, %v3074_v35  ;;  %vm9401_vm0 = vcmp.lt.f32.partialorder %v3087_v11, 0.0004427343  ;;  %v9406_v27 = vmul.f32 0.1, %v9218_v59  ;;  %v9451_v11 = vld [vmem:[%s6391_s30 + $0x458] sm:$0xff] }
 0x267   : > { %v5673_v60 = vpop.eup %5672  ;;  %v4360_v45 = vmul.f32 0.9, %v3080_v15  ;;  %5684 = vlog2.f32 %v3099_v54  ;;  %v1687_v13 = vmul.f32 1.442695, %v1296_v62  ;;  %v1041_v31 = vand.u32 2147483647, %v9393_v9 }
 0x268   : > { %4871 = vst [vmem:[%s6574_s17 + $0x3f0] sm:$0xff] %v4615_v63  ;;  %v3083_v26 = vmul.f32 0.6931472, %v5673_v60  ;;  %v777_v29 = vmax.f32 %v9196_v28, %v521_v12  ;;  %v9414_v5 = vmul.f32 0.1, %v9261_v33  ;;  %v3094_v41 = vadd.f32 1.0, %v3093_v16 }
 0x269   : > { %v9410_v25 = vpop.eup %5674  ;;  %v4616_v48 = vadd.f32 %v4360_v45, %v776_v0  ;;  %v1042_v21 = vand.u32 2147483647, %v9399_v23  ;;  %v3102_v14 = vmul.f32 -0.5, %v9386_v37  ;;  %v3096_v2 = vand.u32 2147483647, %v9361_v34  ;;  %v9476_v45 = vld [vmem:[%s6391_s30 + $0x460] sm:$0xff] }
 0x26a   : > { %v3089_v1 = vsel %vm9401_vm0, %v3086_v7, %v3083_v26  ;;  %v3108_v42 = vadd.f32 1.0, %v9410_v25  ;;  %5686 = vpow2.f32 %v1687_v13  ;;  %v1297_v28 = vsub.f32 0.0, %v1041_v31 }
 0x26b   : > { %4872 = vst [vmem:[%s6574_s17 + $0x3f8] sm:$0xff] %v4616_v48  ;;  %v4361_v22 = vmul.f32 0.9, %v3089_v1  ;;  %v778_v50 = vmax.f32 %v9218_v59, %v9406_v27  ;;  %v9429_v40 = vmul.f32 0.1, %v9287_v58  ;;  %v1298_v38 = vsub.f32 0.0, %v1042_v21 }
 0x26c   : > { %5688 = vlog2.f32 %v3108_v42  ;;  %v779_v53 = vmax.f32 %v9261_v33, %v9414_v5  ;;  %v1689_v61 = vmul.f32 1.442695, %v1297_v28  ;;  %v1043_v57 = vand.u32 2147483647, %v9422_v10 }
 0x26d   : > { %v4617_v18 = vadd.f32 %v4361_v22, %v777_v29  ;;  %v9434_v17 = vpop.eup %5676  ;;  %v3095_v19 = vmul.f32 %v9361_v34, %v3094_v41  ;;  %v3103_v56 = vadd.f32 1.0, %v3102_v14  ;;  %v9438_v59 = vmul.f32 0.1, %v9322_v36  ;;  %v9494_v41 = vld [vmem:[%s6391_s30 + $0x468] sm:$0xff] }
 0x26e   : > { %v1691_v4 = vmul.f32 1.442695, %v1298_v38  ;;  %vm9441_vm1 = vcmp.lt.f32.partialorder %v3096_v2, 0.0004427343  ;;  %v3105_v47 = vand.u32 2147483647, %v9386_v37  ;;  %5690 = vpow2.f32 %v1689_v61 }
 0x26f   : > { %v5679_v30 = vpop.eup %5678  ;;  %4873 = vst [vmem:[%s6574_s17 + $0x400] sm:$0xff] %v4617_v18  ;;  %v3117_v52 = vadd.f32 1.0, %v9434_v17  ;;  %v3111_v34 = vmul.f32 -0.5, %v9410_v25  ;;  %v1299_v46 = vsub.f32 0.0, %v1043_v57  ;;  %v9454_v39 = vmul.f32 0.1, %v9339_v49 }
 0x270   : > { %v9447_v44 = vpop.eup %5680  ;;  %v3092_v6 = vmul.f32 0.6931472, %v5679_v30  ;;  %5692 = vpow2.f32 %v1691_v4  ;;  %v9458_v8 = vmul.f32 0.1, %v9349_v51  ;;  %v3104_v35 = vmul.f32 %v9386_v37, %v3103_v56 }
 0x271   : > { %5694 = vlog2.f32 %v3117_v52  ;;  %v3126_v43 = vadd.f32 1.0, %v9447_v44  ;;  %v3114_v12 = vand.u32 2147483647, %v9410_v25  ;;  %v1693_v0 = vmul.f32 1.442695, %v1299_v46 }
 0x272   : > { %v9460_v3 = vpop.eup %5682  ;;  %v3098_v32 = vsel %vm9441_vm1, %v3095_v19, %v3092_v6  ;;  %v1044_v63 = vand.u32 2147483647, %v9451_v11  ;;  %vm9468_vm2 = vcmp.lt.f32.partialorder %v3105_v47, 0.0004427343  ;;  %v780_v62 = vmax.f32 %v9287_v58, %v9429_v40 }
 0x273   : > { %v4362_v7 = vmul.f32 0.9, %v3098_v32  ;;  %5696 = vlog2.f32 %v3126_v43  ;;  %v3135_v54 = vadd.f32 1.0, %v9460_v3  ;;  %v3112_v60 = vadd.f32 1.0, %v3111_v34 }
 0x274   : > { %v5685_v15 = vpop.eup %5684  ;;  %v3120_v37 = vmul.f32 -0.5, %v9434_v17  ;;  %v3129_v26 = vmul.f32 -0.5, %v9447_v44  ;;  %v781_v13 = vmax.f32 %v9322_v36, %v9438_v59  ;;  %v782_v31 = vmax.f32 %v9339_v49, %v9454_v39  ;;  %v9572_v36 = vld [vmem:[%s6391_s30 + $0x480] sm:$0xff] }
 0x275   : > { %v4618_v55 = vadd.f32 %v4362_v7, %v778_v50  ;;  %v3101_v27 = vmul.f32 0.6931472, %v5685_v15  ;;  %5698 = vlog2.f32 %v3135_v54  ;;  %v783_v58 = vmax.f32 %v9349_v51, %v9458_v8 }
 0x276   : > { %5700 = vpow2.f32 %v1693_v0  ;;  %vm9488_vm3 = vcmp.lt.f32.partialorder %v3114_v12, 0.0004427343  ;;  %v1300_v21 = vsub.f32 0.0, %v1044_v63  ;;  %v1045_v1 = vand.u32 2147483647, %v9476_v45 }
 0x277   : > { %4874 = vst [vmem:[%s6574_s17 + $0x408] sm:$0xff] %v4618_v55  ;;  %v3107_v48 = vsel %vm9468_vm2, %v3104_v35, %v3101_v27  ;;  %v9496_v14 = vpop.eup %5686  ;;  %v3113_v22 = vmul.f32 %v9410_v25, %v3112_v60  ;;  %v3123_v2 = vand.u32 2147483647, %v9434_v17  ;;  %v3138_v28 = vmul.f32 -0.5, %v9460_v3 }
 0x278   : > { %v4363_v42 = vmul.f32 0.9, %v3107_v48  ;;  %v3121_v40 = vadd.f32 1.0, %v3120_v37  ;;  %v3130_v38 = vadd.f32 1.0, %v3129_v26  ;;  %v3144_v18 = vadd.f32 1.0, %v9496_v14 }
 0x279   : > { %v5689_v50 = vpop.eup %5688  ;;  %v1695_v61 = vmul.f32 1.442695, %v1300_v21  ;;  %v1301_v56 = vsub.f32 0.0, %v1045_v1  ;;  %v1046_v4 = vand.u32 2147483647, %v9494_v41  ;;  %v3139_v5 = vadd.f32 1.0, %v3138_v28 }
 0x27a   : > { %v4619_v57 = vadd.f32 %v4363_v42, %v779_v53  ;;  %v3110_v19 = vmul.f32 0.6931472, %v5689_v50  ;;  %v3132_v25 = vand.u32 2147483647, %v9447_v44  ;;  %v9508_v30 = vmul.f32 0.1, %v9374_v20 }
 0x27b   : > { %5702 = vlog2.f32 %v3144_v18  ;;  %v9511_v24 = vmul.f32 0.1, %v9393_v9  ;;  %v9513_v47 = vpop.eup %5690  ;;  %v3141_v53 = vand.u32 2147483647, %v9460_v3  ;;  %v3122_v34 = vmul.f32 %v9434_v17, %v3121_v40  ;;  %v9560_v18 = vld [vmem:[%s6391_s30 + $0x478] sm:$0xff] }
 0x27c   : > { %4875 = vst [vmem:[%s6574_s17 + $0x410] sm:$0xff] %v4619_v57  ;;  %v3116_v33 = vsel %vm9488_vm3, %v3113_v22, %v3110_v19  ;;  %5704 = vpow2.f32 %v1695_v61  ;;  %v3153_v46 = vadd.f32 1.0, %v9513_v47  ;;  %v1697_v43 = vmul.f32 1.442695, %v1301_v56 }
 0x27d   : > { %v9519_v52 = vpop.eup %5692  ;;  %v4364_v6 = vmul.f32 0.9, %v3116_v33  ;;  %vm9523_vm4 = vcmp.lt.f32.partialorder %v3123_v2, 0.0004427343  ;;  %v3131_v12 = vmul.f32 %v9447_v44, %v3130_v38  ;;  %v1302_v7 = vsub.f32 0.0, %v1046_v4  ;;  %v9540_v44 = vld [vmem:[%s6391_s30 + $0x470] sm:$0xff] }
 0x27e   : > { %v5695_v32 = vpop.eup %5694  ;;  %v3162_v0 = vadd.f32 1.0, %v9519_v52  ;;  %v3147_v15 = vmul.f32 -0.5, %v9496_v14  ;;  %5706 = vlog2.f32 %v3153_v46  ;;  %vm9530_vm5 = vcmp.lt.f32.partialorder %v3132_v25, 0.0004427343 }
 0x27f   : > { %v4620_v54 = vadd.f32 %v4364_v6, %v780_v62  ;;  %v3119_v63 = vmul.f32 0.6931472, %v5695_v32  ;;  %v3140_v60 = vmul.f32 %v9460_v3, %v3139_v5  ;;  %vm9535_vm6 = vcmp.lt.f32.partialorder %v3141_v53, 0.0004427343 }
 0x280   : > { %v5697_v17 = vpop.eup %5696  ;;  %5708 = vlog2.f32 %v3162_v0  ;;  %v3150_v27 = vand.u32 2147483647, %v9496_v14  ;;  %v784_v3 = vmax.f32 %v9374_v20, %v9508_v30  ;;  %v3156_v29 = vmul.f32 -0.5, %v9513_v47 }
 0x281   : > { %4876 = vst [vmem:[%s6574_s17 + $0x418] sm:$0xff] %v4620_v54  ;;  %v3125_v62 = vsel %vm9523_vm4, %v3122_v34, %v3119_v63  ;;  %v3128_v55 = vmul.f32 0.6931472, %v5697_v17  ;;  %5710 = vpow2.f32 %v1697_v43  ;;  %v1699_v21 = vmul.f32 1.442695, %v1302_v7  ;;  %v9600_v7 = vld [vmem:[%s6391_s30 + $0x488] sm:$0xff] }
 0x282   : > { %v5699_v26 = vpop.eup %5698  ;;  %v4365_v48 = vmul.f32 0.9, %v3125_v62  ;;  %v3148_v2 = vadd.f32 1.0, %v3147_v15  ;;  %v1047_v28 = vand.u32 2147483647, %v9540_v44  ;;  %v3165_v20 = vmul.f32 -0.5, %v9519_v52 }
 0x283   : > { %v9549_v1 = vpop.eup %5700  ;;  %v3134_v42 = vsel %vm9530_vm5, %v3131_v12, %v3128_v55  ;;  %v3137_v22 = vmul.f32 0.6931472, %v5699_v26  ;;  %vm9564_vm7 = vcmp.lt.f32.partialorder %v3150_v27, 0.0004427343  ;;  %v9569_v19 = vmul.f32 0.1, %v9399_v23 }
 0x284   : > { %v4621_v50 = vadd.f32 %v4365_v48, %v781_v13  ;;  %v4366_v40 = vmul.f32 0.9, %v3134_v42  ;;  %v3171_v38 = vadd.f32 1.0, %v9549_v1  ;;  %5712 = vpow2.f32 %v1699_v21 }
 0x285   : > { %v3143_v61 = vsel %vm9535_vm6, %v3140_v60, %v3137_v22  ;;  %v3157_v56 = vadd.f32 1.0, %v3156_v29  ;;  %v3149_v4 = vmul.f32 %v9496_v14, %v3148_v2  ;;  %v3159_v25 = vand.u32 2147483647, %v9513_v47  ;;  %v9620_v29 = vld [vmem:[%s6391_s30 + $0x490] sm:$0xff] }
 0x286   : > { %4877 = vst [vmem:[%s6574_s17 + $0x420] sm:$0xff] %v4621_v50  ;;  %v4622_v59 = vadd.f32 %v4366_v40, %v782_v31  ;;  %v4367_v13 = vmul.f32 0.9, %v3143_v61  ;;  %5714 = vlog2.f32 %v3171_v38  ;;  %v1303_v30 = vsub.f32 0.0, %v1047_v28 }
 0x287   : > { %v1048_v33 = vand.u32 2147483647, %v9560_v18  ;;  %v3166_v6 = vadd.f32 1.0, %v3165_v20  ;;  %v3168_v49 = vand.u32 2147483647, %v9519_v52  ;;  %v785_v34 = vmax.f32 %v9393_v9, %v9511_v24 }
 0x288   : > { %v5703_v5 = vpop.eup %5702  ;;  %4878 = vst [vmem:[%s6574_s17 + $0x428] sm:$0xff] %v4622_v59  ;;  %v4623_v53 = vadd.f32 %v4367_v13, %v783_v58  ;;  %v1049_v39 = vand.u32 2147483647, %v9572_v36  ;;  %v1701_v46 = vmul.f32 1.442695, %v1303_v30  ;;  %v3158_v32 = vmul.f32 %v9513_v47, %v3157_v56 }
 0x289   : > { %v9587_v31 = vpop.eup %5704  ;;  %v3146_v14 = vmul.f32 0.6931472, %v5703_v5  ;;  %v1304_v43 = vsub.f32 0.0, %v1048_v33  ;;  %v786_v51 = vmax.f32 %v9399_v23, %v9569_v19  ;;  %v3174_v8 = vmul.f32 -0.5, %v9549_v1 }
 0x28a   : > { %4879 = vst [vmem:[%s6574_s17 + $0x430] sm:$0xff] %v4623_v53  ;;  %v3180_v58 = vadd.f32 1.0, %v9587_v31  ;;  %5716 = vpow2.f32 %v1701_v46  ;;  %v1305_v0 = vsub.f32 0.0, %v1049_v39  ;;  %vm9602_vm8 = vcmp.lt.f32.partialorder %v3159_v25, 0.0004427343 }
 0x28b   : > { %v3152_v35 = vsel %vm9564_vm7, %v3149_v4, %v3146_v14  ;;  %v1703_v12 = vmul.f32 1.442695, %v1304_v43  ;;  %v5707_v9 = vpop.eup %5706  ;;  %v3167_v23 = vmul.f32 %v9519_v52, %v3166_v6  ;;  %vm9607_vm9 = vcmp.lt.f32.partialorder %v3168_v49, 0.0004427343  ;;  %v9643_v4 = vld [vmem:[%s6391_s30 + $0x498] sm:$0xff]  ;;  %v9658_v14 = vld [vmem:[%s6391_s30 + $0x4a0] sm:$0xff] }
 0x28c   : > { %v4368_v24 = vmul.f32 0.9, %v3152_v35  ;;  %5718 = vlog2.f32 %v3180_v58  ;;  %v3155_v63 = vmul.f32 0.6931472, %v5707_v9  ;;  %v1705_v17 = vmul.f32 1.442695, %v1305_v0 }
 0x28d   : > { %v5709_v47 = vpop.eup %5708  ;;  %5720 = vpow2.f32 %v1703_v12  ;;  %v3175_v62 = vadd.f32 1.0, %v3174_v8  ;;  %v1050_v55 = vand.u32 2147483647, %v9600_v7  ;;  %v531_v27 = vmul.f32 0.1, %v9422_v10 }
 0x28e   : > { %v9611_v16 = vpop.eup %5710  ;;  %v4624_v60 = vadd.f32 %v4368_v24, %v784_v3  ;;  %v3164_v37 = vmul.f32 0.6931472, %v5709_v47  ;;  %v3161_v52 = vsel %vm9602_vm8, %v3158_v32, %v3155_v63  ;;  %v3177_v26 = vand.u32 2147483647, %v9549_v1 }
 0x28f   : > { %v3189_v48 = vadd.f32 1.0, %v9611_v16  ;;  %v4369_v21 = vmul.f32 0.9, %v3161_v52  ;;  %v3183_v42 = vmul.f32 -0.5, %v9587_v31  ;;  %5722 = vpow2.f32 %v1705_v17 }
 0x290   : > { %4880 = vst [vmem:[%s6574_s17 + $0x438] sm:$0xff] %v4624_v60  ;;  %v3170_v3 = vsel %vm9607_vm9, %v3167_v23, %v3164_v37  ;;  %v9627_v2 = vmul.f32 0.1, %v9451_v11  ;;  %v9630_v28 = vmul.f32 0.1, %v9476_v45  ;;  %v3176_v20 = vmul.f32 %v9549_v1, %v3175_v62 }
 0x291   : > { %v4370_v22 = vmul.f32 0.9, %v3170_v3  ;;  %5724 = vlog2.f32 %v3189_v48  ;;  %v9632_v50 = vpop.eup %5712  ;;  %v4625_v40 = vadd.f32 %v4369_v21, %v785_v34  ;;  %v1306_v38 = vsub.f32 0.0, %v1050_v55 }
 0x292   : > { %v1051_v61 = vand.u32 2147483647, %v9620_v29  ;;  %vm9636_vm10 = vcmp.lt.f32.partialorder %v3177_v26, 0.0004427343  ;;  %v3186_v13 = vand.u32 2147483647, %v9587_v31  ;;  %v787_v25 = vmax.f32 %v9422_v10, %v531_v27 }
 0x293   : > { %v5715_v57 = vpop.eup %5714  ;;  %v4626_v19 = vadd.f32 %v4370_v22, %v786_v51  ;;  %v3198_v56 = vadd.f32 1.0, %v9632_v50  ;;  %4881 = vst [vmem:[%s6574_s17 + $0x440] sm:$0xff] %v4625_v40  ;;  %v3184_v30 = vadd.f32 1.0, %v3183_v42  ;;  %v1707_v33 = vmul.f32 1.442695, %v1306_v38 }
 0x294   : > { %v3173_v1 = vmul.f32 0.6931472, %v5715_v57  ;;  %v788_v5 = vmax.f32 %v9451_v11, %v9627_v2  ;;  %v3192_v53 = vmul.f32 -0.5, %v9611_v16  ;;  %v1307_v6 = vsub.f32 0.0, %v1051_v61  ;;  %v9702_v2 = vld [vmem:[%s6391_s30 + $0x4a8] sm:$0xff] }
 0x295   : > { %4882 = vst [vmem:[%s6574_s17 + $0x448] sm:$0xff] %v4626_v19  ;;  %5726 = vlog2.f32 %v3198_v56  ;;  %v9654_v39 = vmul.f32 0.1, %v9494_v41  ;;  %v1052_v10 = vand.u32 2147483647, %v9643_v4  ;;  %v789_v46 = vmax.f32 %v9476_v45, %v9630_v28  ;;  %v9712_v19 = vld [vmem:[%s6391_s30 + $0x4b0] sm:$0xff] }
 0x296   : > { %v3179_v49 = vsel %vm9636_vm10, %v3176_v20, %v3173_v1  ;;  %5728 = vpow2.f32 %v1707_v33  ;;  %v9663_v11 = vmul.f32 0.1, %v9540_v44  ;;  %v1709_v43 = vmul.f32 1.442695, %v1307_v6 }
 0x297   : > { %v4371_v34 = vmul.f32 0.9, %v3179_v49  ;;  %v9665_v32 = vpop.eup %5716  ;;  %v3185_v51 = vmul.f32 %v9587_v31, %v3184_v30  ;;  %vm9668_vm11 = vcmp.lt.f32.partialorder %v3186_v13, 0.0004427343  ;;  %v3201_v58 = vmul.f32 -0.5, %v9632_v50 }
 0x298   : > { %v1308_v35 = vsub.f32 0.0, %v1052_v10  ;;  %v3193_v9 = vadd.f32 1.0, %v3192_v53  ;;  %v3207_v45 = vadd.f32 1.0, %v9665_v32  ;;  %v1053_v24 = vand.u32 2147483647, %v9658_v14 }
 0x299   : > { %v5719_v12 = vpop.eup %5718  ;;  %v4627_v0 = vadd.f32 %v4371_v34, %v787_v25  ;;  %v3195_v47 = vand.u32 2147483647, %v9611_v16  ;;  %5730 = vpow2.f32 %v1709_v43  ;;  %v790_v63 = vmax.f32 %v9494_v41, %v9654_v39 }
 0x29a   : > { %v9675_v54 = vpop.eup %5720  ;;  %v3182_v23 = vmul.f32 0.6931472, %v5719_v12  ;;  %v1711_v31 = vmul.f32 1.442695, %v1308_v35  ;;  %5732 = vlog2.f32 %v3207_v45  ;;  %v9682_v15 = vmul.f32 0.1, %v9560_v18 }
 0x29b   : > { %4883 = vst [vmem:[%s6574_s17 + $0x450] sm:$0xff] %v4627_v0  ;;  %v3216_v17 = vadd.f32 1.0, %v9675_v54  ;;  %v3202_v37 = vadd.f32 1.0, %v3201_v58  ;;  %v9688_v62 = vmul.f32 0.1, %v9572_v36  ;;  %v3194_v27 = vmul.f32 %v9611_v16, %v3193_v9  ;;  %v9736_v9 = vld [vmem:[%s6391_s30 + $0x4b8] sm:$0xff] }
 0x29c   : > { %v3188_v60 = vsel %vm9668_vm11, %v3185_v51, %v3182_v23  ;;  %5734 = vpow2.f32 %v1711_v31  ;;  %v9690_v55 = vpop.eup %5722  ;;  %v1309_v26 = vsub.f32 0.0, %v1053_v24  ;;  %vm9693_vm12 = vcmp.lt.f32.partialorder %v3195_v47, 0.0004427343 }
 0x29d   : > { %v4372_v52 = vmul.f32 0.9, %v3188_v60  ;;  %5736 = vlog2.f32 %v3216_v17  ;;  %v3204_v3 = vand.u32 2147483647, %v9632_v50  ;;  %v791_v42 = vmax.f32 %v9540_v44, %v9663_v11 }
 0x29e   : > { %v5725_v48 = vpop.eup %5724  ;;  %v3225_v22 = vadd.f32 1.0, %v9690_v55  ;;  %v3210_v40 = vmul.f32 -0.5, %v9665_v32  ;;  %v1713_v20 = vmul.f32 1.442695, %v1309_v26  ;;  %v3203_v38 = vmul.f32 %v9632_v50, %v3202_v37 }
 0x29f   : > { %v4628_v28 = vadd.f32 %v4372_v52, %v788_v5  ;;  %v3191_v16 = vmul.f32 0.6931472, %v5725_v48  ;;  %v792_v61 = vmax.f32 %v9560_v18, %v9682_v15  ;;  %v9709_v57 = vmul.f32 0.1, %v9600_v7 }
 0x2a0   : > { %5738 = vlog2.f32 %v3225_v22  ;;  %v3219_v13 = vmul.f32 -0.5, %v9675_v54  ;;  %v1054_v56 = vand.u32 2147483647, %v9702_v2  ;;  %vm9719_vm13 = vcmp.lt.f32.partialorder %v3204_v3, 0.0004427343 }
 0x2a1   : > { %4884 = vst [vmem:[%s6574_s17 + $0x458] sm:$0xff] %v4628_v28  ;;  %v3197_v59 = vsel %vm9693_vm12, %v3194_v27, %v3191_v16  ;;  %5740 = vpow2.f32 %v1713_v20  ;;  %v3213_v30 = vand.u32 2147483647, %v9665_v32  ;;  %v793_v33 = vmax.f32 %v9572_v36, %v9688_v62 }
 0x2a2   : > { %v5727_v25 = vpop.eup %5726  ;;  %v4373_v50 = vmul.f32 0.9, %v3197_v59  ;;  %v3211_v6 = vadd.f32 1.0, %v3210_v40  ;;  %v1310_v49 = vsub.f32 0.0, %v1054_v56  ;;  %v1055_v10 = vand.u32 2147483647, %v9712_v19 }
 0x2a3   : > { %v9726_v5 = vpop.eup %5728  ;;  %v3200_v53 = vmul.f32 0.6931472, %v5727_v25  ;;  %v3228_v43 = vmul.f32 -0.5, %v9690_v55  ;;  %v794_v51 = vmax.f32 %v9600_v7, %v9709_v57  ;;  %v3220_v35 = vadd.f32 1.0, %v3219_v13 }
 0x2a4   : > { %v4629_v34 = vadd.f32 %v4373_v50, %v789_v46  ;;  %v3234_v8 = vadd.f32 1.0, %v9726_v5  ;;  %v1715_v12 = vmul.f32 1.442695, %v1310_v49  ;;  %v1311_v0 = vsub.f32 0.0, %v1055_v10 }
 0x2a5   : > { %v3206_v58 = vsel %vm9719_vm13, %v3203_v38, %v3200_v53  ;;  %v3222_v24 = vand.u32 2147483647, %v9675_v54  ;;  %v9741_v46 = vmul.f32 0.1, %v9620_v29  ;;  %v3212_v47 = vmul.f32 %v9665_v32, %v3211_v6 }
 0x2a6   : > { %4885 = vst [vmem:[%s6574_s17 + $0x460] sm:$0xff] %v4629_v34  ;;  %v4374_v45 = vmul.f32 0.9, %v3206_v58  ;;  %5742 = vlog2.f32 %v3234_v8  ;;  %v9743_v23 = vpop.eup %5730  ;;  %vm9746_vm14 = vcmp.lt.f32.partialorder %v3213_v30, 0.0004427343  ;;  %v3229_v52 = vadd.f32 1.0, %v3228_v43 }
 0x2a7   : > { %5744 = vpow2.f32 %v1715_v12  ;;  %v1717_v17 = vmul.f32 1.442695, %v1311_v0  ;;  %v5733_v60 = vpop.eup %5732  ;;  %v3231_v27 = vand.u32 2147483647, %v9690_v55  ;;  %v3243_v26 = vadd.f32 1.0, %v9743_v23  ;;  %v9783_v30 = vld [vmem:[%s6391_s30 + $0x4c0] sm:$0xff] }
 0x2a8   : > { %v4630_v37 = vadd.f32 %v4374_v45, %v790_v63  ;;  %v3209_v21 = vmul.f32 0.6931472, %v5733_v60  ;;  %v3221_v32 = vmul.f32 %v9675_v54, %v3220_v35  ;;  %v1056_v3 = vand.u32 2147483647, %v9736_v9  ;;  %v9797_v35 = vld [vmem:[%s6391_s30 + $0x4c8] sm:$0xff]  ;;  %v9808_v0 = vld [vmem:[%s6391_s30 + $0x4d0] sm:$0xff] }
 0x2a9   : > { %v9755_v48 = vpop.eup %5734  ;;  %5746 = vpow2.f32 %v1717_v17  ;;  %vm9760_vm15 = vcmp.lt.f32.partialorder %v3222_v24, 0.0004427343  ;;  %v3237_v41 = vmul.f32 -0.5, %v9726_v5  ;;  %v795_v54 = vmax.f32 %v9620_v29, %v9741_v46 }
 0x2aa   : > { %v5737_v22 = vpop.eup %5736  ;;  %4886 = vst [vmem:[%s6574_s17 + $0x468] sm:$0xff] %v4630_v37  ;;  %5748 = vlog2.f32 %v3243_v26  ;;  %v3252_v39 = vadd.f32 1.0, %v9755_v48  ;;  %v3215_v63 = vsel %vm9746_vm14, %v3212_v47, %v3209_v21  ;;  %v9771_v40 = vmul.f32 0.1, %v9643_v4 }
 0x2ab   : > { %v3218_v16 = vmul.f32 0.6931472, %v5737_v22  ;;  %v4375_v20 = vmul.f32 0.9, %v3215_v63  ;;  %v3230_v38 = vmul.f32 %v9690_v55, %v3229_v52  ;;  %vm9774_vm0 = vcmp.lt.f32.partialorder %v3231_v27, 0.0004427343 }
 0x2ac   : > { %5750 = vlog2.f32 %v3252_v39  ;;  %v3240_v25 = vand.u32 2147483647, %v9726_v5  ;;  %v3246_v50 = vmul.f32 -0.5, %v9743_v23  ;;  %v1312_v1 = vsub.f32 0.0, %v1056_v3 }
 0x2ad   : > { %v5739_v13 = vpop.eup %5738  ;;  %v3224_v56 = vsel %vm9760_vm15, %v3221_v32, %v3218_v16  ;;  %v4631_v53 = vadd.f32 %v4375_v20, %v791_v42  ;;  %v3238_v10 = vadd.f32 1.0, %v3237_v41  ;;  %v796_v34 = vmax.f32 %v9643_v4, %v9771_v40 }
 0x2ae   : > { %v9785_v55 = vpop.eup %5740  ;;  %v4376_v6 = vmul.f32 0.9, %v3224_v56  ;;  %v3227_v49 = vmul.f32 0.6931472, %v5739_v13  ;;  %v9793_v43 = vmul.f32 0.1, %v9658_v14 }
 0x2af   : > { %v3261_v8 = vadd.f32 1.0, %v9785_v55  ;;  %v1719_v58 = vmul.f32 1.442695, %v1312_v1  ;;  %4887 = vst [vmem:[%s6574_s17 + $0x470] sm:$0xff] %v4631_v53  ;;  %v3255_v42 = vmul.f32 -0.5, %v9755_v48  ;;  %v3247_v47 = vadd.f32 1.0, %v3246_v50 }
 0x2b0   : > { %v4632_v44 = vadd.f32 %v4376_v6, %v792_v61  ;;  %v3233_v11 = vsel %vm9774_vm0, %v3230_v38, %v3227_v49  ;;  %v1057_v12 = vand.u32 2147483647, %v9783_v30  ;;  %vm9810_vm1 = vcmp.lt.f32.partialorder %v3240_v25, 0.0004427343  ;;  %v9851_v6 = vld [vmem:[%s6391_s30 + $0x4d8] sm:$0xff] }
 0x2b1   : > { %v4377_v45 = vmul.f32 0.9, %v3233_v11  ;;  %5752 = vlog2.f32 %v3261_v8  ;;  %v3239_v18 = vmul.f32 %v9726_v5, %v3238_v10  ;;  %v1058_v61 = vand.u32 2147483647, %v9797_v35  ;;  %v9857_v8 = vld [vmem:[%s6391_s30 + $0x4e0] sm:$0xff] }
 0x2b2   : > { %4888 = vst [vmem:[%s6574_s17 + $0x478] sm:$0xff] %v4632_v44  ;;  %5754 = vpow2.f32 %v1719_v58  ;;  %v1313_v15 = vsub.f32 0.0, %v1057_v12  ;;  %v3249_v60 = vand.u32 2147483647, %v9743_v23  ;;  %v3258_v37 = vand.u32 2147483647, %v9755_v48 }
 0x2b3   : > { %v5743_v31 = vpop.eup %5742  ;;  %v4633_v17 = vadd.f32 %v4377_v45, %v793_v33  ;;  %v1059_v52 = vand.u32 2147483647, %v9808_v0  ;;  %v3256_v21 = vadd.f32 1.0, %v3255_v42  ;;  %v1314_v32 = vsub.f32 0.0, %v1058_v61 }
 0x2b4   : > { %v9823_v27 = vpop.eup %5744  ;;  %v3236_v26 = vmul.f32 0.6931472, %v5743_v31  ;;  %v1721_v5 = vmul.f32 1.442695, %v1313_v15  ;;  %v3248_v3 = vmul.f32 %v9743_v23, %v3247_v47  ;;  %v3264_v22 = vmul.f32 -0.5, %v9785_v55 }
 0x2b5   : > { %4889 = vst [vmem:[%s6574_s17 + $0x480] sm:$0xff] %v4633_v17  ;;  %v9829_v36 = vmul.f32 0.1, %v9702_v2  ;;  %v3270_v62 = vadd.f32 1.0, %v9823_v27  ;;  %v1723_v41 = vmul.f32 1.442695, %v1314_v32  ;;  %v3257_v59 = vmul.f32 %v9755_v48, %v3256_v21 }
 0x2b6   : > { %v9832_v33 = vpop.eup %5746  ;;  %v3242_v28 = vsel %vm9810_vm1, %v3239_v18, %v3236_v26  ;;  %5756 = vpow2.f32 %v1721_v5  ;;  %v1315_v39 = vsub.f32 0.0, %v1059_v52  ;;  %vm9836_vm2 = vcmp.lt.f32.partialorder %v3249_v60, 0.0004427343  ;;  %v9898_v21 = vld [vmem:[%s6391_s30 + $0x4f0] sm:$0xff] }
 0x2b7   : > { %v5749_v63 = vpop.eup %5748  ;;  %v4378_v16 = vmul.f32 0.9, %v3242_v28  ;;  %vm9840_vm3 = vcmp.lt.f32.partialorder %v3258_v37, 0.0004427343  ;;  %5758 = vlog2.f32 %v3270_v62  ;;  %v3267_v13 = vand.u32 2147483647, %v9785_v55 }
 0x2b8   : > { %v3245_v38 = vmul.f32 0.6931472, %v5749_v63  ;;  %v3279_v56 = vadd.f32 1.0, %v9832_v33  ;;  %v3265_v1 = vadd.f32 1.0, %v3264_v22  ;;  %5760 = vpow2.f32 %v1723_v41 }
 0x2b9   : > { %v5751_v25 = vpop.eup %5750  ;;  %v4634_v50 = vadd.f32 %v4378_v16, %v794_v51  ;;  %v1725_v53 = vmul.f32 1.442695, %v1315_v39  ;;  %v3273_v48 = vmul.f32 -0.5, %v9823_v27  ;;  %v797_v7 = vmax.f32 %v9658_v14, %v9793_v43  ;;  %v9865_v51 = vld [vmem:[%s6391_s30 + $0x4e8] sm:$0xff] }
 0x2ba   : > { %v3251_v49 = vsel %vm9836_vm2, %v3248_v3, %v3245_v38  ;;  %v3254_v10 = vmul.f32 0.6931472, %v5751_v25  ;;  %5762 = vlog2.f32 %v3279_v56  ;;  %v798_v57 = vmax.f32 %v9702_v2, %v9829_v36 }
 0x2bb   : > { %4890 = vst [vmem:[%s6574_s17 + $0x488] sm:$0xff] %v4634_v50  ;;  %v4379_v58 = vmul.f32 0.9, %v3251_v49  ;;  %5764 = vpow2.f32 %v1725_v53  ;;  %vm9869_vm4 = vcmp.lt.f32.partialorder %v3267_v13, 0.0004427343  ;;  %v3266_v45 = vmul.f32 %v9785_v55, %v3265_v1  ;;  %v9934_v53 = vld [vmem:[%s6391_s30 + $0x4f8] sm:$0xff] }
 0x2bc   : > { %v3260_v44 = vsel %vm9840_vm3, %v3257_v59, %v3254_v10  ;;  %v9874_v42 = vmul.f32 0.1, %v9712_v19  ;;  %v1060_v12 = vand.u32 2147483647, %v9851_v6  ;;  %v1061_v24 = vand.u32 2147483647, %v9857_v8 }
 0x2bd   : > { %v4635_v14 = vadd.f32 %v4379_v58, %v795_v54  ;;  %v4380_v43 = vmul.f32 0.9, %v3260_v44  ;;  %v3274_v18 = vadd.f32 1.0, %v3273_v48  ;;  %v3276_v15 = vand.u32 2147483647, %v9823_v27 }
 0x2be   : > { %v5753_v47 = vpop.eup %5752  ;;  %v3282_v61 = vmul.f32 -0.5, %v9832_v33  ;;  %v1316_v31 = vsub.f32 0.0, %v1060_v12  ;;  %v1317_v54 = vsub.f32 0.0, %v1061_v24  ;;  %v1062_v55 = vand.u32 2147483647, %v9865_v51 }
 0x2bf   : > { %v9884_v17 = vpop.eup %5754  ;;  %4891 = vst [vmem:[%s6574_s17 + $0x490] sm:$0xff] %v4635_v14  ;;  %v4636_v29 = vadd.f32 %v4380_v43, %v796_v34  ;;  %v3263_v46 = vmul.f32 0.6931472, %v5753_v47  ;;  %v799_v60 = vmax.f32 %v9712_v19, %v9874_v42  ;;  %v9894_v37 = vmul.f32 0.1, %v9736_v9 }
 0x2c0   : > { %v3288_v52 = vadd.f32 1.0, %v9884_v17  ;;  %v1727_v26 = vmul.f32 1.442695, %v1316_v31  ;;  %v9904_v40 = vmul.f32 0.1, %v9783_v30  ;;  %v3283_v22 = vadd.f32 1.0, %v3282_v61 }
 0x2c1   : > { %4892 = vst [vmem:[%s6574_s17 + $0x498] sm:$0xff] %v4636_v29  ;;  %v3269_v4 = vsel %vm9869_vm4, %v3266_v45, %v3263_v46  ;;  %v9907_v34 = vmul.f32 0.1, %v9797_v35  ;;  %v1729_v5 = vmul.f32 1.442695, %v1317_v54  ;;  %v3275_v28 = vmul.f32 %v9823_v27, %v3274_v18  ;;  %v9960_v31 = vld [vmem:[%s6391_s30 + $0x500] sm:$0xff] }
 0x2c2   : > { %v4381_v32 = vmul.f32 0.9, %v3269_v4  ;;  %vm9909_vm5 = vcmp.lt.f32.partialorder %v3276_v15, 0.0004427343  ;;  %5766 = vlog2.f32 %v3288_v52  ;;  %v3285_v41 = vand.u32 2147483647, %v9832_v33 }
 0x2c3   : > { %v9913_v62 = vpop.eup %5756  ;;  %5768 = vpow2.f32 %v1727_v26  ;;  %v1318_v39 = vsub.f32 0.0, %v1062_v55  ;;  %v3291_v23 = vmul.f32 -0.5, %v9884_v17  ;;  %v1063_v38 = vand.u32 2147483647, %v9898_v21  ;;  %v9963_v29 = vld [vmem:[%s6391_s30 + $0x508] sm:$0xff] }
 0x2c4   : > { %v5759_v63 = vpop.eup %5758  ;;  %v4637_v16 = vadd.f32 %v4381_v32, %v797_v7  ;;  %v3297_v20 = vadd.f32 1.0, %v9913_v62  ;;  %v800_v13 = vmax.f32 %v9736_v9, %v9894_v37  ;;  %v801_v27 = vmax.f32 %v9783_v30, %v9904_v40 }
 0x2c5   : > { %v3272_v59 = vmul.f32 0.6931472, %v5759_v63  ;;  %5770 = vpow2.f32 %v1729_v5  ;;  %v9924_v56 = vpop.eup %5760  ;;  %v3284_v25 = vmul.f32 %v9832_v33, %v3283_v22  ;;  %v802_v50 = vmax.f32 %v9797_v35, %v9907_v34 }
 0x2c6   : > { %4893 = vst [vmem:[%s6574_s17 + $0x4a0] sm:$0xff] %v4637_v16  ;;  %5772 = vlog2.f32 %v3297_v20  ;;  %v9931_v1 = vmul.f32 0.1, %v9808_v0  ;;  %vm9938_vm6 = vcmp.lt.f32.partialorder %v3285_v41, 0.0004427343  ;;  %v3306_v33 = vadd.f32 1.0, %v9924_v56 }
 0x2c7   : > { %v5763_v49 = vpop.eup %5762  ;;  %v3278_v10 = vsel %vm9909_vm5, %v3275_v28, %v3272_v59  ;;  %v1731_v58 = vmul.f32 1.442695, %v1318_v39  ;;  %v3292_v12 = vadd.f32 1.0, %v3291_v23  ;;  %v1319_v14 = vsub.f32 0.0, %v1063_v38 }
 0x2c8   : > { %v9943_v7 = vpop.eup %5764  ;;  %v4382_v44 = vmul.f32 0.9, %v3278_v10  ;;  %v3281_v11 = vmul.f32 0.6931472, %v5763_v49  ;;  %v3300_v43 = vmul.f32 -0.5, %v9913_v62  ;;  %5774 = vlog2.f32 %v3306_v33 }
 0x2c9   : > { %v3315_v45 = vadd.f32 1.0, %v9943_v7  ;;  %v1064_v24 = vand.u32 2147483647, %v9934_v53  ;;  %v9954_v15 = vmul.f32 0.1, %v9851_v6  ;;  %v3293_v36 = vmul.f32 %v9884_v17, %v3292_v12 }
 0x2ca   : > { %v4638_v47 = vadd.f32 %v4382_v44, %v798_v57  ;;  %v3287_v18 = vsel %vm9938_vm6, %v3284_v25, %v3281_v11  ;;  %v9957_v61 = vmul.f32 0.1, %v9857_v8  ;;  %v3294_v54 = vand.u32 2147483647, %v9884_v17  ;;  %v9980_v17 = vld [vmem:[%s6391_s30 + $0x510] sm:$0xff] }
 0x2cb   : > { %v4383_v46 = vmul.f32 0.9, %v3287_v18  ;;  %5776 = vlog2.f32 %v3315_v45  ;;  %v9967_v2 = vmul.f32 0.1, %v9865_v51  ;;  %v3303_v57 = vand.u32 2147483647, %v9913_v62 }
 0x2cc   : > { %4894 = vst [vmem:[%s6574_s17 + $0x4a8] sm:$0xff] %v4638_v47  ;;  %5778 = vpow2.f32 %v1731_v58  ;;  %v1733_v55 = vmul.f32 1.442695, %v1319_v14  ;;  %v3301_v26 = vadd.f32 1.0, %v3300_v43  ;;  %v3309_v4 = vmul.f32 -0.5, %v9924_v56 }
 0x2cd   : > { %v4639_v52 = vadd.f32 %v4383_v46, %v799_v60  ;;  %v1320_v5 = vsub.f32 0.0, %v1064_v24  ;;  %v3318_v32 = vmul.f32 -0.5, %v9943_v7  ;;  %v1065_v3 = vand.u32 2147483647, %v9960_v31 }
 0x2ce   : > { %5780 = vpow2.f32 %v1733_v55  ;;  %v1066_v22 = vand.u32 2147483647, %v9963_v29  ;;  %vm9983_vm7 = vcmp.lt.f32.partialorder %v3294_v54, 0.0004427343  ;;  %v3312_v19 = vand.u32 2147483647, %v9924_v56 }
 0x2cf   : > { %v5767_v28 = vpop.eup %5766  ;;  %4895 = vst [vmem:[%s6574_s17 + $0x4b0] sm:$0xff] %v4639_v52  ;;  %v803_v42 = vmax.f32 %v9808_v0, %v9931_v1  ;;  %v1735_v60 = vmul.f32 1.442695, %v1320_v5  ;;  %vm9992_vm8 = vcmp.lt.f32.partialorder %v3303_v57, 0.0004427343  ;;  %v1321_v23 = vsub.f32 0.0, %v1065_v3 }
 0x2d0   : > { %v9990_v39 = vpop.eup %5768  ;;  %v3290_v63 = vmul.f32 0.6931472, %v5767_v28  ;;  %v1322_v20 = vsub.f32 0.0, %v1066_v22  ;;  %v3310_v38 = vadd.f32 1.0, %v3309_v4  ;;  %v1067_v25 = vand.u32 2147483647, %v9980_v17 }
 0x2d1   : > { %v3324_v59 = vadd.f32 1.0, %v9990_v39  ;;  %5782 = vpow2.f32 %v1735_v60  ;;  %v3302_v48 = vmul.f32 %v9913_v62, %v3301_v26  ;;  %v3319_v33 = vadd.f32 1.0, %v3318_v32  ;;  %v10016_v54 = vld [vmem:[%s6391_s30 + $0x518] sm:$0xff] }
 0x2d2   : > { %v9998_v49 = vpop.eup %5770  ;;  %v3296_v10 = vsel %vm9983_vm7, %v3293_v36, %v3290_v63  ;;  %v1737_v58 = vmul.f32 1.442695, %v1321_v23  ;;  %vm10003_vm9 = vcmp.lt.f32.partialorder %v3312_v19, 0.0004427343  ;;  %v1739_v14 = vmul.f32 1.442695, %v1322_v20 }
 0x2d3   : > { %v5773_v44 = vpop.eup %5772  ;;  %v4384_v11 = vmul.f32 0.9, %v3296_v10  ;;  %5784 = vlog2.f32 %v3324_v59  ;;  %v3321_v45 = vand.u32 2147483647, %v9943_v7  ;;  %v804_v24 = vmax.f32 %v9851_v6, %v9954_v15  ;;  %v10053_v20 = vld [vmem:[%s6391_s30 + $0x520] sm:$0xff] }
 0x2d4   : > { %v3299_v43 = vmul.f32 0.6931472, %v5773_v44  ;;  %v3333_v62 = vadd.f32 1.0, %v9998_v49  ;;  %v3311_v18 = vmul.f32 %v9924_v56, %v3310_v38  ;;  %5786 = vpow2.f32 %v1737_v58 }
 0x2d5   : > { %v4640_v47 = vadd.f32 %v4384_v11, %v800_v13  ;;  %v1323_v46 = vsub.f32 0.0, %v1067_v25  ;;  %v5775_v36 = vpop.eup %5774  ;;  %v3320_v55 = vmul.f32 %v9943_v7, %v3319_v33  ;;  %v3327_v52 = vmul.f32 -0.5, %v9990_v39 }
 0x2d6   : > { %v3305_v57 = vsel %vm9992_vm8, %v3302_v48, %v3299_v43  ;;  %5788 = vlog2.f32 %v3333_v62  ;;  %v3308_v4 = vmul.f32 0.6931472, %v5775_v36  ;;  %vm10023_vm10 = vcmp.lt.f32.partialorder %v3321_v45, 0.0004427343 }
 0x2d7   : > { %4896 = vst [vmem:[%s6574_s17 + $0x4b8] sm:$0xff] %v4640_v47  ;;  %v4385_v26 = vmul.f32 0.9, %v3305_v57  ;;  %5790 = vpow2.f32 %v1739_v14  ;;  %v1741_v9 = vmul.f32 1.442695, %v1323_v46  ;;  %v805_v56 = vmax.f32 %v9857_v8, %v9957_v61 }
 0x2d8   : > { %v5777_v37 = vpop.eup %5776  ;;  %v10030_v5 = vmul.f32 0.1, %v9898_v21  ;;  %v1068_v7 = vand.u32 2147483647, %v10016_v54  ;;  %v3314_v22 = vsel %vm10003_vm9, %v3311_v18, %v3308_v4  ;;  %v3336_v19 = vmul.f32 -0.5, %v9998_v49 }
 0x2d9   : > { %v10033_v32 = vpop.eup %5778  ;;  %v4641_v3 = vadd.f32 %v4385_v26, %v801_v27  ;;  %v3317_v28 = vmul.f32 0.6931472, %v5777_v37  ;;  %5792 = vpow2.f32 %v1741_v9  ;;  %v4386_v41 = vmul.f32 0.9, %v3314_v22 }
 0x2da   : > { %v806_v60 = vmax.f32 %v9865_v51, %v9967_v2  ;;  %v3342_v63 = vadd.f32 1.0, %v10033_v32  ;;  %v3328_v40 = vadd.f32 1.0, %v3327_v52  ;;  %v10050_v27 = vmul.f32 0.1, %v9934_v53 }
 0x2db   : > { %v10044_v16 = vpop.eup %5780  ;;  %4897 = vst [vmem:[%s6574_s17 + $0x4c0] sm:$0xff] %v4641_v3  ;;  %v3323_v30 = vsel %vm10023_vm10, %v3320_v55, %v3317_v28  ;;  %v1324_v23 = vsub.f32 0.0, %v1068_v7  ;;  %v4642_v38 = vadd.f32 %v4386_v41, %v802_v50  ;;  %v3330_v25 = vand.u32 2147483647, %v9990_v39 }
 0x2dc   : > { %v4387_v59 = vmul.f32 0.9, %v3323_v30  ;;  %5794 = vlog2.f32 %v3342_v63  ;;  %v3339_v10 = vand.u32 2147483647, %v9998_v49  ;;  %v807_v48 = vmax.f32 %v9898_v21, %v10030_v5 }
 0x2dd   : > { %v3351_v33 = vadd.f32 1.0, %v10044_v16  ;;  %v10064_v58 = vmul.f32 0.1, %v9960_v31  ;;  %4898 = vst [vmem:[%s6574_s17 + $0x4c8] sm:$0xff] %v4642_v38  ;;  %v3337_v34 = vadd.f32 1.0, %v3336_v19  ;;  %v3329_v12 = vmul.f32 %v9990_v39, %v3328_v40  ;;  %v10119_v38 = vld [vmem:[%s6391_s30 + $0x528] sm:$0xff] }
 0x2de   : > { %v10066_v44 = vpop.eup %5782  ;;  %v4643_v35 = vadd.f32 %v4387_v59, %v803_v42  ;;  %v1743_v50 = vmul.f32 1.442695, %v1324_v23  ;;  %v1069_v11 = vand.u32 2147483647, %v10053_v20  ;;  %v3345_v14 = vmul.f32 -0.5, %v10033_v32 }
 0x2df   : > { %5796 = vlog2.f32 %v3351_v33  ;;  %v3360_v43 = vadd.f32 1.0, %v10066_v44  ;;  %vm10077_vm11 = vcmp.lt.f32.partialorder %v3330_v25, 0.0004427343  ;;  %v808_v0 = vmax.f32 %v9934_v53, %v10050_v27  ;;  %v10207_v53 = vld [vmem:[%s6391_s30 + $0x550] sm:$0xff] }
 0x2e0   : > { %v5785_v45 = vpop.eup %5784  ;;  %4899 = vst [vmem:[%s6574_s17 + $0x4d0] sm:$0xff] %v4643_v35  ;;  %5798 = vpow2.f32 %v1743_v50  ;;  %v1325_v1 = vsub.f32 0.0, %v1069_v11  ;;  %v809_v39 = vmax.f32 %v9960_v31, %v10064_v58  ;;  %v10086_v47 = vmul.f32 0.1, %v9963_v29  ;;  %v10134_v35 = vld [vmem:[%s6391_s30 + $0x530] sm:$0xff] }
 0x2e1   : > { %v3326_v42 = vmul.f32 0.6931472, %v5785_v45  ;;  %5800 = vlog2.f32 %v3360_v43  ;;  %v10088_v18 = vpop.eup %5786  ;;  %v3338_v46 = vmul.f32 %v9998_v49, %v3337_v34  ;;  %vm10091_vm12 = vcmp.lt.f32.partialorder %v3339_v10, 0.0004427343 }
 0x2e2   : > { %v3348_v57 = vand.u32 2147483647, %v10033_v32  ;;  %v1745_v55 = vmul.f32 1.442695, %v1325_v1  ;;  %v3346_v4 = vadd.f32 1.0, %v3345_v14  ;;  %v3354_v9 = vmul.f32 -0.5, %v10044_v16 }
 0x2e3   : > { %v5789_v52 = vpop.eup %5788  ;;  %v3332_v26 = vsel %vm10077_vm11, %v3329_v12, %v3326_v42  ;;  %v3369_v37 = vadd.f32 1.0, %v10088_v18  ;;  %v3357_v3 = vand.u32 2147483647, %v10044_v16  ;;  %v3363_v22 = vmul.f32 -0.5, %v10066_v44  ;;  %v10141_v12 = vld [vmem:[%s6391_s30 + $0x538] sm:$0xff] }
 0x2e4   : > { %v10100_v13 = vpop.eup %5790  ;;  %v4388_v49 = vmul.f32 0.9, %v3332_v26  ;;  %v3335_v7 = vmul.f32 0.6931472, %v5789_v52  ;;  %5802 = vpow2.f32 %v1745_v55  ;;  %v10106_v41 = vmul.f32 0.1, %v9980_v17 }
 0x2e5   : > { %5804 = vlog2.f32 %v3369_v37  ;;  %v3378_v28 = vadd.f32 1.0, %v10100_v13  ;;  %v3366_v40 = vand.u32 2147483647, %v10066_v44  ;;  %v810_v23 = vmax.f32 %v9963_v29, %v10086_v47 }
 0x2e6   : > { %v10108_v19 = vpop.eup %5792  ;;  %v4644_v63 = vadd.f32 %v4388_v49, %v804_v24  ;;  %v3341_v30 = vsel %vm10091_vm12, %v3338_v46, %v3335_v7  ;;  %v3355_v25 = vadd.f32 1.0, %v3354_v9  ;;  %v3347_v6 = vmul.f32 %v10033_v32, %v3346_v4 }
 0x2e7   : > { %v4389_v59 = vmul.f32 0.9, %v3341_v30  ;;  %5806 = vlog2.f32 %v3378_v28  ;;  %v3387_v10 = vadd.f32 1.0, %v10108_v19  ;;  %vm10124_vm13 = vcmp.lt.f32.partialorder %v3348_v57, 0.0004427343 }
 0x2e8   : > { %4900 = vst [vmem:[%s6574_s17 + $0x4d8] sm:$0xff] %v4644_v63  ;;  %vm10128_vm14 = vcmp.lt.f32.partialorder %v3357_v3, 0.0004427343  ;;  %v3372_v33 = vmul.f32 -0.5, %v10088_v18  ;;  %v3364_v11 = vadd.f32 1.0, %v3363_v22  ;;  %v3381_v45 = vmul.f32 -0.5, %v10100_v13 }
 0x2e9   : > { %v5795_v34 = vpop.eup %5794  ;;  %v4645_v50 = vadd.f32 %v4389_v59, %v805_v56  ;;  %5808 = vlog2.f32 %v3387_v10  ;;  %v1070_v32 = vand.u32 2147483647, %v10119_v38  ;;  %vm10143_vm15 = vcmp.lt.f32.partialorder %v3366_v40, 0.0004427343 }
 0x2ea   : > { %v3344_v14 = vmul.f32 0.6931472, %v5795_v34  ;;  %v811_v62 = vmax.f32 %v9980_v17, %v10106_v41  ;;  %v3356_v8 = vmul.f32 %v10044_v16, %v3355_v25  ;;  %v3375_v61 = vand.u32 2147483647, %v10088_v18 }
 0x2eb   : > { %4901 = vst [vmem:[%s6574_s17 + $0x4e0] sm:$0xff] %v4645_v50  ;;  %v1326_v56 = vsub.f32 0.0, %v1070_v32  ;;  %v1071_v1 = vand.u32 2147483647, %v10134_v35  ;;  %v3373_v36 = vadd.f32 1.0, %v3372_v33  ;;  %v3390_v57 = vmul.f32 -0.5, %v10108_v19 }
 0x2ec   : > { %v5797_v42 = vpop.eup %5796  ;;  %v3350_v46 = vsel %vm10124_vm13, %v3347_v6, %v3344_v14  ;;  %v1072_v55 = vand.u32 2147483647, %v10141_v12  ;;  %v3365_v16 = vmul.f32 %v10066_v44, %v3364_v11  ;;  %v3382_v49 = vadd.f32 1.0, %v3381_v45  ;;  %v10186_v32 = vld [vmem:[%s6391_s30 + $0x540] sm:$0xff] }
 0x2ed   : > { %v10158_v52 = vpop.eup %5798  ;;  %v4390_v26 = vmul.f32 0.9, %v3350_v46  ;;  %v3353_v4 = vmul.f32 0.6931472, %v5797_v42  ;;  %v1747_v9 = vmul.f32 1.442695, %v1326_v56  ;;  %v3374_v44 = vmul.f32 %v10088_v18, %v3373_v36 }
 0x2ee   : > { %v5801_v37 = vpop.eup %5800  ;;  %v3384_v7 = vand.u32 2147483647, %v10100_v13  ;;  %v3396_v3 = vadd.f32 1.0, %v10158_v52  ;;  %v1327_v22 = vsub.f32 0.0, %v1071_v1  ;;  %v3393_v59 = vand.u32 2147483647, %v10108_v19 }
 0x2ef   : > { %v4646_v28 = vadd.f32 %v4390_v26, %v806_v60  ;;  %v3359_v63 = vsel %vm10128_vm14, %v3356_v8, %v3353_v4  ;;  %v3362_v30 = vmul.f32 0.6931472, %v5801_v37  ;;  %5810 = vpow2.f32 %v1747_v9 }
 0x2f0   : > { %v4391_v40 = vmul.f32 0.9, %v3359_v63  ;;  %5812 = vlog2.f32 %v3396_v3  ;;  %v3391_v2 = vadd.f32 1.0, %v3390_v57  ;;  %v1749_v60 = vmul.f32 1.442695, %v1327_v22  ;;  %v10313_v3 = vld [vmem:[%s6391_s30 + $0x578] sm:$0xff] }
 0x2f1   : > { %v10170_v25 = vpop.eup %5802  ;;  %4902 = vst [vmem:[%s6574_s17 + $0x4e8] sm:$0xff] %v4646_v28  ;;  %v3368_v51 = vsel %vm10143_vm15, %v3365_v16, %v3362_v30  ;;  %v1328_v10 = vsub.f32 0.0, %v1072_v55  ;;  %vm10178_vm0 = vcmp.lt.f32.partialorder %v3375_v61, 0.0004427343  ;;  %v3383_v50 = vmul.f32 %v10100_v13, %v3382_v49  ;;  %v10204_v61 = vld [vmem:[%s6391_s30 + $0x548] sm:$0xff]  ;;  %v10220_v16 = vld [vmem:[%s6391_s30 + $0x558] sm:$0xff] }
 0x2f2   : > { %v5805_v6 = vpop.eup %5804  ;;  %v4647_v15 = vadd.f32 %v4391_v40, %v807_v48  ;;  %v4392_v18 = vmul.f32 0.9, %v3368_v51  ;;  %v3405_v33 = vadd.f32 1.0, %v10170_v25  ;;  %v3399_v11 = vmul.f32 -0.5, %v10158_v52 }
 0x2f3   : > { %v3371_v34 = vmul.f32 0.6931472, %v5805_v6  ;;  %5814 = vpow2.f32 %v1749_v60  ;;  %vm10192_vm1 = vcmp.lt.f32.partialorder %v3384_v7, 0.0004427343  ;;  %v1751_v14 = vmul.f32 1.442695, %v1328_v10 }
 0x2f4   : > { %v5807_v21 = vpop.eup %5806  ;;  %4903 = vst [vmem:[%s6574_s17 + $0x4f0] sm:$0xff] %v4647_v15  ;;  %v4648_v5 = vadd.f32 %v4392_v18, %v808_v0  ;;  %5816 = vlog2.f32 %v3405_v33  ;;  %v3392_v45 = vmul.f32 %v10108_v19, %v3391_v2  ;;  %vm10199_vm2 = vcmp.lt.f32.partialorder %v3393_v59, 0.0004427343  ;;  %v10245_v2 = vld [vmem:[%s6391_s30 + $0x560] sm:$0xff] }
 0x2f5   : > { %v3377_v13 = vsel %vm10178_vm0, %v3374_v44, %v3371_v34  ;;  %v3380_v43 = vmul.f32 0.6931472, %v5807_v21  ;;  %v3402_v56 = vand.u32 2147483647, %v10158_v52  ;;  %5818 = vpow2.f32 %v1751_v14 }
 0x2f6   : > { %v5809_v27 = vpop.eup %5808  ;;  %4904 = vst [vmem:[%s6574_s17 + $0x4f8] sm:$0xff] %v4648_v5  ;;  %v4393_v0 = vmul.f32 0.9, %v3377_v13  ;;  %v1073_v1 = vand.u32 2147483647, %v10186_v32  ;;  %v3400_v46 = vadd.f32 1.0, %v3399_v11 }
 0x2f7   : > { %v3386_v19 = vsel %vm10192_vm1, %v3383_v50, %v3380_v43  ;;  %v3389_v42 = vmul.f32 0.6931472, %v5809_v27  ;;  %v3408_v36 = vmul.f32 -0.5, %v10170_v25  ;;  %v1074_v4 = vand.u32 2147483647, %v10204_v61  ;;  %v10272_v43 = vld [vmem:[%s6391_s30 + $0x568] sm:$0xff] }
 0x2f8   : > { %v4649_v57 = vadd.f32 %v4393_v0, %v809_v39  ;;  %v4394_v55 = vmul.f32 0.9, %v3386_v19  ;;  %v1329_v26 = vsub.f32 0.0, %v1073_v1  ;;  %v556_v37 = vmul.f32 0.1, %v10016_v54 }
 0x2f9   : > { %v3395_v9 = vsel %vm10199_vm2, %v3392_v45, %v3389_v42  ;;  %v1075_v49 = vand.u32 2147483647, %v10207_v53  ;;  %v1330_v7 = vsub.f32 0.0, %v1074_v4  ;;  %vm10230_vm3 = vcmp.lt.f32.partialorder %v3402_v56, 0.0004427343 }
 0x2fa   : > { %4905 = vst [vmem:[%s6574_s17 + $0x500] sm:$0xff] %v4649_v57  ;;  %v4650_v31 = vadd.f32 %v4394_v55, %v810_v23  ;;  %v4395_v58 = vmul.f32 0.9, %v3395_v9  ;;  %v1753_v39 = vmul.f32 1.442695, %v1329_v26  ;;  %v3409_v22 = vadd.f32 1.0, %v3408_v36 }
 0x2fb   : > { %v1331_v28 = vsub.f32 0.0, %v1075_v49  ;;  %v1076_v63 = vand.u32 2147483647, %v10220_v16  ;;  %v3401_v47 = vmul.f32 %v10158_v52, %v3400_v46  ;;  %v1755_v23 = vmul.f32 1.442695, %v1330_v7 }
 0x2fc   : > { %v10235_v30 = vpop.eup %5810  ;;  %4906 = vst [vmem:[%s6574_s17 + $0x508] sm:$0xff] %v4650_v31  ;;  %v4651_v29 = vadd.f32 %v4395_v58, %v811_v62  ;;  %5820 = vpow2.f32 %v1753_v39  ;;  %v3411_v44 = vand.u32 2147483647, %v10170_v25  ;;  %v557_v10 = vmul.f32 0.1, %v10053_v20 }
 0x2fd   : > { %v5813_v40 = vpop.eup %5812  ;;  %v3414_v59 = vadd.f32 1.0, %v10235_v30  ;;  %v1757_v51 = vmul.f32 1.442695, %v1331_v28  ;;  %5822 = vpow2.f32 %v1755_v23  ;;  %v1332_v6 = vsub.f32 0.0, %v1076_v63 }
 0x2fe   : > { %4907 = vst [vmem:[%s6574_s17 + $0x510] sm:$0xff] %v4651_v29  ;;  %v3398_v60 = vmul.f32 0.6931472, %v5813_v40  ;;  %v812_v17 = vmax.f32 %v10016_v54, %v556_v37  ;;  %v3410_v41 = vmul.f32 %v10170_v25, %v3409_v22  ;;  %v10252_v62 = vmul.f32 0.1, %v10119_v38  ;;  %v10300_v37 = vld [vmem:[%s6391_s30 + $0x570] sm:$0xff] }
 0x2ff   : > { %5824 = vlog2.f32 %v3414_v59  ;;  %v1759_v18 = vmul.f32 1.442695, %v1332_v6  ;;  %v1077_v24 = vand.u32 2147483647, %v10245_v2  ;;  %vm10259_vm4 = vcmp.lt.f32.partialorder %v3411_v44, 0.0004427343 }
 0x300   : > { %v10254_v52 = vpop.eup %5814  ;;  %v3404_v15 = vsel %vm10230_vm3, %v3401_v47, %v3398_v60  ;;  %5826 = vpow2.f32 %v1757_v51  ;;  %v10265_v11 = vmul.f32 0.1, %v10134_v35  ;;  %v813_v14 = vmax.f32 %v10053_v20, %v557_v10  ;;  %v10368_v60 = vld [vmem:[%s6391_s30 + $0x588] sm:$0xff] }
 0x301   : > { %v5817_v33 = vpop.eup %5816  ;;  %v4396_v34 = vmul.f32 0.9, %v3404_v15  ;;  %v3423_v25 = vadd.f32 1.0, %v10254_v52  ;;  %5828 = vpow2.f32 %v1759_v18  ;;  %v1333_v21 = vsub.f32 0.0, %v1077_v24 }
 0x302   : > { %v3407_v50 = vmul.f32 0.6931472, %v5817_v33  ;;  %v10267_v5 = vpop.eup %5818  ;;  %v3417_v13 = vmul.f32 -0.5, %v10235_v30  ;;  %v10277_v8 = vmul.f32 0.1, %v10141_v12  ;;  %v814_v56 = vmax.f32 %v10119_v38, %v10252_v62 }
 0x303   : > { %v4652_v48 = vadd.f32 %v4396_v34, %v812_v17  ;;  %5830 = vlog2.f32 %v3423_v25  ;;  %v3432_v27 = vadd.f32 1.0, %v10267_v5  ;;  %v10284_v20 = vmul.f32 0.1, %v10186_v32 }
 0x304   : > { %v3413_v45 = vsel %vm10259_vm4, %v3410_v41, %v3407_v50  ;;  %v1761_v1 = vmul.f32 1.442695, %v1333_v21  ;;  %v815_v19 = vmax.f32 %v10134_v35, %v10265_v11  ;;  %v10289_v42 = vmul.f32 0.1, %v10204_v61  ;;  %v10346_v21 = vld [vmem:[%s6391_s30 + $0x580] sm:$0xff] }
 0x305   : > { %4908 = vst [vmem:[%s6574_s17 + $0x518] sm:$0xff] %v4652_v48  ;;  %v4397_v0 = vmul.f32 0.9, %v3413_v45  ;;  %5832 = vlog2.f32 %v3432_v27  ;;  %v1078_v46 = vand.u32 2147483647, %v10272_v43  ;;  %v3418_v57 = vadd.f32 1.0, %v3417_v13 }
 0x306   : > { %v3426_v55 = vmul.f32 -0.5, %v10254_v52  ;;  %5834 = vpow2.f32 %v1761_v1  ;;  %v3420_v38 = vand.u32 2147483647, %v10235_v30  ;;  %v816_v26 = vmax.f32 %v10141_v12, %v10277_v8 }
 0x307   : > { %v4653_v36 = vadd.f32 %v4397_v0, %v813_v14  ;;  %v10297_v4 = vmul.f32 0.1, %v10207_v53  ;;  %v1334_v9 = vsub.f32 0.0, %v1078_v46  ;;  %v3435_v31 = vmul.f32 -0.5, %v10267_v5 }
 0x308   : > { %v817_v58 = vmax.f32 %v10186_v32, %v10284_v20  ;;  %v10307_v39 = vmul.f32 0.1, %v10220_v16  ;;  %v10310_v7 = vmul.f32 0.1, %v10245_v2  ;;  %v3429_v22 = vand.u32 2147483647, %v10254_v52 }
 0x309   : > { %v5821_v49 = vpop.eup %5820  ;;  %4909 = vst [vmem:[%s6574_s17 + $0x520] sm:$0xff] %v4653_v36  ;;  %v818_v63 = vmax.f32 %v10204_v61, %v10289_v42  ;;  %v1763_v29 = vmul.f32 1.442695, %v1334_v9  ;;  %v3419_v23 = vmul.f32 %v10235_v30, %v3418_v57  ;;  %v3427_v40 = vadd.f32 1.0, %v3426_v55 }
 0x30a   : > { %v3441_v28 = vadd.f32 1.0, %v5821_v49  ;;  %v10318_v47 = vpop.eup %5822  ;;  %v3438_v44 = vand.u32 2147483647, %v10267_v5  ;;  %v1079_v59 = vand.u32 2147483647, %v10300_v37  ;;  %v3436_v30 = vadd.f32 1.0, %v3435_v31 }
 0x30b   : > { %vm10323_vm5 = vcmp.lt.f32.partialorder %v3420_v38, 0.0004427343  ;;  %v3450_v10 = vadd.f32 1.0, %v10318_v47  ;;  %v1080_v6 = vand.u32 2147483647, %v10313_v3  ;;  %v3444_v62 = vmul.f32 -0.5, %v5821_v49 }
 0x30c   : > { %v5825_v51 = vpop.eup %5824  ;;  %5836 = vlog2.f32 %v3441_v28  ;;  %vm10331_vm6 = vcmp.lt.f32.partialorder %v3429_v22, 0.0004427343  ;;  %v3447_v18 = vand.u32 2147483647, %v5821_v49  ;;  %v3428_v54 = vmul.f32 %v10254_v52, %v3427_v40 }
 0x30d   : > { %v10329_v17 = vpop.eup %5826  ;;  %v3416_v41 = vmul.f32 0.6931472, %v5825_v51  ;;  %5838 = vpow2.f32 %v1763_v29  ;;  %vm10341_vm7 = vcmp.lt.f32.partialorder %v3438_v44, 0.0004427343  ;;  %v1335_v50 = vsub.f32 0.0, %v1079_v59 }
 0x30e   : > { %5840 = vlog2.f32 %v3450_v10  ;;  %v3459_v24 = vadd.f32 1.0, %v10329_v17  ;;  %v10336_v33 = vpop.eup %5828  ;;  %v1336_v45 = vsub.f32 0.0, %v1080_v6  ;;  %v3437_v0 = vmul.f32 %v10267_v5, %v3436_v30  ;;  %v10376_v30 = vld [vmem:[%s6391_s30 + $0x590] sm:$0xff] }
 0x30f   : > { %v3422_v34 = vsel %vm10323_vm5, %v3419_v23, %v3416_v41  ;;  %v3468_v13 = vadd.f32 1.0, %v10336_v33  ;;  %v3445_v1 = vadd.f32 1.0, %v3444_v62  ;;  %v3453_v52 = vmul.f32 -0.5, %v10318_v47 }
 0x310   : > { %v5831_v48 = vpop.eup %5830  ;;  %v4398_v14 = vmul.f32 0.9, %v3422_v34  ;;  %5842 = vlog2.f32 %v3459_v24  ;;  %vm10351_vm8 = vcmp.lt.f32.partialorder %v3447_v18, 0.0004427343  ;;  %v1081_v57 = vand.u32 2147483647, %v10346_v21 }
 0x311   : > { %v3425_v27 = vmul.f32 0.6931472, %v5831_v48  ;;  %5844 = vlog2.f32 %v3468_v13  ;;  %v3456_v9 = vand.u32 2147483647, %v10318_v47  ;;  %v3462_v5 = vmul.f32 -0.5, %v10329_v17 }
 0x312   : > { %v4654_v46 = vadd.f32 %v4398_v14, %v814_v56  ;;  %v5833_v55 = vpop.eup %5832  ;;  %v1765_v31 = vmul.f32 1.442695, %v1335_v50  ;;  %v819_v29 = vmax.f32 %v10207_v53, %v10297_v4  ;;  %v1767_v23 = vmul.f32 1.442695, %v1336_v45 }
 0x313   : > { %v3431_v38 = vsel %vm10331_vm6, %v3428_v54, %v3425_v27  ;;  %v10360_v22 = vpop.eup %5834  ;;  %v3434_v28 = vmul.f32 0.6931472, %v5833_v55  ;;  %v3446_v40 = vmul.f32 %v5821_v49, %v3445_v1  ;;  %v3454_v44 = vadd.f32 1.0, %v3453_v52 }
 0x314   : > { %4910 = vst [vmem:[%s6574_s17 + $0x528] sm:$0xff] %v4654_v46  ;;  %v4399_v56 = vmul.f32 0.9, %v3431_v38  ;;  %v3471_v59 = vmul.f32 -0.5, %v10336_v33  ;;  %v3477_v51 = vadd.f32 1.0, %v10360_v22  ;;  %5846 = vpow2.f32 %v1765_v31  ;;  %v10409_v38 = vld [vmem:[%s6391_s30 + $0x598] sm:$0xff] }
 0x315   : > { %v3440_v6 = vsel %vm10341_vm7, %v3437_v0, %v3434_v28  ;;  %v1337_v41 = vsub.f32 0.0, %v1081_v57  ;;  %v3463_v49 = vadd.f32 1.0, %v3462_v5  ;;  %v3465_v15 = vand.u32 2147483647, %v10329_v17 }
 0x316   : > { %v4655_v10 = vadd.f32 %v4399_v56, %v815_v19  ;;  %v4400_v62 = vmul.f32 0.9, %v3440_v6  ;;  %5848 = vlog2.f32 %v3477_v51  ;;  %vm10380_vm9 = vcmp.lt.f32.partialorder %v3456_v9, 0.0004427343 }
 0x317   : > { %5850 = vpow2.f32 %v1767_v23  ;;  %v1769_v35 = vmul.f32 1.442695, %v1337_v41  ;;  %v1082_v11 = vand.u32 2147483647, %v10368_v60  ;;  %v3472_v34 = vadd.f32 1.0, %v3471_v59 }
 0x318   : > { %4911 = vst [vmem:[%s6574_s17 + $0x530] sm:$0xff] %v4655_v10  ;;  %v4656_v24 = vadd.f32 %v4400_v62, %v816_v26  ;;  %v3474_v54 = vand.u32 2147483647, %v10336_v33  ;;  %v1083_v25 = vand.u32 2147483647, %v10376_v30  ;;  %v3455_v14 = vmul.f32 %v10318_v47, %v3454_v44 }
 0x319   : > { %v5837_v19 = vpop.eup %5836  ;;  %5852 = vpow2.f32 %v1769_v35  ;;  %v1338_v13 = vsub.f32 0.0, %v1082_v11  ;;  %v3464_v27 = vmul.f32 %v10329_v17, %v3463_v49  ;;  %vm10395_vm10 = vcmp.lt.f32.partialorder %v3465_v15, 0.0004427343 }
 0x31a   : > { %v10390_v50 = vpop.eup %5838  ;;  %v3443_v48 = vmul.f32 0.6931472, %v5837_v19  ;;  %4912 = vst [vmem:[%s6574_s17 + $0x538] sm:$0xff] %v4656_v24  ;;  %v3480_v8 = vmul.f32 -0.5, %v10360_v22  ;;  %v1339_v52 = vsub.f32 0.0, %v1083_v25  ;;  %v3473_v55 = vmul.f32 %v10336_v33, %v3472_v34 }
 0x31b   : > { %v5841_v45 = vpop.eup %5840  ;;  %v3486_v26 = vadd.f32 1.0, %v10390_v50  ;;  %v1771_v47 = vmul.f32 1.442695, %v1338_v13  ;;  %vm10404_vm11 = vcmp.lt.f32.partialorder %v3474_v54, 0.0004427343  ;;  %v3489_v10 = vmul.f32 -0.5, %v10390_v50 }
 0x31c   : > { %v3449_v0 = vsel %vm10351_vm8, %v3446_v40, %v3443_v48  ;;  %v3452_v1 = vmul.f32 0.6931472, %v5841_v45  ;;  %v1773_v5 = vmul.f32 1.442695, %v1339_v52  ;;  %v3481_v28 = vadd.f32 1.0, %v3480_v8  ;;  %v10418_v40 = vld [vmem:[%s6391_s30 + $0x5a0] sm:$0xff] }
 0x31d   : > { %v5843_v46 = vpop.eup %5842  ;;  %v4401_v57 = vmul.f32 0.9, %v3449_v0  ;;  %5854 = vlog2.f32 %v3486_v26  ;;  %v3483_v23 = vand.u32 2147483647, %v10360_v22  ;;  %v1084_v51 = vand.u32 2147483647, %v10409_v38 }
 0x31e   : > { %v3458_v36 = vsel %vm10380_vm9, %v3455_v14, %v3452_v1  ;;  %v3461_v9 = vmul.f32 0.6931472, %v5843_v46  ;;  %5856 = vpow2.f32 %v1771_v47  ;;  %v5845_v31 = vpop.eup %5844  ;;  %v1085_v62 = vand.u32 2147483647, %v10418_v40 }
 0x31f   : > { %v4657_v56 = vadd.f32 %v4401_v57, %v817_v58  ;;  %v4402_v33 = vmul.f32 0.9, %v3458_v36  ;;  %v3470_v59 = vmul.f32 0.6931472, %v5845_v31  ;;  %5858 = vpow2.f32 %v1773_v5 }
 0x320   : > { %v3467_v44 = vsel %vm10395_vm10, %v3464_v27, %v3461_v9  ;;  %v820_v58 = vmax.f32 %v10220_v16, %v10307_v39  ;;  %v1340_v41 = vsub.f32 0.0, %v1084_v51  ;;  %v10441_v16 = vld [vmem:[%s6391_s30 + $0x5a8] sm:$0xff]  ;;  %v821_v15 = vmax.f32 %v10245_v2, %v10310_v7 }
 0x321   : > { %4913 = vst [vmem:[%s6574_s17 + $0x540] sm:$0xff] %v4657_v56  ;;  %v4658_v32 = vadd.f32 %v4402_v33, %v818_v63  ;;  %v4403_v20 = vmul.f32 0.9, %v3467_v44  ;;  %v3476_v6 = vsel %vm10404_vm11, %v3473_v55, %v3470_v59  ;;  %v10433_v49 = vpop.eup %5846  ;;  %v3482_v63 = vmul.f32 %v10360_v22, %v3481_v28  ;;  %v10493_v33 = vld [vmem:[%s6391_s30 + $0x5b0] sm:$0xff] }
 0x322   : > { %v4404_v42 = vmul.f32 0.9, %v3476_v6  ;;  %vm10445_vm12 = vcmp.lt.f32.partialorder %v3483_v23, 0.0004427343  ;;  %v3495_v35 = vadd.f32 1.0, %v10433_v49  ;;  %v3490_v22 = vadd.f32 1.0, %v3489_v10 }
 0x323   : > { %4914 = vst [vmem:[%s6574_s17 + $0x548] sm:$0xff] %v4658_v32  ;;  %v4659_v61 = vadd.f32 %v4403_v20, %v819_v29  ;;  %v5849_v39 = vpop.eup %5848  ;;  %v1775_v11 = vmul.f32 1.442695, %v1340_v41  ;;  %v3492_v29 = vand.u32 2147483647, %v10390_v50  ;;  %v1341_v34 = vsub.f32 0.0, %v1085_v62 }
 0x324   : > { %v10450_v19 = vpop.eup %5850  ;;  %v4660_v53 = vadd.f32 %v4404_v42, %v820_v58  ;;  %v3479_v4 = vmul.f32 0.6931472, %v5849_v39  ;;  %5860 = vlog2.f32 %v3495_v35  ;;  %v1086_v2 = vand.u32 2147483647, %v10441_v16  ;;  %v10506_v41 = vld [vmem:[%s6391_s30 + $0x5c0] sm:$0xff] }
 0x325   : > { %4915 = vst [vmem:[%s6574_s17 + $0x550] sm:$0xff] %v4659_v61  ;;  %v3504_v24 = vadd.f32 1.0, %v10450_v19  ;;  %v566_v25 = vmul.f32 0.1, %v10272_v43  ;;  %5862 = vpow2.f32 %v1775_v11  ;;  %v3491_v13 = vmul.f32 %v10390_v50, %v3490_v22 }
 0x326   : > { %v10456_v7 = vpop.eup %5852  ;;  %4916 = vst [vmem:[%s6574_s17 + $0x558] sm:$0xff] %v4660_v53  ;;  %v3485_v54 = vsel %vm10445_vm12, %v3482_v63, %v3479_v4  ;;  %vm10464_vm13 = vcmp.lt.f32.partialorder %v3492_v29, 0.0004427343  ;;  %v10469_v27 = vmul.f32 0.1, %v10300_v37  ;;  %v3498_v12 = vmul.f32 -0.5, %v10433_v49 }
 0x327   : > { %v4405_v48 = vmul.f32 0.9, %v3485_v54  ;;  %5864 = vlog2.f32 %v3504_v24  ;;  %v3513_v14 = vadd.f32 1.0, %v10456_v7  ;;  %v1777_v0 = vmul.f32 1.442695, %v1341_v34 }
 0x328   : > { %v1342_v1 = vsub.f32 0.0, %v1086_v2  ;;  %v822_v52 = vmax.f32 %v10272_v43, %v566_v25  ;;  %v10476_v46 = vmul.f32 0.1, %v10313_v3  ;;  %v3507_v57 = vmul.f32 -0.5, %v10450_v19 }
 0x329   : > { %v4661_v26 = vadd.f32 %v4405_v48, %v821_v15  ;;  %5866 = vlog2.f32 %v3513_v14  ;;  %v10481_v55 = vmul.f32 0.1, %v10346_v21  ;;  %v3516_v17 = vmul.f32 -0.5, %v10456_v7 }
 0x32a   : > { %v5855_v8 = vpop.eup %5854  ;;  %5868 = vpow2.f32 %v1777_v0  ;;  %v823_v5 = vmax.f32 %v10300_v37, %v10469_v27  ;;  %v3501_v31 = vand.u32 2147483647, %v10433_v49  ;;  %v1779_v56 = vmul.f32 1.442695, %v1342_v1  ;;  %v10500_v37 = vld [vmem:[%s6391_s30 + $0x5b8] sm:$0xff]  ;;  %v10545_v1 = vld [vmem:[%s6391_s30 + $0x5c8] sm:$0xff] }
 0x32b   : > { %v10472_v47 = vpop.eup %5856  ;;  %v3488_v50 = vmul.f32 0.6931472, %v5855_v8  ;;  %4917 = vst [vmem:[%s6574_s17 + $0x560] sm:$0xff] %v4661_v26  ;;  %v3499_v23 = vadd.f32 1.0, %v3498_v12  ;;  %v3510_v44 = vand.u32 2147483647, %v10450_v19  ;;  %v824_v59 = vmax.f32 %v10313_v3, %v10476_v46 }
 0x32c   : > { %v3522_v36 = vadd.f32 1.0, %v10472_v47  ;;  %v10485_v9 = vpop.eup %5858  ;;  %v3508_v51 = vadd.f32 1.0, %v3507_v57  ;;  %v825_v58 = vmax.f32 %v10346_v21, %v10481_v55  ;;  %v3517_v10 = vadd.f32 1.0, %v3516_v17 }
 0x32d   : > { %v3494_v43 = vsel %vm10464_vm13, %v3491_v13, %v3488_v50  ;;  %v3531_v32 = vadd.f32 1.0, %v10485_v9  ;;  %v1087_v6 = vand.u32 2147483647, %v10493_v33  ;;  %vm10508_vm14 = vcmp.lt.f32.partialorder %v3501_v31, 0.0004427343 }
 0x32e   : > { %v4406_v28 = vmul.f32 0.9, %v3494_v43  ;;  %5870 = vlog2.f32 %v3522_v36  ;;  %v10513_v3 = vmul.f32 0.1, %v10368_v60  ;;  %v3525_v61 = vmul.f32 -0.5, %v10472_v47 }
 0x32f   : > { %5872 = vpow2.f32 %v1779_v56  ;;  %v3500_v42 = vmul.f32 %v10433_v49, %v3499_v23  ;;  %vm10518_vm15 = vcmp.lt.f32.partialorder %v3510_v44, 0.0004427343  ;;  %v1343_v63 = vsub.f32 0.0, %v1087_v6  ;;  %v10566_v6 = vld [vmem:[%s6391_s30 + $0x5d0] sm:$0xff] }
 0x330   : > { %v4662_v20 = vadd.f32 %v4406_v28, %v822_v52  ;;  %5874 = vlog2.f32 %v3531_v32  ;;  %v1088_v39 = vand.u32 2147483647, %v10500_v37  ;;  %v3509_v18 = vmul.f32 %v10450_v19, %v3508_v51 }
 0x331   : > { %v5861_v15 = vpop.eup %5860  ;;  %v3519_v35 = vand.u32 2147483647, %v10456_v7  ;;  %v3528_v11 = vand.u32 2147483647, %v10472_v47  ;;  %v1089_v53 = vand.u32 2147483647, %v10506_v41  ;;  %v3518_v49 = vmul.f32 %v10456_v7, %v3517_v10 }
 0x332   : > { %4918 = vst [vmem:[%s6574_s17 + $0x568] sm:$0xff] %v4662_v20  ;;  %v10527_v4 = vpop.eup %5862  ;;  %v3497_v22 = vmul.f32 0.6931472, %v5861_v15  ;;  %v1781_v29 = vmul.f32 1.442695, %v1343_v63  ;;  %v1344_v24 = vsub.f32 0.0, %v1088_v39  ;;  %v826_v20 = vmax.f32 %v10368_v60, %v10513_v3 }
 0x333   : > { %v3526_v2 = vadd.f32 1.0, %v3525_v61  ;;  %v3534_v54 = vmul.f32 -0.5, %v10485_v9  ;;  %v3540_v19 = vadd.f32 1.0, %v10527_v4  ;;  %v1345_v25 = vsub.f32 0.0, %v1089_v53  ;;  %v10604_v7 = vld [vmem:[%s6391_s30 + $0x5e0] sm:$0xff] }
 0x334   : > { %v5865_v34 = vpop.eup %5864  ;;  %v3503_v48 = vsel %vm10508_vm14, %v3500_v42, %v3497_v22  ;;  %5876 = vpow2.f32 %v1781_v29  ;;  %v1783_v13 = vmul.f32 1.442695, %v1344_v24  ;;  %vm10534_vm0 = vcmp.lt.f32.partialorder %v3519_v35, 0.0004427343 }
 0x335   : > { %v3506_v14 = vmul.f32 0.6931472, %v5865_v34  ;;  %v4407_v27 = vmul.f32 0.9, %v3503_v48  ;;  %vm10538_vm1 = vcmp.lt.f32.partialorder %v3528_v11, 0.0004427343  ;;  %5878 = vlog2.f32 %v3540_v19 }
 0x336   : > { %v5867_v45 = vpop.eup %5866  ;;  %5880 = vpow2.f32 %v1783_v13  ;;  %v1785_v0 = vmul.f32 1.442695, %v1345_v25  ;;  %v3535_v57 = vadd.f32 1.0, %v3534_v54  ;;  %v3537_v55 = vand.u32 2147483647, %v10485_v9 }
 0x337   : > { %v3512_v8 = vsel %vm10518_vm15, %v3509_v18, %v3506_v14  ;;  %v3515_v26 = vmul.f32 0.6931472, %v5867_v45  ;;  %v10547_v52 = vpop.eup %5868  ;;  %v4663_v50 = vadd.f32 %v4407_v27, %v823_v5  ;;  %v3527_v36 = vmul.f32 %v10472_v47, %v3526_v2 }
 0x338   : > { %v4408_v46 = vmul.f32 0.9, %v3512_v8  ;;  %v3543_v43 = vmul.f32 -0.5, %v10527_v4  ;;  %v3549_v31 = vadd.f32 1.0, %v10547_v52  ;;  %5882 = vpow2.f32 %v1785_v0 }
 0x339   : > { %v3521_v17 = vsel %vm10534_vm0, %v3518_v49, %v3515_v26  ;;  %4919 = vst [vmem:[%s6574_s17 + $0x570] sm:$0xff] %v4663_v50  ;;  %v1090_v5 = vand.u32 2147483647, %v10545_v1  ;;  %v571_v32 = vmul.f32 0.1, %v10376_v30  ;;  %v3536_v10 = vmul.f32 %v10485_v9, %v3535_v57  ;;  %v10577_v9 = vld [vmem:[%s6391_s30 + $0x5d8] sm:$0xff] }
 0x33a   : > { %v4664_v28 = vadd.f32 %v4408_v46, %v824_v59  ;;  %v4409_v23 = vmul.f32 0.9, %v3521_v17  ;;  %5884 = vlog2.f32 %v3549_v31  ;;  %vm10570_vm2 = vcmp.lt.f32.partialorder %v3537_v55, 0.0004427343 }
 0x33b   : > { %v5871_v56 = vpop.eup %5870  ;;  %v3546_v21 = vand.u32 2147483647, %v10527_v4  ;;  %v3544_v3 = vadd.f32 1.0, %v3543_v43  ;;  %v827_v39 = vmax.f32 %v10376_v30, %v571_v32  ;;  %v3552_v15 = vmul.f32 -0.5, %v10547_v52  ;;  %v10631_v32 = vld [vmem:[%s6391_s30 + $0x5e8] sm:$0xff] }
 0x33c   : > { %v10557_v44 = vpop.eup %5872  ;;  %v3524_v51 = vmul.f32 0.6931472, %v5871_v56  ;;  %4920 = vst [vmem:[%s6574_s17 + $0x578] sm:$0xff] %v4664_v28  ;;  %v4665_v47 = vadd.f32 %v4409_v23, %v825_v58  ;;  %v1346_v58 = vsub.f32 0.0, %v1090_v5  ;;  %v1091_v35 = vand.u32 2147483647, %v10566_v6 }
 0x33d   : > { %v3558_v59 = vadd.f32 1.0, %v10557_v44  ;;  %v5875_v62 = vpop.eup %5874  ;;  %v572_v22 = vmul.f32 0.1, %v10409_v38  ;;  %v10586_v49 = vmul.f32 0.1, %v10418_v40  ;;  %v3545_v2 = vmul.f32 %v10527_v4, %v3544_v3 }
 0x33e   : > { %v3530_v61 = vsel %vm10538_vm1, %v3527_v36, %v3524_v51  ;;  %4921 = vst [vmem:[%s6574_s17 + $0x580] sm:$0xff] %v4665_v47  ;;  %v3533_v60 = vmul.f32 0.6931472, %v5875_v62  ;;  %v1787_v18 = vmul.f32 1.442695, %v1346_v58  ;;  %v1347_v24 = vsub.f32 0.0, %v1091_v35 }
 0x33f   : > { %v4410_v63 = vmul.f32 0.9, %v3530_v61  ;;  %5886 = vlog2.f32 %v3558_v59  ;;  %v1092_v30 = vand.u32 2147483647, %v10577_v9  ;;  %vm10593_vm3 = vcmp.lt.f32.partialorder %v3546_v21, 0.0004427343 }
 0x340   : > { %v3539_v53 = vsel %vm10570_vm2, %v3536_v10, %v3533_v60  ;;  %5888 = vpow2.f32 %v1787_v18  ;;  %v10598_v19 = vmul.f32 0.1, %v10441_v16  ;;  %v3561_v25 = vmul.f32 -0.5, %v10557_v44  ;;  %v10712_v21 = vld [vmem:[%s6391_s30 + $0x608] sm:$0xff] }
 0x341   : > { %v4666_v11 = vadd.f32 %v4410_v63, %v826_v20  ;;  %v4411_v29 = vmul.f32 0.9, %v3539_v53  ;;  %v10589_v34 = vpop.eup %5876  ;;  %v3553_v13 = vadd.f32 1.0, %v3552_v15  ;;  %v3555_v45 = vand.u32 2147483647, %v10547_v52 }
 0x342   : > { %v5879_v48 = vpop.eup %5878  ;;  %v3567_v27 = vadd.f32 1.0, %v10589_v34  ;;  %v828_v4 = vmax.f32 %v10409_v38, %v572_v22  ;;  %v1789_v26 = vmul.f32 1.442695, %v1347_v24  ;;  %v1348_v0 = vsub.f32 0.0, %v1092_v30  ;;  %v10660_v24 = vld [vmem:[%s6391_s30 + $0x5f8] sm:$0xff] }
 0x343   : > { %4922 = vst [vmem:[%s6574_s17 + $0x588] sm:$0xff] %v4666_v11  ;;  %v4667_v14 = vadd.f32 %v4411_v29, %v827_v39  ;;  %v10606_v12 = vpop.eup %5880  ;;  %v3542_v8 = vmul.f32 0.6931472, %v5879_v48  ;;  %v829_v50 = vmax.f32 %v10418_v40, %v10586_v49  ;;  %v3564_v46 = vand.u32 2147483647, %v10557_v44 }
 0x344   : > { %5890 = vlog2.f32 %v3567_v27  ;;  %v3576_v57 = vadd.f32 1.0, %v10606_v12  ;;  %v3562_v17 = vadd.f32 1.0, %v3561_v25  ;;  %v1093_v38 = vand.u32 2147483647, %v10604_v7 }
 0x345   : > { %4923 = vst [vmem:[%s6574_s17 + $0x590] sm:$0xff] %v4667_v14  ;;  %v3548_v55 = vsel %vm10593_vm3, %v3545_v2, %v3542_v8  ;;  %5892 = vpow2.f32 %v1789_v26  ;;  %v10617_v36 = vpop.eup %5882  ;;  %v3554_v31 = vmul.f32 %v10547_v52, %v3553_v13  ;;  %v1791_v40 = vmul.f32 1.442695, %v1348_v0 }
 0x346   : > { %v4412_v43 = vmul.f32 0.9, %v3548_v55  ;;  %5894 = vlog2.f32 %v3576_v57  ;;  %vm10620_vm4 = vcmp.lt.f32.partialorder %v3555_v45, 0.0004427343  ;;  %v830_v23 = vmax.f32 %v10441_v16, %v10598_v19  ;;  %v10639_v16 = vld [vmem:[%s6391_s30 + $0x5f0] sm:$0xff] }
 0x347   : > { %v5885_v56 = vpop.eup %5884  ;;  %v10627_v5 = vmul.f32 0.1, %v10493_v33  ;;  %v3585_v51 = vadd.f32 1.0, %v10617_v36  ;;  %v3570_v20 = vmul.f32 -0.5, %v10589_v34  ;;  %5896 = vpow2.f32 %v1791_v40 }
 0x348   : > { %v4668_v52 = vadd.f32 %v4412_v43, %v828_v4  ;;  %v3551_v47 = vmul.f32 0.6931472, %v5885_v56  ;;  %v3563_v10 = vmul.f32 %v10557_v44, %v3562_v17  ;;  %v10636_v59 = vmul.f32 0.1, %v10500_v37 }
 0x349   : > { %5898 = vlog2.f32 %v3585_v51  ;;  %v1349_v62 = vsub.f32 0.0, %v1093_v38  ;;  %vm10644_vm5 = vcmp.lt.f32.partialorder %v3564_v46, 0.0004427343  ;;  %v3579_v58 = vmul.f32 -0.5, %v10606_v12 }
 0x34a   : > { %4924 = vst [vmem:[%s6574_s17 + $0x598] sm:$0xff] %v4668_v52  ;;  %v3557_v42 = vsel %vm10620_vm4, %v3554_v31, %v3551_v47  ;;  %v1094_v44 = vand.u32 2147483647, %v10631_v32  ;;  %v831_v3 = vmax.f32 %v10493_v33, %v10627_v5  ;;  %v3571_v15 = vadd.f32 1.0, %v3570_v20 }
 0x34b   : > { %v4413_v63 = vmul.f32 0.9, %v3557_v42  ;;  %v1793_v39 = vmul.f32 1.442695, %v1349_v62  ;;  %v3573_v18 = vand.u32 2147483647, %v10589_v34  ;;  %v832_v19 = vmax.f32 %v10500_v37, %v10636_v59 }
 0x34c   : > { %v5887_v61 = vpop.eup %5886  ;;  %v1350_v35 = vsub.f32 0.0, %v1094_v44  ;;  %v1095_v11 = vand.u32 2147483647, %v10639_v16  ;;  %v3588_v29 = vmul.f32 -0.5, %v10617_v36  ;;  %v3580_v30 = vadd.f32 1.0, %v3579_v58 }
 0x34d   : > { %v3560_v60 = vmul.f32 0.6931472, %v5887_v61  ;;  %v10654_v53 = vpop.eup %5888  ;;  %v4669_v22 = vadd.f32 %v4413_v63, %v829_v50  ;;  %5900 = vpow2.f32 %v1793_v39  ;;  %v10663_v2 = vmul.f32 0.1, %v10506_v41  ;;  %v10677_v50 = vld [vmem:[%s6391_s30 + $0x600] sm:$0xff] }
 0x34e   : > { %v3594_v54 = vadd.f32 1.0, %v10654_v53  ;;  %v3582_v25 = vand.u32 2147483647, %v10606_v12  ;;  %v1795_v48 = vmul.f32 1.442695, %v1350_v35  ;;  %v1351_v14 = vsub.f32 0.0, %v1095_v11 }
 0x34f   : > { %v3566_v49 = vsel %vm10644_vm5, %v3563_v10, %v3560_v60  ;;  %4925 = vst [vmem:[%s6574_s17 + $0x5a0] sm:$0xff] %v4669_v22  ;;  %v3572_v45 = vmul.f32 %v10589_v34, %v3571_v15  ;;  %vm10671_vm6 = vcmp.lt.f32.partialorder %v3573_v18, 0.0004427343  ;;  %v3589_v8 = vadd.f32 1.0, %v3588_v29  ;;  %v10722_v18 = vld [vmem:[%s6391_s30 + $0x610] sm:$0xff] }
 0x350   : > { %v4414_v33 = vmul.f32 0.9, %v3566_v49  ;;  %5902 = vlog2.f32 %v3594_v54  ;;  %v1797_v26 = vmul.f32 1.442695, %v1351_v14  ;;  %v1096_v0 = vand.u32 2147483647, %v10660_v24 }
 0x351   : > { %v5891_v4 = vpop.eup %5890  ;;  %5904 = vpow2.f32 %v1795_v48  ;;  %v3581_v57 = vmul.f32 %v10606_v12, %v3580_v30  ;;  %v3591_v34 = vand.u32 2147483647, %v10617_v36  ;;  %v10685_v55 = vmul.f32 0.1, %v10545_v1 }
 0x352   : > { %v4670_v13 = vadd.f32 %v4414_v33, %v830_v23  ;;  %v10679_v37 = vpop.eup %5892  ;;  %v3569_v46 = vmul.f32 0.6931472, %v5891_v4  ;;  %vm10687_vm7 = vcmp.lt.f32.partialorder %v3582_v25, 0.0004427343  ;;  %v3597_v43 = vmul.f32 -0.5, %v10654_v53 }
 0x353   : > { %v5895_v17 = vpop.eup %5894  ;;  %v3603_v31 = vadd.f32 1.0, %v10679_v37  ;;  %5906 = vpow2.f32 %v1797_v26  ;;  %v833_v12 = vmax.f32 %v10506_v41, %v10663_v2  ;;  %v1352_v28 = vsub.f32 0.0, %v1096_v0 }
 0x354   : > { %4926 = vst [vmem:[%s6574_s17 + $0x5a8] sm:$0xff] %v4670_v13  ;;  %v3575_v40 = vsel %vm10671_vm6, %v3572_v45, %v3569_v46  ;;  %v3578_v56 = vmul.f32 0.6931472, %v5895_v17  ;;  %v10697_v23 = vpop.eup %5896  ;;  %v3590_v51 = vmul.f32 %v10617_v36, %v3589_v8  ;;  %v1097_v52 = vand.u32 2147483647, %v10677_v50 }
 0x355   : > { %v4415_v5 = vmul.f32 0.9, %v3575_v40  ;;  %5908 = vlog2.f32 %v3603_v31  ;;  %vm10703_vm8 = vcmp.lt.f32.partialorder %v3591_v34, 0.0004427343  ;;  %v10708_v41 = vmul.f32 0.1, %v10566_v6 }
 0x356   : > { %v5899_v47 = vpop.eup %5898  ;;  %v3584_v20 = vsel %vm10687_vm7, %v3581_v57, %v3578_v56  ;;  %v3612_v59 = vadd.f32 1.0, %v10697_v23  ;;  %v3598_v42 = vadd.f32 1.0, %v3597_v43  ;;  %v834_v58 = vmax.f32 %v10545_v1, %v10685_v55  ;;  %v10758_v43 = vld [vmem:[%s6391_s30 + $0x618] sm:$0xff] }
 0x357   : > { %v4671_v62 = vadd.f32 %v4415_v5, %v831_v3  ;;  %v4416_v36 = vmul.f32 0.9, %v3584_v20  ;;  %v3587_v61 = vmul.f32 0.6931472, %v5899_v47  ;;  %v3600_v44 = vand.u32 2147483647, %v10654_v53 }
 0x358   : > { %5910 = vlog2.f32 %v3612_v59  ;;  %v1799_v63 = vmul.f32 1.442695, %v1352_v28  ;;  %v3606_v3 = vmul.f32 -0.5, %v10679_v37  ;;  %v1353_v15 = vsub.f32 0.0, %v1097_v52  ;;  %v10772_v52 = vld [vmem:[%s6391_s30 + $0x620] sm:$0xff] }
 0x359   : > { %4927 = vst [vmem:[%s6574_s17 + $0x5b0] sm:$0xff] %v4671_v62  ;;  %v4672_v60 = vadd.f32 %v4416_v36, %v832_v19  ;;  %v3593_v39 = vsel %vm10703_vm8, %v3590_v51, %v3587_v61  ;;  %v835_v1 = vmax.f32 %v10566_v6, %v10708_v41  ;;  %v1098_v22 = vand.u32 2147483647, %v10712_v21 }
 0x35a   : > { %v10724_v35 = vpop.eup %5900  ;;  %v4417_v11 = vmul.f32 0.9, %v3593_v39  ;;  %5912 = vpow2.f32 %v1799_v63  ;;  %v3599_v49 = vmul.f32 %v10654_v53, %v3598_v42  ;;  %v10732_v29 = vmul.f32 0.1, %v10577_v9 }
 0x35b   : > { %4928 = vst [vmem:[%s6574_s17 + $0x5b8] sm:$0xff] %v4672_v60  ;;  %v3621_v33 = vadd.f32 1.0, %v10724_v35  ;;  %v1801_v30 = vmul.f32 1.442695, %v1353_v15  ;;  %v3615_v54 = vmul.f32 -0.5, %v10697_v23  ;;  %v1354_v19 = vsub.f32 0.0, %v1098_v22 }
 0x35c   : > { %v4673_v2 = vadd.f32 %v4417_v11, %v833_v12  ;;  %v1099_v25 = vand.u32 2147483647, %v10722_v18  ;;  %vm10737_vm9 = vcmp.lt.f32.partialorder %v3600_v44, 0.0004427343  ;;  %v3607_v13 = vadd.f32 1.0, %v3606_v3 }
 0x35d   : > { %v5903_v48 = vpop.eup %5902  ;;  %v10742_v53 = vmul.f32 0.1, %v10604_v7  ;;  %5914 = vlog2.f32 %v3621_v33  ;;  %v3609_v4 = vand.u32 2147483647, %v10679_v37  ;;  %v1803_v8 = vmul.f32 1.442695, %v1354_v19 }
 0x35e   : > { %v10744_v45 = vpop.eup %5904  ;;  %4929 = vst [vmem:[%s6574_s17 + $0x5c0] sm:$0xff] %v4673_v2  ;;  %v3596_v27 = vmul.f32 0.6931472, %v5903_v48  ;;  %5916 = vpow2.f32 %v1801_v30  ;;  %v836_v26 = vmax.f32 %v10577_v9, %v10732_v29  ;;  %v3618_v0 = vand.u32 2147483647, %v10697_v23  ;;  %v10795_v29 = vld [vmem:[%s6391_s30 + $0x628] sm:$0xff] }
 0x35f   : > { %v3624_v46 = vmul.f32 -0.5, %v10724_v35  ;;  %v3630_v57 = vadd.f32 1.0, %v10744_v45  ;;  %v3616_v17 = vadd.f32 1.0, %v3615_v54  ;;  %5918 = vpow2.f32 %v1803_v8  ;;  %v10815_v8 = vld [vmem:[%s6391_s30 + $0x630] sm:$0xff] }
 0x360   : > { %v10753_v34 = vpop.eup %5906  ;;  %v3602_v55 = vsel %vm10737_vm9, %v3599_v49, %v3596_v27  ;;  %v1355_v38 = vsub.f32 0.0, %v1099_v25  ;;  %v3608_v9 = vmul.f32 %v10679_v37, %v3607_v13  ;;  %v10762_v40 = vmul.f32 0.1, %v10631_v32 }
 0x361   : > { %v4418_v31 = vmul.f32 0.9, %v3602_v55  ;;  %5920 = vlog2.f32 %v3630_v57  ;;  %vm10764_vm10 = vcmp.lt.f32.partialorder %v3609_v4, 0.0004427343  ;;  %v837_v28 = vmax.f32 %v10604_v7, %v10742_v53 }
 0x362   : > { %v5909_v56 = vpop.eup %5908  ;;  %v3639_v5 = vadd.f32 1.0, %v10753_v34  ;;  %v1805_v51 = vmul.f32 1.442695, %v1355_v38  ;;  %v3625_v20 = vadd.f32 1.0, %v3624_v46  ;;  %v1100_v10 = vand.u32 2147483647, %v10758_v43 }
 0x363   : > { %v4674_v47 = vadd.f32 %v4418_v31, %v834_v58  ;;  %v3605_v37 = vmul.f32 0.6931472, %v5909_v56  ;;  %v3617_v59 = vmul.f32 %v10697_v23, %v3616_v17  ;;  %vm10776_vm11 = vcmp.lt.f32.partialorder %v3618_v0, 0.0004427343 }
 0x364   : > { %v3633_v36 = vmul.f32 -0.5, %v10744_v45  ;;  %5922 = vlog2.f32 %v3639_v5  ;;  %v1356_v58 = vsub.f32 0.0, %v1100_v10  ;;  %v1101_v44 = vand.u32 2147483647, %v10772_v52 }
 0x365   : > { %v5911_v61 = vpop.eup %5910  ;;  %4930 = vst [vmem:[%s6574_s17 + $0x5c8] sm:$0xff] %v4674_v47  ;;  %v3611_v42 = vsel %vm10764_vm10, %v3608_v9, %v3605_v37  ;;  %5924 = vpow2.f32 %v1805_v51  ;;  %v3627_v23 = vand.u32 2147483647, %v10724_v35  ;;  %v838_v39 = vmax.f32 %v10631_v32, %v10762_v40 }
 0x366   : > { %v4419_v63 = vmul.f32 0.9, %v3611_v42  ;;  %v3614_v60 = vmul.f32 0.6931472, %v5911_v61  ;;  %v3626_v15 = vmul.f32 %v10724_v35, %v3625_v20  ;;  %v10792_v11 = vmul.f32 0.1, %v10639_v16 }
 0x367   : > { %v10788_v3 = vpop.eup %5912  ;;  %v1807_v22 = vmul.f32 1.442695, %v1356_v58  ;;  %v1357_v49 = vsub.f32 0.0, %v1101_v44  ;;  %v3642_v2 = vmul.f32 -0.5, %v10753_v34  ;;  %v3634_v19 = vadd.f32 1.0, %v3633_v36 }
 0x368   : > { %v4675_v33 = vadd.f32 %v4419_v63, %v835_v1  ;;  %v3620_v30 = vsel %vm10776_vm11, %v3617_v59, %v3614_v60  ;;  %v3648_v54 = vadd.f32 1.0, %v10788_v3  ;;  %vm10805_vm12 = vcmp.lt.f32.partialorder %v3627_v23, 0.0004427343 }
 0x369   : > { %v4420_v35 = vmul.f32 0.9, %v3620_v30  ;;  %5926 = vpow2.f32 %v1807_v22  ;;  %v1809_v25 = vmul.f32 1.442695, %v1357_v49  ;;  %v3636_v6 = vand.u32 2147483647, %v10744_v45 }
 0x36a   : > { %v5915_v48 = vpop.eup %5914  ;;  %4931 = vst [vmem:[%s6574_s17 + $0x5d0] sm:$0xff] %v4675_v33  ;;  %5928 = vlog2.f32 %v3648_v54  ;;  %v1102_v41 = vand.u32 2147483647, %v10795_v29  ;;  %v3645_v4 = vand.u32 2147483647, %v10753_v34  ;;  %v3643_v0 = vadd.f32 1.0, %v3642_v2 }
 0x36b   : > { %v10811_v1 = vpop.eup %5916  ;;  %v4676_v13 = vadd.f32 %v4420_v35, %v836_v26  ;;  %v3623_v27 = vmul.f32 0.6931472, %v5915_v48  ;;  %5930 = vpow2.f32 %v1809_v25  ;;  %v10818_v46 = vmul.f32 0.1, %v10660_v24 }
 0x36c   : > { %v10821_v57 = vmul.f32 0.1, %v10677_v50  ;;  %v3657_v55 = vadd.f32 1.0, %v10811_v1  ;;  %v10824_v17 = vpop.eup %5918  ;;  %v3635_v38 = vmul.f32 %v10744_v45, %v3634_v19  ;;  %v3651_v31 = vmul.f32 -0.5, %v10788_v3 }
 0x36d   : > { %4932 = vst [vmem:[%s6574_s17 + $0x5d8] sm:$0xff] %v4676_v13  ;;  %v3629_v26 = vsel %vm10805_vm12, %v3626_v15, %v3623_v27  ;;  %v1358_v9 = vsub.f32 0.0, %v1102_v41  ;;  %vm10831_vm13 = vcmp.lt.f32.partialorder %v3636_v6, 0.0004427343  ;;  %v1103_v51 = vand.u32 2147483647, %v10815_v8 }
 0x36e   : > { %v5921_v56 = vpop.eup %5920  ;;  %v4421_v12 = vmul.f32 0.9, %v3629_v26  ;;  %5932 = vlog2.f32 %v3657_v55  ;;  %v839_v37 = vmax.f32 %v10639_v16, %v10792_v11  ;;  %vm10838_vm14 = vcmp.lt.f32.partialorder %v3645_v4, 0.0004427343  ;;  %v10863_v15 = vld [vmem:[%s6391_s30 + $0x638] sm:$0xff]  ;;  %v10897_v55 = vld [vmem:[%s6391_s30 + $0x640] sm:$0xff] }
 0x36f   : > { %v3632_v47 = vmul.f32 0.6931472, %v5921_v56  ;;  %v3666_v45 = vadd.f32 1.0, %v10824_v17  ;;  %v3644_v59 = vmul.f32 %v10753_v34, %v3643_v0  ;;  %v3654_v62 = vand.u32 2147483647, %v10788_v3  ;;  %v10908_v56 = vld [vmem:[%s6391_s30 + $0x650] sm:$0xff] }
 0x370   : > { %v4677_v10 = vadd.f32 %v4421_v12, %v837_v28  ;;  %v1811_v36 = vmul.f32 1.442695, %v1358_v9  ;;  %v3652_v42 = vadd.f32 1.0, %v3651_v31  ;;  %v3660_v58 = vmul.f32 -0.5, %v10811_v1  ;;  %v10905_v9 = vld [vmem:[%s6391_s30 + $0x648] sm:$0xff] }
 0x371   : > { %v5923_v61 = vpop.eup %5922  ;;  %v3638_v16 = vsel %vm10831_vm13, %v3635_v38, %v3632_v47  ;;  %5934 = vlog2.f32 %v3666_v45  ;;  %v1359_v53 = vsub.f32 0.0, %v1103_v51  ;;  %v840_v34 = vmax.f32 %v10660_v24, %v10818_v46 }
 0x372   : > { %v10851_v44 = vpop.eup %5924  ;;  %4933 = vst [vmem:[%s6574_s17 + $0x5e0] sm:$0xff] %v4677_v10  ;;  %v4422_v63 = vmul.f32 0.9, %v3638_v16  ;;  %v3641_v7 = vmul.f32 0.6931472, %v5923_v61  ;;  %5936 = vpow2.f32 %v1811_v36  ;;  %v841_v28 = vmax.f32 %v10677_v50, %v10821_v57 }
 0x373   : > { %v10859_v60 = vmul.f32 0.1, %v10712_v21  ;;  %v3675_v23 = vadd.f32 1.0, %v10851_v44  ;;  %v10871_v49 = vmul.f32 0.1, %v10722_v18  ;;  %v3669_v2 = vmul.f32 -0.5, %v10824_v17 }
 0x374   : > { %v4678_v11 = vadd.f32 %v4422_v63, %v838_v39  ;;  %v3647_v22 = vsel %vm10838_vm14, %v3644_v59, %v3641_v7  ;;  %v1813_v24 = vmul.f32 1.442695, %v1359_v53  ;;  %vm10873_vm15 = vcmp.lt.f32.partialorder %v3654_v62, 0.0004427343 }
 0x375   : > { %v4423_v33 = vmul.f32 0.9, %v3647_v22  ;;  %5938 = vlog2.f32 %v3675_v23  ;;  %v3653_v32 = vmul.f32 %v10788_v3, %v3652_v42  ;;  %v3661_v40 = vadd.f32 1.0, %v3660_v58 }
 0x376   : > { %v10878_v54 = vpop.eup %5926  ;;  %4934 = vst [vmem:[%s6574_s17 + $0x5e8] sm:$0xff] %v4678_v11  ;;  %5940 = vpow2.f32 %v1813_v24  ;;  %v1104_v39 = vand.u32 2147483647, %v10863_v15  ;;  %v3663_v25 = vand.u32 2147483647, %v10811_v1  ;;  %v842_v3 = vmax.f32 %v10712_v21, %v10859_v60 }
 0x377   : > { %v5929_v35 = vpop.eup %5928  ;;  %v4679_v19 = vadd.f32 %v4423_v33, %v839_v37  ;;  %v3672_v48 = vand.u32 2147483647, %v10824_v17  ;;  %v3684_v14 = vadd.f32 1.0, %v10878_v54  ;;  %v10891_v13 = vmul.f32 0.1, %v10758_v43 }
 0x378   : > { %v10886_v6 = vpop.eup %5930  ;;  %v3650_v41 = vmul.f32 0.6931472, %v5929_v35  ;;  %v1360_v27 = vsub.f32 0.0, %v1104_v39  ;;  %v3670_v4 = vadd.f32 1.0, %v3669_v2  ;;  %v3678_v0 = vmul.f32 -0.5, %v10851_v44 }
 0x379   : > { %4935 = vst [vmem:[%s6574_s17 + $0x5f0] sm:$0xff] %v4679_v19  ;;  %5942 = vlog2.f32 %v3684_v14  ;;  %v3693_v46 = vadd.f32 1.0, %v10886_v6  ;;  %v3662_v38 = vmul.f32 %v10811_v1, %v3661_v40  ;;  %v843_v21 = vmax.f32 %v10722_v18, %v10871_v49 }
 0x37a   : > { %v3656_v26 = vsel %vm10873_vm15, %v3653_v32, %v3650_v41  ;;  %v1815_v31 = vmul.f32 1.442695, %v1360_v27  ;;  %vm10910_vm0 = vcmp.lt.f32.partialorder %v3663_v25, 0.0004427343  ;;  %vm10914_vm1 = vcmp.lt.f32.partialorder %v3672_v48, 0.0004427343 }
 0x37b   : > { %v5933_v12 = vpop.eup %5932  ;;  %v4424_v5 = vmul.f32 0.9, %v3656_v26  ;;  %5944 = vlog2.f32 %v3693_v46  ;;  %v3687_v37 = vmul.f32 -0.5, %v10878_v54  ;;  %v1105_v20 = vand.u32 2147483647, %v10897_v55  ;;  %v10952_v41 = vld [vmem:[%s6391_s30 + $0x658] sm:$0xff] }
 0x37c   : > { %v3659_v1 = vmul.f32 0.6931472, %v5933_v12  ;;  %5946 = vpow2.f32 %v1815_v31  ;;  %v3671_v10 = vmul.f32 %v10824_v17, %v3670_v4  ;;  %v3679_v59 = vadd.f32 1.0, %v3678_v0  ;;  %v10958_v46 = vld [vmem:[%s6391_s30 + $0x660] sm:$0xff] }
 0x37d   : > { %v4680_v45 = vadd.f32 %v4424_v5, %v840_v34  ;;  %v1106_v62 = vand.u32 2147483647, %v10905_v9  ;;  %v3681_v16 = vand.u32 2147483647, %v10851_v44  ;;  %v1361_v42 = vsub.f32 0.0, %v1105_v20 }
 0x37e   : > { %v5935_v36 = vpop.eup %5934  ;;  %v3665_v61 = vsel %vm10910_vm0, %v3662_v38, %v3659_v1  ;;  %v1107_v58 = vand.u32 2147483647, %v10908_v56  ;;  %v3696_v34 = vmul.f32 -0.5, %v10886_v6  ;;  %v3688_v60 = vadd.f32 1.0, %v3687_v37 }
 0x37f   : > { %v10926_v63 = vpop.eup %5936  ;;  %4936 = vst [vmem:[%s6574_s17 + $0x5f8] sm:$0xff] %v4680_v45  ;;  %v4425_v7 = vmul.f32 0.9, %v3665_v61  ;;  %v3668_v53 = vmul.f32 0.6931472, %v5935_v36  ;;  %v1362_v17 = vsub.f32 0.0, %v1106_v62  ;;  %v3680_v30 = vmul.f32 %v10851_v44, %v3679_v59 }
 0x380   : > { %v10931_v23 = vmul.f32 0.1, %v10772_v52  ;;  %v3702_v11 = vadd.f32 1.0, %v10926_v63  ;;  %v1817_v22 = vmul.f32 1.442695, %v1361_v42  ;;  %v3697_v57 = vadd.f32 1.0, %v3696_v34 }
 0x381   : > { %v4681_v24 = vadd.f32 %v4425_v7, %v841_v28  ;;  %v3674_v33 = vsel %vm10914_vm1, %v3671_v10, %v3668_v53  ;;  %v1819_v2 = vmul.f32 1.442695, %v1362_v17  ;;  %vm10940_vm2 = vcmp.lt.f32.partialorder %v3681_v16, 0.0004427343  ;;  %v10991_v16 = vld [vmem:[%s6391_s30 + $0x668] sm:$0xff]  ;;  %v10997_v53 = vld [vmem:[%s6391_s30 + $0x670] sm:$0xff] }
 0x382   : > { %v5939_v32 = vpop.eup %5938  ;;  %v4426_v40 = vmul.f32 0.9, %v3674_v33  ;;  %v3690_v35 = vand.u32 2147483647, %v10878_v54  ;;  %5948 = vlog2.f32 %v3702_v11  ;;  %v1363_v44 = vsub.f32 0.0, %v1107_v58 }
 0x383   : > { %v10945_v19 = vpop.eup %5940  ;;  %4937 = vst [vmem:[%s6574_s17 + $0x600] sm:$0xff] %v4681_v24  ;;  %v3677_v50 = vmul.f32 0.6931472, %v5939_v32  ;;  %5950 = vpow2.f32 %v1817_v22  ;;  %v3689_v25 = vmul.f32 %v10878_v54, %v3688_v60  ;;  %v3699_v48 = vand.u32 2147483647, %v10886_v6 }
 0x384   : > { %v4682_v28 = vadd.f32 %v4426_v40, %v842_v3  ;;  %v3711_v14 = vadd.f32 1.0, %v10945_v19  ;;  %v3705_v4 = vmul.f32 -0.5, %v10926_v63  ;;  %5952 = vpow2.f32 %v1819_v2 }
 0x385   : > { %v3683_v27 = vsel %vm10940_vm2, %v3680_v30, %v3677_v50  ;;  %v1821_v0 = vmul.f32 1.442695, %v1363_v44  ;;  %v844_v54 = vmax.f32 %v10758_v43, %v10891_v13  ;;  %vm10963_vm3 = vcmp.lt.f32.partialorder %v3690_v35, 0.0004427343 }
 0x386   : > { %v5943_v26 = vpop.eup %5942  ;;  %4938 = vst [vmem:[%s6574_s17 + $0x608] sm:$0xff] %v4682_v28  ;;  %v4427_v3 = vmul.f32 0.9, %v3683_v27  ;;  %5954 = vlog2.f32 %v3711_v14  ;;  %v3698_v12 = vmul.f32 %v10886_v6, %v3697_v57  ;;  %v1108_v5 = vand.u32 2147483647, %v10952_v41 }
 0x387   : > { %v3686_v31 = vmul.f32 0.6931472, %v5943_v26  ;;  %5956 = vpow2.f32 %v1821_v0  ;;  %v845_v43 = vmax.f32 %v10772_v52, %v10931_v23  ;;  %vm10974_vm4 = vcmp.lt.f32.partialorder %v3699_v48, 0.0004427343  ;;  %v11004_v23 = vld [vmem:[%s6391_s30 + $0x678] sm:$0xff] }
 0x388   : > { %v5945_v51 = vpop.eup %5944  ;;  %v4683_v47 = vadd.f32 %v4427_v3, %v843_v21  ;;  %v1109_v1 = vand.u32 2147483647, %v10958_v46  ;;  %v3706_v45 = vadd.f32 1.0, %v3705_v4  ;;  %v1364_v18 = vsub.f32 0.0, %v1108_v5 }
 0x389   : > { %v10979_v37 = vpop.eup %5946  ;;  %v3692_v6 = vsel %vm10963_vm3, %v3689_v25, %v3686_v31  ;;  %v3695_v20 = vmul.f32 0.6931472, %v5945_v51  ;;  %v590_v52 = vmul.f32 0.1, %v10795_v29  ;;  %v3714_v21 = vmul.f32 -0.5, %v10945_v19 }
 0x38a   : > { %4939 = vst [vmem:[%s6574_s17 + $0x610] sm:$0xff] %v4683_v47  ;;  %v4428_v49 = vmul.f32 0.9, %v3692_v6  ;;  %v3720_v10 = vadd.f32 1.0, %v10979_v37  ;;  %v3708_v62 = vand.u32 2147483647, %v10926_v63  ;;  %v3707_v34 = vmul.f32 %v10926_v63, %v3706_v45 }
 0x38b   : > { %v3701_v59 = vsel %vm10974_vm4, %v3698_v12, %v3695_v20  ;;  %v1823_v36 = vmul.f32 1.442695, %v1364_v18  ;;  %v1365_v61 = vsub.f32 0.0, %v1109_v1  ;;  %v10994_v7 = vmul.f32 0.1, %v10815_v8 }
 0x38c   : > { %v4684_v42 = vadd.f32 %v4428_v49, %v844_v54  ;;  %v4429_v58 = vmul.f32 0.9, %v3701_v59  ;;  %5958 = vlog2.f32 %v3720_v10  ;;  %v11001_v17 = vmul.f32 0.1, %v10863_v15 }
 0x38d   : > { %5960 = vpow2.f32 %v1823_v36  ;;  %v1825_v60 = vmul.f32 1.442695, %v1365_v61  ;;  %v3715_v22 = vadd.f32 1.0, %v3714_v21  ;;  %v3717_v24 = vand.u32 2147483647, %v10945_v19 }
 0x38e   : > { %4940 = vst [vmem:[%s6574_s17 + $0x618] sm:$0xff] %v4684_v42  ;;  %v4685_v11 = vadd.f32 %v4429_v58, %v845_v43  ;;  %v1110_v33 = vand.u32 2147483647, %v10991_v16  ;;  %vm11009_vm5 = vcmp.lt.f32.partialorder %v3708_v62, 0.0004427343  ;;  %v3723_v63 = vmul.f32 -0.5, %v10979_v37 }
 0x38f   : > { %v5949_v30 = vpop.eup %5948  ;;  %5962 = vpow2.f32 %v1825_v60  ;;  %v1111_v32 = vand.u32 2147483647, %v10997_v53  ;;  %v846_v39 = vmax.f32 %v10795_v29, %v590_v52  ;;  %v1112_v57 = vand.u32 2147483647, %v11004_v23  ;;  %v11058_v52 = vld [vmem:[%s6391_s30 + $0x680] sm:$0xff]  ;;  %v11062_v62 = vld [vmem:[%s6391_s30 + $0x688] sm:$0xff] }
 0x390   : > { %v11015_v40 = vpop.eup %5950  ;;  %4941 = vst [vmem:[%s6574_s17 + $0x620] sm:$0xff] %v4685_v11  ;;  %v3704_v35 = vmul.f32 0.6931472, %v5949_v30  ;;  %v1366_v50 = vsub.f32 0.0, %v1110_v33  ;;  %v847_v44 = vmax.f32 %v10815_v8, %v10994_v7  ;;  %v848_v28 = vmax.f32 %v10863_v15, %v11001_v17  ;;  %v11113_v15 = vld [vmem:[%s6391_s30 + $0x6a0] sm:$0xff] }
 0x391   : > { %v11025_v25 = vmul.f32 0.1, %v10897_v55  ;;  %v3729_v48 = vadd.f32 1.0, %v11015_v40  ;;  %v11028_v14 = vpop.eup %5952  ;;  %v3716_v27 = vmul.f32 %v10945_v19, %v3715_v22  ;;  %vm11033_vm6 = vcmp.lt.f32.partialorder %v3717_v24, 0.0004427343 }
 0x392   : > { %v3710_v29 = vsel %vm11009_vm5, %v3707_v34, %v3704_v35  ;;  %v11038_v8 = vmul.f32 0.1, %v10905_v9  ;;  %v3724_v3 = vadd.f32 1.0, %v3723_v63  ;;  %v1367_v54 = vsub.f32 0.0, %v1111_v32  ;;  %v11085_v35 = vld [vmem:[%s6391_s30 + $0x690] sm:$0xff] }
 0x393   : > { %v5955_v0 = vpop.eup %5954  ;;  %v4430_v26 = vmul.f32 0.9, %v3710_v29  ;;  %5964 = vlog2.f32 %v3729_v48  ;;  %v3738_v12 = vadd.f32 1.0, %v11028_v14  ;;  %v1827_v19 = vmul.f32 1.442695, %v1366_v50 }
 0x394   : > { %v11040_v38 = vpop.eup %5956  ;;  %v3713_v31 = vmul.f32 0.6931472, %v5955_v0  ;;  %v1368_v5 = vsub.f32 0.0, %v1112_v57  ;;  %v3726_v47 = vand.u32 2147483647, %v10979_v37  ;;  %v849_v43 = vmax.f32 %v10897_v55, %v11025_v25 }
 0x395   : > { %v4686_v51 = vadd.f32 %v4430_v26, %v846_v39  ;;  %v3747_v13 = vadd.f32 1.0, %v11040_v38  ;;  %v850_v6 = vmax.f32 %v10905_v9, %v11038_v8  ;;  %5966 = vlog2.f32 %v3738_v12 }
 0x396   : > { %v3719_v1 = vsel %vm11033_vm6, %v3716_v27, %v3713_v31  ;;  %v11052_v20 = vmul.f32 0.1, %v10908_v56  ;;  %v3725_v18 = vmul.f32 %v10979_v37, %v3724_v3  ;;  %v3732_v49 = vmul.f32 -0.5, %v11015_v40 }
 0x397   : > { %4942 = vst [vmem:[%s6574_s17 + $0x628] sm:$0xff] %v4686_v51  ;;  %v4431_v45 = vmul.f32 0.9, %v3719_v1  ;;  %5968 = vlog2.f32 %v3747_v13  ;;  %v3741_v21 = vmul.f32 -0.5, %v11028_v14  ;;  %v1829_v10 = vmul.f32 1.442695, %v1367_v54 }
 0x398   : > { %5970 = vpow2.f32 %v1827_v19  ;;  %v1831_v59 = vmul.f32 1.442695, %v1368_v5  ;;  %vm11064_vm7 = vcmp.lt.f32.partialorder %v3726_v47, 0.0004427343  ;;  %v3735_v37 = vand.u32 2147483647, %v11015_v40 }
 0x399   : > { %v5959_v36 = vpop.eup %5958  ;;  %v4687_v61 = vadd.f32 %v4431_v45, %v847_v44  ;;  %v11070_v58 = vmul.f32 0.1, %v10952_v41  ;;  %v3750_v60 = vmul.f32 -0.5, %v11040_v38  ;;  %5972 = vpow2.f32 %v1829_v10  ;;  %v11110_v51 = vld [vmem:[%s6391_s30 + $0x698] sm:$0xff] }
 0x39a   : > { %v11072_v7 = vpop.eup %5960  ;;  %v3722_v34 = vmul.f32 0.6931472, %v5959_v36  ;;  %v1113_v11 = vand.u32 2147483647, %v11058_v52  ;;  %v3733_v22 = vadd.f32 1.0, %v3732_v49  ;;  %5974 = vpow2.f32 %v1831_v59 }
 0x39b   : > { %4943 = vst [vmem:[%s6574_s17 + $0x630] sm:$0xff] %v4687_v61  ;;  %v3744_v24 = vand.u32 2147483647, %v11028_v14  ;;  %v3756_v33 = vadd.f32 1.0, %v11072_v7  ;;  %v3742_v63 = vadd.f32 1.0, %v3741_v21  ;;  %v3751_v48 = vadd.f32 1.0, %v3750_v60 }
 0x39c   : > { %v11079_v30 = vpop.eup %5962  ;;  %v3728_v2 = vsel %vm11064_vm7, %v3725_v18, %v3722_v34  ;;  %v1369_v32 = vsub.f32 0.0, %v1113_v11  ;;  %v1114_v39 = vand.u32 2147483647, %v11062_v62  ;;  %v11088_v57 = vmul.f32 0.1, %v10958_v46 }
 0x39d   : > { %v4432_v50 = vmul.f32 0.9, %v3728_v2  ;;  %5976 = vlog2.f32 %v3756_v33  ;;  %v11091_v44 = vmul.f32 0.1, %v10991_v16  ;;  %v3753_v29 = vand.u32 2147483647, %v11040_v38 }
 0x39e   : > { %v3765_v27 = vadd.f32 1.0, %v11079_v30  ;;  %v1833_v4 = vmul.f32 1.442695, %v1369_v32  ;;  %v3734_v26 = vmul.f32 %v11015_v40, %v3733_v22  ;;  %vm11099_vm8 = vcmp.lt.f32.partialorder %v3735_v37, 0.0004427343 }
 0x39f   : > { %v4688_v0 = vadd.f32 %v4432_v50, %v848_v28  ;;  %v1370_v54 = vsub.f32 0.0, %v1114_v39  ;;  %v3743_v12 = vmul.f32 %v11028_v14, %v3742_v63  ;;  %vm11104_vm9 = vcmp.lt.f32.partialorder %v3744_v24, 0.0004427343 }
 0x3a0   : > { %v5965_v31 = vpop.eup %5964  ;;  %5978 = vlog2.f32 %v3765_v27  ;;  %v1115_v5 = vand.u32 2147483647, %v11085_v35  ;;  %v3759_v40 = vmul.f32 -0.5, %v11072_v7  ;;  %v3752_v47 = vmul.f32 %v11040_v38, %v3751_v48 }
 0x3a1   : > { %4944 = vst [vmem:[%s6574_s17 + $0x638] sm:$0xff] %v4688_v0  ;;  %v3731_v17 = vmul.f32 0.6931472, %v5965_v31  ;;  %5980 = vpow2.f32 %v1833_v4  ;;  %v1835_v28 = vmul.f32 1.442695, %v1370_v54  ;;  %v3768_v13 = vmul.f32 -0.5, %v11079_v30 }
 0x3a2   : > { %vm11118_vm10 = vcmp.lt.f32.partialorder %v3753_v29, 0.0004427343  ;;  %v1371_v1 = vsub.f32 0.0, %v1115_v5  ;;  %v5967_v45 = vpop.eup %5966  ;;  %v1116_v49 = vand.u32 2147483647, %v11110_v51  ;;  %v851_v38 = vmax.f32 %v10908_v56, %v11052_v20  ;;  %v11230_v4 = vld [vmem:[%s6391_s30 + $0x6b8] sm:$0xff] }
 0x3a3   : > { %v3737_v18 = vsel %vm11099_vm8, %v3734_v26, %v3731_v17  ;;  %5982 = vpow2.f32 %v1835_v28  ;;  %v1117_v21 = vand.u32 2147483647, %v11113_v15  ;;  %v3740_v36 = vmul.f32 0.6931472, %v5967_v45  ;;  %v11184_v28 = vld [vmem:[%s6391_s30 + $0x6a8] sm:$0xff] }
 0x3a4   : > { %v5969_v10 = vpop.eup %5968  ;;  %v4433_v59 = vmul.f32 0.9, %v3737_v18  ;;  %v1837_v61 = vmul.f32 1.442695, %v1371_v1  ;;  %v852_v34 = vmax.f32 %v10952_v41, %v11070_v58  ;;  %v3760_v60 = vadd.f32 1.0, %v3759_v40 }
 0x3a5   : > { %v11129_v42 = vpop.eup %5970  ;;  %v3749_v37 = vmul.f32 0.6931472, %v5969_v10  ;;  %v3762_v11 = vand.u32 2147483647, %v11072_v7  ;;  %v3746_v24 = vsel %vm11104_vm9, %v3743_v12, %v3740_v36  ;;  %v3769_v33 = vadd.f32 1.0, %v3768_v13  ;;  %v11197_v10 = vld [vmem:[%s6391_s30 + $0x6b0] sm:$0xff] }
 0x3a6   : > { %v4689_v22 = vadd.f32 %v4433_v59, %v849_v43  ;;  %v3774_v56 = vadd.f32 1.0, %v11129_v42  ;;  %v11140_v20 = vpop.eup %5972  ;;  %v4434_v2 = vmul.f32 0.9, %v3746_v24  ;;  %5984 = vpow2.f32 %v1837_v61 }
 0x3a7   : > { %v3755_v63 = vsel %vm11118_vm10, %v3752_v47, %v3749_v37  ;;  %v1372_v41 = vsub.f32 0.0, %v1116_v49  ;;  %v11144_v58 = vpop.eup %5974  ;;  %v3783_v25 = vadd.f32 1.0, %v11140_v20  ;;  %v1373_v43 = vsub.f32 0.0, %v1117_v21 }
 0x3a8   : > { %4945 = vst [vmem:[%s6574_s17 + $0x640] sm:$0xff] %v4689_v22  ;;  %v4435_v55 = vmul.f32 0.9, %v3755_v63  ;;  %5986 = vlog2.f32 %v3774_v56  ;;  %v4690_v32 = vadd.f32 %v4434_v2, %v850_v6  ;;  %v3761_v39 = vmul.f32 %v11072_v7, %v3760_v60 }
 0x3a9   : > { %v3771_v50 = vand.u32 2147483647, %v11079_v30  ;;  %v11154_v48 = vmul.f32 0.1, %v10997_v53  ;;  %vm11156_vm11 = vcmp.lt.f32.partialorder %v3762_v11, 0.0004427343  ;;  %5988 = vlog2.f32 %v3783_v25 }
 0x3aa   : > { %v5977_v29 = vpop.eup %5976  ;;  %v4691_v27 = vadd.f32 %v4435_v55, %v851_v38  ;;  %v3792_v0 = vadd.f32 1.0, %v11144_v58  ;;  %4946 = vst [vmem:[%s6574_s17 + $0x648] sm:$0xff] %v4690_v32  ;;  %v853_v9 = vmax.f32 %v10958_v46, %v11088_v57  ;;  %v3770_v8 = vmul.f32 %v11079_v30, %v3769_v33 }
 0x3ab   : > { %v3758_v26 = vmul.f32 0.6931472, %v5977_v29  ;;  %v854_v6 = vmax.f32 %v10991_v16, %v11091_v44  ;;  %v3777_v7 = vmul.f32 -0.5, %v11129_v42  ;;  %v1839_v3 = vmul.f32 1.442695, %v1372_v41 }
 0x3ac   : > { %4947 = vst [vmem:[%s6574_s17 + $0x650] sm:$0xff] %v4691_v27  ;;  %5990 = vlog2.f32 %v3792_v0  ;;  %v1841_v54 = vmul.f32 1.442695, %v1373_v43  ;;  %vm11171_vm12 = vcmp.lt.f32.partialorder %v3771_v50, 0.0004427343  ;;  %v855_v46 = vmax.f32 %v10997_v53, %v11154_v48 }
 0x3ad   : > { %v5979_v31 = vpop.eup %5978  ;;  %v3764_v12 = vsel %vm11156_vm11, %v3761_v39, %v3758_v26  ;;  %v11178_v30 = vmul.f32 0.1, %v11004_v23  ;;  %v3786_v40 = vmul.f32 -0.5, %v11140_v20  ;;  %5992 = vpow2.f32 %v1839_v3 }
 0x3ae   : > { %v11180_v57 = vpop.eup %5980  ;;  %v4436_v5 = vmul.f32 0.9, %v3764_v12  ;;  %v3767_v17 = vmul.f32 0.6931472, %v5979_v31  ;;  %v3780_v47 = vand.u32 2147483647, %v11129_v42  ;;  %5994 = vpow2.f32 %v1841_v54 }
 0x3af   : > { %v3795_v14 = vmul.f32 -0.5, %v11144_v58  ;;  %v11189_v13 = vmul.f32 0.1, %v11058_v52  ;;  %v3801_v1 = vadd.f32 1.0, %v11180_v57  ;;  %v3778_v21 = vadd.f32 1.0, %v3777_v7 }
 0x3b0   : > { %v11192_v45 = vpop.eup %5982  ;;  %v4692_v18 = vadd.f32 %v4436_v5, %v852_v34  ;;  %v3773_v49 = vsel %vm11171_vm12, %v3770_v8, %v3767_v17  ;;  %v3789_v36 = vand.u32 2147483647, %v11140_v20  ;;  %v3798_v38 = vand.u32 2147483647, %v11144_v58 }
 0x3b1   : > { %v4437_v59 = vmul.f32 0.9, %v3773_v49  ;;  %5996 = vlog2.f32 %v3801_v1  ;;  %v3787_v61 = vadd.f32 1.0, %v3786_v40  ;;  %v856_v37 = vmax.f32 %v11004_v23, %v11178_v30 }
 0x3b2   : > { %4948 = vst [vmem:[%s6574_s17 + $0x658] sm:$0xff] %v4692_v18  ;;  %v3810_v34 = vadd.f32 1.0, %v11192_v45  ;;  %v1118_v60 = vand.u32 2147483647, %v11184_v28  ;;  %v3796_v22 = vadd.f32 1.0, %v3795_v14  ;;  %v3779_v2 = vmul.f32 %v11129_v42, %v3778_v21 }
 0x3b3   : > { %v4693_v11 = vadd.f32 %v4437_v59, %v853_v9  ;;  %v11207_v24 = vmul.f32 0.1, %v11062_v62  ;;  %v1119_v33 = vand.u32 2147483647, %v11197_v10  ;;  %v11210_v56 = vpop.eup %5984  ;;  %vm11213_vm13 = vcmp.lt.f32.partialorder %v3780_v47, 0.0004427343 }
 0x3b4   : > { %5998 = vlog2.f32 %v3810_v34  ;;  %v1374_v41 = vsub.f32 0.0, %v1118_v60  ;;  %vm11218_vm14 = vcmp.lt.f32.partialorder %v3789_v36, 0.0004427343  ;;  %vm11222_vm15 = vcmp.lt.f32.partialorder %v3798_v38, 0.0004427343 }
 0x3b5   : > { %v5987_v55 = vpop.eup %5986  ;;  %4949 = vst [vmem:[%s6574_s17 + $0x660] sm:$0xff] %v4693_v11  ;;  %v3804_v32 = vmul.f32 -0.5, %v11180_v57  ;;  %v3819_v42 = vadd.f32 1.0, %v11210_v56  ;;  %v3788_v50 = vmul.f32 %v11140_v20, %v3787_v61  ;;  %v1375_v27 = vsub.f32 0.0, %v1119_v33 }
 0x3b6   : > { %v3776_v39 = vmul.f32 0.6931472, %v5987_v55  ;;  %v1843_v29 = vmul.f32 1.442695, %v1374_v41  ;;  %v5989_v0 = vpop.eup %5988  ;;  %v3797_v26 = vmul.f32 %v11144_v58, %v3796_v22  ;;  %v3807_v9 = vand.u32 2147483647, %v11180_v57 }
 0x3b7   : > { %v3813_v8 = vmul.f32 -0.5, %v11192_v45  ;;  %6000 = vlog2.f32 %v3819_v42  ;;  %v3785_v3 = vmul.f32 0.6931472, %v5989_v0  ;;  %v1845_v54 = vmul.f32 1.442695, %v1375_v27  ;;  %v11241_v58 = vld [vmem:[%s6391_s30 + $0x6c0] sm:$0xff] }
 0x3b8   : > { %v3782_v7 = vsel %vm11213_vm13, %v3779_v2, %v3776_v39  ;;  %6002 = vpow2.f32 %v1843_v29  ;;  %v857_v12 = vmax.f32 %v11058_v52, %v11189_v13  ;;  %v3805_v19 = vadd.f32 1.0, %v3804_v32  ;;  %v11279_v41 = vld [vmem:[%s6391_s30 + $0x6c8] sm:$0xff]  ;;  %v11282_v55 = vld [vmem:[%s6391_s30 + $0x6d0] sm:$0xff] }
 0x3b9   : > { %v5991_v20 = vpop.eup %5990  ;;  %v4438_v31 = vmul.f32 0.9, %v3782_v7  ;;  %v1120_v5 = vand.u32 2147483647, %v11230_v4  ;;  %v3791_v17 = vsel %vm11218_vm14, %v3788_v50, %v3785_v3  ;;  %v3816_v47 = vand.u32 2147483647, %v11192_v45 }
 0x3ba   : > { %v3794_v40 = vmul.f32 0.6931472, %v5991_v20  ;;  %6004 = vpow2.f32 %v1845_v54  ;;  %v11246_v14 = vpop.eup %5992  ;;  %v4439_v52 = vmul.f32 0.9, %v3791_v17  ;;  %v3822_v13 = vmul.f32 -0.5, %v11210_v56 }
 0x3bb   : > { %v4694_v1 = vadd.f32 %v4438_v31, %v854_v6  ;;  %v1376_v18 = vsub.f32 0.0, %v1120_v5  ;;  %v3814_v21 = vadd.f32 1.0, %v3813_v8  ;;  %v3828_v59 = vadd.f32 1.0, %v11246_v14  ;;  %v11256_v38 = vpop.eup %5994  ;;  %v11368_v8 = vld [vmem:[%s6391_s30 + $0x6f0] sm:$0xff] }
 0x3bc   : > { %v3800_v49 = vsel %vm11222_vm15, %v3797_v26, %v3794_v40  ;;  %v1121_v36 = vand.u32 2147483647, %v11241_v58  ;;  %v4695_v16 = vadd.f32 %v4439_v52, %v855_v46  ;;  %v3806_v6 = vmul.f32 %v11180_v57, %v3805_v19 }
 0x3bd   : > { %4950 = vst [vmem:[%s6574_s17 + $0x668] sm:$0xff] %v4694_v1  ;;  %v4440_v44 = vmul.f32 0.9, %v3800_v49  ;;  %v1847_v61 = vmul.f32 1.442695, %v1376_v18  ;;  %6006 = vlog2.f32 %v3828_v59  ;;  %v3837_v22 = vadd.f32 1.0, %v11256_v38 }
 0x3be   : > { %v5997_v34 = vpop.eup %5996  ;;  %vm11263_vm0 = vcmp.lt.f32.partialorder %v3807_v9, 0.0004427343  ;;  %v603_v11 = vmul.f32 0.1, %v11085_v35  ;;  %4951 = vst [vmem:[%s6574_s17 + $0x670] sm:$0xff] %v4695_v16  ;;  %v3823_v46 = vadd.f32 1.0, %v3822_v13  ;;  %v3815_v33 = vmul.f32 %v11192_v45, %v3814_v21 }
 0x3bf   : > { %v4696_v53 = vadd.f32 %v4440_v44, %v856_v37  ;;  %v3803_v48 = vmul.f32 0.6931472, %v5997_v34  ;;  %v11274_v57 = vmul.f32 0.1, %v11110_v51  ;;  %v3825_v2 = vand.u32 2147483647, %v11210_v56 }
 0x3c0   : > { %6008 = vlog2.f32 %v3837_v22  ;;  %v1377_v63 = vsub.f32 0.0, %v1121_v36  ;;  %vm11287_vm1 = vcmp.lt.f32.partialorder %v3816_v47, 0.0004427343  ;;  %v3831_v37 = vmul.f32 -0.5, %v11246_v14  ;;  %v11324_v21 = vld [vmem:[%s6391_s30 + $0x6e0] sm:$0xff] }
 0x3c1   : > { %v5999_v25 = vpop.eup %5998  ;;  %4952 = vst [vmem:[%s6574_s17 + $0x678] sm:$0xff] %v4696_v53  ;;  %v3809_v23 = vsel %vm11263_vm0, %v3806_v6, %v3803_v48  ;;  %6010 = vpow2.f32 %v1847_v61  ;;  %v858_v43 = vmax.f32 %v11062_v62, %v11207_v24  ;;  %v3824_v39 = vmul.f32 %v11210_v56, %v3823_v46 }
 0x3c2   : > { %v4441_v45 = vmul.f32 0.9, %v3809_v23  ;;  %v3812_v32 = vmul.f32 0.6931472, %v5999_v25  ;;  %v1849_v42 = vmul.f32 1.442695, %v1377_v63  ;;  %v859_v56 = vmax.f32 %v11085_v35, %v603_v11 }
 0x3c3   : > { %v3840_v50 = vmul.f32 -0.5, %v11256_v38  ;;  %v1122_v29 = vand.u32 2147483647, %v11279_v41  ;;  %v1123_v27 = vand.u32 2147483647, %v11282_v55  ;;  %v3832_v54 = vadd.f32 1.0, %v3831_v37 }
 0x3c4   : > { %v6001_v0 = vpop.eup %6000  ;;  %v4697_v26 = vadd.f32 %v4441_v45, %v857_v12  ;;  %v3818_v9 = vsel %vm11287_vm1, %v3815_v33, %v3812_v32  ;;  %vm11300_vm2 = vcmp.lt.f32.partialorder %v3825_v2, 0.0004427343  ;;  %6012 = vpow2.f32 %v1849_v42  ;;  %v11315_v35 = vld [vmem:[%s6391_s30 + $0x6d8] sm:$0xff] }
 0x3c5   : > { %v11304_v62 = vpop.eup %6002  ;;  %v4442_v24 = vmul.f32 0.9, %v3818_v9  ;;  %v3821_v7 = vmul.f32 0.6931472, %v6001_v0  ;;  %v1378_v3 = vsub.f32 0.0, %v1122_v29  ;;  %v1379_v12 = vsub.f32 0.0, %v1123_v27 }
 0x3c6   : > { %4953 = vst [vmem:[%s6574_s17 + $0x680] sm:$0xff] %v4697_v26  ;;  %v3834_v20 = vand.u32 2147483647, %v11246_v14  ;;  %v3846_v31 = vadd.f32 1.0, %v11304_v62  ;;  %v3841_v40 = vadd.f32 1.0, %v3840_v50  ;;  %v860_v13 = vmax.f32 %v11110_v51, %v11274_v57 }
 0x3c7   : > { %v11310_v19 = vpop.eup %6004  ;;  %v4698_v5 = vadd.f32 %v4442_v24, %v858_v43  ;;  %v3827_v17 = vsel %vm11300_vm2, %v3824_v39, %v3821_v7  ;;  %v1851_v47 = vmul.f32 1.442695, %v1378_v3  ;;  %v605_v52 = vmul.f32 0.1, %v11113_v15  ;;  %v11372_v3 = vld [vmem:[%s6391_s30 + $0x6f8] sm:$0xff] }
 0x3c8   : > { %v4443_v1 = vmul.f32 0.9, %v3827_v17  ;;  %6014 = vlog2.f32 %v3846_v31  ;;  %v3843_v18 = vand.u32 2147483647, %v11256_v38  ;;  %v3855_v49 = vadd.f32 1.0, %v11310_v19 }
 0x3c9   : > { %4954 = vst [vmem:[%s6574_s17 + $0x688] sm:$0xff] %v4698_v5  ;;  %6016 = vpow2.f32 %v1851_v47  ;;  %v3833_v36 = vmul.f32 %v11246_v14, %v3832_v54  ;;  %v1853_v16 = vmul.f32 1.442695, %v1379_v12  ;;  %v1124_v44 = vand.u32 2147483647, %v11315_v35  ;;  %v11337_v14 = vld [vmem:[%s6391_s30 + $0x6e8] sm:$0xff] }
 0x3ca   : > { %v4699_v59 = vadd.f32 %v4443_v1, %v859_v56  ;;  %v6007_v6 = vpop.eup %6006  ;;  %vm11328_vm3 = vcmp.lt.f32.partialorder %v3834_v20, 0.0004427343  ;;  %v3842_v51 = vmul.f32 %v11256_v38, %v3841_v40  ;;  %v3849_v34 = vmul.f32 -0.5, %v11304_v62 }
 0x3cb   : > { %6018 = vlog2.f32 %v3855_v49  ;;  %v3830_v60 = vmul.f32 0.6931472, %v6007_v6  ;;  %v1380_v11 = vsub.f32 0.0, %v1124_v44  ;;  %v1125_v22 = vand.u32 2147483647, %v11324_v21 }
 0x3cc   : > { %4955 = vst [vmem:[%s6574_s17 + $0x690] sm:$0xff] %v4699_v59  ;;  %6020 = vpow2.f32 %v1853_v16  ;;  %v861_v48 = vmax.f32 %v11113_v15, %v605_v52  ;;  %vm11340_vm4 = vcmp.lt.f32.partialorder %v3843_v18, 0.0004427343  ;;  %v11345_v38 = vmul.f32 0.1, %v11184_v28 }
 0x3cd   : > { %v6009_v53 = vpop.eup %6008  ;;  %v11348_v57 = vmul.f32 0.1, %v11197_v10  ;;  %v3836_v2 = vsel %vm11328_vm3, %v3833_v36, %v3830_v60  ;;  %v1855_v25 = vmul.f32 1.442695, %v1380_v11  ;;  %v1381_v23 = vsub.f32 0.0, %v1125_v22 }
 0x3ce   : > { %v11350_v33 = vpop.eup %6010  ;;  %v3839_v63 = vmul.f32 0.6931472, %v6009_v53  ;;  %v4444_v30 = vmul.f32 0.9, %v3836_v2  ;;  %v3858_v15 = vmul.f32 -0.5, %v11310_v19  ;;  %v3850_v32 = vadd.f32 1.0, %v3849_v34 }
 0x3cf   : > { %v3864_v37 = vadd.f32 1.0, %v11350_v33  ;;  %v1126_v45 = vand.u32 2147483647, %v11337_v14  ;;  %6022 = vpow2.f32 %v1855_v25  ;;  %v1857_v42 = vmul.f32 1.442695, %v1381_v23 }
 0x3d0   : > { %v3845_v43 = vsel %vm11340_vm4, %v3842_v51, %v3839_v63  ;;  %v4700_v50 = vadd.f32 %v4444_v30, %v860_v13  ;;  %v3852_v27 = vand.u32 2147483647, %v11304_v62  ;;  %v3861_v0 = vand.u32 2147483647, %v11310_v19 }
 0x3d1   : > { %v11359_v39 = vpop.eup %6012  ;;  %v4445_v29 = vmul.f32 0.9, %v3845_v43  ;;  %6024 = vlog2.f32 %v3864_v37  ;;  %v11364_v26 = vmul.f32 0.1, %v11230_v4  ;;  %v3859_v56 = vadd.f32 1.0, %v3858_v15 }
 0x3d2   : > { %v3873_v9 = vadd.f32 1.0, %v11359_v39  ;;  %4956 = vst [vmem:[%s6574_s17 + $0x698] sm:$0xff] %v4700_v50  ;;  %6026 = vpow2.f32 %v1857_v42  ;;  %v1382_v7 = vsub.f32 0.0, %v1126_v45  ;;  %v862_v54 = vmax.f32 %v11184_v28, %v11345_v38 }
 0x3d3   : > { %v4701_v24 = vadd.f32 %v4445_v29, %v861_v48  ;;  %v3851_v20 = vmul.f32 %v11304_v62, %v3850_v32  ;;  %v3867_v31 = vmul.f32 -0.5, %v11350_v33  ;;  %vm11379_vm5 = vcmp.lt.f32.partialorder %v3852_v27, 0.0004427343  ;;  %v11413_v48 = vld [vmem:[%s6391_s30 + $0x700] sm:$0xff] }
 0x3d4   : > { %6028 = vlog2.f32 %v3873_v9  ;;  %v863_v17 = vmax.f32 %v11197_v10, %v11348_v57  ;;  %v1859_v40 = vmul.f32 1.442695, %v1382_v7  ;;  %v1127_v47 = vand.u32 2147483647, %v11368_v8 }
 0x3d5   : > { %v6015_v12 = vpop.eup %6014  ;;  %4957 = vst [vmem:[%s6574_s17 + $0x6a0] sm:$0xff] %v4701_v24  ;;  %v864_v62 = vmax.f32 %v11230_v4, %v11364_v26  ;;  %v11391_v52 = vmul.f32 0.1, %v11241_v58  ;;  %v1128_v13 = vand.u32 2147483647, %v11372_v3  ;;  %v3860_v18 = vmul.f32 %v11310_v19, %v3859_v56 }
 0x3d6   : > { %v11386_v1 = vpop.eup %6016  ;;  %v3848_v28 = vmul.f32 0.6931472, %v6015_v12  ;;  %vm11395_vm6 = vcmp.lt.f32.partialorder %v3861_v0, 0.0004427343  ;;  %6030 = vpow2.f32 %v1859_v40  ;;  %v3868_v16 = vadd.f32 1.0, %v3867_v31 }
 0x3d7   : > { %v3882_v10 = vadd.f32 1.0, %v11386_v1  ;;  %v3876_v44 = vmul.f32 -0.5, %v11359_v39  ;;  %v1383_v6 = vsub.f32 0.0, %v1127_v47  ;;  %v1384_v34 = vsub.f32 0.0, %v1128_v13 }
 0x3d8   : > { %v6019_v59 = vpop.eup %6018  ;;  %v3854_v36 = vsel %vm11379_vm5, %v3851_v20, %v3848_v28  ;;  %v3870_v60 = vand.u32 2147483647, %v11350_v33  ;;  %v865_v11 = vmax.f32 %v11241_v58, %v11391_v52  ;;  %v11409_v22 = vmul.f32 0.1, %v11279_v41 }
 0x3d9   : > { %v11403_v61 = vpop.eup %6020  ;;  %v4446_v51 = vmul.f32 0.9, %v3854_v36  ;;  %v3857_v19 = vmul.f32 0.6931472, %v6019_v59  ;;  %6032 = vlog2.f32 %v3882_v10  ;;  %v3879_v57 = vand.u32 2147483647, %v11359_v39 }
 0x3da   : > { %v3891_v53 = vadd.f32 1.0, %v11403_v61  ;;  %v1861_v2 = vmul.f32 1.442695, %v1383_v6  ;;  %v3869_v25 = vmul.f32 %v11350_v33, %v3868_v16  ;;  %v3877_v23 = vadd.f32 1.0, %v3876_v44 }
 0x3db   : > { %v4702_v46 = vadd.f32 %v4446_v51, %v862_v54  ;;  %v3863_v38 = vsel %vm11395_vm6, %v3860_v18, %v3857_v19  ;;  %v3885_v15 = vmul.f32 -0.5, %v11386_v1  ;;  %v1863_v37 = vmul.f32 1.442695, %v1384_v34  ;;  %v11469_v34 = vld [vmem:[%s6391_s30 + $0x710] sm:$0xff] }
 0x3dc   : > { %v4447_v63 = vmul.f32 0.9, %v3863_v38  ;;  %6034 = vlog2.f32 %v3891_v53  ;;  %v11419_v30 = vpop.eup %6022  ;;  %v1129_v45 = vand.u32 2147483647, %v11413_v48  ;;  %vm11424_vm7 = vcmp.lt.f32.partialorder %v3870_v60, 0.0004427343 }
 0x3dd   : > { %4958 = vst [vmem:[%s6574_s17 + $0x6a8] sm:$0xff] %v4702_v46  ;;  %6036 = vpow2.f32 %v1861_v2  ;;  %v11429_v33 = vmul.f32 0.1, %v11282_v55  ;;  %v3900_v50 = vadd.f32 1.0, %v11419_v30  ;;  %v866_v27 = vmax.f32 %v11279_v41, %v11409_v22  ;;  %v11479_v53 = vld [vmem:[%s6391_s30 + $0x718] sm:$0xff] }
 0x3de   : > { %v6025_v43 = vpop.eup %6024  ;;  %v4703_v32 = vadd.f32 %v4447_v63, %v863_v17  ;;  %v11435_v0 = vmul.f32 0.1, %v11315_v35  ;;  %6038 = vpow2.f32 %v1863_v37  ;;  %v3878_v24 = vmul.f32 %v11359_v39, %v3877_v23  ;;  %v11450_v17 = vld [vmem:[%s6391_s30 + $0x708] sm:$0xff] }
 0x3df   : > { %v3866_v29 = vmul.f32 0.6931472, %v6025_v43  ;;  %v11437_v9 = vpop.eup %6026  ;;  %v3894_v56 = vmul.f32 -0.5, %v11403_v61  ;;  %6040 = vlog2.f32 %v3900_v50  ;;  %v1385_v7 = vsub.f32 0.0, %v1129_v45 }
 0x3e0   : > { %4959 = vst [vmem:[%s6574_s17 + $0x6b0] sm:$0xff] %v4703_v32  ;;  %vm11444_vm8 = vcmp.lt.f32.partialorder %v3879_v57, 0.0004427343  ;;  %v3886_v12 = vadd.f32 1.0, %v3885_v15  ;;  %v3909_v5 = vadd.f32 1.0, %v11437_v9  ;;  %v867_v28 = vmax.f32 %v11282_v55, %v11429_v33 }
 0x3e1   : > { %v6029_v54 = vpop.eup %6028  ;;  %v3872_v20 = vsel %vm11424_vm7, %v3869_v25, %v3866_v29  ;;  %v3888_v39 = vand.u32 2147483647, %v11386_v1  ;;  %v3897_v13 = vand.u32 2147483647, %v11403_v61  ;;  %v3903_v18 = vmul.f32 -0.5, %v11419_v30 }
 0x3e2   : > { %v4448_v40 = vmul.f32 0.9, %v3872_v20  ;;  %v3875_v47 = vmul.f32 0.6931472, %v6029_v54  ;;  %6042 = vlog2.f32 %v3909_v5  ;;  %v1865_v49 = vmul.f32 1.442695, %v1385_v7 }
 0x3e3   : > { %v11457_v10 = vpop.eup %6030  ;;  %v3895_v16 = vadd.f32 1.0, %v3894_v56  ;;  %v1130_v55 = vand.u32 2147483647, %v11450_v17  ;;  %v3887_v6 = vmul.f32 %v11386_v1, %v3886_v12  ;;  %v3912_v51 = vmul.f32 -0.5, %v11437_v9 }
 0x3e4   : > { %v4704_v59 = vadd.f32 %v4448_v40, %v864_v62  ;;  %v3881_v36 = vsel %vm11444_vm8, %v3878_v24, %v3875_v47  ;;  %v3918_v19 = vadd.f32 1.0, %v11457_v10  ;;  %vm11472_vm9 = vcmp.lt.f32.partialorder %v3888_v39, 0.0004427343 }
 0x3e5   : > { %v4449_v44 = vmul.f32 0.9, %v3881_v36  ;;  %v868_v26 = vmax.f32 %v11315_v35, %v11435_v0  ;;  %6044 = vpow2.f32 %v1865_v49  ;;  %v1386_v62 = vsub.f32 0.0, %v1130_v55 }
 0x3e6   : > { %v6033_v60 = vpop.eup %6032  ;;  %4960 = vst [vmem:[%s6574_s17 + $0x6b8] sm:$0xff] %v4704_v59  ;;  %v3904_v38 = vadd.f32 1.0, %v3903_v18  ;;  %6046 = vlog2.f32 %v3918_v19  ;;  %v3896_v57 = vmul.f32 %v11403_v61, %v3895_v16  ;;  %vm11485_vm10 = vcmp.lt.f32.partialorder %v3897_v13, 0.0004427343  ;;  %v11518_v13 = vld [vmem:[%s6391_s30 + $0x720] sm:$0xff]  ;;  %v11521_v18 = vld [vmem:[%s6391_s30 + $0x728] sm:$0xff] }
 0x3e7   : > { %v4705_v1 = vadd.f32 %v4449_v44, %v865_v11  ;;  %v3884_v46 = vmul.f32 0.6931472, %v6033_v60  ;;  %v1867_v63 = vmul.f32 1.442695, %v1386_v62  ;;  %v1131_v25 = vand.u32 2147483647, %v11469_v34 }
 0x3e8   : > { %v3906_v58 = vand.u32 2147483647, %v11419_v30  ;;  %v3913_v52 = vadd.f32 1.0, %v3912_v51  ;;  %v1132_v11 = vand.u32 2147483647, %v11479_v53  ;;  %v3905_v32 = vmul.f32 %v11419_v30, %v3904_v38 }
 0x3e9   : > { %v6035_v23 = vpop.eup %6034  ;;  %4961 = vst [vmem:[%s6574_s17 + $0x6c0] sm:$0xff] %v4705_v1  ;;  %v3890_v15 = vsel %vm11472_vm9, %v3887_v6, %v3884_v46  ;;  %6048 = vpow2.f32 %v1867_v63  ;;  %v1387_v43 = vsub.f32 0.0, %v1131_v25  ;;  %v3915_v42 = vand.u32 2147483647, %v11437_v9 }
 0x3ea   : > { %v11495_v37 = vpop.eup %6036  ;;  %v4450_v61 = vmul.f32 0.9, %v3890_v15  ;;  %v3893_v45 = vmul.f32 0.6931472, %v6035_v23  ;;  %v3921_v33 = vmul.f32 -0.5, %v11457_v10  ;;  %v1388_v54 = vsub.f32 0.0, %v1132_v11 }
 0x3eb   : > { %v3927_v50 = vadd.f32 1.0, %v11495_v37  ;;  %v11501_v29 = vpop.eup %6038  ;;  %v1869_v7 = vmul.f32 1.442695, %v1387_v43  ;;  %vm11508_vm11 = vcmp.lt.f32.partialorder %v3906_v58, 0.0004427343  ;;  %v3914_v22 = vmul.f32 %v11437_v9, %v3913_v52  ;;  %v11557_v15 = vld [vmem:[%s6391_s30 + $0x730] sm:$0xff] }
 0x3ec   : > { %v4706_v24 = vadd.f32 %v4450_v61, %v866_v27  ;;  %v3899_v56 = vsel %vm11485_vm10, %v3896_v57, %v3893_v45  ;;  %v6041_v30 = vpop.eup %6040  ;;  %v613_v12 = vmul.f32 0.1, %v11324_v21  ;;  %v614_v27 = vmul.f32 0.1, %v11337_v14  ;;  %v11560_v58 = vld [vmem:[%s6391_s30 + $0x738] sm:$0xff] }
 0x3ed   : > { %v4451_v20 = vmul.f32 0.9, %v3899_v56  ;;  %6050 = vlog2.f32 %v3927_v50  ;;  %v3902_v41 = vmul.f32 0.6931472, %v6041_v30  ;;  %v3936_v5 = vadd.f32 1.0, %v11501_v29 }
 0x3ee   : > { %4962 = vst [vmem:[%s6574_s17 + $0x6c8] sm:$0xff] %v4706_v24  ;;  %v3922_v47 = vadd.f32 1.0, %v3921_v33  ;;  %6052 = vpow2.f32 %v1869_v7  ;;  %v1871_v39 = vmul.f32 1.442695, %v1388_v54  ;;  %vm11525_vm12 = vcmp.lt.f32.partialorder %v3915_v42, 0.0004427343 }
 0x3ef   : > { %v4707_v40 = vadd.f32 %v4451_v20, %v867_v28  ;;  %v6043_v49 = vpop.eup %6042  ;;  %v3908_v59 = vsel %vm11508_vm11, %v3905_v32, %v3902_v41  ;;  %v3924_v9 = vand.u32 2147483647, %v11457_v10  ;;  %6054 = vlog2.f32 %v3936_v5 }
 0x3f0   : > { %v4452_v28 = vmul.f32 0.9, %v3908_v59  ;;  %v3911_v16 = vmul.f32 0.6931472, %v6043_v49  ;;  %v3930_v55 = vmul.f32 -0.5, %v11495_v37  ;;  %6056 = vpow2.f32 %v1871_v39 }
 0x3f1   : > { %4963 = vst [vmem:[%s6574_s17 + $0x6d0] sm:$0xff] %v4707_v40  ;;  %v869_v44 = vmax.f32 %v11324_v21, %v613_v12  ;;  %v870_v6 = vmax.f32 %v11337_v14, %v614_v27  ;;  %v1133_v51 = vand.u32 2147483647, %v11518_v13  ;;  %v1134_v19 = vand.u32 2147483647, %v11521_v18 }
 0x3f2   : > { %v11536_v60 = vpop.eup %6044  ;;  %v4708_v4 = vadd.f32 %v4452_v28, %v868_v26  ;;  %v3917_v62 = vsel %vm11525_vm12, %v3914_v22, %v3911_v16  ;;  %v3923_v1 = vmul.f32 %v11457_v10, %v3922_v47  ;;  %v615_v21 = vmul.f32 0.1, %v11368_v8 }
 0x3f3   : > { %v6047_v14 = vpop.eup %6046  ;;  %v4453_v46 = vmul.f32 0.9, %v3917_v62  ;;  %vm11545_vm13 = vcmp.lt.f32.partialorder %v3924_v9, 0.0004427343  ;;  %v3939_v57 = vmul.f32 -0.5, %v11501_v29  ;;  %v3945_v35 = vadd.f32 1.0, %v11536_v60 }
 0x3f4   : > { %4964 = vst [vmem:[%s6574_s17 + $0x6d8] sm:$0xff] %v4708_v4  ;;  %v3920_v0 = vmul.f32 0.6931472, %v6047_v14  ;;  %v3931_v26 = vadd.f32 1.0, %v3930_v55  ;;  %v1389_v2 = vsub.f32 0.0, %v1133_v51  ;;  %v1390_v10 = vsub.f32 0.0, %v1134_v19 }
 0x3f5   : > { %v4709_v63 = vadd.f32 %v4453_v46, %v869_v44  ;;  %v3933_v25 = vand.u32 2147483647, %v11495_v37  ;;  %v11554_v23 = vmul.f32 0.1, %v11372_v3  ;;  %6058 = vlog2.f32 %v3945_v35  ;;  %v11606_v19 = vld [vmem:[%s6391_s30 + $0x740] sm:$0xff] }
 0x3f6   : > { %v11562_v52 = vpop.eup %6048  ;;  %v3926_v11 = vsel %vm11545_vm13, %v3923_v1, %v3920_v0  ;;  %v3942_v61 = vand.u32 2147483647, %v11501_v29  ;;  %v1873_v45 = vmul.f32 1.442695, %v1389_v2  ;;  %v1875_v43 = vmul.f32 1.442695, %v1390_v10 }
 0x3f7   : > { %4965 = vst [vmem:[%s6574_s17 + $0x6e0] sm:$0xff] %v4709_v63  ;;  %v4454_v32 = vmul.f32 0.9, %v3926_v11  ;;  %v3940_v42 = vadd.f32 1.0, %v3939_v57  ;;  %v3948_v33 = vmul.f32 -0.5, %v11536_v60  ;;  %v3954_v50 = vadd.f32 1.0, %v11562_v52 }
 0x3f8   : > { %v871_v24 = vmax.f32 %v11368_v8, %v615_v21  ;;  %v3932_v56 = vmul.f32 %v11495_v37, %v3931_v26  ;;  %6060 = vpow2.f32 %v1873_v45  ;;  %v1135_v7 = vand.u32 2147483647, %v11557_v15  ;;  %v11616_v21 = vld [vmem:[%s6391_s30 + $0x748] sm:$0xff] }
 0x3f9   : > { %v4710_v30 = vadd.f32 %v4454_v32, %v870_v6  ;;  %vm11573_vm14 = vcmp.lt.f32.partialorder %v3933_v25, 0.0004427343  ;;  %6062 = vlog2.f32 %v3954_v50  ;;  %v1136_v31 = vand.u32 2147483647, %v11560_v58 }
 0x3fa   : > { %v6051_v54 = vpop.eup %6050  ;;  %v11579_v41 = vmul.f32 0.1, %v11413_v48  ;;  %6064 = vpow2.f32 %v1875_v43  ;;  %v1391_v8 = vsub.f32 0.0, %v1135_v7  ;;  %v3941_v37 = vmul.f32 %v11501_v29, %v3940_v42 }
 0x3fb   : > { %v3929_v12 = vmul.f32 0.6931472, %v6051_v54  ;;  %v11581_v22 = vpop.eup %6052  ;;  %4966 = vst [vmem:[%s6574_s17 + $0x6e8] sm:$0xff] %v4710_v30  ;;  %vm11585_vm15 = vcmp.lt.f32.partialorder %v3942_v61, 0.0004427343  ;;  %v3949_v5 = vadd.f32 1.0, %v3948_v33  ;;  %v872_v28 = vmax.f32 %v11372_v3, %v11554_v23 }
 0x3fc   : > { %v3951_v40 = vand.u32 2147483647, %v11536_v60  ;;  %v6055_v47 = vpop.eup %6054  ;;  %v3957_v49 = vmul.f32 -0.5, %v11562_v52  ;;  %v3963_v59 = vadd.f32 1.0, %v11581_v22  ;;  %v1392_v36 = vsub.f32 0.0, %v1136_v31 }
 0x3fd   : > { %v3935_v39 = vsel %vm11573_vm14, %v3932_v56, %v3929_v12  ;;  %v11594_v9 = vpop.eup %6056  ;;  %v3938_v16 = vmul.f32 0.6931472, %v6055_v47  ;;  %v1877_v55 = vmul.f32 1.442695, %v1391_v8  ;;  %v11599_v44 = vmul.f32 0.1, %v11450_v17 }
 0x3fe   : > { %v4455_v29 = vmul.f32 0.9, %v3935_v39  ;;  %v11602_v6 = vmul.f32 0.1, %v11469_v34  ;;  %6066 = vlog2.f32 %v3963_v59  ;;  %v3972_v51 = vadd.f32 1.0, %v11594_v9  ;;  %v11646_v56 = vld [vmem:[%s6391_s30 + $0x758] sm:$0xff] }
 0x3ff   : > { %v3944_v62 = vsel %vm11585_vm15, %v3941_v37, %v3938_v16  ;;  %v3950_v3 = vmul.f32 %v11536_v60, %v3949_v5  ;;  %vm11611_vm0 = vcmp.lt.f32.partialorder %v3951_v40, 0.0004427343  ;;  %v3960_v46 = vand.u32 2147483647, %v11562_v52  ;;  %v11623_v60 = vld [vmem:[%s6391_s30 + $0x750] sm:$0xff] }
 0x400   : > { %v4711_v4 = vadd.f32 %v4455_v29, %v871_v24  ;;  %v4456_v14 = vmul.f32 0.9, %v3944_v62  ;;  %6068 = vlog2.f32 %v3972_v51  ;;  %v1879_v38 = vmul.f32 1.442695, %v1392_v36 }
 0x401   : > { %v3958_v57 = vadd.f32 1.0, %v3957_v49  ;;  %v3966_v35 = vmul.f32 -0.5, %v11581_v22  ;;  %6070 = vpow2.f32 %v1877_v55  ;;  %v1137_v0 = vand.u32 2147483647, %v11606_v19 }
 0x402   : > { %4967 = vst [vmem:[%s6574_s17 + $0x6f0] sm:$0xff] %v4711_v4  ;;  %v6059_v26 = vpop.eup %6058  ;;  %v4712_v2 = vadd.f32 %v4456_v14, %v872_v28  ;;  %v3975_v10 = vmul.f32 -0.5, %v11594_v9  ;;  %6072 = vpow2.f32 %v1879_v38  ;;  %v1138_v63 = vand.u32 2147483647, %v11616_v21  ;;  %v11682_v38 = vld [vmem:[%s6391_s30 + $0x768] sm:$0xff] }
 0x403   : > { %v873_v25 = vmax.f32 %v11413_v48, %v11579_v41  ;;  %v3947_v23 = vmul.f32 0.6931472, %v6059_v26  ;;  %v874_v11 = vmax.f32 %v11450_v17, %v11599_v44  ;;  %v1393_v61 = vsub.f32 0.0, %v1137_v0 }
 0x404   : > { %4968 = vst [vmem:[%s6574_s17 + $0x6f8] sm:$0xff] %v4712_v2  ;;  %vm11632_vm1 = vcmp.lt.f32.partialorder %v3960_v46, 0.0004427343  ;;  %v875_v43 = vmax.f32 %v11469_v34, %v11602_v6  ;;  %v1394_v32 = vsub.f32 0.0, %v1138_v63  ;;  %v1139_v42 = vand.u32 2147483647, %v11623_v60 }
 0x405   : > { %v11639_v33 = vpop.eup %6060  ;;  %v3953_v48 = vsel %vm11611_vm0, %v3950_v3, %v3947_v23  ;;  %v3959_v50 = vmul.f32 %v11562_v52, %v3958_v57  ;;  %v3969_v17 = vand.u32 2147483647, %v11581_v22  ;;  %v1881_v24 = vmul.f32 1.442695, %v1393_v61 }
 0x406   : > { %v6063_v7 = vpop.eup %6062  ;;  %v4457_v54 = vmul.f32 0.9, %v3953_v48  ;;  %v3967_v30 = vadd.f32 1.0, %v3966_v35  ;;  %v3976_v20 = vadd.f32 1.0, %v3975_v10  ;;  %v3981_v31 = vadd.f32 1.0, %v11639_v33 }
 0x407   : > { %v11649_v12 = vpop.eup %6064  ;;  %v3956_v41 = vmul.f32 0.6931472, %v6063_v7  ;;  %6074 = vpow2.f32 %v1881_v24  ;;  %v1883_v8 = vmul.f32 1.442695, %v1394_v32  ;;  %v1395_v37 = vsub.f32 0.0, %v1139_v42 }
 0x408   : > { %v4713_v27 = vadd.f32 %v4457_v54, %v873_v25  ;;  %v620_v52 = vmul.f32 0.1, %v11479_v53  ;;  %6076 = vlog2.f32 %v3981_v31  ;;  %v1140_v5 = vand.u32 2147483647, %v11646_v56 }
 0x409   : > { %v3962_v40 = vsel %vm11632_vm1, %v3959_v50, %v3956_v41  ;;  %v3978_v47 = vand.u32 2147483647, %v11594_v9  ;;  %v11657_v39 = vmul.f32 0.1, %v11518_v13  ;;  %v3990_v49 = vadd.f32 1.0, %v11649_v12 }
 0x40a   : > { %4969 = vst [vmem:[%s6574_s17 + $0x700] sm:$0xff] %v4713_v27  ;;  %v4458_v59 = vmul.f32 0.9, %v3962_v40  ;;  %v3968_v36 = vmul.f32 %v11581_v22, %v3967_v30  ;;  %6078 = vpow2.f32 %v1883_v8  ;;  %v1885_v29 = vmul.f32 1.442695, %v1395_v37 }
 0x40b   : > { %v6067_v28 = vpop.eup %6066  ;;  %vm11662_vm2 = vcmp.lt.f32.partialorder %v3969_v17, 0.0004427343  ;;  %v3977_v55 = vmul.f32 %v11594_v9, %v3976_v20  ;;  %v3984_v44 = vmul.f32 -0.5, %v11639_v33  ;;  %6080 = vlog2.f32 %v3990_v49  ;;  %v11679_v9 = vld [vmem:[%s6391_s30 + $0x760] sm:$0xff] }
 0x40c   : > { %v4714_v51 = vadd.f32 %v4458_v59, %v874_v11  ;;  %v3965_v4 = vmul.f32 0.6931472, %v6067_v28  ;;  %6082 = vpow2.f32 %v1885_v29  ;;  %v1396_v62 = vsub.f32 0.0, %v1140_v5 }
 0x40d   : > { %v6069_v22 = vpop.eup %6068  ;;  %v876_v3 = vmax.f32 %v11479_v53, %v620_v52  ;;  %vm11669_vm3 = vcmp.lt.f32.partialorder %v3978_v47, 0.0004427343  ;;  %v877_v14 = vmax.f32 %v11518_v13, %v11657_v39  ;;  %v11676_v46 = vmul.f32 0.1, %v11521_v18 }
 0x40e   : > { %v11684_v57 = vpop.eup %6070  ;;  %4970 = vst [vmem:[%s6574_s17 + $0x708] sm:$0xff] %v4714_v51  ;;  %v3971_v53 = vsel %vm11662_vm2, %v3968_v36, %v3965_v4  ;;  %v3974_v35 = vmul.f32 0.6931472, %v6069_v22  ;;  %v3987_v0 = vand.u32 2147483647, %v11639_v33  ;;  %v3993_v63 = vmul.f32 -0.5, %v11649_v12 }
 0x40f   : > { %v11691_v26 = vmul.f32 0.1, %v11557_v15  ;;  %v11693_v2 = vpop.eup %6072  ;;  %v4459_v10 = vmul.f32 0.9, %v3971_v53  ;;  %v3999_v25 = vadd.f32 1.0, %v11684_v57  ;;  %v3985_v61 = vadd.f32 1.0, %v3984_v44 }
 0x410   : > { %v1887_v23 = vmul.f32 1.442695, %v1396_v62  ;;  %v3980_v11 = vsel %vm11669_vm3, %v3977_v55, %v3974_v35  ;;  %v4008_v45 = vadd.f32 1.0, %v11693_v2  ;;  %v1141_v32 = vand.u32 2147483647, %v11679_v9  ;;  %v11744_v4 = vld [vmem:[%s6391_s30 + $0x770] sm:$0xff] }
 0x411   : > { %v4715_v42 = vadd.f32 %v4459_v10, %v875_v43  ;;  %v4460_v48 = vmul.f32 0.9, %v3980_v11  ;;  %6084 = vlog2.f32 %v3999_v25  ;;  %v1142_v50 = vand.u32 2147483647, %v11682_v38  ;;  %v11765_v25 = vld [vmem:[%s6391_s30 + $0x778] sm:$0xff]  ;;  %v11804_v55 = vld [vmem:[%s6391_s30 + $0x790] sm:$0xff] }
 0x412   : > { %v878_v17 = vmax.f32 %v11521_v18, %v11676_v46  ;;  %v11708_v24 = vmul.f32 0.1, %v11560_v58  ;;  %6086 = vlog2.f32 %v4008_v45  ;;  %v11711_v7 = vmul.f32 0.1, %v11606_v19  ;;  %v11770_v45 = vld [vmem:[%s6391_s30 + $0x780] sm:$0xff] }
 0x413   : > { %4971 = vst [vmem:[%s6574_s17 + $0x710] sm:$0xff] %v4715_v42  ;;  %v4716_v54 = vadd.f32 %v4460_v48, %v876_v3  ;;  %v3994_v30 = vadd.f32 1.0, %v3993_v63  ;;  %v4002_v34 = vmul.f32 -0.5, %v11684_v57  ;;  %6088 = vpow2.f32 %v1887_v23 }
 0x414   : > { %v11715_v6 = vpop.eup %6074  ;;  %v3986_v43 = vmul.f32 %v11639_v33, %v3985_v61  ;;  %v3996_v20 = vand.u32 2147483647, %v11649_v12  ;;  %v4011_v18 = vmul.f32 -0.5, %v11693_v2  ;;  %v1397_v31 = vsub.f32 0.0, %v1141_v32 }
 0x415   : > { %v6077_v41 = vpop.eup %6076  ;;  %4972 = vst [vmem:[%s6574_s17 + $0x718] sm:$0xff] %v4716_v54  ;;  %vm11721_vm4 = vcmp.lt.f32.partialorder %v3987_v0, 0.0004427343  ;;  %v4017_v37 = vadd.f32 1.0, %v11715_v6  ;;  %v11727_v27 = vmul.f32 0.1, %v11616_v21  ;;  %v879_v33 = vmax.f32 %v11557_v15, %v11691_v26 }
 0x416   : > { %v1398_v52 = vsub.f32 0.0, %v1142_v50  ;;  %v3983_v5 = vmul.f32 0.6931472, %v6077_v41  ;;  %v4005_v40 = vand.u32 2147483647, %v11684_v57  ;;  %v3995_v59 = vmul.f32 %v11649_v12, %v3994_v30 }
 0x417   : > { %v1889_v47 = vmul.f32 1.442695, %v1397_v31  ;;  %v11732_v49 = vpop.eup %6078  ;;  %v4003_v36 = vadd.f32 1.0, %v4002_v34  ;;  %v4014_v29 = vand.u32 2147483647, %v11693_v2  ;;  %6090 = vlog2.f32 %v4017_v37 }
 0x418   : > { %v6081_v28 = vpop.eup %6080  ;;  %v3989_v16 = vsel %vm11721_vm4, %v3986_v43, %v3983_v5  ;;  %vm11738_vm5 = vcmp.lt.f32.partialorder %v3996_v20, 0.0004427343  ;;  %v4012_v44 = vadd.f32 1.0, %v4011_v18  ;;  %v4026_v51 = vadd.f32 1.0, %v11732_v49 }
 0x419   : > { %v11746_v62 = vpop.eup %6082  ;;  %v4461_v12 = vmul.f32 0.9, %v3989_v16  ;;  %v3992_v22 = vmul.f32 0.6931472, %v6081_v28  ;;  %6092 = vpow2.f32 %v1889_v47  ;;  %v1891_v3 = vmul.f32 1.442695, %v1398_v52 }
 0x41a   : > { %vm11748_vm6 = vcmp.lt.f32.partialorder %v4005_v40, 0.0004427343  ;;  %v4020_v46 = vmul.f32 -0.5, %v11715_v6  ;;  %6094 = vlog2.f32 %v4026_v51  ;;  %v4035_v53 = vadd.f32 1.0, %v11746_v62  ;;  %v11792_v47 = vld [vmem:[%s6391_s30 + $0x788] sm:$0xff] }
 0x41b   : > { %v4717_v35 = vadd.f32 %v4461_v12, %v877_v14  ;;  %v3998_v0 = vsel %vm11738_vm5, %v3995_v59, %v3992_v22  ;;  %v4004_v10 = vmul.f32 %v11684_v57, %v4003_v36  ;;  %vm11760_vm7 = vcmp.lt.f32.partialorder %v4014_v29, 0.0004427343 }
 0x41c   : > { %v4462_v23 = vmul.f32 0.9, %v3998_v0  ;;  %v4013_v11 = vmul.f32 %v11693_v2, %v4012_v44  ;;  %6096 = vlog2.f32 %v4035_v53  ;;  %v1143_v61 = vand.u32 2147483647, %v11744_v4 }
 0x41d   : > { %4973 = vst [vmem:[%s6574_s17 + $0x720] sm:$0xff] %v4717_v35  ;;  %v4023_v13 = vand.u32 2147483647, %v11715_v6  ;;  %v4029_v39 = vmul.f32 -0.5, %v11732_v49  ;;  %v4038_v14 = vmul.f32 -0.5, %v11746_v62  ;;  %6098 = vpow2.f32 %v1891_v3 }
 0x41e   : > { %v6085_v57 = vpop.eup %6084  ;;  %v4718_v32 = vadd.f32 %v4462_v23, %v878_v17  ;;  %v4021_v42 = vadd.f32 1.0, %v4020_v46  ;;  %v1399_v48 = vsub.f32 0.0, %v1143_v61  ;;  %v1144_v2 = vand.u32 2147483647, %v11765_v25 }
 0x41f   : > { %v6087_v50 = vpop.eup %6086  ;;  %v4001_v54 = vmul.f32 0.6931472, %v6085_v57  ;;  %v880_v30 = vmax.f32 %v11560_v58, %v11708_v24  ;;  %v4032_v34 = vand.u32 2147483647, %v11732_v49  ;;  %v1145_v43 = vand.u32 2147483647, %v11770_v45 }
 0x420   : > { %v11781_v20 = vpop.eup %6088  ;;  %4974 = vst [vmem:[%s6574_s17 + $0x728] sm:$0xff] %v4718_v32  ;;  %v4010_v18 = vmul.f32 0.6931472, %v6087_v50  ;;  %v881_v17 = vmax.f32 %v11606_v19, %v11711_v7  ;;  %v1893_v31 = vmul.f32 1.442695, %v1399_v48  ;;  %v1400_v41 = vsub.f32 0.0, %v1144_v2 }
 0x421   : > { %v4007_v8 = vsel %vm11748_vm6, %v4004_v10, %v4001_v54  ;;  %v4030_v37 = vadd.f32 1.0, %v4029_v39  ;;  %v4039_v52 = vadd.f32 1.0, %v4038_v14  ;;  %v4044_v58 = vadd.f32 1.0, %v11781_v20  ;;  %v11840_v54 = vld [vmem:[%s6391_s30 + $0x798] sm:$0xff] }
 0x422   : > { %v4463_v24 = vmul.f32 0.9, %v4007_v8  ;;  %v4016_v5 = vsel %vm11760_vm7, %v4013_v11, %v4010_v18  ;;  %6100 = vpow2.f32 %v1893_v31  ;;  %v1895_v40 = vmul.f32 1.442695, %v1400_v41 }
 0x423   : > { %v4464_v19 = vmul.f32 0.9, %v4016_v5  ;;  %v4022_v7 = vmul.f32 %v11715_v6, %v4021_v42  ;;  %v627_v59 = vmul.f32 0.1, %v11623_v60  ;;  %6102 = vlog2.f32 %v4044_v58 }
 0x424   : > { %v6091_v36 = vpop.eup %6090  ;;  %v4719_v29 = vadd.f32 %v4463_v24, %v879_v33  ;;  %vm11799_vm8 = vcmp.lt.f32.partialorder %v4023_v13, 0.0004427343  ;;  %6104 = vpow2.f32 %v1895_v40  ;;  %v1401_v16 = vsub.f32 0.0, %v1145_v43 }
 0x425   : > { %v4720_v44 = vadd.f32 %v4464_v19, %v880_v30  ;;  %v4019_v51 = vmul.f32 0.6931472, %v6091_v36  ;;  %v4041_v6 = vand.u32 2147483647, %v11746_v62  ;;  %v1146_v12 = vand.u32 2147483647, %v11792_v47 }
 0x426   : > { %v11808_v22 = vpop.eup %6092  ;;  %4975 = vst [vmem:[%s6574_s17 + $0x730] sm:$0xff] %v4719_v29  ;;  %v4031_v15 = vmul.f32 %v11732_v49, %v4030_v37  ;;  %vm11812_vm9 = vcmp.lt.f32.partialorder %v4032_v34, 0.0004427343  ;;  %v4040_v33 = vmul.f32 %v11746_v62, %v4039_v52  ;;  %v1897_v3 = vmul.f32 1.442695, %v1401_v16  ;;  %v11866_v29 = vld [vmem:[%s6391_s30 + $0x7a0] sm:$0xff] }
 0x427   : > { %v6095_v1 = vpop.eup %6094  ;;  %4976 = vst [vmem:[%s6574_s17 + $0x738] sm:$0xff] %v4720_v44  ;;  %v4025_v46 = vsel %vm11799_vm8, %v4022_v7, %v4019_v51  ;;  %v4047_v53 = vmul.f32 -0.5, %v11781_v20  ;;  %v4053_v35 = vadd.f32 1.0, %v11808_v22  ;;  %v1147_v0 = vand.u32 2147483647, %v11804_v55 }
 0x428   : > { %v4465_v10 = vmul.f32 0.9, %v4025_v46  ;;  %v4028_v49 = vmul.f32 0.6931472, %v6095_v1  ;;  %6106 = vpow2.f32 %v1897_v3  ;;  %v1402_v63 = vsub.f32 0.0, %v1146_v12  ;;  %v11888_v46 = vld [vmem:[%s6391_s30 + $0x7a8] sm:$0xff] }
 0x429   : > { %v6097_v23 = vpop.eup %6096  ;;  %v882_v62 = vmax.f32 %v11616_v21, %v11727_v27  ;;  %vm11825_vm10 = vcmp.lt.f32.partialorder %v4041_v6, 0.0004427343  ;;  %6108 = vlog2.f32 %v4053_v35  ;;  %v883_v42 = vmax.f32 %v11623_v60, %v627_v59 }
 0x42a   : > { %v11829_v61 = vpop.eup %6098  ;;  %v4721_v13 = vadd.f32 %v4465_v10, %v881_v17  ;;  %v4034_v39 = vsel %vm11812_vm9, %v4031_v15, %v4028_v49  ;;  %v4037_v14 = vmul.f32 0.6931472, %v6097_v23  ;;  %v1899_v57 = vmul.f32 1.442695, %v1402_v63  ;;  %v11894_v49 = vld [vmem:[%s6391_s30 + $0x7b0] sm:$0xff] }
 0x42b   : > { %v4466_v32 = vmul.f32 0.9, %v4034_v39  ;;  %v4048_v48 = vadd.f32 1.0, %v4047_v53  ;;  %v4062_v21 = vadd.f32 1.0, %v11829_v61  ;;  %v4050_v2 = vand.u32 2147483647, %v11781_v20 }
 0x42c   : > { %4977 = vst [vmem:[%s6574_s17 + $0x740] sm:$0xff] %v4721_v13  ;;  %v4043_v27 = vsel %vm11825_vm10, %v4040_v33, %v4037_v14  ;;  %6110 = vpow2.f32 %v1899_v57  ;;  %v1403_v50 = vsub.f32 0.0, %v1147_v0  ;;  %v4056_v43 = vmul.f32 -0.5, %v11808_v22 }
 0x42d   : > { %v4722_v30 = vadd.f32 %v4466_v32, %v882_v62  ;;  %v4467_v34 = vmul.f32 0.9, %v4043_v27  ;;  %6112 = vlog2.f32 %v4062_v21  ;;  %v628_v60 = vmul.f32 0.1, %v11646_v56 }
 0x42e   : > { %v11845_v18 = vmul.f32 0.1, %v11679_v9  ;;  %v1901_v17 = vmul.f32 1.442695, %v1403_v50  ;;  %v4049_v8 = vmul.f32 %v11781_v20, %v4048_v48  ;;  %v11852_v37 = vmul.f32 0.1, %v11682_v38 }
 0x42f   : > { %v11847_v31 = vpop.eup %6100  ;;  %4978 = vst [vmem:[%s6574_s17 + $0x748] sm:$0xff] %v4722_v30  ;;  %v4723_v41 = vadd.f32 %v4467_v34, %v883_v42  ;;  %v1148_v52 = vand.u32 2147483647, %v11840_v54  ;;  %vm11855_vm11 = vcmp.lt.f32.partialorder %v4050_v2, 0.0004427343  ;;  %v4057_v20 = vadd.f32 1.0, %v4056_v43 }
 0x430   : > { %v6103_v58 = vpop.eup %6102  ;;  %v4059_v5 = vand.u32 2147483647, %v11808_v22  ;;  %v4071_v40 = vadd.f32 1.0, %v11847_v31  ;;  %6114 = vpow2.f32 %v1901_v17  ;;  %v4065_v59 = vmul.f32 -0.5, %v11829_v61 }
 0x431   : > { %v11861_v19 = vpop.eup %6104  ;;  %4979 = vst [vmem:[%s6574_s17 + $0x750] sm:$0xff] %v4723_v41  ;;  %v4046_v7 = vmul.f32 0.6931472, %v6103_v58  ;;  %v1404_v36 = vsub.f32 0.0, %v1148_v52  ;;  %v884_v28 = vmax.f32 %v11646_v56, %v628_v60  ;;  %v885_v51 = vmax.f32 %v11679_v9, %v11845_v18 }
 0x432   : > { %6116 = vlog2.f32 %v4071_v40  ;;  %v4080_v16 = vadd.f32 1.0, %v11861_v19  ;;  %v11875_v6 = vmul.f32 0.1, %v11744_v4  ;;  %v886_v26 = vmax.f32 %v11682_v38, %v11852_v37 }
 0x433   : > { %v4052_v44 = vsel %vm11855_vm11, %v4049_v8, %v4046_v7  ;;  %v1903_v12 = vmul.f32 1.442695, %v1404_v36  ;;  %v1149_v56 = vand.u32 2147483647, %v11866_v29  ;;  %v4058_v3 = vmul.f32 %v11808_v22, %v4057_v20  ;;  %v11931_v20 = vld [vmem:[%s6391_s30 + $0x7b8] sm:$0xff] }
 0x434   : > { %v4468_v15 = vmul.f32 0.9, %v4052_v44  ;;  %6118 = vlog2.f32 %v4080_v16  ;;  %vm11883_vm12 = vcmp.lt.f32.partialorder %v4059_v5, 0.0004427343  ;;  %v4066_v9 = vadd.f32 1.0, %v4065_v59 }
 0x435   : > { %v11880_v33 = vpop.eup %6106  ;;  %6120 = vpow2.f32 %v1903_v12  ;;  %v4068_v38 = vand.u32 2147483647, %v11829_v61  ;;  %v4074_v0 = vmul.f32 -0.5, %v11847_v31  ;;  %v887_v22 = vmax.f32 %v11744_v4, %v11875_v6 }
 0x436   : > { %v6109_v53 = vpop.eup %6108  ;;  %v4724_v35 = vadd.f32 %v4468_v15, %v884_v28  ;;  %v4089_v10 = vadd.f32 1.0, %v11880_v33  ;;  %v11899_v23 = vmul.f32 0.1, %v11765_v25  ;;  %v1405_v62 = vsub.f32 0.0, %v1149_v56  ;;  %v11936_v15 = vld [vmem:[%s6391_s30 + $0x7c0] sm:$0xff] }
 0x437   : > { %v4055_v63 = vmul.f32 0.6931472, %v6109_v53  ;;  %v4077_v11 = vand.u32 2147483647, %v11847_v31  ;;  %v4083_v13 = vmul.f32 -0.5, %v11861_v19  ;;  %v4067_v32 = vmul.f32 %v11829_v61, %v4066_v9 }
 0x438   : > { %4980 = vst [vmem:[%s6574_s17 + $0x758] sm:$0xff] %v4724_v35  ;;  %6122 = vlog2.f32 %v4089_v10  ;;  %v1150_v39 = vand.u32 2147483647, %v11888_v46  ;;  %v1905_v42 = vmul.f32 1.442695, %v1405_v62  ;;  %v4075_v50 = vadd.f32 1.0, %v4074_v0 }
 0x439   : > { %v11905_v14 = vpop.eup %6110  ;;  %v4061_v57 = vsel %vm11883_vm12, %v4058_v3, %v4055_v63  ;;  %v1151_v48 = vand.u32 2147483647, %v11894_v49  ;;  %vm11911_vm13 = vcmp.lt.f32.partialorder %v4068_v38, 0.0004427343  ;;  %v4092_v43 = vmul.f32 -0.5, %v11880_v33 }
 0x43a   : > { %v6113_v21 = vpop.eup %6112  ;;  %v4469_v27 = vmul.f32 0.9, %v4061_v57  ;;  %v4098_v30 = vadd.f32 1.0, %v11905_v14  ;;  %6124 = vpow2.f32 %v1905_v42  ;;  %v1406_v60 = vsub.f32 0.0, %v1150_v39 }
 0x43b   : > { %v4064_v34 = vmul.f32 0.6931472, %v6113_v21  ;;  %vm11917_vm14 = vcmp.lt.f32.partialorder %v4077_v11, 0.0004427343  ;;  %v4084_v17 = vadd.f32 1.0, %v4083_v13  ;;  %v1407_v58 = vsub.f32 0.0, %v1151_v48 }
 0x43c   : > { %v4725_v61 = vadd.f32 %v4469_v27, %v885_v51  ;;  %6126 = vlog2.f32 %v4098_v30  ;;  %v4086_v37 = vand.u32 2147483647, %v11861_v19  ;;  %v1907_v52 = vmul.f32 1.442695, %v1406_v60 }
 0x43d   : > { %v11921_v41 = vpop.eup %6114  ;;  %v4070_v8 = vsel %vm11911_vm13, %v4067_v32, %v4064_v34  ;;  %v4076_v5 = vmul.f32 %v11847_v31, %v4075_v50  ;;  %v4095_v40 = vand.u32 2147483647, %v11880_v33  ;;  %v4093_v36 = vadd.f32 1.0, %v4092_v43  ;;  %v11966_v32 = vld [vmem:[%s6391_s30 + $0x7c8] sm:$0xff] }
 0x43e   : > { %4981 = vst [vmem:[%s6574_s17 + $0x760] sm:$0xff] %v4725_v61  ;;  %v4470_v24 = vmul.f32 0.9, %v4070_v8  ;;  %v4107_v7 = vadd.f32 1.0, %v11921_v41  ;;  %v4101_v28 = vmul.f32 -0.5, %v11905_v14  ;;  %6128 = vpow2.f32 %v1907_v52 }
 0x43f   : > { %v6117_v59 = vpop.eup %6116  ;;  %v1909_v16 = vmul.f32 1.442695, %v1407_v58  ;;  %v4085_v12 = vmul.f32 %v11861_v19, %v4084_v17  ;;  %vm11938_vm15 = vcmp.lt.f32.partialorder %v4086_v37, 0.0004427343  ;;  %v633_v3 = vmul.f32 0.1, %v11770_v45 }
 0x440   : > { %v4726_v44 = vadd.f32 %v4470_v24, %v886_v26  ;;  %v4073_v51 = vmul.f32 0.6931472, %v6117_v59  ;;  %6130 = vlog2.f32 %v4107_v7  ;;  %v1152_v1 = vand.u32 2147483647, %v11931_v20 }
 0x441   : > { %v6119_v31 = vpop.eup %6118  ;;  %6132 = vpow2.f32 %v1909_v16  ;;  %v888_v19 = vmax.f32 %v11765_v25, %v11899_v23  ;;  %vm11951_vm0 = vcmp.lt.f32.partialorder %v4095_v40, 0.0004427343  ;;  %v4094_v0 = vmul.f32 %v11880_v33, %v4093_v36  ;;  %v11992_v40 = vld [vmem:[%s6391_s30 + $0x7d0] sm:$0xff] }
 0x442   : > { %v11944_v9 = vpop.eup %6120  ;;  %4982 = vst [vmem:[%s6574_s17 + $0x768] sm:$0xff] %v4726_v44  ;;  %v4079_v26 = vsel %vm11917_vm14, %v4076_v5, %v4073_v51  ;;  %v4082_v53 = vmul.f32 0.6931472, %v6119_v31  ;;  %v4102_v10 = vadd.f32 1.0, %v4101_v28  ;;  %v4110_v11 = vmul.f32 -0.5, %v11921_v41 }
 0x443   : > { %v4471_v38 = vmul.f32 0.9, %v4079_v26  ;;  %v4116_v63 = vadd.f32 1.0, %v11944_v9  ;;  %v1408_v13 = vsub.f32 0.0, %v1152_v1  ;;  %v1153_v25 = vand.u32 2147483647, %v11936_v15 }
 0x444   : > { %v4088_v62 = vsel %vm11938_vm15, %v4085_v12, %v4082_v53  ;;  %v4104_v33 = vand.u32 2147483647, %v11905_v14  ;;  %v889_v42 = vmax.f32 %v11770_v45, %v633_v3  ;;  %v634_v21 = vmul.f32 0.1, %v11792_v47 }
 0x445   : > { %v6123_v23 = vpop.eup %6122  ;;  %v4727_v39 = vadd.f32 %v4471_v38, %v887_v22  ;;  %v4472_v57 = vmul.f32 0.9, %v4088_v62  ;;  %6134 = vlog2.f32 %v4116_v63  ;;  %v1911_v27 = vmul.f32 1.442695, %v1408_v13  ;;  %v12020_v62 = vld [vmem:[%s6391_s30 + $0x7e0] sm:$0xff] }
 0x446   : > { %v4091_v48 = vmul.f32 0.6931472, %v6123_v23  ;;  %v4103_v50 = vmul.f32 %v11905_v14, %v4102_v10  ;;  %v4113_v4 = vand.u32 2147483647, %v11921_v41  ;;  %v1409_v6 = vsub.f32 0.0, %v1153_v25 }
 0x447   : > { %4983 = vst [vmem:[%s6574_s17 + $0x770] sm:$0xff] %v4727_v39  ;;  %v4728_v2 = vadd.f32 %v4472_v57, %v888_v19  ;;  %v11973_v22 = vpop.eup %6124  ;;  %v4111_v34 = vadd.f32 1.0, %v4110_v11  ;;  %6136 = vpow2.f32 %v1911_v27  ;;  %v1154_v45 = vand.u32 2147483647, %v11966_v32 }
 0x448   : > { %v4097_v30 = vsel %vm11951_vm0, %v4094_v0, %v4091_v48  ;;  %vm11979_vm1 = vcmp.lt.f32.partialorder %v4104_v33, 0.0004427343  ;;  %v4119_v14 = vmul.f32 -0.5, %v11944_v9  ;;  %v4125_v18 = vadd.f32 1.0, %v11973_v22  ;;  %v12015_v0 = vld [vmem:[%s6391_s30 + $0x7d8] sm:$0xff] }
 0x449   : > { %v6127_v43 = vpop.eup %6126  ;;  %4984 = vst [vmem:[%s6574_s17 + $0x778] sm:$0xff] %v4728_v2  ;;  %v4473_v60 = vmul.f32 0.9, %v4097_v30  ;;  %v890_v17 = vmax.f32 %v11792_v47, %v634_v21  ;;  %v1913_v37 = vmul.f32 1.442695, %v1409_v6  ;;  %v1410_v52 = vsub.f32 0.0, %v1154_v45 }
 0x44a   : > { %v4100_v8 = vmul.f32 0.6931472, %v6127_v43  ;;  %v635_v24 = vmul.f32 0.1, %v11804_v55  ;;  %vm11987_vm2 = vcmp.lt.f32.partialorder %v4113_v4, 0.0004427343  ;;  %6138 = vlog2.f32 %v4125_v18 }
 0x44b   : > { %v4729_v58 = vadd.f32 %v4473_v60, %v889_v42  ;;  %v11994_v7 = vpop.eup %6128  ;;  %v4112_v47 = vmul.f32 %v11921_v41, %v4111_v34  ;;  %6140 = vpow2.f32 %v1913_v37  ;;  %v1915_v36 = vmul.f32 1.442695, %v1410_v52  ;;  %v12040_v30 = vld [vmem:[%s6391_s30 + $0x7e8] sm:$0xff] }
 0x44c   : > { %v4106_v59 = vsel %vm11979_vm1, %v4103_v50, %v4100_v8  ;;  %v4120_v44 = vadd.f32 1.0, %v4119_v14  ;;  %v4122_v51 = vand.u32 2147483647, %v11944_v9  ;;  %v4134_v12 = vadd.f32 1.0, %v11994_v7 }
 0x44d   : > { %v6131_v28 = vpop.eup %6130  ;;  %4985 = vst [vmem:[%s6574_s17 + $0x780] sm:$0xff] %v4729_v58  ;;  %v4474_v16 = vmul.f32 0.9, %v4106_v59  ;;  %v4128_v3 = vmul.f32 -0.5, %v11973_v22  ;;  %6142 = vpow2.f32 %v1915_v36  ;;  %v1155_v41 = vand.u32 2147483647, %v11992_v40 }
 0x44e   : > { %v12002_v31 = vpop.eup %6132  ;;  %v4109_v56 = vmul.f32 0.6931472, %v6131_v28  ;;  %v891_v26 = vmax.f32 %v11804_v55, %v635_v24  ;;  %6144 = vlog2.f32 %v4134_v12  ;;  %v636_v35 = vmul.f32 0.1, %v11840_v54 }
 0x44f   : > { %v4730_v1 = vadd.f32 %v4474_v16, %v890_v17  ;;  %v4143_v19 = vadd.f32 1.0, %v12002_v31  ;;  %v12012_v38 = vmul.f32 0.1, %v11866_v29  ;;  %v4121_v63 = vmul.f32 %v11944_v9, %v4120_v44 }
 0x450   : > { %v4115_v53 = vsel %vm11987_vm2, %v4112_v47, %v4109_v56  ;;  %v1411_v55 = vsub.f32 0.0, %v1155_v41  ;;  %vm12022_vm3 = vcmp.lt.f32.partialorder %v4122_v51, 0.0004427343  ;;  %v4129_v25 = vadd.f32 1.0, %v4128_v3 }
 0x451   : > { %4986 = vst [vmem:[%s6574_s17 + $0x788] sm:$0xff] %v4730_v1  ;;  %v4475_v10 = vmul.f32 0.9, %v4115_v53  ;;  %6146 = vlog2.f32 %v4143_v19  ;;  %v4131_v23 = vand.u32 2147483647, %v11973_v22  ;;  %v4137_v39 = vmul.f32 -0.5, %v11994_v7 }
 0x452   : > { %v6135_v11 = vpop.eup %6134  ;;  %v1917_v42 = vmul.f32 1.442695, %v1411_v55  ;;  %v1156_v9 = vand.u32 2147483647, %v12015_v0  ;;  %v892_v48 = vmax.f32 %v11840_v54, %v636_v35  ;;  %v4146_v21 = vmul.f32 -0.5, %v12002_v31  ;;  %v12071_v19 = vld [vmem:[%s6391_s30 + $0x7f0] sm:$0xff] }
 0x453   : > { %v4731_v57 = vadd.f32 %v4475_v10, %v891_v26  ;;  %v4118_v33 = vmul.f32 0.6931472, %v6135_v11  ;;  %v1157_v27 = vand.u32 2147483647, %v12020_v62  ;;  %v893_v4 = vmax.f32 %v11866_v29, %v12012_v38  ;;  %v12079_v55 = vld [vmem:[%s6391_s30 + $0x7f8] sm:$0xff] }
 0x454   : > { %v12032_v2 = vpop.eup %6136  ;;  %6148 = vpow2.f32 %v1917_v42  ;;  %v1412_v6 = vsub.f32 0.0, %v1156_v9  ;;  %v638_v54 = vmul.f32 0.1, %v11888_v46  ;;  %v4138_v45 = vadd.f32 1.0, %v4137_v39 }
 0x455   : > { %4987 = vst [vmem:[%s6574_s17 + $0x790] sm:$0xff] %v4731_v57  ;;  %v4124_v50 = vsel %vm12022_vm3, %v4121_v63, %v4118_v33  ;;  %v4152_v43 = vadd.f32 1.0, %v12032_v2  ;;  %v4130_v60 = vmul.f32 %v11973_v22, %v4129_v25  ;;  %vm12045_vm4 = vcmp.lt.f32.partialorder %v4131_v23, 0.0004427343 }
 0x456   : > { %v4476_v34 = vmul.f32 0.9, %v4124_v50  ;;  %v1919_v14 = vmul.f32 1.442695, %v1412_v6  ;;  %v1413_v18 = vsub.f32 0.0, %v1157_v27  ;;  %v4147_v37 = vadd.f32 1.0, %v4146_v21 }
 0x457   : > { %v6139_v29 = vpop.eup %6138  ;;  %v4140_v8 = vand.u32 2147483647, %v11994_v7  ;;  %6150 = vlog2.f32 %v4152_v43  ;;  %v1158_v5 = vand.u32 2147483647, %v12040_v30  ;;  %v4139_v22 = vmul.f32 %v11994_v7, %v4138_v45 }
 0x458   : > { %v4732_v17 = vadd.f32 %v4476_v34, %v892_v48  ;;  %v12050_v52 = vpop.eup %6140  ;;  %v4127_v58 = vmul.f32 0.6931472, %v6139_v29  ;;  %6152 = vpow2.f32 %v1919_v14  ;;  %v1921_v24 = vmul.f32 1.442695, %v1413_v18 }
 0x459   : > { %v639_v59 = vmul.f32 0.1, %v11894_v49  ;;  %v4149_v47 = vand.u32 2147483647, %v12002_v31  ;;  %v4161_v36 = vadd.f32 1.0, %v12050_v52  ;;  %v4155_v44 = vmul.f32 -0.5, %v12032_v2 }
 0x45a   : > { %4988 = vst [vmem:[%s6574_s17 + $0x798] sm:$0xff] %v4732_v17  ;;  %v12058_v28 = vpop.eup %6142  ;;  %v4133_v16 = vsel %vm12045_vm4, %v4130_v60, %v4127_v58  ;;  %6154 = vpow2.f32 %v1921_v24  ;;  %v1414_v51 = vsub.f32 0.0, %v1158_v5  ;;  %vm12063_vm5 = vcmp.lt.f32.partialorder %v4140_v8, 0.0004427343 }
 0x45b   : > { %v6145_v12 = vpop.eup %6144  ;;  %v4477_v56 = vmul.f32 0.9, %v4133_v16  ;;  %6156 = vlog2.f32 %v4161_v36  ;;  %v894_v3 = vmax.f32 %v11888_v46, %v638_v54  ;;  %v4148_v1 = vmul.f32 %v12002_v31, %v4147_v37 }
 0x45c   : > { %v4136_v41 = vmul.f32 0.6931472, %v6145_v12  ;;  %v4170_v26 = vadd.f32 1.0, %v12058_v28  ;;  %v895_v38 = vmax.f32 %v11894_v49, %v639_v59  ;;  %vm12074_vm6 = vcmp.lt.f32.partialorder %v4149_v47, 0.0004427343 }
 0x45d   : > { %v4733_v35 = vadd.f32 %v4477_v56, %v893_v4  ;;  %v1923_v63 = vmul.f32 1.442695, %v1414_v51  ;;  %v4156_v31 = vadd.f32 1.0, %v4155_v44  ;;  %v4164_v25 = vmul.f32 -0.5, %v12050_v52 }
 0x45e   : > { %v6147_v53 = vpop.eup %6146  ;;  %v4142_v46 = vsel %vm12063_vm5, %v4139_v22, %v4136_v41  ;;  %6158 = vlog2.f32 %v4170_v26  ;;  %v1159_v49 = vand.u32 2147483647, %v12071_v19  ;;  %v4158_v39 = vand.u32 2147483647, %v12032_v2 }
 0x45f   : > { %v4145_v11 = vmul.f32 0.6931472, %v6147_v53  ;;  %4989 = vst [vmem:[%s6574_s17 + $0x7a0] sm:$0xff] %v4733_v35  ;;  %v4478_v13 = vmul.f32 0.9, %v4142_v46  ;;  %6160 = vpow2.f32 %v1923_v63  ;;  %v4157_v27 = vmul.f32 %v12032_v2, %v4156_v31 }
 0x460   : > { %v1160_v57 = vand.u32 2147483647, %v12079_v55  ;;  %v1415_v48 = vsub.f32 0.0, %v1159_v49  ;;  %v640_v21 = vmul.f32 0.1, %v11931_v20  ;;  %v4173_v50 = vmul.f32 -0.5, %v12058_v28 }
 0x461   : > { %v4151_v23 = vsel %vm12074_vm6, %v4148_v1, %v4145_v11  ;;  %v12090_v33 = vpop.eup %6148  ;;  %v4734_v42 = vadd.f32 %v4478_v13, %v894_v3  ;;  %v4165_v34 = vadd.f32 1.0, %v4164_v25  ;;  %vm12097_vm7 = vcmp.lt.f32.partialorder %v4158_v39, 0.0004427343 }
 0x462   : > { %v4479_v9 = vmul.f32 0.9, %v4151_v23  ;;  %v4179_v4 = vadd.f32 1.0, %v12090_v33  ;;  %v1925_v54 = vmul.f32 1.442695, %v1415_v48  ;;  %v1416_v45 = vsub.f32 0.0, %v1160_v57 }
 0x463   : > { %4990 = vst [vmem:[%s6574_s17 + $0x7a8] sm:$0xff] %v4734_v42  ;;  %v4167_v61 = vand.u32 2147483647, %v12050_v52  ;;  %v896_v29 = vmax.f32 %v11931_v20, %v640_v21  ;;  %v641_v17 = vmul.f32 0.1, %v11936_v15  ;;  %v4174_v8 = vadd.f32 1.0, %v4173_v50 }
 0x464   : > { %v4735_v6 = vadd.f32 %v4479_v9, %v895_v38  ;;  %v6151_v43 = vpop.eup %6150  ;;  %6162 = vlog2.f32 %v4179_v4  ;;  %v1927_v18 = vmul.f32 1.442695, %v1416_v45  ;;  %v4166_v5 = vmul.f32 %v12050_v52, %v4165_v34 }
 0x465   : > { %v12102_v14 = vpop.eup %6152  ;;  %v4154_v2 = vmul.f32 0.6931472, %v6151_v43  ;;  %6164 = vpow2.f32 %v1925_v54  ;;  %v4176_v22 = vand.u32 2147483647, %v12058_v28  ;;  %vm4168_vm8 = vcmp.lt.f32.partialorder %v4167_v61, 0.0004427343 }
 0x466   : > { %4991 = vst [vmem:[%s6574_s17 + $0x7b0] sm:$0xff] %v4735_v6  ;;  %v4188_v37 = vadd.f32 1.0, %v12102_v14  ;;  %6166 = vpow2.f32 %v1927_v18  ;;  %v4182_v20 = vmul.f32 -0.5, %v12090_v33  ;;  %v642_v16 = vmul.f32 0.1, %v11966_v32 }
 0x467   : > { %v12108_v58 = vpop.eup %6154  ;;  %v4160_v24 = vsel %vm12097_vm7, %v4157_v27, %v4154_v2  ;;  %v897_v12 = vmax.f32 %v11936_v15, %v641_v17  ;;  %v4175_v52 = vmul.f32 %v12058_v28, %v4174_v8  ;;  %vm4177_vm9 = vcmp.lt.f32.partialorder %v4176_v22, 0.0004427343 }
 0x468   : > { %v6157_v59 = vpop.eup %6156  ;;  %v4480_v47 = vmul.f32 0.9, %v4160_v24  ;;  %6168 = vlog2.f32 %v4188_v37  ;;  %v4197_v44 = vadd.f32 1.0, %v12108_v58  ;;  %v4183_v26 = vadd.f32 1.0, %v4182_v20 }
 0x469   : > { %v4163_v36 = vmul.f32 0.6931472, %v6157_v59  ;;  %v4191_v53 = vmul.f32 -0.5, %v12102_v14  ;;  %v898_v35 = vmax.f32 %v11966_v32, %v642_v16  ;;  %v4185_v38 = vand.u32 2147483647, %v12090_v33 }
 0x46a   : > { %v4736_v51 = vadd.f32 %v4480_v47, %v896_v29  ;;  %6170 = vlog2.f32 %v4197_v44  ;;  %v643_v63 = vmul.f32 0.1, %v11992_v40  ;;  %v4200_v11 = vmul.f32 -0.5, %v12108_v58 }
 0x46b   : > { %v6159_v56 = vpop.eup %6158  ;;  %v4169_v7 = vsel %vm4168_vm8, %v4166_v5, %v4163_v36  ;;  %v4184_v31 = vmul.f32 %v12090_v33, %v4183_v26  ;;  %v4192_v13 = vadd.f32 1.0, %v4191_v53  ;;  %vm4186_vm10 = vcmp.lt.f32.partialorder %v4185_v38, 0.0004427343 }
 0x46c   : > { %v6161_v3 = vpop.eup %6160  ;;  %4992 = vst [vmem:[%s6574_s17 + $0x7b8] sm:$0xff] %v4736_v51  ;;  %v4481_v41 = vmul.f32 0.9, %v4169_v7  ;;  %v4172_v1 = vmul.f32 0.6931472, %v6159_v56  ;;  %v899_v39 = vmax.f32 %v11992_v40, %v643_v63  ;;  %v4201_v9 = vadd.f32 1.0, %v4200_v11 }
 0x46d   : > { %v4206_v10 = vadd.f32 1.0, %v6161_v3  ;;  %v4194_v32 = vand.u32 2147483647, %v12102_v14  ;;  %v644_v42 = vmul.f32 0.1, %v12015_v0  ;;  %v4209_v48 = vmul.f32 -0.5, %v6161_v3 }
 0x46e   : > { %v4737_v15 = vadd.f32 %v4481_v41, %v897_v12  ;;  %v4178_v28 = vsel %vm4177_vm9, %v4175_v52, %v4172_v1  ;;  %v4193_v33 = vmul.f32 %v12102_v14, %v4192_v13  ;;  %v4203_v4 = vand.u32 2147483647, %v12108_v58 }
 0x46f   : > { %v4482_v46 = vmul.f32 0.9, %v4178_v28  ;;  %6172 = vlog2.f32 %v4206_v10  ;;  %vm4195_vm11 = vcmp.lt.f32.partialorder %v4194_v32, 0.0004427343  ;;  %v645_v40 = vmul.f32 0.1, %v12020_v62 }
 0x470   : > { %4993 = vst [vmem:[%s6574_s17 + $0x7c0] sm:$0xff] %v4737_v15  ;;  %v900_v60 = vmax.f32 %v12015_v0, %v644_v42  ;;  %v4202_v61 = vmul.f32 %v12108_v58, %v4201_v9  ;;  %v4210_v2 = vadd.f32 1.0, %v4209_v48  ;;  %vm4204_vm12 = vcmp.lt.f32.partialorder %v4203_v4, 0.0004427343 }
 0x471   : > { %v6163_v25 = vpop.eup %6162  ;;  %v4738_v49 = vadd.f32 %v4482_v46, %v898_v35  ;;  %v4212_v14 = vand.u32 2147483647, %v6161_v3  ;;  %v901_v24 = vmax.f32 %v12020_v62, %v645_v40  ;;  %v646_v5 = vmul.f32 0.1, %v12040_v30 }
 0x472   : > { %v6165_v23 = vpop.eup %6164  ;;  %v4181_v57 = vmul.f32 0.6931472, %v6163_v25  ;;  %v4211_v59 = vmul.f32 %v6161_v3, %v4210_v2  ;;  %v647_v56 = vmul.f32 0.1, %v12071_v19  ;;  %v648_v35 = vmul.f32 0.1, %v12079_v55 }
 0x473   : > { %4994 = vst [vmem:[%s6574_s17 + $0x7c8] sm:$0xff] %v4738_v49  ;;  %v4215_v21 = vadd.f32 1.0, %v6165_v23  ;;  %v6167_v27 = vpop.eup %6166  ;;  %v4218_v37 = vmul.f32 -0.5, %v6165_v23  ;;  %vm4213_vm13 = vcmp.lt.f32.partialorder %v4212_v14, 0.0004427343  ;;  %v902_v51 = vmax.f32 %v12040_v30, %v646_v5 }
 0x474   : > { %v4187_v50 = vsel %vm4186_vm10, %v4184_v31, %v4181_v57  ;;  %v4224_v45 = vadd.f32 1.0, %v6167_v27  ;;  %v4227_v20 = vmul.f32 -0.5, %v6167_v27  ;;  %v4221_v12 = vand.u32 2147483647, %v6165_v23 }
 0x475   : > { %v6169_v6 = vpop.eup %6168  ;;  %v4483_v34 = vmul.f32 0.9, %v4187_v50  ;;  %6174 = vlog2.f32 %v4215_v21  ;;  %v4219_v16 = vadd.f32 1.0, %v4218_v37  ;;  %v4230_v3 = vand.u32 2147483647, %v6167_v27 }
 0x476   : > { %v4190_v54 = vmul.f32 0.6931472, %v6169_v6  ;;  %6176 = vlog2.f32 %v4224_v45  ;;  %v4228_v7 = vadd.f32 1.0, %v4227_v20  ;;  %vm4222_vm14 = vcmp.lt.f32.partialorder %v4221_v12, 0.0004427343 }
 0x477   : > { %v4739_v43 = vadd.f32 %v4483_v34, %v899_v39  ;;  %v6171_v18 = vpop.eup %6170  ;;  %v4220_v41 = vmul.f32 %v6165_v23, %v4219_v16  ;;  %v903_v30 = vmax.f32 %v12071_v19, %v647_v56  ;;  %vm4231_vm15 = vcmp.lt.f32.partialorder %v4230_v3, 0.0004427343 }
 0x478   : > { %v4196_v29 = vsel %vm4195_vm11, %v4193_v33, %v4190_v54  ;;  %v4199_v8 = vmul.f32 0.6931472, %v6171_v18  ;;  %v4229_v38 = vmul.f32 %v6167_v27, %v4228_v7  ;;  %v904_v46 = vmax.f32 %v12079_v55, %v648_v35 }
 0x479   : > { %4995 = vst [vmem:[%s6574_s17 + $0x7d0] sm:$0xff] %v4739_v43  ;;  %v4484_v17 = vmul.f32 0.9, %v4196_v29 }
 0x47a   : > { %v4205_v0 = vsel %vm4204_vm12, %v4202_v61, %v4199_v8 }
 0x47b   : > { %v4740_v22 = vadd.f32 %v4484_v17, %v900_v60  ;;  %v4485_v47 = vmul.f32 0.9, %v4205_v0 }
 0x47c   : > { %v6173_v58 = vpop.eup %6172 }
 0x47d   : > { %4996 = vst [vmem:[%s6574_s17 + $0x7d8] sm:$0xff] %v4740_v22  ;;  %v4208_v36 = vmul.f32 0.6931472, %v6173_v58  ;;  %v4741_v44 = vadd.f32 %v4485_v47, %v901_v24 }
 0x47f   : > { %v4214_v52 = vsel %vm4213_vm13, %v4211_v59, %v4208_v36  ;;  %4997 = vst [vmem:[%s6574_s17 + $0x7e0] sm:$0xff] %v4741_v44 }
 0x480   : > { %v4486_v62 = vmul.f32 0.9, %v4214_v52 }
 0x482   : > { %v6175_v1 = vpop.eup %6174  ;;  %v4742_v26 = vadd.f32 %v4486_v62, %v902_v51 }
 0x483   : > { %v4217_v53 = vmul.f32 0.6931472, %v6175_v1  ;;  %v6177_v10 = vpop.eup %6176 }
 0x484   : > { %4998 = vst [vmem:[%s6574_s17 + $0x7e8] sm:$0xff] %v4742_v26  ;;  %v4226_v63 = vmul.f32 0.6931472, %v6177_v10 }
 0x485   : > { %v4223_v15 = vsel %vm4222_vm14, %v4220_v41, %v4217_v53 }
 0x486   : > { %v4487_v28 = vmul.f32 0.9, %v4223_v15  ;;  %v4232_v31 = vsel %vm4231_vm15, %v4229_v38, %v4226_v63 }
 0x487   : > { %v4488_v13 = vmul.f32 0.9, %v4232_v31 }
 0x488   : > { %v4743_v11 = vadd.f32 %v4487_v28, %v903_v30 }
 0x489   : > { %v4744_v19 = vadd.f32 %v4488_v13, %v904_v46 }
 0x48a   : > { %4999 = vst [vmem:[%s6574_s17 + $0x7f0] sm:$0xff] %v4743_v11 }
 0x48b   : > { %5000 = vst [vmem:[%s6574_s17 + $0x7f8] sm:$0xff] %v4744_v19 }
 0x48c   : > { %6219 = shalt.err (!%p6216_p10)
}
 0x48d   : > { %s6220_s13 = scalar_lea.hbm %s12153_s2, 32768  ;;  %s6224_s20 = scalar_lea.hbm %s12200_s1, 65536 }
 0x48e   : > { %p6221_p0 = scmp.ne.s32.totalorder %s12153_s2, %s6220_s13  ;;  %p6225_p1 = scmp.lt.s32.totalorder %s12153_s2, %s12200_s1 }
 0x48f   : > { %p6226_p3 = scmp.lt.s32.totalorder %s6224_s20, %s6220_s13 }
 0x490   : > { %p6222_p2 = pnand %p6221_p0, %p12715_p12 }
 0x491   : > { %p6227_p6 = por %p6226_p3, %p6225_p1 }
 0x492   : > { %p6223_p9 = pneg %p6222_p2 }
 0x494   : > { %p6228_p11 = pnand %p6227_p6, %p6223_p9 }
 0x496   : > { %6231 = shalt.err (!%p6228_p11)
}
 0x497   : > { %s6276_s24 = smov 128   ;;  %s6277_s26 = smov 8  }
 0x498   : > { %5106 = dma.vmem_to_hbm [thread:$0]  (%p12715_p12), %s12155_s27, 32768, %s12153_s2, %s5002_s3, %s6276_s24, %s6276_s24, %s6277_s26  }
 0x499 PF: > { %s5030_s30 = sand.u32 1, %s6258_s6   ;;  %p12716_p13 = scmp.ne.s32.totalorder %s12206_s19, 0 }
 0x49a   : > { %p12717_p4 = scmp.ge.s32.totalorder %s6270_s9, 2  ;;  %s5031_s17 = scalar_lea.sflag [#allocation4], %s5030_s30 }
 0x49c   : > { %p5113_p5 = pnand %p12717_p4, %p12716_p13 }
 0x49e   : > { %p5114_p7 = pneg %p5113_p5 }
 0x4a0   : > { %6253 = dma.done.wait (%p5114_p7), %s5031_s17, 32768  }
 0x4a1   : > { %6255 = vsyncadd (%p5114_p7), %s5031_s17, 4294934528  ;;  %p14_p8 = scmp.ge.s32.totalorder %s6313_s12, 4   ;;  %s12718_s6 = smov %s6262_s7 }
 0x4a2   : > { %s12719_s7 = smov %s6266_s8  ;;  %s12720_s8 = smov %s6325_s15 }
 0x4a3   : > { %s12721_s9 = smov %s6313_s12  ;;  %16 = sbr.rel (!%p14_p8) target bundleno = 5 (0x5), region = 69 }
 0x4a8   :  { %5036 = vsyncpa [#allocation3], 1 }
 0x4a9   :  { %5038 = vsyncpa [#allocation3 + $0x1], 1 }
 0x4aa   :  { %5039 = vsyncpa [#allocation4], 1 }
 0x4ab   :  { %5041 = vsyncpa [#allocation4 + $0x1], 1 }

</bundles_post_ra>
